<compile_context>
chip_gen: v6e
topology: v6e:2x2x1
jax: 0.10.0
libtpu: 0.0.40
codegen_flags: <defaults>
</compile_context>

<pallas_src>
import numpy as np
import jax
import jax.numpy as jnp
from jax.experimental import pallas as pl
from jax.experimental.pallas import tpu as pltpu

LEAKY_SLOPE = 0.01
BN_EPS = 1e-5


# ---------------------------------------------------------------------------
# Host-side operator construction
# ---------------------------------------------------------------------------
def _cubic_aa(x, a=-0.5):
    x = abs(float(x))
    if x < 1.0:
        return ((a + 2.0) * x - (a + 3.0)) * x * x + 1.0
    if x < 2.0:
        return (((x - 5.0) * x + 8.0) * x - 4.0) * a
    return 0.0


def bicubic_aa_matrix(in_size, out_size):
    """Matrix of F.interpolate(mode='bicubic', antialias=True, align_corners=False)."""
    M = np.zeros((out_size, in_size), dtype=np.float64)
    scale = in_size / out_size
    support = 2.0 * scale if scale > 1.0 else 2.0
    invscale = 1.0 / scale if scale > 1.0 else 1.0
    for i in range(out_size):
        center = scale * (i + 0.5)
        xmin = max(int(center - support + 0.5), 0)
        xmax = min(int(center + support + 0.5), in_size)
        w = np.array([_cubic_aa((j - center + 0.5) * invscale)
                      for j in range(xmin, xmax)])
        M[i, xmin:xmax] = w / w.sum()
    return M.astype(np.float32)


def shift_matrices(S):
    """(9, S*S, S*S) operators M[k] with (x_flat @ M[k])[h*S+w] = x[h+kh-1, w+kw-1]
    (zero outside the image), k = kh*3 + kw.  Realizes the 3x3 taps as matmuls."""
    mats = np.zeros((9, S * S, S * S), dtype=np.float32)
    for k in range(9):
        dh, dw = k // 3 - 1, k % 3 - 1
        for h in range(S):
            for w in range(S):
                hs, ws = h + dh, w + dw
                if 0 <= hs < S and 0 <= ws < S:
                    mats[k, hs * S + ws, h * S + w] = 1.0
    return mats


# ---------------------------------------------------------------------------
# Fused ResNet kernel: one ResidualBlock per grid step
# ---------------------------------------------------------------------------
def _resnet_kernel(x_ref, w1_ref, w2_ref, prm_ref, shift_ref, kupT_ref,
                   kdnT_ref, out_ref):
    """Grid axis = residual-block index. The activation is carried across grid
    steps inside out_ref (constant output block index => VMEM-resident)."""
    N, C, S2 = out_ref.shape
    blk = pl.program_id(0)

    @pl.when(blk == 0)
    def _init():
        out_ref[...] = x_ref[...]

    inv_cnt = 1.0 / float(N * S2)

    def conv3x3_bn(z_list, w_ref_b, bias, gamma, beta):
        """3x3 conv (pad=1) + train-mode BatchNorm2d on N values of (C, S2)."""
        ys = []
        ssum = jnp.zeros((C, 1), jnp.float32)
        ssq = jnp.zeros((C, 1), jnp.float32)
        for n in range(N):
            zn = z_list[n]                                        # (C, S2)
            acc = jnp.zeros((C, S2), jnp.float32) + bias
            for k in range(9):
                shifted = jnp.dot(zn, shift_ref[k],               # spatial tap
                                  preferred_element_type=jnp.float32)
                acc = acc + jnp.dot(w_ref_b[0, k], shifted,       # channel mix
                                    preferred_element_type=jnp.float32)
            ys.append(acc)
            ssum = ssum + jnp.sum(acc, axis=1, keepdims=True)
            ssq = ssq + jnp.sum(acc * acc, axis=1, keepdims=True)
        mean = ssum * inv_cnt                                     # (C, 1)
        var = ssq * inv_cnt - mean * mean                         # biased var
        scale = jax.lax.rsqrt(var + BN_EPS) * gamma
        return [(y - mean) * scale + beta for y in ys]

    b1, g1, be1 = prm_ref[0, 0], prm_ref[0, 1], prm_ref[0, 2]     # (C, 1) each
    b2, g2, be2 = prm_ref[0, 3], prm_ref[0, 4], prm_ref[0, 5]

    x_list = [out_ref[n] for n in range(N)]                       # carried act

    h_list = conv3x3_bn(x_list, w1_ref, b1, g1, be1)

    # CNO_LReLu: bicubic-AA upsample S->2S, LeakyReLU(0.01), bicubic-AA down.
    # Batched over all N*C planes via the Kronecker resize operators.
    h_all = jnp.concatenate(h_list, axis=0)                       # (N*C, S2)
    u = jnp.dot(h_all, kupT_ref[...], preferred_element_type=jnp.float32)
    u = jnp.where(u >= 0.0, u, LEAKY_SLOPE * u)
    d = jnp.dot(u, kdnT_ref[...], preferred_element_type=jnp.float32)
    a_list = [d[n * C:(n + 1) * C, :] for n in range(N)]

    y_list = conv3x3_bn(a_list, w2_ref, b2, g2, be2)

    for n in range(N):
        out_ref[n] = x_list[n] + y_list[n]                        # residual


# ---------------------------------------------------------------------------
# Wrapper
# ---------------------------------------------------------------------------
@jax.jit
def resnet_forward(x, w1_all, w2_all, prm_all, shifts, kupT, kdnT):
    N, C, S, _ = x.shape
    S2 = S * S
    NB = w1_all.shape[0]
    x2 = x.reshape(N, C, S2)                                      # lane-dense
    out = pl.pallas_call(
        _resnet_kernel,
        out_shape=jax.ShapeDtypeStruct((N, C, S2), jnp.float32),
        grid=(NB,),
        in_specs=[
            pl.BlockSpec((N, C, S2), lambda i: (0, 0, 0)),        # x (DMA'd once)
            pl.BlockSpec((1, 9, C, C), lambda i: (i, 0, 0, 0)),   # conv1 weights
            pl.BlockSpec((1, 9, C, C), lambda i: (i, 0, 0, 0)),   # conv2 weights
            pl.BlockSpec((1, 6, C, 1), lambda i: (i, 0, 0, 0)),   # bias/BN params
            pl.BlockSpec((9, S2, S2), lambda i: (0, 0, 0)),       # 3x3 tap shifts
            pl.BlockSpec((S2, 4 * S2), lambda i: (0, 0)),         # up-resize op
            pl.BlockSpec((4 * S2, S2), lambda i: (0, 0)),         # down-resize op
        ],
        out_specs=pl.BlockSpec((N, C, S2), lambda i: (0, 0, 0)),
        compiler_params=pltpu.CompilerParams(
            dimension_semantics=("arbitrary",),   # sequential carry over blocks
            vmem_limit_bytes=48 * 1024 * 1024),
    )(x2, w1_all, w2_all, prm_all, shifts, kupT, kdnT)
    return out.reshape(N, C, S, S)


# ---------------------------------------------------------------------------
# Pure-JAX reference (same math) for validation
# ---------------------------------------------------------------------------
def reference_forward(x, blocks, wup, wdn):
    P = jax.lax.Precision.HIGHEST

    def conv(z, w, b):
        y = jax.lax.conv_general_dilated(
            z, w, (1, 1), ((1, 1), (1, 1)),
            dimension_numbers=("NCHW", "OIHW", "NCHW"), precision=P)
        return y + b[None, :, None, None]

    def bn(z, g, be):
        m = z.mean(axis=(0, 2, 3), keepdims=True)
        v = ((z - m) ** 2).mean(axis=(0, 2, 3), keepdims=True)
        return (z - m) / jnp.sqrt(v + BN_EPS) * g[None, :, None, None] \
            + be[None, :, None, None]

    def act(z):
        u = jnp.einsum("ah,nchw->ncaw", wup, z, precision=P)
        u = jnp.einsum("bw,ncaw->ncab", wup, u, precision=P)
        u = jnp.where(u >= 0, u, LEAKY_SLOPE * u)
        d = jnp.einsum("ha,ncab->nchb", wdn, u, precision=P)
        d = jnp.einsum("wb,nchb->nchw", wdn, d, precision=P)
        return d

    for p in blocks:
        h = bn(conv(x, p["w1"], p["b1"]), p["g1"], p["be1"])
        h = act(h)
        x = x + bn(conv(h, p["w2"], p["b2"]), p["g2"], p["be2"])
    return x


# ---------------------------------------------------------------------------
# Parameter construction / packing
# ---------------------------------------------------------------------------
def init_block_params(key, C):
    ks = jax.random.split(key, 8)
    scale = 1.0 / np.sqrt(C * 9)

    def mk(kw, kb, kg, kbe):
        w = jax.random.uniform(kw, (C, C, 3, 3), jnp.float32, -scale, scale)
        b = jax.random.uniform(kb, (C,), jnp.float32, -scale, scale)
        g = 1.0 + 0.1 * jax.random.normal(kg, (C,), jnp.float32)
        be = 0.1 * jax.random.normal(kbe, (C,), jnp.float32)
        return w, b, g, be

    w1, b1, g1, be1 = mk(*ks[:4])
    w2, b2, g2, be2 = mk(*ks[4:])
    return {"w1": w1, "b1": b1, "g1": g1, "be1": be1,
            "w2": w2, "b2": b2, "g2": g2, "be2": be2}


def pack_blocks(blocks, C):
    w1_all, w2_all, prm_all = [], [], []
    for p in blocks:
        # W[k, co, ci] = w[co, ci, kh, kw], k = kh*3 + kw
        w1_all.append(jnp.transpose(p["w1"], (2, 3, 0, 1)).reshape(9, C, C))
        w2_all.append(jnp.transpose(p["w2"], (2, 3, 0, 1)).reshape(9, C, C))
        prm_all.append(jnp.stack([p["b1"], p["g1"], p["be1"],
                                  p["b2"], p["g2"], p["be2"]]).reshape(6, C, 1))
    return jnp.stack(w1_all), jnp.stack(w2_all), jnp.stack(prm_all)


# ---------------------------------------------------------------------------
if __name__ == "__main__":
    N, C, S, NUM_BLOCKS = 2, 4, 16, 2

    key = jax.random.PRNGKey(0)
    key, kx = jax.random.split(key)
    x = jax.random.normal(kx, (N, C, S, S), jnp.float32)

    blocks = []
    for _ in range(NUM_BLOCKS):
        key, kb = jax.random.split(key)
        blocks.append(init_block_params(kb, C))
    blocks = tuple(blocks)

    w1_all, w2_all, prm_all = pack_blocks(blocks, C)

    wup_np = bicubic_aa_matrix(S, 2 * S)                  # (2S, S)
    wdn_np = bicubic_aa_matrix(2 * S, S)                  # (S, 2S)
    kupT = jnp.asarray(np.kron(wup_np, wup_np).T)         # (S*S, 4*S*S)
    kdnT = jnp.asarray(np.kron(wdn_np, wdn_np).T)         # (4*S*S, S*S)
    shifts = jnp.asarray(shift_matrices(S))               # (9, S*S, S*S)

    out = resnet_forward(x, w1_all, w2_all, prm_all, shifts, kupT, kdnT)
    out = jax.block_until_ready(out)

    ref = reference_forward(x, blocks, jnp.asarray(wup_np), jnp.asarray(wdn_np))
    np.testing.assert_allclose(np.asarray(out), np.asarray(ref),
                               rtol=2e-2, atol=2e-2)
    assert out.shape == (N, C, S, S) and np.isfinite(np.asarray(out)).all()

    print("KERNEL_OK")
</pallas_src>

<mosaic_0001>
module attributes {stable_mosaic.version = 11 : i64} {
  func.func @_resnet_kernel(%arg0: i32, %arg1: memref<2x4x256xf32, #tpu.memory_space<vmem>>, %arg2: memref<1x9x4x4xf32, #tpu.memory_space<vmem>>, %arg3: memref<1x9x4x4xf32, #tpu.memory_space<vmem>>, %arg4: memref<1x6x4x1xf32, #tpu.memory_space<vmem>>, %arg5: memref<9x256x256xf32, #tpu.memory_space<vmem>>, %arg6: memref<256x1024xf32, #tpu.memory_space<vmem>>, %arg7: memref<1024x256xf32, #tpu.memory_space<vmem>>, %arg8: memref<2x4x256xf32, #tpu.memory_space<vmem>>) attributes {dimension_semantics = [#tpu.dimension_semantics<arbitrary>], iteration_bounds = array<i64: 2>, scalar_prefetch = 0 : i64, scratch_operands = 0 : i64, tpu.core_type = #tpu.core_type<tc>, window_params = [{pipeline_mode = #tpu.pipeline_mode<synchronous>, transform_indices = @transform_0, window_bounds = array<i64: 2, 4, 256>}, {transform_indices = @transform_1, window_bounds = array<i64: 1, 9, 4, 4>}, {transform_indices = @transform_2, window_bounds = array<i64: 1, 9, 4, 4>}, {transform_indices = @transform_3, window_bounds = array<i64: 1, 6, 4, 1>}, {pipeline_mode = #tpu.pipeline_mode<synchronous>, transform_indices = @transform_4, window_bounds = array<i64: 9, 256, 256>}, {pipeline_mode = #tpu.pipeline_mode<synchronous>, transform_indices = @transform_5, window_bounds = array<i64: 256, 1024>}, {pipeline_mode = #tpu.pipeline_mode<synchronous>, transform_indices = @transform_6, window_bounds = array<i64: 1024, 256>}, {pipeline_mode = #tpu.pipeline_mode<synchronous>, transform_indices = @transform_7, window_bounds = array<i64: 2, 4, 256>}]} {
    %c0_i32 = arith.constant 0 : i32
    %0 = arith.cmpi eq, %arg0, %c0_i32 : i32
    %1 = arith.extui %0 : i1 to i32
    %c0_i32_0 = arith.constant 0 : i32
    %2 = arith.cmpi ne, %1, %c0_i32_0 : i32
    scf.if %2 {
      %c0_381 = arith.constant 0 : index
      %c0_382 = arith.constant 0 : index
      %c0_383 = arith.constant 0 : index
      %379 = vector.load %arg1[%c0_381, %c0_382, %c0_383] : memref<2x4x256xf32, #tpu.memory_space<vmem>>, vector<2x4x256xf32>
      %c0_384 = arith.constant 0 : index
      %c0_385 = arith.constant 0 : index
      %c0_386 = arith.constant 0 : index
      %380 = vector.load %arg8[%c0_384, %c0_385, %c0_386] : memref<2x4x256xf32, #tpu.memory_space<vmem>>, vector<2x4x256xf32>
      tpu.vector_store %arg8[%c0_384, %c0_385, %c0_386], %379 {strides = array<i32>} : memref<2x4x256xf32, #tpu.memory_space<vmem>>, vector<2x4x256xf32>,
    } else {
    }
    %c0 = arith.constant 0 : index
    %c0_1 = arith.constant 0 : index
    %c0_2 = arith.constant 0 : index
    %c0_3 = arith.constant 0 : index
    %3 = vector.load %arg4[%c0, %c0_1, %c0_2, %c0_3] : memref<1x6x4x1xf32, #tpu.memory_space<vmem>>, vector<1x1x4x1xf32>
    %4 = vector.shape_cast %3 : vector<1x1x4x1xf32> to vector<4x1xf32>
    %c0_4 = arith.constant 0 : index
    %c1 = arith.constant 1 : index
    %c0_5 = arith.constant 0 : index
    %c0_6 = arith.constant 0 : index
    %5 = vector.load %arg4[%c0_4, %c1, %c0_5, %c0_6] : memref<1x6x4x1xf32, #tpu.memory_space<vmem>>, vector<1x1x4x1xf32>
    %6 = vector.shape_cast %5 : vector<1x1x4x1xf32> to vector<4x1xf32>
    %c0_7 = arith.constant 0 : index
    %c2 = arith.constant 2 : index
    %c0_8 = arith.constant 0 : index
    %c0_9 = arith.constant 0 : index
    %7 = vector.load %arg4[%c0_7, %c2, %c0_8, %c0_9] : memref<1x6x4x1xf32, #tpu.memory_space<vmem>>, vector<1x1x4x1xf32>
    %8 = vector.shape_cast %7 : vector<1x1x4x1xf32> to vector<4x1xf32>
    %c0_10 = arith.constant 0 : index
    %c3 = arith.constant 3 : index
    %c0_11 = arith.constant 0 : index
    %c0_12 = arith.constant 0 : index
    %9 = vector.load %arg4[%c0_10, %c3, %c0_11, %c0_12] : memref<1x6x4x1xf32, #tpu.memory_space<vmem>>, vector<1x1x4x1xf32>
    %10 = vector.shape_cast %9 : vector<1x1x4x1xf32> to vector<4x1xf32>
    %c0_13 = arith.constant 0 : index
    %c4 = arith.constant 4 : index
    %c0_14 = arith.constant 0 : index
    %c0_15 = arith.constant 0 : index
    %11 = vector.load %arg4[%c0_13, %c4, %c0_14, %c0_15] : memref<1x6x4x1xf32, #tpu.memory_space<vmem>>, vector<1x1x4x1xf32>
    %12 = vector.shape_cast %11 : vector<1x1x4x1xf32> to vector<4x1xf32>
    %c0_16 = arith.constant 0 : index
    %c5 = arith.constant 5 : index
    %c0_17 = arith.constant 0 : index
    %c0_18 = arith.constant 0 : index
    %13 = vector.load %arg4[%c0_16, %c5, %c0_17, %c0_18] : memref<1x6x4x1xf32, #tpu.memory_space<vmem>>, vector<1x1x4x1xf32>
    %14 = vector.shape_cast %13 : vector<1x1x4x1xf32> to vector<4x1xf32>
    %c0_19 = arith.constant 0 : index
    %c0_20 = arith.constant 0 : index
    %c0_21 = arith.constant 0 : index
    %15 = vector.load %arg8[%c0_19, %c0_20, %c0_21] : memref<2x4x256xf32, #tpu.memory_space<vmem>>, vector<1x4x256xf32>
    %16 = vector.shape_cast %15 : vector<1x4x256xf32> to vector<4x256xf32>
    %c1_22 = arith.constant 1 : index
    %c0_23 = arith.constant 0 : index
    %c0_24 = arith.constant 0 : index
    %17 = vector.load %arg8[%c1_22, %c0_23, %c0_24] : memref<2x4x256xf32, #tpu.memory_space<vmem>>, vector<1x4x256xf32>
    %18 = vector.shape_cast %17 : vector<1x4x256xf32> to vector<4x256xf32>
    %cst = arith.constant 0.000000e+00 : f32
    %19 = vector.broadcast %cst : f32 to vector<4x1xf32>
    %cst_25 = arith.constant 0.000000e+00 : f32
    %20 = vector.broadcast %cst_25 : f32 to vector<4x1xf32>
    %cst_26 = arith.constant 0.000000e+00 : f32
    %21 = vector.broadcast %cst_26 : f32 to vector<4x256xf32>
    %22 = vector.broadcast %4 : vector<4x1xf32> to vector<4x256xf32>
    %23 = arith.addf %21, %22 : vector<4x256xf32>
    %c0_27 = arith.constant 0 : index
    %c0_28 = arith.constant 0 : index
    %c0_29 = arith.constant 0 : index
    %24 = vector.load %arg5[%c0_27, %c0_28, %c0_29] : memref<9x256x256xf32, #tpu.memory_space<vmem>>, vector<1x256x256xf32>
    %25 = vector.shape_cast %24 : vector<1x256x256xf32> to vector<256x256xf32>
    %cst_30 = arith.constant dense<0.000000e+00> : vector<4x256xf32>
    %26 = tpu.matmul %16, %25, %cst_30 {dimension_numbers = #tpu.dot_dimension_numbers<[1], [0], [0], [1], [0, 0, 1, 1], [], []>} : vector<4x256xf32>, vector<256x256xf32>, vector<4x256xf32> -> vector<4x256xf32>
    %c0_31 = arith.constant 0 : index
    %c0_32 = arith.constant 0 : index
    %c0_33 = arith.constant 0 : index
    %c0_34 = arith.constant 0 : index
    %27 = vector.load %arg2[%c0_31, %c0_32, %c0_33, %c0_34] : memref<1x9x4x4xf32, #tpu.memory_space<vmem>>, vector<1x1x4x4xf32>
    %28 = vector.shape_cast %27 : vector<1x1x4x4xf32> to vector<4x4xf32>
    %cst_35 = arith.constant dense<0.000000e+00> : vector<4x256xf32>
    %29 = tpu.matmul %28, %26, %cst_35 {dimension_numbers = #tpu.dot_dimension_numbers<[1], [0], [0], [1], [0, 0, 1, 1], [], []>} : vector<4x4xf32>, vector<4x256xf32>, vector<4x256xf32> -> vector<4x256xf32>
    %30 = arith.addf %23, %29 : vector<4x256xf32>
    %c1_36 = arith.constant 1 : index
    %c0_37 = arith.constant 0 : index
    %c0_38 = arith.constant 0 : index
    %31 = vector.load %arg5[%c1_36, %c0_37, %c0_38] : memref<9x256x256xf32, #tpu.memory_space<vmem>>, vector<1x256x256xf32>
    %32 = vector.shape_cast %31 : vector<1x256x256xf32> to vector<256x256xf32>
    %cst_39 = arith.constant dense<0.000000e+00> : vector<4x256xf32>
    %33 = tpu.matmul %16, %32, %cst_39 {dimension_numbers = #tpu.dot_dimension_numbers<[1], [0], [0], [1], [0, 0, 1, 1], [], []>} : vector<4x256xf32>, vector<256x256xf32>, vector<4x256xf32> -> vector<4x256xf32>
    %c0_40 = arith.constant 0 : index
    %c1_41 = arith.constant 1 : index
    %c0_42 = arith.constant 0 : index
    %c0_43 = arith.constant 0 : index
    %34 = vector.load %arg2[%c0_40, %c1_41, %c0_42, %c0_43] : memref<1x9x4x4xf32, #tpu.memory_space<vmem>>, vector<1x1x4x4xf32>
    %35 = vector.shape_cast %34 : vector<1x1x4x4xf32> to vector<4x4xf32>
    %cst_44 = arith.constant dense<0.000000e+00> : vector<4x256xf32>
    %36 = tpu.matmul %35, %33, %cst_44 {dimension_numbers = #tpu.dot_dimension_numbers<[1], [0], [0], [1], [0, 0, 1, 1], [], []>} : vector<4x4xf32>, vector<4x256xf32>, vector<4x256xf32> -> vector<4x256xf32>
    %37 = arith.addf %30, %36 : vector<4x256xf32>
    %c2_45 = arith.constant 2 : index
    %c0_46 = arith.constant 0 : index
    %c0_47 = arith.constant 0 : index
    %38 = vector.load %arg5[%c2_45, %c0_46, %c0_47] : memref<9x256x256xf32, #tpu.memory_space<vmem>>, vector<1x256x256xf32>
    %39 = vector.shape_cast %38 : vector<1x256x256xf32> to vector<256x256xf32>
    %cst_48 = arith.constant dense<0.000000e+00> : vector<4x256xf32>
    %40 = tpu.matmul %16, %39, %cst_48 {dimension_numbers = #tpu.dot_dimension_numbers<[1], [0], [0], [1], [0, 0, 1, 1], [], []>} : vector<4x256xf32>, vector<256x256xf32>, vector<4x256xf32> -> vector<4x256xf32>
    %c0_49 = arith.constant 0 : index
    %c2_50 = arith.constant 2 : index
    %c0_51 = arith.constant 0 : index
    %c0_52 = arith.constant 0 : index
    %41 = vector.load %arg2[%c0_49, %c2_50, %c0_51, %c0_52] : memref<1x9x4x4xf32, #tpu.memory_space<vmem>>, vector<1x1x4x4xf32>
    %42 = vector.shape_cast %41 : vector<1x1x4x4xf32> to vector<4x4xf32>
    %cst_53 = arith.constant dense<0.000000e+00> : vector<4x256xf32>
    %43 = tpu.matmul %42, %40, %cst_53 {dimension_numbers = #tpu.dot_dimension_numbers<[1], [0], [0], [1], [0, 0, 1, 1], [], []>} : vector<4x4xf32>, vector<4x256xf32>, vector<4x256xf32> -> vector<4x256xf32>
    %44 = arith.addf %37, %43 : vector<4x256xf32>
    %c3_54 = arith.constant 3 : index
    %c0_55 = arith.constant 0 : index
    %c0_56 = arith.constant 0 : index
    %45 = vector.load %arg5[%c3_54, %c0_55, %c0_56] : memref<9x256x256xf32, #tpu.memory_space<vmem>>, vector<1x256x256xf32>
    %46 = vector.shape_cast %45 : vector<1x256x256xf32> to vector<256x256xf32>
    %cst_57 = arith.constant dense<0.000000e+00> : vector<4x256xf32>
    %47 = tpu.matmul %16, %46, %cst_57 {dimension_numbers = #tpu.dot_dimension_numbers<[1], [0], [0], [1], [0, 0, 1, 1], [], []>} : vector<4x256xf32>, vector<256x256xf32>, vector<4x256xf32> -> vector<4x256xf32>
    %c0_58 = arith.constant 0 : index
    %c3_59 = arith.constant 3 : index
    %c0_60 = arith.constant 0 : index
    %c0_61 = arith.constant 0 : index
    %48 = vector.load %arg2[%c0_58, %c3_59, %c0_60, %c0_61] : memref<1x9x4x4xf32, #tpu.memory_space<vmem>>, vector<1x1x4x4xf32>
    %49 = vector.shape_cast %48 : vector<1x1x4x4xf32> to vector<4x4xf32>
    %cst_62 = arith.constant dense<0.000000e+00> : vector<4x256xf32>
    %50 = tpu.matmul %49, %47, %cst_62 {dimension_numbers = #tpu.dot_dimension_numbers<[1], [0], [0], [1], [0, 0, 1, 1], [], []>} : vector<4x4xf32>, vector<4x256xf32>, vector<4x256xf32> -> vector<4x256xf32>
    %51 = arith.addf %44, %50 : vector<4x256xf32>
    %c4_63 = arith.constant 4 : index
    %c0_64 = arith.constant 0 : index
    %c0_65 = arith.constant 0 : index
    %52 = vector.load %arg5[%c4_63, %c0_64, %c0_65] : memref<9x256x256xf32, #tpu.memory_space<vmem>>, vector<1x256x256xf32>
    %53 = vector.shape_cast %52 : vector<1x256x256xf32> to vector<256x256xf32>
    %cst_66 = arith.constant dense<0.000000e+00> : vector<4x256xf32>
    %54 = tpu.matmul %16, %53, %cst_66 {dimension_numbers = #tpu.dot_dimension_numbers<[1], [0], [0], [1], [0, 0, 1, 1], [], []>} : vector<4x256xf32>, vector<256x256xf32>, vector<4x256xf32> -> vector<4x256xf32>
    %c0_67 = arith.constant 0 : index
    %c4_68 = arith.constant 4 : index
    %c0_69 = arith.constant 0 : index
    %c0_70 = arith.constant 0 : index
    %55 = vector.load %arg2[%c0_67, %c4_68, %c0_69, %c0_70] : memref<1x9x4x4xf32, #tpu.memory_space<vmem>>, vector<1x1x4x4xf32>
    %56 = vector.shape_cast %55 : vector<1x1x4x4xf32> to vector<4x4xf32>
    %cst_71 = arith.constant dense<0.000000e+00> : vector<4x256xf32>
    %57 = tpu.matmul %56, %54, %cst_71 {dimension_numbers = #tpu.dot_dimension_numbers<[1], [0], [0], [1], [0, 0, 1, 1], [], []>} : vector<4x4xf32>, vector<4x256xf32>, vector<4x256xf32> -> vector<4x256xf32>
    %58 = arith.addf %51, %57 : vector<4x256xf32>
    %c5_72 = arith.constant 5 : index
    %c0_73 = arith.constant 0 : index
    %c0_74 = arith.constant 0 : index
    %59 = vector.load %arg5[%c5_72, %c0_73, %c0_74] : memref<9x256x256xf32, #tpu.memory_space<vmem>>, vector<1x256x256xf32>
    %60 = vector.shape_cast %59 : vector<1x256x256xf32> to vector<256x256xf32>
    %cst_75 = arith.constant dense<0.000000e+00> : vector<4x256xf32>
    %61 = tpu.matmul %16, %60, %cst_75 {dimension_numbers = #tpu.dot_dimension_numbers<[1], [0], [0], [1], [0, 0, 1, 1], [], []>} : vector<4x256xf32>, vector<256x256xf32>, vector<4x256xf32> -> vector<4x256xf32>
    %c0_76 = arith.constant 0 : index
    %c5_77 = arith.constant 5 : index
    %c0_78 = arith.constant 0 : index
    %c0_79 = arith.constant 0 : index
    %62 = vector.load %arg2[%c0_76, %c5_77, %c0_78, %c0_79] : memref<1x9x4x4xf32, #tpu.memory_space<vmem>>, vector<1x1x4x4xf32>
    %63 = vector.shape_cast %62 : vector<1x1x4x4xf32> to vector<4x4xf32>
    %cst_80 = arith.constant dense<0.000000e+00> : vector<4x256xf32>
    %64 = tpu.matmul %63, %61, %cst_80 {dimension_numbers = #tpu.dot_dimension_numbers<[1], [0], [0], [1], [0, 0, 1, 1], [], []>} : vector<4x4xf32>, vector<4x256xf32>, vector<4x256xf32> -> vector<4x256xf32>
    %65 = arith.addf %58, %64 : vector<4x256xf32>
    %c6 = arith.constant 6 : index
    %c0_81 = arith.constant 0 : index
    %c0_82 = arith.constant 0 : index
    %66 = vector.load %arg5[%c6, %c0_81, %c0_82] : memref<9x256x256xf32, #tpu.memory_space<vmem>>, vector<1x256x256xf32>
    %67 = vector.shape_cast %66 : vector<1x256x256xf32> to vector<256x256xf32>
    %cst_83 = arith.constant dense<0.000000e+00> : vector<4x256xf32>
    %68 = tpu.matmul %16, %67, %cst_83 {dimension_numbers = #tpu.dot_dimension_numbers<[1], [0], [0], [1], [0, 0, 1, 1], [], []>} : vector<4x256xf32>, vector<256x256xf32>, vector<4x256xf32> -> vector<4x256xf32>
    %c0_84 = arith.constant 0 : index
    %c6_85 = arith.constant 6 : index
    %c0_86 = arith.constant 0 : index
    %c0_87 = arith.constant 0 : index
    %69 = vector.load %arg2[%c0_84, %c6_85, %c0_86, %c0_87] : memref<1x9x4x4xf32, #tpu.memory_space<vmem>>, vector<1x1x4x4xf32>
    %70 = vector.shape_cast %69 : vector<1x1x4x4xf32> to vector<4x4xf32>
    %cst_88 = arith.constant dense<0.000000e+00> : vector<4x256xf32>
    %71 = tpu.matmul %70, %68, %cst_88 {dimension_numbers = #tpu.dot_dimension_numbers<[1], [0], [0], [1], [0, 0, 1, 1], [], []>} : vector<4x4xf32>, vector<4x256xf32>, vector<4x256xf32> -> vector<4x256xf32>
    %72 = arith.addf %65, %71 : vector<4x256xf32>
    %c7 = arith.constant 7 : index
    %c0_89 = arith.constant 0 : index
    %c0_90 = arith.constant 0 : index
    %73 = vector.load %arg5[%c7, %c0_89, %c0_90] : memref<9x256x256xf32, #tpu.memory_space<vmem>>, vector<1x256x256xf32>
    %74 = vector.shape_cast %73 : vector<1x256x256xf32> to vector<256x256xf32>
    %cst_91 = arith.constant dense<0.000000e+00> : vector<4x256xf32>
    %75 = tpu.matmul %16, %74, %cst_91 {dimension_numbers = #tpu.dot_dimension_numbers<[1], [0], [0], [1], [0, 0, 1, 1], [], []>} : vector<4x256xf32>, vector<256x256xf32>, vector<4x256xf32> -> vector<4x256xf32>
    %c0_92 = arith.constant 0 : index
    %c7_93 = arith.constant 7 : index
    %c0_94 = arith.constant 0 : index
    %c0_95 = arith.constant 0 : index
    %76 = vector.load %arg2[%c0_92, %c7_93, %c0_94, %c0_95] : memref<1x9x4x4xf32, #tpu.memory_space<vmem>>, vector<1x1x4x4xf32>
    %77 = vector.shape_cast %76 : vector<1x1x4x4xf32> to vector<4x4xf32>
    %cst_96 = arith.constant dense<0.000000e+00> : vector<4x256xf32>
    %78 = tpu.matmul %77, %75, %cst_96 {dimension_numbers = #tpu.dot_dimension_numbers<[1], [0], [0], [1], [0, 0, 1, 1], [], []>} : vector<4x4xf32>, vector<4x256xf32>, vector<4x256xf32> -> vector<4x256xf32>
    %79 = arith.addf %72, %78 : vector<4x256xf32>
    %c8 = arith.constant 8 : index
    %c0_97 = arith.constant 0 : index
    %c0_98 = arith.constant 0 : index
    %80 = vector.load %arg5[%c8, %c0_97, %c0_98] : memref<9x256x256xf32, #tpu.memory_space<vmem>>, vector<1x256x256xf32>
    %81 = vector.shape_cast %80 : vector<1x256x256xf32> to vector<256x256xf32>
    %cst_99 = arith.constant dense<0.000000e+00> : vector<4x256xf32>
    %82 = tpu.matmul %16, %81, %cst_99 {dimension_numbers = #tpu.dot_dimension_numbers<[1], [0], [0], [1], [0, 0, 1, 1], [], []>} : vector<4x256xf32>, vector<256x256xf32>, vector<4x256xf32> -> vector<4x256xf32>
    %c0_100 = arith.constant 0 : index
    %c8_101 = arith.constant 8 : index
    %c0_102 = arith.constant 0 : index
    %c0_103 = arith.constant 0 : index
    %83 = vector.load %arg2[%c0_100, %c8_101, %c0_102, %c0_103] : memref<1x9x4x4xf32, #tpu.memory_space<vmem>>, vector<1x1x4x4xf32>
    %84 = vector.shape_cast %83 : vector<1x1x4x4xf32> to vector<4x4xf32>
    %cst_104 = arith.constant dense<0.000000e+00> : vector<4x256xf32>
    %85 = tpu.matmul %84, %82, %cst_104 {dimension_numbers = #tpu.dot_dimension_numbers<[1], [0], [0], [1], [0, 0, 1, 1], [], []>} : vector<4x4xf32>, vector<4x256xf32>, vector<4x256xf32> -> vector<4x256xf32>
    %86 = arith.addf %79, %85 : vector<4x256xf32>
    %cst_105 = arith.constant dense<0.000000e+00> : vector<4xf32>
    %87 = vector.multi_reduction <add>, %86, %cst_105 [1] : vector<4x256xf32> to vector<4xf32>
    %88 = vector.shape_cast %87 : vector<4xf32> to vector<4x1xf32>
    %89 = arith.addf %19, %88 : vector<4x1xf32>
    %90 = arith.mulf %86, %86 : vector<4x256xf32>
    %cst_106 = arith.constant dense<0.000000e+00> : vector<4xf32>
    %91 = vector.multi_reduction <add>, %90, %cst_106 [1] : vector<4x256xf32> to vector<4xf32>
    %92 = vector.shape_cast %91 : vector<4xf32> to vector<4x1xf32>
    %93 = arith.addf %20, %92 : vector<4x1xf32>
    %cst_107 = arith.constant 0.000000e+00 : f32
    %94 = vector.broadcast %cst_107 : f32 to vector<4x256xf32>
    %95 = vector.broadcast %4 : vector<4x1xf32> to vector<4x256xf32>
    %96 = arith.addf %94, %95 : vector<4x256xf32>
    %c0_108 = arith.constant 0 : index
    %c0_109 = arith.constant 0 : index
    %c0_110 = arith.constant 0 : index
    %97 = vector.load %arg5[%c0_108, %c0_109, %c0_110] : memref<9x256x256xf32, #tpu.memory_space<vmem>>, vector<1x256x256xf32>
    %98 = vector.shape_cast %97 : vector<1x256x256xf32> to vector<256x256xf32>
    %cst_111 = arith.constant dense<0.000000e+00> : vector<4x256xf32>
    %99 = tpu.matmul %18, %98, %cst_111 {dimension_numbers = #tpu.dot_dimension_numbers<[1], [0], [0], [1], [0, 0, 1, 1], [], []>} : vector<4x256xf32>, vector<256x256xf32>, vector<4x256xf32> -> vector<4x256xf32>
    %c0_112 = arith.constant 0 : index
    %c0_113 = arith.constant 0 : index
    %c0_114 = arith.constant 0 : index
    %c0_115 = arith.constant 0 : index
    %100 = vector.load %arg2[%c0_112, %c0_113, %c0_114, %c0_115] : memref<1x9x4x4xf32, #tpu.memory_space<vmem>>, vector<1x1x4x4xf32>
    %101 = vector.shape_cast %100 : vector<1x1x4x4xf32> to vector<4x4xf32>
    %cst_116 = arith.constant dense<0.000000e+00> : vector<4x256xf32>
    %102 = tpu.matmul %101, %99, %cst_116 {dimension_numbers = #tpu.dot_dimension_numbers<[1], [0], [0], [1], [0, 0, 1, 1], [], []>} : vector<4x4xf32>, vector<4x256xf32>, vector<4x256xf32> -> vector<4x256xf32>
    %103 = arith.addf %96, %102 : vector<4x256xf32>
    %c1_117 = arith.constant 1 : index
    %c0_118 = arith.constant 0 : index
    %c0_119 = arith.constant 0 : index
    %104 = vector.load %arg5[%c1_117, %c0_118, %c0_119] : memref<9x256x256xf32, #tpu.memory_space<vmem>>, vector<1x256x256xf32>
    %105 = vector.shape_cast %104 : vector<1x256x256xf32> to vector<256x256xf32>
    %cst_120 = arith.constant dense<0.000000e+00> : vector<4x256xf32>
    %106 = tpu.matmul %18, %105, %cst_120 {dimension_numbers = #tpu.dot_dimension_numbers<[1], [0], [0], [1], [0, 0, 1, 1], [], []>} : vector<4x256xf32>, vector<256x256xf32>, vector<4x256xf32> -> vector<4x256xf32>
    %c0_121 = arith.constant 0 : index
    %c1_122 = arith.constant 1 : index
    %c0_123 = arith.constant 0 : index
    %c0_124 = arith.constant 0 : index
    %107 = vector.load %arg2[%c0_121, %c1_122, %c0_123, %c0_124] : memref<1x9x4x4xf32, #tpu.memory_space<vmem>>, vector<1x1x4x4xf32>
    %108 = vector.shape_cast %107 : vector<1x1x4x4xf32> to vector<4x4xf32>
    %cst_125 = arith.constant dense<0.000000e+00> : vector<4x256xf32>
    %109 = tpu.matmul %108, %106, %cst_125 {dimension_numbers = #tpu.dot_dimension_numbers<[1], [0], [0], [1], [0, 0, 1, 1], [], []>} : vector<4x4xf32>, vector<4x256xf32>, vector<4x256xf32> -> vector<4x256xf32>
    %110 = arith.addf %103, %109 : vector<4x256xf32>
    %c2_126 = arith.constant 2 : index
    %c0_127 = arith.constant 0 : index
    %c0_128 = arith.constant 0 : index
    %111 = vector.load %arg5[%c2_126, %c0_127, %c0_128] : memref<9x256x256xf32, #tpu.memory_space<vmem>>, vector<1x256x256xf32>
    %112 = vector.shape_cast %111 : vector<1x256x256xf32> to vector<256x256xf32>
    %cst_129 = arith.constant dense<0.000000e+00> : vector<4x256xf32>
    %113 = tpu.matmul %18, %112, %cst_129 {dimension_numbers = #tpu.dot_dimension_numbers<[1], [0], [0], [1], [0, 0, 1, 1], [], []>} : vector<4x256xf32>, vector<256x256xf32>, vector<4x256xf32> -> vector<4x256xf32>
    %c0_130 = arith.constant 0 : index
    %c2_131 = arith.constant 2 : index
    %c0_132 = arith.constant 0 : index
    %c0_133 = arith.constant 0 : index
    %114 = vector.load %arg2[%c0_130, %c2_131, %c0_132, %c0_133] : memref<1x9x4x4xf32, #tpu.memory_space<vmem>>, vector<1x1x4x4xf32>
    %115 = vector.shape_cast %114 : vector<1x1x4x4xf32> to vector<4x4xf32>
    %cst_134 = arith.constant dense<0.000000e+00> : vector<4x256xf32>
    %116 = tpu.matmul %115, %113, %cst_134 {dimension_numbers = #tpu.dot_dimension_numbers<[1], [0], [0], [1], [0, 0, 1, 1], [], []>} : vector<4x4xf32>, vector<4x256xf32>, vector<4x256xf32> -> vector<4x256xf32>
    %117 = arith.addf %110, %116 : vector<4x256xf32>
    %c3_135 = arith.constant 3 : index
    %c0_136 = arith.constant 0 : index
    %c0_137 = arith.constant 0 : index
    %118 = vector.load %arg5[%c3_135, %c0_136, %c0_137] : memref<9x256x256xf32, #tpu.memory_space<vmem>>, vector<1x256x256xf32>
    %119 = vector.shape_cast %118 : vector<1x256x256xf32> to vector<256x256xf32>
    %cst_138 = arith.constant dense<0.000000e+00> : vector<4x256xf32>
    %120 = tpu.matmul %18, %119, %cst_138 {dimension_numbers = #tpu.dot_dimension_numbers<[1], [0], [0], [1], [0, 0, 1, 1], [], []>} : vector<4x256xf32>, vector<256x256xf32>, vector<4x256xf32> -> vector<4x256xf32>
    %c0_139 = arith.constant 0 : index
    %c3_140 = arith.constant 3 : index
    %c0_141 = arith.constant 0 : index
    %c0_142 = arith.constant 0 : index
    %121 = vector.load %arg2[%c0_139, %c3_140, %c0_141, %c0_142] : memref<1x9x4x4xf32, #tpu.memory_space<vmem>>, vector<1x1x4x4xf32>
    %122 = vector.shape_cast %121 : vector<1x1x4x4xf32> to vector<4x4xf32>
    %cst_143 = arith.constant dense<0.000000e+00> : vector<4x256xf32>
    %123 = tpu.matmul %122, %120, %cst_143 {dimension_numbers = #tpu.dot_dimension_numbers<[1], [0], [0], [1], [0, 0, 1, 1], [], []>} : vector<4x4xf32>, vector<4x256xf32>, vector<4x256xf32> -> vector<4x256xf32>
    %124 = arith.addf %117, %123 : vector<4x256xf32>
    %c4_144 = arith.constant 4 : index
    %c0_145 = arith.constant 0 : index
    %c0_146 = arith.constant 0 : index
    %125 = vector.load %arg5[%c4_144, %c0_145, %c0_146] : memref<9x256x256xf32, #tpu.memory_space<vmem>>, vector<1x256x256xf32>
    %126 = vector.shape_cast %125 : vector<1x256x256xf32> to vector<256x256xf32>
    %cst_147 = arith.constant dense<0.000000e+00> : vector<4x256xf32>
    %127 = tpu.matmul %18, %126, %cst_147 {dimension_numbers = #tpu.dot_dimension_numbers<[1], [0], [0], [1], [0, 0, 1, 1], [], []>} : vector<4x256xf32>, vector<256x256xf32>, vector<4x256xf32> -> vector<4x256xf32>
    %c0_148 = arith.constant 0 : index
    %c4_149 = arith.constant 4 : index
    %c0_150 = arith.constant 0 : index
    %c0_151 = arith.constant 0 : index
    %128 = vector.load %arg2[%c0_148, %c4_149, %c0_150, %c0_151] : memref<1x9x4x4xf32, #tpu.memory_space<vmem>>, vector<1x1x4x4xf32>
    %129 = vector.shape_cast %128 : vector<1x1x4x4xf32> to vector<4x4xf32>
    %cst_152 = arith.constant dense<0.000000e+00> : vector<4x256xf32>
    %130 = tpu.matmul %129, %127, %cst_152 {dimension_numbers = #tpu.dot_dimension_numbers<[1], [0], [0], [1], [0, 0, 1, 1], [], []>} : vector<4x4xf32>, vector<4x256xf32>, vector<4x256xf32> -> vector<4x256xf32>
    %131 = arith.addf %124, %130 : vector<4x256xf32>
    %c5_153 = arith.constant 5 : index
    %c0_154 = arith.constant 0 : index
    %c0_155 = arith.constant 0 : index
    %132 = vector.load %arg5[%c5_153, %c0_154, %c0_155] : memref<9x256x256xf32, #tpu.memory_space<vmem>>, vector<1x256x256xf32>
    %133 = vector.shape_cast %132 : vector<1x256x256xf32> to vector<256x256xf32>
    %cst_156 = arith.constant dense<0.000000e+00> : vector<4x256xf32>
    %134 = tpu.matmul %18, %133, %cst_156 {dimension_numbers = #tpu.dot_dimension_numbers<[1], [0], [0], [1], [0, 0, 1, 1], [], []>} : vector<4x256xf32>, vector<256x256xf32>, vector<4x256xf32> -> vector<4x256xf32>
    %c0_157 = arith.constant 0 : index
    %c5_158 = arith.constant 5 : index
    %c0_159 = arith.constant 0 : index
    %c0_160 = arith.constant 0 : index
    %135 = vector.load %arg2[%c0_157, %c5_158, %c0_159, %c0_160] : memref<1x9x4x4xf32, #tpu.memory_space<vmem>>, vector<1x1x4x4xf32>
    %136 = vector.shape_cast %135 : vector<1x1x4x4xf32> to vector<4x4xf32>
    %cst_161 = arith.constant dense<0.000000e+00> : vector<4x256xf32>
    %137 = tpu.matmul %136, %134, %cst_161 {dimension_numbers = #tpu.dot_dimension_numbers<[1], [0], [0], [1], [0, 0, 1, 1], [], []>} : vector<4x4xf32>, vector<4x256xf32>, vector<4x256xf32> -> vector<4x256xf32>
    %138 = arith.addf %131, %137 : vector<4x256xf32>
    %c6_162 = arith.constant 6 : index
    %c0_163 = arith.constant 0 : index
    %c0_164 = arith.constant 0 : index
    %139 = vector.load %arg5[%c6_162, %c0_163, %c0_164] : memref<9x256x256xf32, #tpu.memory_space<vmem>>, vector<1x256x256xf32>
    %140 = vector.shape_cast %139 : vector<1x256x256xf32> to vector<256x256xf32>
    %cst_165 = arith.constant dense<0.000000e+00> : vector<4x256xf32>
    %141 = tpu.matmul %18, %140, %cst_165 {dimension_numbers = #tpu.dot_dimension_numbers<[1], [0], [0], [1], [0, 0, 1, 1], [], []>} : vector<4x256xf32>, vector<256x256xf32>, vector<4x256xf32> -> vector<4x256xf32>
    %c0_166 = arith.constant 0 : index
    %c6_167 = arith.constant 6 : index
    %c0_168 = arith.constant 0 : index
    %c0_169 = arith.constant 0 : index
    %142 = vector.load %arg2[%c0_166, %c6_167, %c0_168, %c0_169] : memref<1x9x4x4xf32, #tpu.memory_space<vmem>>, vector<1x1x4x4xf32>
    %143 = vector.shape_cast %142 : vector<1x1x4x4xf32> to vector<4x4xf32>
    %cst_170 = arith.constant dense<0.000000e+00> : vector<4x256xf32>
    %144 = tpu.matmul %143, %141, %cst_170 {dimension_numbers = #tpu.dot_dimension_numbers<[1], [0], [0], [1], [0, 0, 1, 1], [], []>} : vector<4x4xf32>, vector<4x256xf32>, vector<4x256xf32> -> vector<4x256xf32>
    %145 = arith.addf %138, %144 : vector<4x256xf32>
    %c7_171 = arith.constant 7 : index
    %c0_172 = arith.constant 0 : index
    %c0_173 = arith.constant 0 : index
    %146 = vector.load %arg5[%c7_171, %c0_172, %c0_173] : memref<9x256x256xf32, #tpu.memory_space<vmem>>, vector<1x256x256xf32>
    %147 = vector.shape_cast %146 : vector<1x256x256xf32> to vector<256x256xf32>
    %cst_174 = arith.constant dense<0.000000e+00> : vector<4x256xf32>
    %148 = tpu.matmul %18, %147, %cst_174 {dimension_numbers = #tpu.dot_dimension_numbers<[1], [0], [0], [1], [0, 0, 1, 1], [], []>} : vector<4x256xf32>, vector<256x256xf32>, vector<4x256xf32> -> vector<4x256xf32>
    %c0_175 = arith.constant 0 : index
    %c7_176 = arith.constant 7 : index
    %c0_177 = arith.constant 0 : index
    %c0_178 = arith.constant 0 : index
    %149 = vector.load %arg2[%c0_175, %c7_176, %c0_177, %c0_178] : memref<1x9x4x4xf32, #tpu.memory_space<vmem>>, vector<1x1x4x4xf32>
    %150 = vector.shape_cast %149 : vector<1x1x4x4xf32> to vector<4x4xf32>
    %cst_179 = arith.constant dense<0.000000e+00> : vector<4x256xf32>
    %151 = tpu.matmul %150, %148, %cst_179 {dimension_numbers = #tpu.dot_dimension_numbers<[1], [0], [0], [1], [0, 0, 1, 1], [], []>} : vector<4x4xf32>, vector<4x256xf32>, vector<4x256xf32> -> vector<4x256xf32>
    %152 = arith.addf %145, %151 : vector<4x256xf32>
    %c8_180 = arith.constant 8 : index
    %c0_181 = arith.constant 0 : index
    %c0_182 = arith.constant 0 : index
    %153 = vector.load %arg5[%c8_180, %c0_181, %c0_182] : memref<9x256x256xf32, #tpu.memory_space<vmem>>, vector<1x256x256xf32>
    %154 = vector.shape_cast %153 : vector<1x256x256xf32> to vector<256x256xf32>
    %cst_183 = arith.constant dense<0.000000e+00> : vector<4x256xf32>
    %155 = tpu.matmul %18, %154, %cst_183 {dimension_numbers = #tpu.dot_dimension_numbers<[1], [0], [0], [1], [0, 0, 1, 1], [], []>} : vector<4x256xf32>, vector<256x256xf32>, vector<4x256xf32> -> vector<4x256xf32>
    %c0_184 = arith.constant 0 : index
    %c8_185 = arith.constant 8 : index
    %c0_186 = arith.constant 0 : index
    %c0_187 = arith.constant 0 : index
    %156 = vector.load %arg2[%c0_184, %c8_185, %c0_186, %c0_187] : memref<1x9x4x4xf32, #tpu.memory_space<vmem>>, vector<1x1x4x4xf32>
    %157 = vector.shape_cast %156 : vector<1x1x4x4xf32> to vector<4x4xf32>
    %cst_188 = arith.constant dense<0.000000e+00> : vector<4x256xf32>
    %158 = tpu.matmul %157, %155, %cst_188 {dimension_numbers = #tpu.dot_dimension_numbers<[1], [0], [0], [1], [0, 0, 1, 1], [], []>} : vector<4x4xf32>, vector<4x256xf32>, vector<4x256xf32> -> vector<4x256xf32>
    %159 = arith.addf %152, %158 : vector<4x256xf32>
    %cst_189 = arith.constant dense<0.000000e+00> : vector<4xf32>
    %160 = vector.multi_reduction <add>, %159, %cst_189 [1] : vector<4x256xf32> to vector<4xf32>
    %161 = vector.shape_cast %160 : vector<4xf32> to vector<4x1xf32>
    %162 = arith.addf %89, %161 : vector<4x1xf32>
    %163 = arith.mulf %159, %159 : vector<4x256xf32>
    %cst_190 = arith.constant dense<0.000000e+00> : vector<4xf32>
    %164 = vector.multi_reduction <add>, %163, %cst_190 [1] : vector<4x256xf32> to vector<4xf32>
    %165 = vector.shape_cast %164 : vector<4xf32> to vector<4x1xf32>
    %166 = arith.addf %93, %165 : vector<4x1xf32>
    %cst_191 = arith.constant 0.001953125 : f32
    %167 = vector.broadcast %cst_191 : f32 to vector<4x1xf32>
    %168 = arith.mulf %162, %167 : vector<4x1xf32>
    %cst_192 = arith.constant 0.001953125 : f32
    %169 = vector.broadcast %cst_192 : f32 to vector<4x1xf32>
    %170 = arith.mulf %166, %169 : vector<4x1xf32>
    %171 = arith.mulf %168, %168 : vector<4x1xf32>
    %172 = arith.subf %170, %171 : vector<4x1xf32>
    %cst_193 = arith.constant 9.99999974E-6 : f32
    %173 = vector.broadcast %cst_193 : f32 to vector<4x1xf32>
    %174 = arith.addf %172, %173 : vector<4x1xf32>
    %175 = math.rsqrt %174 : vector<4x1xf32>
    %176 = arith.mulf %175, %6 : vector<4x1xf32>
    %177 = vector.broadcast %168 : vector<4x1xf32> to vector<4x256xf32>
    %178 = arith.subf %86, %177 : vector<4x256xf32>
    %179 = vector.broadcast %176 : vector<4x1xf32> to vector<4x256xf32>
    %180 = arith.mulf %178, %179 : vector<4x256xf32>
    %181 = vector.broadcast %8 : vector<4x1xf32> to vector<4x256xf32>
    %182 = arith.addf %180, %181 : vector<4x256xf32>
    %183 = vector.broadcast %168 : vector<4x1xf32> to vector<4x256xf32>
    %184 = arith.subf %159, %183 : vector<4x256xf32>
    %185 = vector.broadcast %176 : vector<4x1xf32> to vector<4x256xf32>
    %186 = arith.mulf %184, %185 : vector<4x256xf32>
    %187 = vector.broadcast %8 : vector<4x1xf32> to vector<4x256xf32>
    %188 = arith.addf %186, %187 : vector<4x256xf32>
    %189 = tpu.concatenate %182, %188 in 0 : vector<4x256xf32>, vector<4x256xf32> -> vector<8x256xf32>
    %c0_194 = arith.constant 0 : index
    %c0_195 = arith.constant 0 : index
    %190 = vector.load %arg6[%c0_194, %c0_195] : memref<256x1024xf32, #tpu.memory_space<vmem>>, vector<256x1024xf32>
    %cst_196 = arith.constant dense<0.000000e+00> : vector<8x1024xf32>
    %191 = tpu.matmul %189, %190, %cst_196 {dimension_numbers = #tpu.dot_dimension_numbers<[1], [0], [0], [1], [0, 0, 1, 1], [], []>} : vector<8x256xf32>, vector<256x1024xf32>, vector<8x1024xf32> -> vector<8x1024xf32>
    %cst_197 = arith.constant 0.000000e+00 : f32
    %192 = vector.broadcast %cst_197 : f32 to vector<8x1024xf32>
    %193 = arith.cmpf oge, %191, %192 : vector<8x1024xf32>
    %cst_198 = arith.constant 0.00999999977 : f32
    %194 = vector.broadcast %cst_198 : f32 to vector<8x1024xf32>
    %195 = arith.mulf %194, %191 : vector<8x1024xf32>
    %196 = arith.select %193, %191, %195 : vector<8x1024xi1>, vector<8x1024xf32>
    %c0_199 = arith.constant 0 : index
    %c0_200 = arith.constant 0 : index
    %197 = vector.load %arg7[%c0_199, %c0_200] : memref<1024x256xf32, #tpu.memory_space<vmem>>, vector<1024x256xf32>
    %cst_201 = arith.constant dense<0.000000e+00> : vector<8x256xf32>
    %198 = tpu.matmul %196, %197, %cst_201 {dimension_numbers = #tpu.dot_dimension_numbers<[1], [0], [0], [1], [0, 0, 1, 1], [], []>} : vector<8x1024xf32>, vector<1024x256xf32>, vector<8x256xf32> -> vector<8x256xf32>
    %199 = vector.extract_strided_slice %198 {offsets = [0, 0], sizes = [4, 256], strides = [1, 1]} : vector<8x256xf32> to vector<4x256xf32>
    %200 = vector.extract_strided_slice %198 {offsets = [4, 0], sizes = [4, 256], strides = [1, 1]} : vector<8x256xf32> to vector<4x256xf32>
    %cst_202 = arith.constant 0.000000e+00 : f32
    %201 = vector.broadcast %cst_202 : f32 to vector<4x1xf32>
    %cst_203 = arith.constant 0.000000e+00 : f32
    %202 = vector.broadcast %cst_203 : f32 to vector<4x1xf32>
    %cst_204 = arith.constant 0.000000e+00 : f32
    %203 = vector.broadcast %cst_204 : f32 to vector<4x256xf32>
    %204 = vector.broadcast %10 : vector<4x1xf32> to vector<4x256xf32>
    %205 = arith.addf %203, %204 : vector<4x256xf32>
    %c0_205 = arith.constant 0 : index
    %c0_206 = arith.constant 0 : index
    %c0_207 = arith.constant 0 : index
    %206 = vector.load %arg5[%c0_205, %c0_206, %c0_207] : memref<9x256x256xf32, #tpu.memory_space<vmem>>, vector<1x256x256xf32>
    %207 = vector.shape_cast %206 : vector<1x256x256xf32> to vector<256x256xf32>
    %cst_208 = arith.constant dense<0.000000e+00> : vector<4x256xf32>
    %208 = tpu.matmul %199, %207, %cst_208 {dimension_numbers = #tpu.dot_dimension_numbers<[1], [0], [0], [1], [0, 0, 1, 1], [], []>} : vector<4x256xf32>, vector<256x256xf32>, vector<4x256xf32> -> vector<4x256xf32>
    %c0_209 = arith.constant 0 : index
    %c0_210 = arith.constant 0 : index
    %c0_211 = arith.constant 0 : index
    %c0_212 = arith.constant 0 : index
    %209 = vector.load %arg3[%c0_209, %c0_210, %c0_211, %c0_212] : memref<1x9x4x4xf32, #tpu.memory_space<vmem>>, vector<1x1x4x4xf32>
    %210 = vector.shape_cast %209 : vector<1x1x4x4xf32> to vector<4x4xf32>
    %cst_213 = arith.constant dense<0.000000e+00> : vector<4x256xf32>
    %211 = tpu.matmul %210, %208, %cst_213 {dimension_numbers = #tpu.dot_dimension_numbers<[1], [0], [0], [1], [0, 0, 1, 1], [], []>} : vector<4x4xf32>, vector<4x256xf32>, vector<4x256xf32> -> vector<4x256xf32>
    %212 = arith.addf %205, %211 : vector<4x256xf32>
    %c1_214 = arith.constant 1 : index
    %c0_215 = arith.constant 0 : index
    %c0_216 = arith.constant 0 : index
    %213 = vector.load %arg5[%c1_214, %c0_215, %c0_216] : memref<9x256x256xf32, #tpu.memory_space<vmem>>, vector<1x256x256xf32>
    %214 = vector.shape_cast %213 : vector<1x256x256xf32> to vector<256x256xf32>
    %cst_217 = arith.constant dense<0.000000e+00> : vector<4x256xf32>
    %215 = tpu.matmul %199, %214, %cst_217 {dimension_numbers = #tpu.dot_dimension_numbers<[1], [0], [0], [1], [0, 0, 1, 1], [], []>} : vector<4x256xf32>, vector<256x256xf32>, vector<4x256xf32> -> vector<4x256xf32>
    %c0_218 = arith.constant 0 : index
    %c1_219 = arith.constant 1 : index
    %c0_220 = arith.constant 0 : index
    %c0_221 = arith.constant 0 : index
    %216 = vector.load %arg3[%c0_218, %c1_219, %c0_220, %c0_221] : memref<1x9x4x4xf32, #tpu.memory_space<vmem>>, vector<1x1x4x4xf32>
    %217 = vector.shape_cast %216 : vector<1x1x4x4xf32> to vector<4x4xf32>
    %cst_222 = arith.constant dense<0.000000e+00> : vector<4x256xf32>
    %218 = tpu.matmul %217, %215, %cst_222 {dimension_numbers = #tpu.dot_dimension_numbers<[1], [0], [0], [1], [0, 0, 1, 1], [], []>} : vector<4x4xf32>, vector<4x256xf32>, vector<4x256xf32> -> vector<4x256xf32>
    %219 = arith.addf %212, %218 : vector<4x256xf32>
    %c2_223 = arith.constant 2 : index
    %c0_224 = arith.constant 0 : index
    %c0_225 = arith.constant 0 : index
    %220 = vector.load %arg5[%c2_223, %c0_224, %c0_225] : memref<9x256x256xf32, #tpu.memory_space<vmem>>, vector<1x256x256xf32>
    %221 = vector.shape_cast %220 : vector<1x256x256xf32> to vector<256x256xf32>
    %cst_226 = arith.constant dense<0.000000e+00> : vector<4x256xf32>
    %222 = tpu.matmul %199, %221, %cst_226 {dimension_numbers = #tpu.dot_dimension_numbers<[1], [0], [0], [1], [0, 0, 1, 1], [], []>} : vector<4x256xf32>, vector<256x256xf32>, vector<4x256xf32> -> vector<4x256xf32>
    %c0_227 = arith.constant 0 : index
    %c2_228 = arith.constant 2 : index
    %c0_229 = arith.constant 0 : index
    %c0_230 = arith.constant 0 : index
    %223 = vector.load %arg3[%c0_227, %c2_228, %c0_229, %c0_230] : memref<1x9x4x4xf32, #tpu.memory_space<vmem>>, vector<1x1x4x4xf32>
    %224 = vector.shape_cast %223 : vector<1x1x4x4xf32> to vector<4x4xf32>
    %cst_231 = arith.constant dense<0.000000e+00> : vector<4x256xf32>
    %225 = tpu.matmul %224, %222, %cst_231 {dimension_numbers = #tpu.dot_dimension_numbers<[1], [0], [0], [1], [0, 0, 1, 1], [], []>} : vector<4x4xf32>, vector<4x256xf32>, vector<4x256xf32> -> vector<4x256xf32>
    %226 = arith.addf %219, %225 : vector<4x256xf32>
    %c3_232 = arith.constant 3 : index
    %c0_233 = arith.constant 0 : index
    %c0_234 = arith.constant 0 : index
    %227 = vector.load %arg5[%c3_232, %c0_233, %c0_234] : memref<9x256x256xf32, #tpu.memory_space<vmem>>, vector<1x256x256xf32>
    %228 = vector.shape_cast %227 : vector<1x256x256xf32> to vector<256x256xf32>
    %cst_235 = arith.constant dense<0.000000e+00> : vector<4x256xf32>
    %229 = tpu.matmul %199, %228, %cst_235 {dimension_numbers = #tpu.dot_dimension_numbers<[1], [0], [0], [1], [0, 0, 1, 1], [], []>} : vector<4x256xf32>, vector<256x256xf32>, vector<4x256xf32> -> vector<4x256xf32>
    %c0_236 = arith.constant 0 : index
    %c3_237 = arith.constant 3 : index
    %c0_238 = arith.constant 0 : index
    %c0_239 = arith.constant 0 : index
    %230 = vector.load %arg3[%c0_236, %c3_237, %c0_238, %c0_239] : memref<1x9x4x4xf32, #tpu.memory_space<vmem>>, vector<1x1x4x4xf32>
    %231 = vector.shape_cast %230 : vector<1x1x4x4xf32> to vector<4x4xf32>
    %cst_240 = arith.constant dense<0.000000e+00> : vector<4x256xf32>
    %232 = tpu.matmul %231, %229, %cst_240 {dimension_numbers = #tpu.dot_dimension_numbers<[1], [0], [0], [1], [0, 0, 1, 1], [], []>} : vector<4x4xf32>, vector<4x256xf32>, vector<4x256xf32> -> vector<4x256xf32>
    %233 = arith.addf %226, %232 : vector<4x256xf32>
    %c4_241 = arith.constant 4 : index
    %c0_242 = arith.constant 0 : index
    %c0_243 = arith.constant 0 : index
    %234 = vector.load %arg5[%c4_241, %c0_242, %c0_243] : memref<9x256x256xf32, #tpu.memory_space<vmem>>, vector<1x256x256xf32>
    %235 = vector.shape_cast %234 : vector<1x256x256xf32> to vector<256x256xf32>
    %cst_244 = arith.constant dense<0.000000e+00> : vector<4x256xf32>
    %236 = tpu.matmul %199, %235, %cst_244 {dimension_numbers = #tpu.dot_dimension_numbers<[1], [0], [0], [1], [0, 0, 1, 1], [], []>} : vector<4x256xf32>, vector<256x256xf32>, vector<4x256xf32> -> vector<4x256xf32>
    %c0_245 = arith.constant 0 : index
    %c4_246 = arith.constant 4 : index
    %c0_247 = arith.constant 0 : index
    %c0_248 = arith.constant 0 : index
    %237 = vector.load %arg3[%c0_245, %c4_246, %c0_247, %c0_248] : memref<1x9x4x4xf32, #tpu.memory_space<vmem>>, vector<1x1x4x4xf32>
    %238 = vector.shape_cast %237 : vector<1x1x4x4xf32> to vector<4x4xf32>
    %cst_249 = arith.constant dense<0.000000e+00> : vector<4x256xf32>
    %239 = tpu.matmul %238, %236, %cst_249 {dimension_numbers = #tpu.dot_dimension_numbers<[1], [0], [0], [1], [0, 0, 1, 1], [], []>} : vector<4x4xf32>, vector<4x256xf32>, vector<4x256xf32> -> vector<4x256xf32>
    %240 = arith.addf %233, %239 : vector<4x256xf32>
    %c5_250 = arith.constant 5 : index
    %c0_251 = arith.constant 0 : index
    %c0_252 = arith.constant 0 : index
    %241 = vector.load %arg5[%c5_250, %c0_251, %c0_252] : memref<9x256x256xf32, #tpu.memory_space<vmem>>, vector<1x256x256xf32>
    %242 = vector.shape_cast %241 : vector<1x256x256xf32> to vector<256x256xf32>
    %cst_253 = arith.constant dense<0.000000e+00> : vector<4x256xf32>
    %243 = tpu.matmul %199, %242, %cst_253 {dimension_numbers = #tpu.dot_dimension_numbers<[1], [0], [0], [1], [0, 0, 1, 1], [], []>} : vector<4x256xf32>, vector<256x256xf32>, vector<4x256xf32> -> vector<4x256xf32>
    %c0_254 = arith.constant 0 : index
    %c5_255 = arith.constant 5 : index
    %c0_256 = arith.constant 0 : index
    %c0_257 = arith.constant 0 : index
    %244 = vector.load %arg3[%c0_254, %c5_255, %c0_256, %c0_257] : memref<1x9x4x4xf32, #tpu.memory_space<vmem>>, vector<1x1x4x4xf32>
    %245 = vector.shape_cast %244 : vector<1x1x4x4xf32> to vector<4x4xf32>
    %cst_258 = arith.constant dense<0.000000e+00> : vector<4x256xf32>
    %246 = tpu.matmul %245, %243, %cst_258 {dimension_numbers = #tpu.dot_dimension_numbers<[1], [0], [0], [1], [0, 0, 1, 1], [], []>} : vector<4x4xf32>, vector<4x256xf32>, vector<4x256xf32> -> vector<4x256xf32>
    %247 = arith.addf %240, %246 : vector<4x256xf32>
    %c6_259 = arith.constant 6 : index
    %c0_260 = arith.constant 0 : index
    %c0_261 = arith.constant 0 : index
    %248 = vector.load %arg5[%c6_259, %c0_260, %c0_261] : memref<9x256x256xf32, #tpu.memory_space<vmem>>, vector<1x256x256xf32>
    %249 = vector.shape_cast %248 : vector<1x256x256xf32> to vector<256x256xf32>
    %cst_262 = arith.constant dense<0.000000e+00> : vector<4x256xf32>
    %250 = tpu.matmul %199, %249, %cst_262 {dimension_numbers = #tpu.dot_dimension_numbers<[1], [0], [0], [1], [0, 0, 1, 1], [], []>} : vector<4x256xf32>, vector<256x256xf32>, vector<4x256xf32> -> vector<4x256xf32>
    %c0_263 = arith.constant 0 : index
    %c6_264 = arith.constant 6 : index
    %c0_265 = arith.constant 0 : index
    %c0_266 = arith.constant 0 : index
    %251 = vector.load %arg3[%c0_263, %c6_264, %c0_265, %c0_266] : memref<1x9x4x4xf32, #tpu.memory_space<vmem>>, vector<1x1x4x4xf32>
    %252 = vector.shape_cast %251 : vector<1x1x4x4xf32> to vector<4x4xf32>
    %cst_267 = arith.constant dense<0.000000e+00> : vector<4x256xf32>
    %253 = tpu.matmul %252, %250, %cst_267 {dimension_numbers = #tpu.dot_dimension_numbers<[1], [0], [0], [1], [0, 0, 1, 1], [], []>} : vector<4x4xf32>, vector<4x256xf32>, vector<4x256xf32> -> vector<4x256xf32>
    %254 = arith.addf %247, %253 : vector<4x256xf32>
    %c7_268 = arith.constant 7 : index
    %c0_269 = arith.constant 0 : index
    %c0_270 = arith.constant 0 : index
    %255 = vector.load %arg5[%c7_268, %c0_269, %c0_270] : memref<9x256x256xf32, #tpu.memory_space<vmem>>, vector<1x256x256xf32>
    %256 = vector.shape_cast %255 : vector<1x256x256xf32> to vector<256x256xf32>
    %cst_271 = arith.constant dense<0.000000e+00> : vector<4x256xf32>
    %257 = tpu.matmul %199, %256, %cst_271 {dimension_numbers = #tpu.dot_dimension_numbers<[1], [0], [0], [1], [0, 0, 1, 1], [], []>} : vector<4x256xf32>, vector<256x256xf32>, vector<4x256xf32> -> vector<4x256xf32>
    %c0_272 = arith.constant 0 : index
    %c7_273 = arith.constant 7 : index
    %c0_274 = arith.constant 0 : index
    %c0_275 = arith.constant 0 : index
    %258 = vector.load %arg3[%c0_272, %c7_273, %c0_274, %c0_275] : memref<1x9x4x4xf32, #tpu.memory_space<vmem>>, vector<1x1x4x4xf32>
    %259 = vector.shape_cast %258 : vector<1x1x4x4xf32> to vector<4x4xf32>
    %cst_276 = arith.constant dense<0.000000e+00> : vector<4x256xf32>
    %260 = tpu.matmul %259, %257, %cst_276 {dimension_numbers = #tpu.dot_dimension_numbers<[1], [0], [0], [1], [0, 0, 1, 1], [], []>} : vector<4x4xf32>, vector<4x256xf32>, vector<4x256xf32> -> vector<4x256xf32>
    %261 = arith.addf %254, %260 : vector<4x256xf32>
    %c8_277 = arith.constant 8 : index
    %c0_278 = arith.constant 0 : index
    %c0_279 = arith.constant 0 : index
    %262 = vector.load %arg5[%c8_277, %c0_278, %c0_279] : memref<9x256x256xf32, #tpu.memory_space<vmem>>, vector<1x256x256xf32>
    %263 = vector.shape_cast %262 : vector<1x256x256xf32> to vector<256x256xf32>
    %cst_280 = arith.constant dense<0.000000e+00> : vector<4x256xf32>
    %264 = tpu.matmul %199, %263, %cst_280 {dimension_numbers = #tpu.dot_dimension_numbers<[1], [0], [0], [1], [0, 0, 1, 1], [], []>} : vector<4x256xf32>, vector<256x256xf32>, vector<4x256xf32> -> vector<4x256xf32>
    %c0_281 = arith.constant 0 : index
    %c8_282 = arith.constant 8 : index
    %c0_283 = arith.constant 0 : index
    %c0_284 = arith.constant 0 : index
    %265 = vector.load %arg3[%c0_281, %c8_282, %c0_283, %c0_284] : memref<1x9x4x4xf32, #tpu.memory_space<vmem>>, vector<1x1x4x4xf32>
    %266 = vector.shape_cast %265 : vector<1x1x4x4xf32> to vector<4x4xf32>
    %cst_285 = arith.constant dense<0.000000e+00> : vector<4x256xf32>
    %267 = tpu.matmul %266, %264, %cst_285 {dimension_numbers = #tpu.dot_dimension_numbers<[1], [0], [0], [1], [0, 0, 1, 1], [], []>} : vector<4x4xf32>, vector<4x256xf32>, vector<4x256xf32> -> vector<4x256xf32>
    %268 = arith.addf %261, %267 : vector<4x256xf32>
    %cst_286 = arith.constant dense<0.000000e+00> : vector<4xf32>
    %269 = vector.multi_reduction <add>, %268, %cst_286 [1] : vector<4x256xf32> to vector<4xf32>
    %270 = vector.shape_cast %269 : vector<4xf32> to vector<4x1xf32>
    %271 = arith.addf %201, %270 : vector<4x1xf32>
    %272 = arith.mulf %268, %268 : vector<4x256xf32>
    %cst_287 = arith.constant dense<0.000000e+00> : vector<4xf32>
    %273 = vector.multi_reduction <add>, %272, %cst_287 [1] : vector<4x256xf32> to vector<4xf32>
    %274 = vector.shape_cast %273 : vector<4xf32> to vector<4x1xf32>
    %275 = arith.addf %202, %274 : vector<4x1xf32>
    %cst_288 = arith.constant 0.000000e+00 : f32
    %276 = vector.broadcast %cst_288 : f32 to vector<4x256xf32>
    %277 = vector.broadcast %10 : vector<4x1xf32> to vector<4x256xf32>
    %278 = arith.addf %276, %277 : vector<4x256xf32>
    %c0_289 = arith.constant 0 : index
    %c0_290 = arith.constant 0 : index
    %c0_291 = arith.constant 0 : index
    %279 = vector.load %arg5[%c0_289, %c0_290, %c0_291] : memref<9x256x256xf32, #tpu.memory_space<vmem>>, vector<1x256x256xf32>
    %280 = vector.shape_cast %279 : vector<1x256x256xf32> to vector<256x256xf32>
    %cst_292 = arith.constant dense<0.000000e+00> : vector<4x256xf32>
    %281 = tpu.matmul %200, %280, %cst_292 {dimension_numbers = #tpu.dot_dimension_numbers<[1], [0], [0], [1], [0, 0, 1, 1], [], []>} : vector<4x256xf32>, vector<256x256xf32>, vector<4x256xf32> -> vector<4x256xf32>
    %c0_293 = arith.constant 0 : index
    %c0_294 = arith.constant 0 : index
    %c0_295 = arith.constant 0 : index
    %c0_296 = arith.constant 0 : index
    %282 = vector.load %arg3[%c0_293, %c0_294, %c0_295, %c0_296] : memref<1x9x4x4xf32, #tpu.memory_space<vmem>>, vector<1x1x4x4xf32>
    %283 = vector.shape_cast %282 : vector<1x1x4x4xf32> to vector<4x4xf32>
    %cst_297 = arith.constant dense<0.000000e+00> : vector<4x256xf32>
    %284 = tpu.matmul %283, %281, %cst_297 {dimension_numbers = #tpu.dot_dimension_numbers<[1], [0], [0], [1], [0, 0, 1, 1], [], []>} : vector<4x4xf32>, vector<4x256xf32>, vector<4x256xf32> -> vector<4x256xf32>
    %285 = arith.addf %278, %284 : vector<4x256xf32>
    %c1_298 = arith.constant 1 : index
    %c0_299 = arith.constant 0 : index
    %c0_300 = arith.constant 0 : index
    %286 = vector.load %arg5[%c1_298, %c0_299, %c0_300] : memref<9x256x256xf32, #tpu.memory_space<vmem>>, vector<1x256x256xf32>
    %287 = vector.shape_cast %286 : vector<1x256x256xf32> to vector<256x256xf32>
    %cst_301 = arith.constant dense<0.000000e+00> : vector<4x256xf32>
    %288 = tpu.matmul %200, %287, %cst_301 {dimension_numbers = #tpu.dot_dimension_numbers<[1], [0], [0], [1], [0, 0, 1, 1], [], []>} : vector<4x256xf32>, vector<256x256xf32>, vector<4x256xf32> -> vector<4x256xf32>
    %c0_302 = arith.constant 0 : index
    %c1_303 = arith.constant 1 : index
    %c0_304 = arith.constant 0 : index
    %c0_305 = arith.constant 0 : index
    %289 = vector.load %arg3[%c0_302, %c1_303, %c0_304, %c0_305] : memref<1x9x4x4xf32, #tpu.memory_space<vmem>>, vector<1x1x4x4xf32>
    %290 = vector.shape_cast %289 : vector<1x1x4x4xf32> to vector<4x4xf32>
    %cst_306 = arith.constant dense<0.000000e+00> : vector<4x256xf32>
    %291 = tpu.matmul %290, %288, %cst_306 {dimension_numbers = #tpu.dot_dimension_numbers<[1], [0], [0], [1], [0, 0, 1, 1], [], []>} : vector<4x4xf32>, vector<4x256xf32>, vector<4x256xf32> -> vector<4x256xf32>
    %292 = arith.addf %285, %291 : vector<4x256xf32>
    %c2_307 = arith.constant 2 : index
    %c0_308 = arith.constant 0 : index
    %c0_309 = arith.constant 0 : index
    %293 = vector.load %arg5[%c2_307, %c0_308, %c0_309] : memref<9x256x256xf32, #tpu.memory_space<vmem>>, vector<1x256x256xf32>
    %294 = vector.shape_cast %293 : vector<1x256x256xf32> to vector<256x256xf32>
    %cst_310 = arith.constant dense<0.000000e+00> : vector<4x256xf32>
    %295 = tpu.matmul %200, %294, %cst_310 {dimension_numbers = #tpu.dot_dimension_numbers<[1], [0], [0], [1], [0, 0, 1, 1], [], []>} : vector<4x256xf32>, vector<256x256xf32>, vector<4x256xf32> -> vector<4x256xf32>
    %c0_311 = arith.constant 0 : index
    %c2_312 = arith.constant 2 : index
    %c0_313 = arith.constant 0 : index
    %c0_314 = arith.constant 0 : index
    %296 = vector.load %arg3[%c0_311, %c2_312, %c0_313, %c0_314] : memref<1x9x4x4xf32, #tpu.memory_space<vmem>>, vector<1x1x4x4xf32>
    %297 = vector.shape_cast %296 : vector<1x1x4x4xf32> to vector<4x4xf32>
    %cst_315 = arith.constant dense<0.000000e+00> : vector<4x256xf32>
    %298 = tpu.matmul %297, %295, %cst_315 {dimension_numbers = #tpu.dot_dimension_numbers<[1], [0], [0], [1], [0, 0, 1, 1], [], []>} : vector<4x4xf32>, vector<4x256xf32>, vector<4x256xf32> -> vector<4x256xf32>
    %299 = arith.addf %292, %298 : vector<4x256xf32>
    %c3_316 = arith.constant 3 : index
    %c0_317 = arith.constant 0 : index
    %c0_318 = arith.constant 0 : index
    %300 = vector.load %arg5[%c3_316, %c0_317, %c0_318] : memref<9x256x256xf32, #tpu.memory_space<vmem>>, vector<1x256x256xf32>
    %301 = vector.shape_cast %300 : vector<1x256x256xf32> to vector<256x256xf32>
    %cst_319 = arith.constant dense<0.000000e+00> : vector<4x256xf32>
    %302 = tpu.matmul %200, %301, %cst_319 {dimension_numbers = #tpu.dot_dimension_numbers<[1], [0], [0], [1], [0, 0, 1, 1], [], []>} : vector<4x256xf32>, vector<256x256xf32>, vector<4x256xf32> -> vector<4x256xf32>
    %c0_320 = arith.constant 0 : index
    %c3_321 = arith.constant 3 : index
    %c0_322 = arith.constant 0 : index
    %c0_323 = arith.constant 0 : index
    %303 = vector.load %arg3[%c0_320, %c3_321, %c0_322, %c0_323] : memref<1x9x4x4xf32, #tpu.memory_space<vmem>>, vector<1x1x4x4xf32>
    %304 = vector.shape_cast %303 : vector<1x1x4x4xf32> to vector<4x4xf32>
    %cst_324 = arith.constant dense<0.000000e+00> : vector<4x256xf32>
    %305 = tpu.matmul %304, %302, %cst_324 {dimension_numbers = #tpu.dot_dimension_numbers<[1], [0], [0], [1], [0, 0, 1, 1], [], []>} : vector<4x4xf32>, vector<4x256xf32>, vector<4x256xf32> -> vector<4x256xf32>
    %306 = arith.addf %299, %305 : vector<4x256xf32>
    %c4_325 = arith.constant 4 : index
    %c0_326 = arith.constant 0 : index
    %c0_327 = arith.constant 0 : index
    %307 = vector.load %arg5[%c4_325, %c0_326, %c0_327] : memref<9x256x256xf32, #tpu.memory_space<vmem>>, vector<1x256x256xf32>
    %308 = vector.shape_cast %307 : vector<1x256x256xf32> to vector<256x256xf32>
    %cst_328 = arith.constant dense<0.000000e+00> : vector<4x256xf32>
    %309 = tpu.matmul %200, %308, %cst_328 {dimension_numbers = #tpu.dot_dimension_numbers<[1], [0], [0], [1], [0, 0, 1, 1], [], []>} : vector<4x256xf32>, vector<256x256xf32>, vector<4x256xf32> -> vector<4x256xf32>
    %c0_329 = arith.constant 0 : index
    %c4_330 = arith.constant 4 : index
    %c0_331 = arith.constant 0 : index
    %c0_332 = arith.constant 0 : index
    %310 = vector.load %arg3[%c0_329, %c4_330, %c0_331, %c0_332] : memref<1x9x4x4xf32, #tpu.memory_space<vmem>>, vector<1x1x4x4xf32>
    %311 = vector.shape_cast %310 : vector<1x1x4x4xf32> to vector<4x4xf32>
    %cst_333 = arith.constant dense<0.000000e+00> : vector<4x256xf32>
    %312 = tpu.matmul %311, %309, %cst_333 {dimension_numbers = #tpu.dot_dimension_numbers<[1], [0], [0], [1], [0, 0, 1, 1], [], []>} : vector<4x4xf32>, vector<4x256xf32>, vector<4x256xf32> -> vector<4x256xf32>
    %313 = arith.addf %306, %312 : vector<4x256xf32>
    %c5_334 = arith.constant 5 : index
    %c0_335 = arith.constant 0 : index
    %c0_336 = arith.constant 0 : index
    %314 = vector.load %arg5[%c5_334, %c0_335, %c0_336] : memref<9x256x256xf32, #tpu.memory_space<vmem>>, vector<1x256x256xf32>
    %315 = vector.shape_cast %314 : vector<1x256x256xf32> to vector<256x256xf32>
    %cst_337 = arith.constant dense<0.000000e+00> : vector<4x256xf32>
    %316 = tpu.matmul %200, %315, %cst_337 {dimension_numbers = #tpu.dot_dimension_numbers<[1], [0], [0], [1], [0, 0, 1, 1], [], []>} : vector<4x256xf32>, vector<256x256xf32>, vector<4x256xf32> -> vector<4x256xf32>
    %c0_338 = arith.constant 0 : index
    %c5_339 = arith.constant 5 : index
    %c0_340 = arith.constant 0 : index
    %c0_341 = arith.constant 0 : index
    %317 = vector.load %arg3[%c0_338, %c5_339, %c0_340, %c0_341] : memref<1x9x4x4xf32, #tpu.memory_space<vmem>>, vector<1x1x4x4xf32>
    %318 = vector.shape_cast %317 : vector<1x1x4x4xf32> to vector<4x4xf32>
    %cst_342 = arith.constant dense<0.000000e+00> : vector<4x256xf32>
    %319 = tpu.matmul %318, %316, %cst_342 {dimension_numbers = #tpu.dot_dimension_numbers<[1], [0], [0], [1], [0, 0, 1, 1], [], []>} : vector<4x4xf32>, vector<4x256xf32>, vector<4x256xf32> -> vector<4x256xf32>
    %320 = arith.addf %313, %319 : vector<4x256xf32>
    %c6_343 = arith.constant 6 : index
    %c0_344 = arith.constant 0 : index
    %c0_345 = arith.constant 0 : index
    %321 = vector.load %arg5[%c6_343, %c0_344, %c0_345] : memref<9x256x256xf32, #tpu.memory_space<vmem>>, vector<1x256x256xf32>
    %322 = vector.shape_cast %321 : vector<1x256x256xf32> to vector<256x256xf32>
    %cst_346 = arith.constant dense<0.000000e+00> : vector<4x256xf32>
    %323 = tpu.matmul %200, %322, %cst_346 {dimension_numbers = #tpu.dot_dimension_numbers<[1], [0], [0], [1], [0, 0, 1, 1], [], []>} : vector<4x256xf32>, vector<256x256xf32>, vector<4x256xf32> -> vector<4x256xf32>
    %c0_347 = arith.constant 0 : index
    %c6_348 = arith.constant 6 : index
    %c0_349 = arith.constant 0 : index
    %c0_350 = arith.constant 0 : index
    %324 = vector.load %arg3[%c0_347, %c6_348, %c0_349, %c0_350] : memref<1x9x4x4xf32, #tpu.memory_space<vmem>>, vector<1x1x4x4xf32>
    %325 = vector.shape_cast %324 : vector<1x1x4x4xf32> to vector<4x4xf32>
    %cst_351 = arith.constant dense<0.000000e+00> : vector<4x256xf32>
    %326 = tpu.matmul %325, %323, %cst_351 {dimension_numbers = #tpu.dot_dimension_numbers<[1], [0], [0], [1], [0, 0, 1, 1], [], []>} : vector<4x4xf32>, vector<4x256xf32>, vector<4x256xf32> -> vector<4x256xf32>
    %327 = arith.addf %320, %326 : vector<4x256xf32>
    %c7_352 = arith.constant 7 : index
    %c0_353 = arith.constant 0 : index
    %c0_354 = arith.constant 0 : index
    %328 = vector.load %arg5[%c7_352, %c0_353, %c0_354] : memref<9x256x256xf32, #tpu.memory_space<vmem>>, vector<1x256x256xf32>
    %329 = vector.shape_cast %328 : vector<1x256x256xf32> to vector<256x256xf32>
    %cst_355 = arith.constant dense<0.000000e+00> : vector<4x256xf32>
    %330 = tpu.matmul %200, %329, %cst_355 {dimension_numbers = #tpu.dot_dimension_numbers<[1], [0], [0], [1], [0, 0, 1, 1], [], []>} : vector<4x256xf32>, vector<256x256xf32>, vector<4x256xf32> -> vector<4x256xf32>
    %c0_356 = arith.constant 0 : index
    %c7_357 = arith.constant 7 : index
    %c0_358 = arith.constant 0 : index
    %c0_359 = arith.constant 0 : index
    %331 = vector.load %arg3[%c0_356, %c7_357, %c0_358, %c0_359] : memref<1x9x4x4xf32, #tpu.memory_space<vmem>>, vector<1x1x4x4xf32>
    %332 = vector.shape_cast %331 : vector<1x1x4x4xf32> to vector<4x4xf32>
    %cst_360 = arith.constant dense<0.000000e+00> : vector<4x256xf32>
    %333 = tpu.matmul %332, %330, %cst_360 {dimension_numbers = #tpu.dot_dimension_numbers<[1], [0], [0], [1], [0, 0, 1, 1], [], []>} : vector<4x4xf32>, vector<4x256xf32>, vector<4x256xf32> -> vector<4x256xf32>
    %334 = arith.addf %327, %333 : vector<4x256xf32>
    %c8_361 = arith.constant 8 : index
    %c0_362 = arith.constant 0 : index
    %c0_363 = arith.constant 0 : index
    %335 = vector.load %arg5[%c8_361, %c0_362, %c0_363] : memref<9x256x256xf32, #tpu.memory_space<vmem>>, vector<1x256x256xf32>
    %336 = vector.shape_cast %335 : vector<1x256x256xf32> to vector<256x256xf32>
    %cst_364 = arith.constant dense<0.000000e+00> : vector<4x256xf32>
    %337 = tpu.matmul %200, %336, %cst_364 {dimension_numbers = #tpu.dot_dimension_numbers<[1], [0], [0], [1], [0, 0, 1, 1], [], []>} : vector<4x256xf32>, vector<256x256xf32>, vector<4x256xf32> -> vector<4x256xf32>
    %c0_365 = arith.constant 0 : index
    %c8_366 = arith.constant 8 : index
    %c0_367 = arith.constant 0 : index
    %c0_368 = arith.constant 0 : index
    %338 = vector.load %arg3[%c0_365, %c8_366, %c0_367, %c0_368] : memref<1x9x4x4xf32, #tpu.memory_space<vmem>>, vector<1x1x4x4xf32>
    %339 = vector.shape_cast %338 : vector<1x1x4x4xf32> to vector<4x4xf32>
    %cst_369 = arith.constant dense<0.000000e+00> : vector<4x256xf32>
    %340 = tpu.matmul %339, %337, %cst_369 {dimension_numbers = #tpu.dot_dimension_numbers<[1], [0], [0], [1], [0, 0, 1, 1], [], []>} : vector<4x4xf32>, vector<4x256xf32>, vector<4x256xf32> -> vector<4x256xf32>
    %341 = arith.addf %334, %340 : vector<4x256xf32>
    %cst_370 = arith.constant dense<0.000000e+00> : vector<4xf32>
    %342 = vector.multi_reduction <add>, %341, %cst_370 [1] : vector<4x256xf32> to vector<4xf32>
    %343 = vector.shape_cast %342 : vector<4xf32> to vector<4x1xf32>
    %344 = arith.addf %271, %343 : vector<4x1xf32>
    %345 = arith.mulf %341, %341 : vector<4x256xf32>
    %cst_371 = arith.constant dense<0.000000e+00> : vector<4xf32>
    %346 = vector.multi_reduction <add>, %345, %cst_371 [1] : vector<4x256xf32> to vector<4xf32>
    %347 = vector.shape_cast %346 : vector<4xf32> to vector<4x1xf32>
    %348 = arith.addf %275, %347 : vector<4x1xf32>
    %cst_372 = arith.constant 0.001953125 : f32
    %349 = vector.broadcast %cst_372 : f32 to vector<4x1xf32>
    %350 = arith.mulf %344, %349 : vector<4x1xf32>
    %cst_373 = arith.constant 0.001953125 : f32
    %351 = vector.broadcast %cst_373 : f32 to vector<4x1xf32>
    %352 = arith.mulf %348, %351 : vector<4x1xf32>
    %353 = arith.mulf %350, %350 : vector<4x1xf32>
    %354 = arith.subf %352, %353 : vector<4x1xf32>
    %cst_374 = arith.constant 9.99999974E-6 : f32
    %355 = vector.broadcast %cst_374 : f32 to vector<4x1xf32>
    %356 = arith.addf %354, %355 : vector<4x1xf32>
    %357 = math.rsqrt %356 : vector<4x1xf32>
    %358 = arith.mulf %357, %12 : vector<4x1xf32>
    %359 = vector.broadcast %350 : vector<4x1xf32> to vector<4x256xf32>
    %360 = arith.subf %268, %359 : vector<4x256xf32>
    %361 = vector.broadcast %358 : vector<4x1xf32> to vector<4x256xf32>
    %362 = arith.mulf %360, %361 : vector<4x256xf32>
    %363 = vector.broadcast %14 : vector<4x1xf32> to vector<4x256xf32>
    %364 = arith.addf %362, %363 : vector<4x256xf32>
    %365 = vector.broadcast %350 : vector<4x1xf32> to vector<4x256xf32>
    %366 = arith.subf %341, %365 : vector<4x256xf32>
    %367 = vector.broadcast %358 : vector<4x1xf32> to vector<4x256xf32>
    %368 = arith.mulf %366, %367 : vector<4x256xf32>
    %369 = vector.broadcast %14 : vector<4x1xf32> to vector<4x256xf32>
    %370 = arith.addf %368, %369 : vector<4x256xf32>
    %371 = arith.addf %16, %364 : vector<4x256xf32>
    %c0_375 = arith.constant 0 : index
    %c0_376 = arith.constant 0 : index
    %c0_377 = arith.constant 0 : index
    %372 = vector.load %arg8[%c0_375, %c0_376, %c0_377] : memref<2x4x256xf32, #tpu.memory_space<vmem>>, vector<1x4x256xf32>
    %373 = vector.shape_cast %372 : vector<1x4x256xf32> to vector<4x256xf32>
    %374 = vector.shape_cast %371 : vector<4x256xf32> to vector<1x4x256xf32>
    tpu.vector_store %arg8[%c0_375, %c0_376, %c0_377], %374 {strides = array<i32>} : memref<2x4x256xf32, #tpu.memory_space<vmem>>, vector<1x4x256xf32>,
    %375 = arith.addf %18, %370 : vector<4x256xf32>
    %c1_378 = arith.constant 1 : index
    %c0_379 = arith.constant 0 : index
    %c0_380 = arith.constant 0 : index
    %376 = vector.load %arg8[%c1_378, %c0_379, %c0_380] : memref<2x4x256xf32, #tpu.memory_space<vmem>>, vector<1x4x256xf32>
    %377 = vector.shape_cast %376 : vector<1x4x256xf32> to vector<4x256xf32>
    %378 = vector.shape_cast %375 : vector<4x256xf32> to vector<1x4x256xf32>
    tpu.vector_store %arg8[%c1_378, %c0_379, %c0_380], %378 {strides = array<i32>} : memref<2x4x256xf32, #tpu.memory_space<vmem>>, vector<1x4x256xf32>,
    return
  }
  func.func @transform_0(%arg0: i32) -> (i32, i32, i32) {
    %c0_i32 = arith.constant 0 : i32
    %c0_i32_0 = arith.constant 0 : i32
    %c0_i32_1 = arith.constant 0 : i32
    %c0_i32_2 = arith.constant 0 : i32
    return %c0_i32, %c0_i32_0, %c0_i32_1 : i32, i32, i32
  }
  func.func @transform_1(%arg0: i32) -> (i32, i32, i32, i32) {
    %c0_i32 = arith.constant 0 : i32
    %c0_i32_0 = arith.constant 0 : i32
    %c0_i32_1 = arith.constant 0 : i32
    %c0_i32_2 = arith.constant 0 : i32
    return %arg0, %c0_i32, %c0_i32_0, %c0_i32_1 : i32, i32, i32, i32
  }
  func.func @transform_2(%arg0: i32) -> (i32, i32, i32, i32) {
    %c0_i32 = arith.constant 0 : i32
    %c0_i32_0 = arith.constant 0 : i32
    %c0_i32_1 = arith.constant 0 : i32
    %c0_i32_2 = arith.constant 0 : i32
    return %arg0, %c0_i32, %c0_i32_0, %c0_i32_1 : i32, i32, i32, i32
  }
  func.func @transform_3(%arg0: i32) -> (i32, i32, i32, i32) {
    %c0_i32 = arith.constant 0 : i32
    %c0_i32_0 = arith.constant 0 : i32
    %c0_i32_1 = arith.constant 0 : i32
    %c0_i32_2 = arith.constant 0 : i32
    return %arg0, %c0_i32, %c0_i32_0, %c0_i32_1 : i32, i32, i32, i32
  }
  func.func @transform_4(%arg0: i32) -> (i32, i32, i32) {
    %c0_i32 = arith.constant 0 : i32
    %c0_i32_0 = arith.constant 0 : i32
    %c0_i32_1 = arith.constant 0 : i32
    %c0_i32_2 = arith.constant 0 : i32
    return %c0_i32, %c0_i32_0, %c0_i32_1 : i32, i32, i32
  }
  func.func @transform_5(%arg0: i32) -> (i32, i32) {
    %c0_i32 = arith.constant 0 : i32
    %c0_i32_0 = arith.constant 0 : i32
    %c0_i32_1 = arith.constant 0 : i32
    return %c0_i32, %c0_i32_0 : i32, i32
  }
  func.func @transform_6(%arg0: i32) -> (i32, i32) {
    %c0_i32 = arith.constant 0 : i32
    %c0_i32_0 = arith.constant 0 : i32
    %c0_i32_1 = arith.constant 0 : i32
    return %c0_i32, %c0_i32_0 : i32, i32
  }
  func.func @transform_7(%arg0: i32) -> (i32, i32, i32) {
    %c0_i32 = arith.constant 0 : i32
    %c0_i32_0 = arith.constant 0 : i32
    %c0_i32_1 = arith.constant 0 : i32
    %c0_i32_2 = arith.constant 0 : i32
    return %c0_i32, %c0_i32_0, %c0_i32_1 : i32, i32, i32
  }
}

</mosaic_0001>

<bundles_post_ra>
// kernel: resnet_forward.1
= control target key start
LH: loop header
LB: loop body
LE: loop exit
PB: predicated region body
PF: predicated region fallthrough
CT: control target
= control target key end

     0   :  { %12 = vsyncpa [#allocation3], 0  ;;  %s10556_s0 = inlined_call_operand.vmem [shape: f32[2,4,256], index: 0, kind: input, shape index: {}]   ;;  %s10557_s1 = inlined_call_operand.vmem [shape: f32[2,9,4,4], index: 1, kind: input, shape index: {}]   ;;  %s10558_s2 = inlined_call_operand.vmem [shape: f32[2,9,4,4], index: 2, kind: input, shape index: {}]   ;;  %s10559_s3 = inlined_call_operand.vmem [shape: f32[2,6,4,1], index: 3, kind: input, shape index: {}]   ;;  %s10560_s4 = inlined_call_operand.hbm [shape: f32[9,256,256], index: 4, kind: input, shape index: {}]   ;;  %s10561_s5 = inlined_call_operand.hbm [shape: f32[256,1024], index: 5, kind: input, shape index: {}]   ;;  %s10562_s6 = inlined_call_operand.hbm [shape: f32[1024,256], index: 6, kind: input, shape index: {}]   ;;  %s10563_s7 = inlined_call_operand.vmem [shape: f32[2,4,256], index: 7, kind: output, shape index: {}]  }
   0x1   :  { %13 = vsyncpa [#allocation5], 0  ;;  %s9885_s24 = smov 0  }
   0x2 LB: > { %s9836_s25 = smov [#allocation4]   ;;  %s9891_s27 = sadd.s32 4294967295, %s9834_s24   ;;  %s9834_s24 = sphi %s9885_s24, %s19_s24  }
   0x3   : > { %s235_s26 = sshll.u32 %s9836_s25, 4  ;;  %p7790_p0 = scmp.ge.s32.totalorder %s9834_s24, 1  ;;  %s236_s26 = int_to_ptr.vmem [resolvable:$true] %s235_s26 }
   0x4   : > { %p207_p1 = scmp.lt.s32.totalorder %s9834_s24, 3  ;;  %p7791_p2 = scmp.ne.s32.totalorder %s9891_s27, 0 }
   0x5   : > { %p7960_p3 = scmp.eq.s32.totalorder %s9891_s27, 0  ;;  %s9837_s29 = smov [#allocation2]  }
   0x6   : > { %p9897_p4 = pnand %p7790_p0, %p207_p1  ;;  %s222_s30 = sshll.u32 %s9837_s29, 4  ;;  %s9903_s30 = int_to_ptr.vmem [resolvable:$true] %s222_s30 }
   0x7   : > { %s9838_s9 = smov [#allocation6]   ;;  %s9753_s11 = scalar_lea.vmem %s236_s26, 32768 }
   0x8   : > { %p7950_p5 = pneg %p9897_p4  ;;  %s9911_s10 = sshll.u32 %s9838_s9, 4  ;;  %s249_s10 = int_to_ptr.vmem [resolvable:$true] %s9911_s10 }
   0x9   : > { %p9754_p8 = scmp.ne.s32.totalorder %s236_s26, %s9753_s11  ;;  %p9761_p11 = scmp.lt.s32.totalorder %s236_s26, %s236_s26 }
   0xa   : > { %p9907_p6 = pnand %p7960_p3, %p7950_p5  ;;  %p9762_p12 = scmp.lt.s32.totalorder %s9753_s11, %s9753_s11 }
   0xc   : > { %p9744_p7 = pneg %p9907_p6  ;;  %p9763_p13 = por %p9762_p12, %p9761_p11 }
   0xe   : > { %p9756_p9 = pnand %p9754_p8, %p9744_p7 }
  0x10   : > { %p9757_p10 = pneg %p9756_p9 }
  0x12   : > { %p9764_p0 = pnand %p9763_p13, %p9757_p10 }
  0x14   : > { %9767 = shalt.err (!%p9764_p0)
}
  0x15   : > { %s9839_s12 = smov 1024   ;;  %s9840_s13 = smov 64  }
  0x16   : > { %7956 = dma.hbm_to_vmem [thread:$0]  (!%p9907_p6), %s10561_s5, 32768, %s236_s26, [#allocation5], %s9839_s12, %s9839_s12, %s9840_s13  }
  0x17   : > { %s9779_s16 = scalar_lea.vmem %s9903_s30, 73728  ;;  %p9787_p9 = scmp.lt.s32.totalorder %s9903_s30, %s9903_s30 }
  0x18   : > { %p9780_p1 = scmp.ne.s32.totalorder %s9903_s30, %s9779_s16  ;;  %p9788_p10 = scmp.lt.s32.totalorder %s9779_s16, %s9779_s16 }
  0x1a   : > { %p9782_p5 = pnand %p9780_p1, %p9744_p7  ;;  %p9789_p11 = por %p9788_p10, %p9787_p9 }
  0x1c   : > { %p9783_p8 = pneg %p9782_p5 }
  0x1e   : > { %p9790_p12 = pnand %p9789_p11, %p9783_p8 }
  0x20   : > { %9793 = shalt.err (!%p9790_p12)
}
  0x21   : > { %s9841_s17 = smov 256   ;;  %s9842_s18 = smov 16  }
  0x22   : > { %7953 = dma.hbm_to_vmem [thread:$0]  (!%p9907_p6), %s10560_s4, 73728, %s9903_s30, [#allocation3], %s9841_s17, %s9841_s17, %s9842_s18  }
  0x23   : > { %s9805_s21 = scalar_lea.vmem %s249_s10, 32768  ;;  %p9813_p5 = scmp.lt.s32.totalorder %s249_s10, %s249_s10 }
  0x24   : > { %p9806_p13 = scmp.ne.s32.totalorder %s249_s10, %s9805_s21  ;;  %p9814_p8 = scmp.lt.s32.totalorder %s9805_s21, %s9805_s21 }
  0x26   : > { %p9808_p0 = pnand %p9806_p13, %p9744_p7  ;;  %p9815_p9 = por %p9814_p8, %p9813_p5 }
  0x28   : > { %p9809_p1 = pneg %p9808_p0 }
  0x2a   : > { %p9816_p10 = pnand %p9815_p9, %p9809_p1 }
  0x2c   : > { %9819 = shalt.err (!%p9816_p10)
}
  0x2d   : > { %7959 = dma.hbm_to_vmem [thread:$0]  (!%p9907_p6), %s10562_s6, 32768, %s249_s10, [#allocation5], %s9841_s17, %s9841_s17, %s9842_s18  }
  0x2e   : > { %288 = sbr.rel (%p9897_p4) target bundleno = 10663 (0x29a7), region = 48 }
  0x33   : > { %9825 = dma.done.wait (%p7960_p3), [#allocation3], 73728  }
  0x34   : > { %9827 = vsyncadd (%p7960_p3), [#allocation3], 4294893568 }
  0x35   : > { %9829 = dma.done.wait (%p7960_p3), [#allocation5], 65536  }
  0x36   : > { %9831 = vsyncadd (%p7960_p3), [#allocation5], 4294901760  ;;  %p333_p7 = scmp.lt.s32.totalorder %s9891_s27, 1 }
  0x38   : > { %s334_s25 = scalar_select %p333_p7, %s9891_s27, 1 }
  0x39   : > { %351 = sbr.rel (%p7791_p2) target bundleno = 64 (0x40), region = 64 }
  0x3a   : > { %s7936_s26 = smul.u32 36, %s334_s25 }
  0x3b   : > { %s7937_s29 = smul.u32 24, %s334_s25 }
  0x3c   : > { %s9960_s8 = scalar_lea.vmem %s10557_s1, %s7936_s26  ;;  %s9965_s11 = scalar_lea.vmem %s10558_s2, %s7936_s26 }
  0x3d   : > { %s9970_s14 = scalar_lea.vmem %s10559_s3, %s7937_s29 }
  0x3e   : > { %v352_v0 = vld [vmem:[%s10556_s0] sm:$0xff]  ;;  %v353_v1 = vld [vmem:[%s10556_s0 + $0x8] sm:$0xff] }
  0x3f   : > { %354 = vst [vmem:[%s10563_s7] sm:$0xff] %v352_v0  ;;  %355 = vst [vmem:[%s10563_s7 + $0x8] sm:$0xff] %v353_v1 }
  0x40 PF: > { %v407_v2 = vld [vmem:[#allocation2 + $0xf8] sm:$0xff]  ;;  %v406_v3 = vld [vmem:[#allocation2 + $0xf0] sm:$0xff]  ;;  %v405_v4 = vld [vmem:[#allocation2 + $0xe8] sm:$0xff]  ;;  %vm519_vm0 = vcmask 1043456   ;;  %vm515_vm1 = vcmask 31744  }
  0x41   : > { %443 = vmatprep.subr.mxu0 %v407_v2  ;;  %v404_v5 = vld [vmem:[#allocation2 + $0xe0] sm:$0xff]  ;;  %v403_v6 = vld [vmem:[#allocation2 + $0xd8] sm:$0xff]  ;;  %v402_v7 = vld [vmem:[#allocation2 + $0xd0] sm:$0xff] }
  0x42   : > { %444 = vmatpush1.msra.mxu0 %v406_v3  ;;  %v401_v8 = vld [vmem:[#allocation2 + $0xc8] sm:$0xff]  ;;  %v400_v9 = vld [vmem:[#allocation2 + $0xc0] sm:$0xff]  ;;  %v399_v10 = vld [vmem:[#allocation2 + $0xb8] sm:$0xff] }
  0x43   : > { %445 = vmatprep.subr.mxu0 %v405_v4  ;;  %v398_v11 = vld [vmem:[#allocation2 + $0xb0] sm:$0xff]  ;;  %v397_v12 = vld [vmem:[#allocation2 + $0xa8] sm:$0xff]  ;;  %v396_v13 = vld [vmem:[#allocation2 + $0xa0] sm:$0xff]  ;;  %v9843_v4 = vmov 0.0  }
  0x44   : > { %446 = vmatpush1.msra.mxu0 %v404_v5  ;;  %v395_v14 = vld [vmem:[#allocation2 + $0x98] sm:$0xff]  ;;  %v394_v15 = vld [vmem:[#allocation2 + $0x90] sm:$0xff]  ;;  %v393_v16 = vld [vmem:[#allocation2 + $0x88] sm:$0xff]  ;;  %590 = vmatprep.mubr.f32.mxu1 %v9843_v4  ;;  %v9844_v5 = vmov 0  }
  0x45   : > { %447 = vmatprep.subr.mxu0 %v403_v6  ;;  %v392_v17 = vld [vmem:[#allocation2 + $0x80] sm:$0xff]  ;;  %v391_v18 = vld [vmem:[#allocation2 + $0x78] sm:$0xff]  ;;  %v390_v19 = vld [vmem:[#allocation2 + $0x70] sm:$0xff]  ;;  %7983 = vset.pattern.permute.xlu0 %v9844_v5 }
  0x46   : > { %448 = vmatpush1.msra.mxu0 %v402_v7  ;;  %v389_v20 = vld [vmem:[#allocation2 + $0x68] sm:$0xff]  ;;  %v388_v21 = vld [vmem:[#allocation2 + $0x60] sm:$0xff]  ;;  %v387_v22 = vld [vmem:[#allocation2 + $0x58] sm:$0xff]  ;;  %7984 = vset.pattern.permute.xlu1 %v9844_v5 }
  0x47   : > { %449 = vmatprep.subr.mxu0 %v401_v8  ;;  %v386_v23 = vld [vmem:[#allocation2 + $0x50] sm:$0xff]  ;;  %v385_v24 = vld [vmem:[#allocation2 + $0x48] sm:$0xff]  ;;  %v384_v25 = vld [vmem:[#allocation2 + $0x40] sm:$0xff] }
  0x48   : > { %450 = vmatpush1.msra.mxu0 %v400_v9  ;;  %v9989_v26 = vld [vmem:[%s10563_s7] sm:$0xff]  ;;  %v383_v27 = vld [vmem:[#allocation2 + $0x38] sm:$0xff]  ;;  %v382_v29 = vld [vmem:[#allocation2 + $0x30] sm:$0xff] }
  0x49   : > { %451 = vmatprep.subr.mxu0 %v399_v10  ;;  %v9993_v28 = vcombine.high %v9989_v26, %v9989_v26  ;;  %v381_v30 = vld [vmem:[#allocation2 + $0x28] sm:$0xff]  ;;  %v380_v31 = vld [vmem:[#allocation2 + $0x20] sm:$0xff]  ;;  %v379_v32 = vld [vmem:[#allocation2 + $0x18] sm:$0xff] }
  0x4a   : > { %452 = vmatpush1.msra.mxu0 %v398_v11  ;;  %v378_v33 = vld [vmem:[#allocation2 + $0x10] sm:$0xff]  ;;  %v377_v34 = vld [vmem:[#allocation2 + $0x8] sm:$0xff]  ;;  %v376_v35 = vld [vmem:[#allocation2] sm:$0xff] }
  0x4b   : > { %453 = vmatprep.subr.mxu0 %v397_v12  ;;  %507 = vmatprep.mubr.f32.mxu0 %v9993_v28  ;;  %v439_v36 = vld [vmem:[#allocation2 + $0x1f8] sm:$0xff]  ;;  %v438_v37 = vld [vmem:[#allocation2 + $0x1f0] sm:$0xff]  ;;  %v437_v38 = vld [vmem:[#allocation2 + $0x1e8] sm:$0xff] }
  0x4c   : > { %454 = vmatpush1.msra.mxu0 %v396_v13  ;;  %v436_v39 = vld [vmem:[#allocation2 + $0x1e0] sm:$0xff]  ;;  %v435_v40 = vld [vmem:[#allocation2 + $0x1d8] sm:$0xff]  ;;  %v434_v41 = vld [vmem:[#allocation2 + $0x1d0] sm:$0xff] }
  0x4d   : > { %455 = vmatprep.subr.mxu0 %v395_v14  ;;  %v433_v42 = vld [vmem:[#allocation2 + $0x1c8] sm:$0xff]  ;;  %v432_v43 = vld [vmem:[#allocation2 + $0x1c0] sm:$0xff]  ;;  %v431_v44 = vld [vmem:[#allocation2 + $0x1b8] sm:$0xff] }
  0x4e   : > { %456 = vmatpush1.msra.mxu0 %v394_v15  ;;  %v430_v45 = vld [vmem:[#allocation2 + $0x1b0] sm:$0xff]  ;;  %v429_v46 = vld [vmem:[#allocation2 + $0x1a8] sm:$0xff]  ;;  %v428_v47 = vld [vmem:[#allocation2 + $0x1a0] sm:$0xff] }
  0x4f   : > { %457 = vmatprep.subr.mxu0 %v393_v16  ;;  %v427_v48 = vld [vmem:[#allocation2 + $0x198] sm:$0xff]  ;;  %v426_v49 = vld [vmem:[#allocation2 + $0x190] sm:$0xff]  ;;  %v425_v50 = vld [vmem:[#allocation2 + $0x188] sm:$0xff] }
  0x50   : > { %458 = vmatpush1.msra.mxu0 %v392_v17  ;;  %v424_v51 = vld [vmem:[#allocation2 + $0x180] sm:$0xff]  ;;  %v423_v52 = vld [vmem:[#allocation2 + $0x178] sm:$0xff]  ;;  %v422_v53 = vld [vmem:[#allocation2 + $0x170] sm:$0xff] }
  0x51   : > { %459 = vmatprep.subr.mxu0 %v391_v18  ;;  %v421_v54 = vld [vmem:[#allocation2 + $0x168] sm:$0xff]  ;;  %v420_v55 = vld [vmem:[#allocation2 + $0x160] sm:$0xff]  ;;  %v419_v56 = vld [vmem:[#allocation2 + $0x158] sm:$0xff] }
  0x52   : > { %460 = vmatpush1.msra.mxu0 %v390_v19  ;;  %v418_v57 = vld [vmem:[#allocation2 + $0x150] sm:$0xff]  ;;  %v417_v58 = vld [vmem:[#allocation2 + $0x148] sm:$0xff]  ;;  %v416_v59 = vld [vmem:[#allocation2 + $0x140] sm:$0xff] }
  0x53   : > { %461 = vmatprep.subr.mxu0 %v389_v20  ;;  %v415_v60 = vld [vmem:[#allocation2 + $0x138] sm:$0xff]  ;;  %v414_v61 = vld [vmem:[#allocation2 + $0x130] sm:$0xff]  ;;  %v413_v62 = vld [vmem:[#allocation2 + $0x128] sm:$0xff] }
  0x54   : > { %462 = vmatpush1.msra.mxu0 %v388_v21  ;;  %v412_v63 = vld [vmem:[#allocation2 + $0x120] sm:$0xff]  ;;  %v411_v0 = vld [vmem:[#allocation2 + $0x118] sm:$0xff]  ;;  %v410_v1 = vld [vmem:[#allocation2 + $0x110] sm:$0xff] }
  0x55   : > { %463 = vmatprep.subr.mxu0 %v387_v22  ;;  %v409_v2 = vld [vmem:[#allocation2 + $0x108] sm:$0xff]  ;;  %v408_v3 = vld [vmem:[#allocation2 + $0x100] sm:$0xff]  ;;  %v631_v10 = vld [vmem:[#allocation2 + $0x2f8] sm:$0xff] }
  0x56   : > { %464 = vmatpush1.msra.mxu0 %v386_v23  ;;  %v356_v6 = vld [vmem:[%s9970_s14] sm:$0xf]  ;;  %v630_v11 = vld [vmem:[#allocation2 + $0x2f0] sm:$0xff]  ;;  %v629_v12 = vld [vmem:[#allocation2 + $0x2e8] sm:$0xff] }
  0x57   : > { %465 = vmatprep.subr.mxu0 %v385_v24  ;;  %372 = vperm.xlu0 %7983, %v356_v6   ;;  %v514_v9 = vld [vmem:[%s9960_s8] sm:$0xf]  ;;  %v627_v14 = vld [vmem:[#allocation2 + $0x2d8] sm:$0xff]  ;;  %v626_v15 = vld [vmem:[#allocation2 + $0x2d0] sm:$0xff] }
  0x58   : > { %466 = vmatpush1.msra.mxu0 %v384_v25  ;;  %v628_v13 = vld [vmem:[#allocation2 + $0x2e0] sm:$0xff]  ;;  %v625_v16 = vld [vmem:[#allocation2 + $0x2c8] sm:$0xff]  ;;  %v623_v18 = vld [vmem:[#allocation2 + $0x2b8] sm:$0xff] }
  0x59   : > { %467 = vmatprep.subr.mxu0 %v383_v27  ;;  %v624_v17 = vld [vmem:[#allocation2 + $0x2c0] sm:$0xff]  ;;  %v622_v19 = vld [vmem:[#allocation2 + $0x2b0] sm:$0xff]  ;;  %v621_v20 = vld [vmem:[#allocation2 + $0x2a8] sm:$0xff] }
  0x5a   : > { %468 = vmatpush1.msra.mxu0 %v382_v29  ;;  %v620_v21 = vld [vmem:[#allocation2 + $0x2a0] sm:$0xff]  ;;  %v619_v22 = vld [vmem:[#allocation2 + $0x298] sm:$0xff]  ;;  %v618_v23 = vld [vmem:[#allocation2 + $0x290] sm:$0xff] }
  0x5b   : > { %469 = vmatprep.subr.mxu0 %v381_v30  ;;  %v617_v24 = vld [vmem:[#allocation2 + $0x288] sm:$0xff]  ;;  %v616_v25 = vld [vmem:[#allocation2 + $0x280] sm:$0xff]  ;;  %v615_v27 = vld [vmem:[#allocation2 + $0x278] sm:$0xff] }
  0x5c   : > { %470 = vmatpush1.msra.mxu0 %v380_v31  ;;  %v614_v29 = vld [vmem:[#allocation2 + $0x270] sm:$0xff]  ;;  %v613_v30 = vld [vmem:[#allocation2 + $0x268] sm:$0xff]  ;;  %v612_v31 = vld [vmem:[#allocation2 + $0x260] sm:$0xff] }
  0x5d   : > { %471 = vmatprep.subr.mxu0 %v379_v32  ;;  %v611_v32 = vld [vmem:[#allocation2 + $0x258] sm:$0xff]  ;;  %v638_v6 = vld [vmem:[#allocation2 + $0x330] sm:$0xff] }
  0x5e   : > { %472 = vmatpush1.msra.mxu0 %v378_v33  ;;  %v610_v33 = vld [vmem:[#allocation2 + $0x250] sm:$0xff]  ;;  %v639_v5 = vld [vmem:[#allocation2 + $0x338] sm:$0xff] }
  0x5f   : > { %473 = vmatprep.subr.mxu0 %v377_v34  ;;  %v609_v34 = vld [vmem:[#allocation2 + $0x248] sm:$0xff] }
  0x60   : > { %474 = vmatpush1.msra.mxu0 %v376_v35  ;;  %v608_v35 = vld [vmem:[#allocation2 + $0x240] sm:$0xff] }
  0x61   : > { %475 = vmatprep.subr.mxu0 %v439_v36  ;;  %v607_v36 = vld [vmem:[#allocation2 + $0x238] sm:$0xff] }
  0x62   : > { %476 = vmatpush2.msra.mxu0 %v438_v37  ;;  %v606_v37 = vld [vmem:[#allocation2 + $0x230] sm:$0xff] }
  0x63   : > { %477 = vmatprep.subr.mxu0 %v437_v38  ;;  %v605_v38 = vld [vmem:[#allocation2 + $0x228] sm:$0xff] }
  0x64   : > { %478 = vmatpush2.msra.mxu0 %v436_v39  ;;  %v604_v39 = vld [vmem:[#allocation2 + $0x220] sm:$0xff] }
  0x65   : > { %479 = vmatprep.subr.mxu0 %v435_v40  ;;  %v603_v40 = vld [vmem:[#allocation2 + $0x218] sm:$0xff] }
  0x66   : > { %480 = vmatpush2.msra.mxu0 %v434_v41  ;;  %v602_v41 = vld [vmem:[#allocation2 + $0x210] sm:$0xff] }
  0x67   : > { %481 = vmatprep.subr.mxu0 %v433_v42  ;;  %v601_v42 = vld [vmem:[#allocation2 + $0x208] sm:$0xff] }
  0x68   : > { %482 = vmatpush2.msra.mxu0 %v432_v43  ;;  %v600_v43 = vld [vmem:[#allocation2 + $0x200] sm:$0xff] }
  0x69   : > { %483 = vmatprep.subr.mxu0 %v431_v44  ;;  %v663_v44 = vld [vmem:[#allocation2 + $0x3f8] sm:$0xff] }
  0x6a   : > { %484 = vmatpush2.msra.mxu0 %v430_v45  ;;  %v662_v45 = vld [vmem:[#allocation2 + $0x3f0] sm:$0xff] }
  0x6b   : > { %485 = vmatprep.subr.mxu0 %v429_v46  ;;  %v661_v46 = vld [vmem:[#allocation2 + $0x3e8] sm:$0xff] }
  0x6c   : > { %486 = vmatpush2.msra.mxu0 %v428_v47  ;;  %v660_v47 = vld [vmem:[#allocation2 + $0x3e0] sm:$0xff] }
  0x6d   : > { %487 = vmatprep.subr.mxu0 %v427_v48  ;;  %v659_v48 = vld [vmem:[#allocation2 + $0x3d8] sm:$0xff] }
  0x6e   : > { %488 = vmatpush2.msra.mxu0 %v426_v49  ;;  %v658_v49 = vld [vmem:[#allocation2 + $0x3d0] sm:$0xff] }
  0x6f   : > { %489 = vmatprep.subr.mxu0 %v425_v50  ;;  %v657_v50 = vld [vmem:[#allocation2 + $0x3c8] sm:$0xff] }
  0x70   : > { %490 = vmatpush2.msra.mxu0 %v424_v51  ;;  %v656_v51 = vld [vmem:[#allocation2 + $0x3c0] sm:$0xff] }
  0x71   : > { %491 = vmatprep.subr.mxu0 %v423_v52  ;;  %v655_v52 = vld [vmem:[#allocation2 + $0x3b8] sm:$0xff] }
  0x72   : > { %492 = vmatpush2.msra.mxu0 %v422_v53  ;;  %v654_v53 = vld [vmem:[#allocation2 + $0x3b0] sm:$0xff] }
  0x73   : > { %493 = vmatprep.subr.mxu0 %v421_v54  ;;  %v653_v54 = vld [vmem:[#allocation2 + $0x3a8] sm:$0xff] }
  0x74   : > { %494 = vmatpush2.msra.mxu0 %v420_v55  ;;  %v652_v55 = vld [vmem:[#allocation2 + $0x3a0] sm:$0xff] }
  0x75   : > { %495 = vmatprep.subr.mxu0 %v419_v56  ;;  %v651_v56 = vld [vmem:[#allocation2 + $0x398] sm:$0xff] }
  0x76   : > { %496 = vmatpush2.msra.mxu0 %v418_v57  ;;  %v650_v57 = vld [vmem:[#allocation2 + $0x390] sm:$0xff] }
  0x77   : > { %497 = vmatprep.subr.mxu0 %v417_v58  ;;  %v649_v58 = vld [vmem:[#allocation2 + $0x388] sm:$0xff] }
  0x78   : > { %498 = vmatpush2.msra.mxu0 %v416_v59  ;;  %v648_v59 = vld [vmem:[#allocation2 + $0x380] sm:$0xff] }
  0x79   : > { %499 = vmatprep.subr.mxu0 %v415_v60  ;;  %v647_v60 = vld [vmem:[#allocation2 + $0x378] sm:$0xff] }
  0x7a   : > { %500 = vmatpush2.msra.mxu0 %v414_v61  ;;  %v646_v61 = vld [vmem:[#allocation2 + $0x370] sm:$0xff] }
  0x7b   : > { %501 = vmatprep.subr.mxu0 %v413_v62  ;;  %v645_v62 = vld [vmem:[#allocation2 + $0x368] sm:$0xff] }
  0x7c   : > { %502 = vmatpush2.msra.mxu0 %v412_v63  ;;  %v644_v63 = vld [vmem:[#allocation2 + $0x360] sm:$0xff] }
  0x7d   : > { %503 = vmatprep.subr.mxu0 %v411_v0  ;;  %v643_v0 = vld [vmem:[#allocation2 + $0x358] sm:$0xff] }
  0x7e   : > { %504 = vmatpush2.msra.mxu0 %v410_v1  ;;  %v642_v1 = vld [vmem:[#allocation2 + $0x350] sm:$0xff] }
  0x7f   : > { %505 = vmatprep.subr.mxu0 %v409_v2  ;;  %v641_v2 = vld [vmem:[#allocation2 + $0x348] sm:$0xff] }
  0x80   : > { %506 = vmatpush2.msra.mxu0 %v408_v3  ;;  %v640_v3 = vld [vmem:[#allocation2 + $0x340] sm:$0xff] }
  0x81   : > { %508 = vmatmul.mubr.f32.vlgmr.msra.gmra.mxu0 %v9989_v26 }
  0x82   : > { %810 = vmatprep.mubr.f32.mxu0 %v9843_v4 }
 0x141   : > { %v509_v7 = vpop.f32.mrf.mxu0 }
 0x143   : > { %v511_v8 = vpop.f32.mrf.mxu0 }
 0x144   : > { %7809 = vmatprep.subr.msk.mxu1 %vm519_vm0, %v511_v8  ;;  %v636_v8 = vld [vmem:[#allocation2 + $0x320] sm:$0xff] }
 0x145   : > { %7810 = vmatpush1.msk.msra.mxu1 %vm519_vm0, %v509_v7  ;;  %v637_v7 = vld [vmem:[#allocation2 + $0x328] sm:$0xff] }
 0x146   : > { %7811 = vmatmul.mubr.msk.f32.vlgmr.msra.gmra.mxu1 %vm515_vm1, %v514_v9  ;;  %664 = vmatprep.subr.mxu1 %v631_v10  ;;  %v635_v9 = vld [vmem:[#allocation2 + $0x318] sm:$0xff]  ;;  %v634_v10 = vld [vmem:[#allocation2 + $0x310] sm:$0xff] }
 0x147   : > { %665 = vmatpush1.msra.mxu1 %v630_v11  ;;  %728 = vmatprep.mubr.f32.mxu1 %v9993_v28  ;;  %v633_v11 = vld [vmem:[#allocation2 + $0x308] sm:$0xff] }
 0x148   : > { %666 = vmatprep.subr.mxu1 %v629_v12  ;;  %v632_v12 = vld [vmem:[#allocation2 + $0x300] sm:$0xff] }
 0x149   : > { %667 = vmatpush1.msra.mxu1 %v628_v13  ;;  %v851_v13 = vld [vmem:[#allocation2 + $0x4f8] sm:$0xff] }
 0x14a   : > { %668 = vmatprep.subr.mxu1 %v627_v14  ;;  %v850_v14 = vld [vmem:[#allocation2 + $0x4f0] sm:$0xff] }
 0x14b   : > { %669 = vmatpush1.msra.mxu1 %v626_v15  ;;  %v849_v15 = vld [vmem:[#allocation2 + $0x4e8] sm:$0xff] }
 0x14c   : > { %670 = vmatprep.subr.mxu1 %v625_v16  ;;  %v848_v16 = vld [vmem:[#allocation2 + $0x4e0] sm:$0xff] }
 0x14d   : > { %671 = vmatpush1.msra.mxu1 %v624_v17  ;;  %v847_v17 = vld [vmem:[#allocation2 + $0x4d8] sm:$0xff] }
 0x14e   : > { %672 = vmatprep.subr.mxu1 %v623_v18  ;;  %v846_v18 = vld [vmem:[#allocation2 + $0x4d0] sm:$0xff] }
 0x14f   : > { %673 = vmatpush1.msra.mxu1 %v622_v19  ;;  %v845_v19 = vld [vmem:[#allocation2 + $0x4c8] sm:$0xff] }
 0x150   : > { %674 = vmatprep.subr.mxu1 %v621_v20  ;;  %v844_v20 = vld [vmem:[#allocation2 + $0x4c0] sm:$0xff] }
 0x151   : > { %675 = vmatpush1.msra.mxu1 %v620_v21  ;;  %v843_v21 = vld [vmem:[#allocation2 + $0x4b8] sm:$0xff] }
 0x152   : > { %676 = vmatprep.subr.mxu1 %v619_v22  ;;  %v842_v22 = vld [vmem:[#allocation2 + $0x4b0] sm:$0xff] }
 0x153   : > { %677 = vmatpush1.msra.mxu1 %v618_v23  ;;  %v841_v23 = vld [vmem:[#allocation2 + $0x4a8] sm:$0xff] }
 0x154   : > { %678 = vmatprep.subr.mxu1 %v617_v24  ;;  %v840_v24 = vld [vmem:[#allocation2 + $0x4a0] sm:$0xff] }
 0x155   : > { %679 = vmatpush1.msra.mxu1 %v616_v25  ;;  %v839_v25 = vld [vmem:[#allocation2 + $0x498] sm:$0xff] }
 0x156   : > { %680 = vmatprep.subr.mxu1 %v615_v27  ;;  %v838_v27 = vld [vmem:[#allocation2 + $0x490] sm:$0xff] }
 0x157   : > { %681 = vmatpush1.msra.mxu1 %v614_v29  ;;  %v837_v29 = vld [vmem:[#allocation2 + $0x488] sm:$0xff] }
 0x158   : > { %682 = vmatprep.subr.mxu1 %v613_v30  ;;  %v836_v30 = vld [vmem:[#allocation2 + $0x480] sm:$0xff] }
 0x159   : > { %683 = vmatpush1.msra.mxu1 %v612_v31  ;;  %v835_v31 = vld [vmem:[#allocation2 + $0x478] sm:$0xff] }
 0x15a   : > { %684 = vmatprep.subr.mxu1 %v611_v32  ;;  %v834_v32 = vld [vmem:[#allocation2 + $0x470] sm:$0xff] }
 0x15b   : > { %685 = vmatpush1.msra.mxu1 %v610_v33  ;;  %v833_v33 = vld [vmem:[#allocation2 + $0x468] sm:$0xff] }
 0x15c   : > { %686 = vmatprep.subr.mxu1 %v609_v34  ;;  %v832_v34 = vld [vmem:[#allocation2 + $0x460] sm:$0xff] }
 0x15d   : > { %687 = vmatpush1.msra.mxu1 %v608_v35  ;;  %v831_v35 = vld [vmem:[#allocation2 + $0x458] sm:$0xff] }
 0x15e   : > { %688 = vmatprep.subr.mxu1 %v607_v36  ;;  %v830_v36 = vld [vmem:[#allocation2 + $0x450] sm:$0xff] }
 0x15f   : > { %689 = vmatpush1.msra.mxu1 %v606_v37  ;;  %v829_v37 = vld [vmem:[#allocation2 + $0x448] sm:$0xff] }
 0x160   : > { %690 = vmatprep.subr.mxu1 %v605_v38  ;;  %v828_v38 = vld [vmem:[#allocation2 + $0x440] sm:$0xff] }
 0x161   : > { %691 = vmatpush1.msra.mxu1 %v604_v39  ;;  %v827_v39 = vld [vmem:[#allocation2 + $0x438] sm:$0xff] }
 0x162   : > { %692 = vmatprep.subr.mxu1 %v603_v40  ;;  %v826_v40 = vld [vmem:[#allocation2 + $0x430] sm:$0xff] }
 0x163   : > { %693 = vmatpush1.msra.mxu1 %v602_v41  ;;  %v825_v41 = vld [vmem:[#allocation2 + $0x428] sm:$0xff] }
 0x164   : > { %694 = vmatprep.subr.mxu1 %v601_v42  ;;  %v824_v42 = vld [vmem:[#allocation2 + $0x420] sm:$0xff] }
 0x165   : > { %695 = vmatpush1.msra.mxu1 %v600_v43  ;;  %v823_v43 = vld [vmem:[#allocation2 + $0x418] sm:$0xff] }
 0x166   : > { %696 = vmatprep.subr.mxu1 %v663_v44  ;;  %v822_v44 = vld [vmem:[#allocation2 + $0x410] sm:$0xff] }
 0x167   : > { %697 = vmatpush2.msra.mxu1 %v662_v45  ;;  %v821_v45 = vld [vmem:[#allocation2 + $0x408] sm:$0xff] }
 0x168   : > { %698 = vmatprep.subr.mxu1 %v661_v46  ;;  %v820_v46 = vld [vmem:[#allocation2 + $0x400] sm:$0xff] }
 0x169   : > { %699 = vmatpush2.msra.mxu1 %v660_v47  ;;  %v883_v47 = vld [vmem:[#allocation2 + $0x5f8] sm:$0xff] }
 0x16a   : > { %700 = vmatprep.subr.mxu1 %v659_v48  ;;  %v882_v48 = vld [vmem:[#allocation2 + $0x5f0] sm:$0xff] }
 0x16b   : > { %701 = vmatpush2.msra.mxu1 %v658_v49  ;;  %v881_v49 = vld [vmem:[#allocation2 + $0x5e8] sm:$0xff] }
 0x16c   : > { %702 = vmatprep.subr.mxu1 %v657_v50  ;;  %v880_v50 = vld [vmem:[#allocation2 + $0x5e0] sm:$0xff] }
 0x16d   : > { %703 = vmatpush2.msra.mxu1 %v656_v51  ;;  %v879_v51 = vld [vmem:[#allocation2 + $0x5d8] sm:$0xff] }
 0x16e   : > { %704 = vmatprep.subr.mxu1 %v655_v52  ;;  %v878_v52 = vld [vmem:[#allocation2 + $0x5d0] sm:$0xff] }
 0x16f   : > { %705 = vmatpush2.msra.mxu1 %v654_v53  ;;  %v877_v53 = vld [vmem:[#allocation2 + $0x5c8] sm:$0xff] }
 0x170   : > { %706 = vmatprep.subr.mxu1 %v653_v54  ;;  %v876_v54 = vld [vmem:[#allocation2 + $0x5c0] sm:$0xff] }
 0x171   : > { %707 = vmatpush2.msra.mxu1 %v652_v55  ;;  %v875_v55 = vld [vmem:[#allocation2 + $0x5b8] sm:$0xff] }
 0x172   : > { %708 = vmatprep.subr.mxu1 %v651_v56  ;;  %v874_v56 = vld [vmem:[#allocation2 + $0x5b0] sm:$0xff] }
 0x173   : > { %709 = vmatpush2.msra.mxu1 %v650_v57  ;;  %v873_v57 = vld [vmem:[#allocation2 + $0x5a8] sm:$0xff] }
 0x174   : > { %710 = vmatprep.subr.mxu1 %v649_v58  ;;  %v872_v58 = vld [vmem:[#allocation2 + $0x5a0] sm:$0xff] }
 0x175   : > { %711 = vmatpush2.msra.mxu1 %v648_v59  ;;  %v871_v59 = vld [vmem:[#allocation2 + $0x598] sm:$0xff] }
 0x176   : > { %712 = vmatprep.subr.mxu1 %v647_v60  ;;  %v870_v60 = vld [vmem:[#allocation2 + $0x590] sm:$0xff] }
 0x177   : > { %713 = vmatpush2.msra.mxu1 %v646_v61  ;;  %v869_v61 = vld [vmem:[#allocation2 + $0x588] sm:$0xff] }
 0x178   : > { %714 = vmatprep.subr.mxu1 %v645_v62  ;;  %v868_v62 = vld [vmem:[#allocation2 + $0x580] sm:$0xff] }
 0x179   : > { %715 = vmatpush2.msra.mxu1 %v644_v63  ;;  %v867_v63 = vld [vmem:[#allocation2 + $0x578] sm:$0xff] }
 0x17a   : > { %716 = vmatprep.subr.mxu1 %v643_v0  ;;  %v866_v0 = vld [vmem:[#allocation2 + $0x570] sm:$0xff] }
 0x17b   : > { %717 = vmatpush2.msra.mxu1 %v642_v1  ;;  %v865_v1 = vld [vmem:[#allocation2 + $0x568] sm:$0xff] }
 0x17c   : > { %718 = vmatprep.subr.mxu1 %v641_v2  ;;  %v864_v2 = vld [vmem:[#allocation2 + $0x560] sm:$0xff] }
 0x17d   : > { %719 = vmatpush2.msra.mxu1 %v640_v3  ;;  %v863_v3 = vld [vmem:[#allocation2 + $0x558] sm:$0xff] }
 0x17e   : > { %720 = vmatprep.subr.mxu1 %v639_v5  ;;  %v862_v5 = vld [vmem:[#allocation2 + $0x550] sm:$0xff] }
 0x17f   : > { %721 = vmatpush2.msra.mxu1 %v638_v6  ;;  %v861_v6 = vld [vmem:[#allocation2 + $0x548] sm:$0xff] }
 0x180   : > { %722 = vmatprep.subr.mxu1 %v637_v7  ;;  %v860_v7 = vld [vmem:[#allocation2 + $0x540] sm:$0xff] }
 0x181   : > { %723 = vmatpush2.msra.mxu1 %v636_v8  ;;  %v859_v8 = vld [vmem:[#allocation2 + $0x538] sm:$0xff] }
 0x182   : > { %724 = vmatprep.subr.mxu1 %v635_v9  ;;  %v858_v9 = vld [vmem:[#allocation2 + $0x530] sm:$0xff] }
 0x183   : > { %725 = vmatpush2.msra.mxu1 %v634_v10  ;;  %v857_v10 = vld [vmem:[#allocation2 + $0x528] sm:$0xff] }
 0x184   : > { %726 = vmatprep.subr.mxu1 %v633_v11  ;;  %v856_v11 = vld [vmem:[#allocation2 + $0x520] sm:$0xff] }
 0x185   : > { %727 = vmatpush2.msra.mxu1 %v632_v12  ;;  %v855_v12 = vld [vmem:[#allocation2 + $0x518] sm:$0xff] }
 0x186   : > { %729 = vmatmul.mubr.f32.vlgmr.msra.gmra.mxu1 %v9989_v26  ;;  %884 = vmatprep.subr.mxu1 %v851_v13  ;;  %v854_v13 = vld [vmem:[#allocation2 + $0x510] sm:$0xff] }
 0x187   : > { %885 = vmatpush1.msra.mxu1 %v850_v14  ;;  %948 = vmatprep.mubr.f32.mxu1 %v9993_v28  ;;  %v853_v14 = vld [vmem:[#allocation2 + $0x508] sm:$0xff] }
 0x188   : > { %886 = vmatprep.subr.mxu1 %v849_v15  ;;  %v852_v15 = vld [vmem:[#allocation2 + $0x500] sm:$0xff] }
 0x189   : > { %887 = vmatpush1.msra.mxu1 %v848_v16 }
 0x18a   : > { %888 = vmatprep.subr.mxu1 %v847_v17 }
 0x18b   : > { %889 = vmatpush1.msra.mxu1 %v846_v18 }
 0x18c   : > { %890 = vmatprep.subr.mxu1 %v845_v19 }
 0x18d   : > { %891 = vmatpush1.msra.mxu1 %v844_v20  ;;  %v7812_v20 = vld [vmem:[%s9960_s8 + $0x4] sm:$0xf] }
 0x18e   : > { %892 = vmatprep.subr.mxu1 %v843_v21 }
 0x18f   : > { %893 = vmatpush1.msra.mxu1 %v842_v22 }
 0x190   : > { %894 = vmatprep.subr.mxu1 %v841_v23  ;;  %v7816_v23 = vld [vmem:[%s9960_s8 + $0x8] sm:$0xf] }
 0x191   : > { %895 = vmatpush1.msra.mxu1 %v840_v24  ;;  %v1071_v24 = vld [vmem:[#allocation2 + $0x6f8] sm:$0xff] }
 0x192   : > { %896 = vmatprep.subr.mxu1 %v839_v25  ;;  %v1070_v25 = vld [vmem:[#allocation2 + $0x6f0] sm:$0xff] }
 0x193   : > { %897 = vmatpush1.msra.mxu1 %v838_v27  ;;  %v1069_v27 = vld [vmem:[#allocation2 + $0x6e8] sm:$0xff] }
 0x194   : > { %898 = vmatprep.subr.mxu1 %v837_v29  ;;  %v1068_v29 = vld [vmem:[#allocation2 + $0x6e0] sm:$0xff] }
 0x195   : > { %899 = vmatpush1.msra.mxu1 %v836_v30  ;;  %v1067_v30 = vld [vmem:[#allocation2 + $0x6d8] sm:$0xff] }
 0x196   : > { %900 = vmatprep.subr.mxu1 %v835_v31  ;;  %v1066_v31 = vld [vmem:[#allocation2 + $0x6d0] sm:$0xff] }
 0x197   : > { %901 = vmatpush1.msra.mxu1 %v834_v32  ;;  %v1065_v32 = vld [vmem:[#allocation2 + $0x6c8] sm:$0xff] }
 0x198   : > { %902 = vmatprep.subr.mxu1 %v833_v33  ;;  %v1064_v33 = vld [vmem:[#allocation2 + $0x6c0] sm:$0xff] }
 0x199   : > { %903 = vmatpush1.msra.mxu1 %v832_v34  ;;  %v1063_v34 = vld [vmem:[#allocation2 + $0x6b8] sm:$0xff] }
 0x19a   : > { %904 = vmatprep.subr.mxu1 %v831_v35  ;;  %v1062_v35 = vld [vmem:[#allocation2 + $0x6b0] sm:$0xff] }
 0x19b   : > { %905 = vmatpush1.msra.mxu1 %v830_v36  ;;  %v1061_v36 = vld [vmem:[#allocation2 + $0x6a8] sm:$0xff] }
 0x19c   : > { %906 = vmatprep.subr.mxu1 %v829_v37  ;;  %v1060_v37 = vld [vmem:[#allocation2 + $0x6a0] sm:$0xff] }
 0x19d   : > { %907 = vmatpush1.msra.mxu1 %v828_v38  ;;  %v1059_v38 = vld [vmem:[#allocation2 + $0x698] sm:$0xff] }
 0x19e   : > { %908 = vmatprep.subr.mxu1 %v827_v39  ;;  %v1058_v39 = vld [vmem:[#allocation2 + $0x690] sm:$0xff] }
 0x19f   : > { %909 = vmatpush1.msra.mxu1 %v826_v40  ;;  %v1057_v40 = vld [vmem:[#allocation2 + $0x688] sm:$0xff] }
 0x1a0   : > { %910 = vmatprep.subr.mxu1 %v825_v41  ;;  %v1056_v41 = vld [vmem:[#allocation2 + $0x680] sm:$0xff] }
 0x1a1   : > { %911 = vmatpush1.msra.mxu1 %v824_v42  ;;  %v1055_v42 = vld [vmem:[#allocation2 + $0x678] sm:$0xff] }
 0x1a2   : > { %912 = vmatprep.subr.mxu1 %v823_v43  ;;  %v1054_v43 = vld [vmem:[#allocation2 + $0x670] sm:$0xff] }
 0x1a3   : > { %913 = vmatpush1.msra.mxu1 %v822_v44  ;;  %v1053_v44 = vld [vmem:[#allocation2 + $0x668] sm:$0xff] }
 0x1a4   : > { %914 = vmatprep.subr.mxu1 %v821_v45  ;;  %v1052_v45 = vld [vmem:[#allocation2 + $0x660] sm:$0xff] }
 0x1a5   : > { %915 = vmatpush1.msra.mxu1 %v820_v46  ;;  %v1051_v46 = vld [vmem:[#allocation2 + $0x658] sm:$0xff] }
 0x1a6   : > { %916 = vmatprep.subr.mxu1 %v883_v47  ;;  %v1050_v47 = vld [vmem:[#allocation2 + $0x650] sm:$0xff] }
 0x1a7   : > { %917 = vmatpush2.msra.mxu1 %v882_v48  ;;  %v1049_v48 = vld [vmem:[#allocation2 + $0x648] sm:$0xff] }
 0x1a8   : > { %918 = vmatprep.subr.mxu1 %v881_v49  ;;  %v1048_v49 = vld [vmem:[#allocation2 + $0x640] sm:$0xff] }
 0x1a9   : > { %919 = vmatpush2.msra.mxu1 %v880_v50  ;;  %v1047_v50 = vld [vmem:[#allocation2 + $0x638] sm:$0xff] }
 0x1aa   : > { %920 = vmatprep.subr.mxu1 %v879_v51  ;;  %v1046_v51 = vld [vmem:[#allocation2 + $0x630] sm:$0xff] }
 0x1ab   : > { %921 = vmatpush2.msra.mxu1 %v878_v52  ;;  %v1045_v52 = vld [vmem:[#allocation2 + $0x628] sm:$0xff] }
 0x1ac   : > { %922 = vmatprep.subr.mxu1 %v877_v53  ;;  %v1044_v53 = vld [vmem:[#allocation2 + $0x620] sm:$0xff] }
 0x1ad   : > { %923 = vmatpush2.msra.mxu1 %v876_v54  ;;  %v1043_v54 = vld [vmem:[#allocation2 + $0x618] sm:$0xff] }
 0x1ae   : > { %924 = vmatprep.subr.mxu1 %v875_v55  ;;  %v1042_v55 = vld [vmem:[#allocation2 + $0x610] sm:$0xff] }
 0x1af   : > { %925 = vmatpush2.msra.mxu1 %v874_v56  ;;  %v1041_v56 = vld [vmem:[#allocation2 + $0x608] sm:$0xff] }
 0x1b0   : > { %926 = vmatprep.subr.mxu1 %v873_v57  ;;  %v1040_v57 = vld [vmem:[#allocation2 + $0x600] sm:$0xff] }
 0x1b1   : > { %927 = vmatpush2.msra.mxu1 %v872_v58  ;;  %v1103_v58 = vld [vmem:[#allocation2 + $0x7f8] sm:$0xff] }
 0x1b2   : > { %928 = vmatprep.subr.mxu1 %v871_v59  ;;  %v1102_v59 = vld [vmem:[#allocation2 + $0x7f0] sm:$0xff] }
 0x1b3   : > { %929 = vmatpush2.msra.mxu1 %v870_v60  ;;  %v1101_v60 = vld [vmem:[#allocation2 + $0x7e8] sm:$0xff] }
 0x1b4   : > { %930 = vmatprep.subr.mxu1 %v869_v61  ;;  %v1100_v61 = vld [vmem:[#allocation2 + $0x7e0] sm:$0xff] }
 0x1b5   : > { %931 = vmatpush2.msra.mxu1 %v868_v62  ;;  %v1099_v62 = vld [vmem:[#allocation2 + $0x7d8] sm:$0xff] }
 0x1b6   : > { %932 = vmatprep.subr.mxu1 %v867_v63  ;;  %v1098_v63 = vld [vmem:[#allocation2 + $0x7d0] sm:$0xff] }
 0x1b7   : > { %933 = vmatpush2.msra.mxu1 %v866_v0  ;;  %v1097_v0 = vld [vmem:[#allocation2 + $0x7c8] sm:$0xff] }
 0x1b8   : > { %934 = vmatprep.subr.mxu1 %v865_v1  ;;  %v1096_v1 = vld [vmem:[#allocation2 + $0x7c0] sm:$0xff] }
 0x1b9   : > { %935 = vmatpush2.msra.mxu1 %v864_v2  ;;  %v1095_v2 = vld [vmem:[#allocation2 + $0x7b8] sm:$0xff] }
 0x1ba   : > { %936 = vmatprep.subr.mxu1 %v863_v3  ;;  %v1094_v3 = vld [vmem:[#allocation2 + $0x7b0] sm:$0xff] }
 0x1bb   : > { %937 = vmatpush2.msra.mxu1 %v862_v5  ;;  %v1093_v5 = vld [vmem:[#allocation2 + $0x7a8] sm:$0xff] }
 0x1bc   : > { %938 = vmatprep.subr.mxu1 %v861_v6  ;;  %v1092_v6 = vld [vmem:[#allocation2 + $0x7a0] sm:$0xff] }
 0x1bd   : > { %939 = vmatpush2.msra.mxu1 %v860_v7  ;;  %v1091_v7 = vld [vmem:[#allocation2 + $0x798] sm:$0xff] }
 0x1be   : > { %940 = vmatprep.subr.mxu1 %v859_v8  ;;  %v1090_v8 = vld [vmem:[#allocation2 + $0x790] sm:$0xff] }
 0x1bf   : > { %941 = vmatpush2.msra.mxu1 %v858_v9  ;;  %v1089_v9 = vld [vmem:[#allocation2 + $0x788] sm:$0xff] }
 0x1c0   : > { %942 = vmatprep.subr.mxu1 %v857_v10  ;;  %v1088_v10 = vld [vmem:[#allocation2 + $0x780] sm:$0xff] }
 0x1c1   : > { %943 = vmatpush2.msra.mxu1 %v856_v11  ;;  %v1087_v11 = vld [vmem:[#allocation2 + $0x778] sm:$0xff] }
 0x1c2   : > { %944 = vmatprep.subr.mxu1 %v855_v12  ;;  %v1086_v12 = vld [vmem:[#allocation2 + $0x770] sm:$0xff] }
 0x1c3   : > { %945 = vmatpush2.msra.mxu1 %v854_v13  ;;  %v1085_v13 = vld [vmem:[#allocation2 + $0x768] sm:$0xff] }
 0x1c4   : > { %946 = vmatprep.subr.mxu1 %v853_v14  ;;  %v1084_v14 = vld [vmem:[#allocation2 + $0x760] sm:$0xff] }
 0x1c5   : > { %947 = vmatpush2.msra.mxu1 %v852_v15  ;;  %v1083_v15 = vld [vmem:[#allocation2 + $0x758] sm:$0xff] }
 0x1c6   : > { %949 = vmatmul.mubr.f32.vlgmr.msra.gmra.mxu1 %v9989_v26 }
 0x1c7   : > { %1250 = vmatprep.mubr.f32.mxu1 %v9843_v4 }
 0x206   : > { %v10009_v16 = vpop.f32.mrf.mxu1 }
 0x208   : > { %v10011_v17 = vpop.f32.mrf.mxu1 }
 0x246   : > { %v730_v18 = vpop.f32.mrf.mxu1 }
 0x248   : > { %v732_v19 = vpop.f32.mrf.mxu1 }
 0x249   : > { %7813 = vmatprep.subr.msk.mxu0 %vm519_vm0, %v732_v19  ;;  %v1081_v19 = vld [vmem:[#allocation2 + $0x748] sm:$0xff] }
 0x24a   : > { %7814 = vmatpush1.msk.msra.mxu0 %vm519_vm0, %v730_v18  ;;  %v1082_v18 = vld [vmem:[#allocation2 + $0x750] sm:$0xff] }
 0x24b   : > { %7815 = vmatmul.mubr.msk.f32.vlgmr.msra.gmra.mxu0 %vm515_vm1, %v7812_v20  ;;  %v1080_v20 = vld [vmem:[#allocation2 + $0x740] sm:$0xff] }
 0x24c   : > { %1030 = vmatprep.mubr.f32.mxu0 %v9843_v4 }
 0x286   : > { %v950_v21 = vpop.f32.mrf.mxu1 }
 0x288   : > { %v952_v22 = vpop.f32.mrf.mxu1 }
 0x289   : > { %7817 = vmatprep.subr.msk.mxu0 %vm519_vm0, %v952_v22  ;;  %v1078_v22 = vld [vmem:[#allocation2 + $0x730] sm:$0xff] }
 0x28a   : > { %7818 = vmatpush1.msk.msra.mxu0 %vm519_vm0, %v950_v21  ;;  %v1079_v21 = vld [vmem:[#allocation2 + $0x738] sm:$0xff] }
 0x28b   : > { %7819 = vmatmul.mubr.msk.f32.vlgmr.msra.gmra.mxu0 %vm515_vm1, %v7816_v23  ;;  %1104 = vmatprep.subr.mxu0 %v1071_v24  ;;  %v1077_v23 = vld [vmem:[#allocation2 + $0x728] sm:$0xff]  ;;  %v1076_v24 = vld [vmem:[#allocation2 + $0x720] sm:$0xff] }
 0x28c   : > { %1105 = vmatpush1.msra.mxu0 %v1070_v25  ;;  %1168 = vmatprep.mubr.f32.mxu0 %v9993_v28  ;;  %v1075_v25 = vld [vmem:[#allocation2 + $0x718] sm:$0xff] }
 0x28d   : > { %1106 = vmatprep.subr.mxu0 %v1069_v27  ;;  %v1074_v27 = vld [vmem:[#allocation2 + $0x710] sm:$0xff] }
 0x28e   : > { %1107 = vmatpush1.msra.mxu0 %v1068_v29  ;;  %v1073_v29 = vld [vmem:[#allocation2 + $0x708] sm:$0xff] }
 0x28f   : > { %1108 = vmatprep.subr.mxu0 %v1067_v30  ;;  %v1072_v30 = vld [vmem:[#allocation2 + $0x700] sm:$0xff] }
 0x290   : > { %1109 = vmatpush1.msra.mxu0 %v1066_v31  ;;  %v10025_v31 = vpop.permute.xlu0 %372 }
 0x291   : > { %1110 = vmatprep.subr.mxu0 %v1065_v32  ;;  %v597_v32 = vadd.f32 %v10009_v16, %v10025_v31  ;;  %v1290_v16 = vld [vmem:[#allocation2 + $0x8f0] sm:$0xff] }
 0x292   : > { %1111 = vmatpush1.msra.mxu0 %v1064_v33 }
 0x293   : > { %1112 = vmatprep.subr.mxu0 %v1063_v34  ;;  %v598_v34 = vadd.f32 %v10011_v17, %v10025_v31  ;;  %v1288_v17 = vld [vmem:[#allocation2 + $0x8e0] sm:$0xff] }
 0x294   : > { %1113 = vmatpush1.msra.mxu0 %v1062_v35 }
 0x295   : > { %1114 = vmatprep.subr.mxu0 %v1061_v36 }
 0x296   : > { %1115 = vmatpush1.msra.mxu0 %v1060_v37 }
 0x297   : > { %1116 = vmatprep.subr.mxu0 %v1059_v38 }
 0x298   : > { %1117 = vmatpush1.msra.mxu0 %v1058_v39 }
 0x299   : > { %1118 = vmatprep.subr.mxu0 %v1057_v40 }
 0x29a   : > { %1119 = vmatpush1.msra.mxu0 %v1056_v41 }
 0x29b   : > { %1120 = vmatprep.subr.mxu0 %v1055_v42 }
 0x29c   : > { %1121 = vmatpush1.msra.mxu0 %v1054_v43  ;;  %v7820_v43 = vld [vmem:[%s9960_s8 + $0xc] sm:$0xf] }
 0x29d   : > { %1122 = vmatprep.subr.mxu0 %v1053_v44  ;;  %v1291_v44 = vld [vmem:[#allocation2 + $0x8f8] sm:$0xff] }
 0x29e   : > { %1123 = vmatpush1.msra.mxu0 %v1052_v45  ;;  %v1289_v45 = vld [vmem:[#allocation2 + $0x8e8] sm:$0xff] }
 0x29f   : > { %1124 = vmatprep.subr.mxu0 %v1051_v46  ;;  %v1287_v46 = vld [vmem:[#allocation2 + $0x8d8] sm:$0xff] }
 0x2a0   : > { %1125 = vmatpush1.msra.mxu0 %v1050_v47  ;;  %v1286_v47 = vld [vmem:[#allocation2 + $0x8d0] sm:$0xff] }
 0x2a1   : > { %1126 = vmatprep.subr.mxu0 %v1049_v48  ;;  %v1285_v48 = vld [vmem:[#allocation2 + $0x8c8] sm:$0xff] }
 0x2a2   : > { %1127 = vmatpush1.msra.mxu0 %v1048_v49  ;;  %v1284_v49 = vld [vmem:[#allocation2 + $0x8c0] sm:$0xff] }
 0x2a3   : > { %1128 = vmatprep.subr.mxu0 %v1047_v50  ;;  %v1283_v50 = vld [vmem:[#allocation2 + $0x8b8] sm:$0xff] }
 0x2a4   : > { %1129 = vmatpush1.msra.mxu0 %v1046_v51  ;;  %v1282_v51 = vld [vmem:[#allocation2 + $0x8b0] sm:$0xff] }
 0x2a5   : > { %1130 = vmatprep.subr.mxu0 %v1045_v52  ;;  %v1281_v52 = vld [vmem:[#allocation2 + $0x8a8] sm:$0xff] }
 0x2a6   : > { %1131 = vmatpush1.msra.mxu0 %v1044_v53  ;;  %v1280_v53 = vld [vmem:[#allocation2 + $0x8a0] sm:$0xff] }
 0x2a7   : > { %1132 = vmatprep.subr.mxu0 %v1043_v54  ;;  %v1279_v54 = vld [vmem:[#allocation2 + $0x898] sm:$0xff] }
 0x2a8   : > { %1133 = vmatpush1.msra.mxu0 %v1042_v55  ;;  %v1278_v55 = vld [vmem:[#allocation2 + $0x890] sm:$0xff] }
 0x2a9   : > { %1134 = vmatprep.subr.mxu0 %v1041_v56  ;;  %v1277_v56 = vld [vmem:[#allocation2 + $0x888] sm:$0xff] }
 0x2aa   : > { %1135 = vmatpush1.msra.mxu0 %v1040_v57  ;;  %v1276_v57 = vld [vmem:[#allocation2 + $0x880] sm:$0xff] }
 0x2ab   : > { %1136 = vmatprep.subr.mxu0 %v1103_v58  ;;  %v1275_v58 = vld [vmem:[#allocation2 + $0x878] sm:$0xff] }
 0x2ac   : > { %1137 = vmatpush2.msra.mxu0 %v1102_v59  ;;  %v1274_v59 = vld [vmem:[#allocation2 + $0x870] sm:$0xff] }
 0x2ad   : > { %1138 = vmatprep.subr.mxu0 %v1101_v60  ;;  %v1273_v60 = vld [vmem:[#allocation2 + $0x868] sm:$0xff] }
 0x2ae   : > { %1139 = vmatpush2.msra.mxu0 %v1100_v61  ;;  %v1272_v61 = vld [vmem:[#allocation2 + $0x860] sm:$0xff] }
 0x2af   : > { %1140 = vmatprep.subr.mxu0 %v1099_v62  ;;  %v1271_v62 = vld [vmem:[#allocation2 + $0x858] sm:$0xff] }
 0x2b0   : > { %1141 = vmatpush2.msra.mxu0 %v1098_v63  ;;  %v1270_v63 = vld [vmem:[#allocation2 + $0x850] sm:$0xff] }
 0x2b1   : > { %1142 = vmatprep.subr.mxu0 %v1097_v0  ;;  %v1269_v0 = vld [vmem:[#allocation2 + $0x848] sm:$0xff] }
 0x2b2   : > { %1143 = vmatpush2.msra.mxu0 %v1096_v1  ;;  %v1268_v1 = vld [vmem:[#allocation2 + $0x840] sm:$0xff] }
 0x2b3   : > { %1144 = vmatprep.subr.mxu0 %v1095_v2  ;;  %v1267_v2 = vld [vmem:[#allocation2 + $0x838] sm:$0xff] }
 0x2b4   : > { %1145 = vmatpush2.msra.mxu0 %v1094_v3  ;;  %v1266_v3 = vld [vmem:[#allocation2 + $0x830] sm:$0xff] }
 0x2b5   : > { %1146 = vmatprep.subr.mxu0 %v1093_v5  ;;  %v1265_v5 = vld [vmem:[#allocation2 + $0x828] sm:$0xff] }
 0x2b6   : > { %1147 = vmatpush2.msra.mxu0 %v1092_v6  ;;  %v1264_v6 = vld [vmem:[#allocation2 + $0x820] sm:$0xff] }
 0x2b7   : > { %1148 = vmatprep.subr.mxu0 %v1091_v7  ;;  %v1263_v7 = vld [vmem:[#allocation2 + $0x818] sm:$0xff] }
 0x2b8   : > { %1149 = vmatpush2.msra.mxu0 %v1090_v8  ;;  %v1262_v8 = vld [vmem:[#allocation2 + $0x810] sm:$0xff] }
 0x2b9   : > { %1150 = vmatprep.subr.mxu0 %v1089_v9  ;;  %v1261_v9 = vld [vmem:[#allocation2 + $0x808] sm:$0xff] }
 0x2ba   : > { %1151 = vmatpush2.msra.mxu0 %v1088_v10  ;;  %v1260_v10 = vld [vmem:[#allocation2 + $0x800] sm:$0xff] }
 0x2bb   : > { %1152 = vmatprep.subr.mxu0 %v1087_v11  ;;  %v1323_v11 = vld [vmem:[#allocation2 + $0x9f8] sm:$0xff] }
 0x2bc   : > { %1153 = vmatpush2.msra.mxu0 %v1086_v12  ;;  %v1322_v12 = vld [vmem:[#allocation2 + $0x9f0] sm:$0xff] }
 0x2bd   : > { %1154 = vmatprep.subr.mxu0 %v1085_v13  ;;  %v1321_v13 = vld [vmem:[#allocation2 + $0x9e8] sm:$0xff] }
 0x2be   : > { %1155 = vmatpush2.msra.mxu0 %v1084_v14  ;;  %v1320_v14 = vld [vmem:[#allocation2 + $0x9e0] sm:$0xff] }
 0x2bf   : > { %1156 = vmatprep.subr.mxu0 %v1083_v15  ;;  %v1319_v15 = vld [vmem:[#allocation2 + $0x9d8] sm:$0xff] }
 0x2c0   : > { %1157 = vmatpush2.msra.mxu0 %v1082_v18  ;;  %v1318_v18 = vld [vmem:[#allocation2 + $0x9d0] sm:$0xff] }
 0x2c1   : > { %1158 = vmatprep.subr.mxu0 %v1081_v19  ;;  %v1317_v19 = vld [vmem:[#allocation2 + $0x9c8] sm:$0xff] }
 0x2c2   : > { %1159 = vmatpush2.msra.mxu0 %v1080_v20  ;;  %v1316_v20 = vld [vmem:[#allocation2 + $0x9c0] sm:$0xff] }
 0x2c3   : > { %1160 = vmatprep.subr.mxu0 %v1079_v21  ;;  %v1315_v21 = vld [vmem:[#allocation2 + $0x9b8] sm:$0xff] }
 0x2c4   : > { %1161 = vmatpush2.msra.mxu0 %v1078_v22  ;;  %v1314_v22 = vld [vmem:[#allocation2 + $0x9b0] sm:$0xff] }
 0x2c5   : > { %1162 = vmatprep.subr.mxu0 %v1077_v23  ;;  %v1313_v23 = vld [vmem:[#allocation2 + $0x9a8] sm:$0xff] }
 0x2c6   : > { %1163 = vmatpush2.msra.mxu0 %v1076_v24  ;;  %v1312_v24 = vld [vmem:[#allocation2 + $0x9a0] sm:$0xff] }
 0x2c7   : > { %1164 = vmatprep.subr.mxu0 %v1075_v25  ;;  %v1311_v25 = vld [vmem:[#allocation2 + $0x998] sm:$0xff] }
 0x2c8   : > { %1165 = vmatpush2.msra.mxu0 %v1074_v27  ;;  %v1310_v27 = vld [vmem:[#allocation2 + $0x990] sm:$0xff] }
 0x2c9   : > { %1166 = vmatprep.subr.mxu0 %v1073_v29  ;;  %v1309_v29 = vld [vmem:[#allocation2 + $0x988] sm:$0xff] }
 0x2ca   : > { %1167 = vmatpush2.msra.mxu0 %v1072_v30  ;;  %v1308_v30 = vld [vmem:[#allocation2 + $0x980] sm:$0xff] }
 0x2cb   : > { %1169 = vmatmul.mubr.f32.vlgmr.msra.gmra.mxu0 %v9989_v26 }
 0x2cc   : > { %1470 = vmatprep.mubr.f32.mxu0 %v9843_v4 }
 0x30b   : > { %v812_v33 = vpop.f32.mrf.mxu0 }
 0x30c   : > { %v817_v35 = vadd.f32 %v812_v33, %v597_v32  ;;  %v1307_v32 = vld [vmem:[#allocation2 + $0x978] sm:$0xff]  ;;  %v1306_v33 = vld [vmem:[#allocation2 + $0x970] sm:$0xff] }
 0x30d   : > { %v814_v36 = vpop.f32.mrf.mxu0 }
 0x30e   : > { %v818_v37 = vadd.f32 %v814_v36, %v598_v34  ;;  %v1305_v34 = vld [vmem:[#allocation2 + $0x968] sm:$0xff]  ;;  %v1303_v36 = vld [vmem:[#allocation2 + $0x958] sm:$0xff] }
 0x34b   : > { %v1032_v38 = vpop.f32.mrf.mxu0 }
 0x34c   : > { %v10031_v39 = vadd.f32 %v1032_v38, %v817_v35  ;;  %v1304_v35 = vld [vmem:[#allocation2 + $0x960] sm:$0xff]  ;;  %v1301_v38 = vld [vmem:[#allocation2 + $0x948] sm:$0xff] }
 0x34d   : > { %v1034_v40 = vpop.f32.mrf.mxu0 }
 0x34e   : > { %v10033_v41 = vadd.f32 %v1034_v40, %v818_v37  ;;  %v1302_v37 = vld [vmem:[#allocation2 + $0x950] sm:$0xff]  ;;  %v1300_v40 = vld [vmem:[#allocation2 + $0x940] sm:$0xff] }
 0x38b   : > { %v1170_v26 = vpop.f32.mrf.mxu0 }
 0x38d   : > { %v1172_v42 = vpop.f32.mrf.mxu0 }
 0x38e   : > { %7821 = vmatprep.subr.msk.mxu1 %vm519_vm0, %v1172_v42  ;;  %v1298_v42 = vld [vmem:[#allocation2 + $0x930] sm:$0xff] }
 0x38f   : > { %7822 = vmatpush1.msk.msra.mxu1 %vm519_vm0, %v1170_v26  ;;  %v1299_v26 = vld [vmem:[#allocation2 + $0x938] sm:$0xff] }
 0x390   : > { %7823 = vmatmul.mubr.msk.f32.vlgmr.msra.gmra.mxu1 %vm515_vm1, %v7820_v43  ;;  %1324 = vmatprep.subr.mxu1 %v1291_v44  ;;  %v1297_v43 = vld [vmem:[#allocation2 + $0x928] sm:$0xff]  ;;  %v1296_v44 = vld [vmem:[#allocation2 + $0x920] sm:$0xff] }
 0x391   : > { %1325 = vmatpush1.msra.mxu1 %v1290_v16  ;;  %1388 = vmatprep.mubr.f32.mxu1 %v9993_v28  ;;  %v1295_v16 = vld [vmem:[#allocation2 + $0x918] sm:$0xff] }
 0x392   : > { %1326 = vmatprep.subr.mxu1 %v1289_v45  ;;  %v1294_v45 = vld [vmem:[#allocation2 + $0x910] sm:$0xff] }
 0x393   : > { %1327 = vmatpush1.msra.mxu1 %v1288_v17  ;;  %v1293_v17 = vld [vmem:[#allocation2 + $0x908] sm:$0xff] }
 0x394   : > { %1328 = vmatprep.subr.mxu1 %v1287_v46  ;;  %v1292_v46 = vld [vmem:[#allocation2 + $0x900] sm:$0xff] }
 0x395   : > { %1329 = vmatpush1.msra.mxu1 %v1286_v47  ;;  %v10043_v47 = vld [vmem:[%s10563_s7] sm:$0xff] }
 0x396   : > { %1330 = vmatprep.subr.mxu1 %v1285_v48 }
 0x397   : > { %1331 = vmatpush1.msra.mxu1 %v1284_v49 }
 0x398   : > { %1332 = vmatprep.subr.mxu1 %v1283_v50 }
 0x399   : > { %1333 = vmatpush1.msra.mxu1 %v1282_v51 }
 0x39a   : > { %1334 = vmatprep.subr.mxu1 %v1281_v52 }
 0x39b   : > { %1335 = vmatpush1.msra.mxu1 %v1280_v53 }
 0x39c   : > { %1336 = vmatprep.subr.mxu1 %v1279_v54  ;;  %v7824_v54 = vld [vmem:[%s9960_s8 + $0x10] sm:$0xf] }
 0x39d   : > { %1337 = vmatpush1.msra.mxu1 %v1278_v55  ;;  %v1511_v55 = vld [vmem:[#allocation2 + $0xaf8] sm:$0xff] }
 0x39e   : > { %1338 = vmatprep.subr.mxu1 %v1277_v56  ;;  %v1510_v56 = vld [vmem:[#allocation2 + $0xaf0] sm:$0xff] }
 0x39f   : > { %1339 = vmatpush1.msra.mxu1 %v1276_v57  ;;  %v1509_v57 = vld [vmem:[#allocation2 + $0xae8] sm:$0xff] }
 0x3a0   : > { %1340 = vmatprep.subr.mxu1 %v1275_v58  ;;  %v1508_v58 = vld [vmem:[#allocation2 + $0xae0] sm:$0xff] }
 0x3a1   : > { %1341 = vmatpush1.msra.mxu1 %v1274_v59  ;;  %v1505_v59 = vld [vmem:[#allocation2 + $0xac8] sm:$0xff] }
 0x3a2   : > { %1342 = vmatprep.subr.mxu1 %v1273_v60  ;;  %v1504_v60 = vld [vmem:[#allocation2 + $0xac0] sm:$0xff] }
 0x3a3   : > { %1343 = vmatpush1.msra.mxu1 %v1272_v61  ;;  %v1503_v61 = vld [vmem:[#allocation2 + $0xab8] sm:$0xff] }
 0x3a4   : > { %1344 = vmatprep.subr.mxu1 %v1271_v62  ;;  %v1502_v62 = vld [vmem:[#allocation2 + $0xab0] sm:$0xff] }
 0x3a5   : > { %1345 = vmatpush1.msra.mxu1 %v1270_v63  ;;  %v1501_v63 = vld [vmem:[#allocation2 + $0xaa8] sm:$0xff] }
 0x3a6   : > { %1346 = vmatprep.subr.mxu1 %v1269_v0  ;;  %v1500_v0 = vld [vmem:[#allocation2 + $0xaa0] sm:$0xff] }
 0x3a7   : > { %1347 = vmatpush1.msra.mxu1 %v1268_v1  ;;  %v1499_v1 = vld [vmem:[#allocation2 + $0xa98] sm:$0xff] }
 0x3a8   : > { %1348 = vmatprep.subr.mxu1 %v1267_v2  ;;  %v1498_v2 = vld [vmem:[#allocation2 + $0xa90] sm:$0xff] }
 0x3a9   : > { %1349 = vmatpush1.msra.mxu1 %v1266_v3  ;;  %v1497_v3 = vld [vmem:[#allocation2 + $0xa88] sm:$0xff] }
 0x3aa   : > { %1350 = vmatprep.subr.mxu1 %v1265_v5  ;;  %v1496_v5 = vld [vmem:[#allocation2 + $0xa80] sm:$0xff] }
 0x3ab   : > { %1351 = vmatpush1.msra.mxu1 %v1264_v6  ;;  %v1495_v6 = vld [vmem:[#allocation2 + $0xa78] sm:$0xff] }
 0x3ac   : > { %1352 = vmatprep.subr.mxu1 %v1263_v7  ;;  %v1494_v7 = vld [vmem:[#allocation2 + $0xa70] sm:$0xff] }
 0x3ad   : > { %1353 = vmatpush1.msra.mxu1 %v1262_v8  ;;  %v1493_v8 = vld [vmem:[#allocation2 + $0xa68] sm:$0xff] }
 0x3ae   : > { %1354 = vmatprep.subr.mxu1 %v1261_v9  ;;  %v1492_v9 = vld [vmem:[#allocation2 + $0xa60] sm:$0xff] }
 0x3af   : > { %1355 = vmatpush1.msra.mxu1 %v1260_v10  ;;  %v1491_v10 = vld [vmem:[#allocation2 + $0xa58] sm:$0xff] }
 0x3b0   : > { %1356 = vmatprep.subr.mxu1 %v1323_v11  ;;  %v1490_v11 = vld [vmem:[#allocation2 + $0xa50] sm:$0xff] }
 0x3b1   : > { %1357 = vmatpush2.msra.mxu1 %v1322_v12  ;;  %v1489_v12 = vld [vmem:[#allocation2 + $0xa48] sm:$0xff] }
 0x3b2   : > { %1358 = vmatprep.subr.mxu1 %v1321_v13  ;;  %v1488_v13 = vld [vmem:[#allocation2 + $0xa40] sm:$0xff] }
 0x3b3   : > { %1359 = vmatpush2.msra.mxu1 %v1320_v14  ;;  %v1487_v14 = vld [vmem:[#allocation2 + $0xa38] sm:$0xff] }
 0x3b4   : > { %1360 = vmatprep.subr.mxu1 %v1319_v15  ;;  %v1486_v15 = vld [vmem:[#allocation2 + $0xa30] sm:$0xff] }
 0x3b5   : > { %1361 = vmatpush2.msra.mxu1 %v1318_v18  ;;  %v1485_v18 = vld [vmem:[#allocation2 + $0xa28] sm:$0xff] }
 0x3b6   : > { %1362 = vmatprep.subr.mxu1 %v1317_v19  ;;  %v1484_v19 = vld [vmem:[#allocation2 + $0xa20] sm:$0xff] }
 0x3b7   : > { %1363 = vmatpush2.msra.mxu1 %v1316_v20  ;;  %v1483_v20 = vld [vmem:[#allocation2 + $0xa18] sm:$0xff] }
 0x3b8   : > { %1364 = vmatprep.subr.mxu1 %v1315_v21  ;;  %v1482_v21 = vld [vmem:[#allocation2 + $0xa10] sm:$0xff] }
 0x3b9   : > { %1365 = vmatpush2.msra.mxu1 %v1314_v22  ;;  %v1481_v22 = vld [vmem:[#allocation2 + $0xa08] sm:$0xff] }
 0x3ba   : > { %1366 = vmatprep.subr.mxu1 %v1313_v23  ;;  %v1480_v23 = vld [vmem:[#allocation2 + $0xa00] sm:$0xff] }
 0x3bb   : > { %1367 = vmatpush2.msra.mxu1 %v1312_v24  ;;  %v1543_v24 = vld [vmem:[#allocation2 + $0xbf8] sm:$0xff] }
 0x3bc   : > { %1368 = vmatprep.subr.mxu1 %v1311_v25  ;;  %v1542_v25 = vld [vmem:[#allocation2 + $0xbf0] sm:$0xff] }
 0x3bd   : > { %1369 = vmatpush2.msra.mxu1 %v1310_v27  ;;  %v1541_v27 = vld [vmem:[#allocation2 + $0xbe8] sm:$0xff] }
 0x3be   : > { %1370 = vmatprep.subr.mxu1 %v1309_v29  ;;  %v1540_v29 = vld [vmem:[#allocation2 + $0xbe0] sm:$0xff] }
 0x3bf   : > { %1371 = vmatpush2.msra.mxu1 %v1308_v30  ;;  %v1539_v30 = vld [vmem:[#allocation2 + $0xbd8] sm:$0xff] }
 0x3c0   : > { %1372 = vmatprep.subr.mxu1 %v1307_v32  ;;  %v1538_v32 = vld [vmem:[#allocation2 + $0xbd0] sm:$0xff] }
 0x3c1   : > { %1373 = vmatpush2.msra.mxu1 %v1306_v33  ;;  %v1537_v33 = vld [vmem:[#allocation2 + $0xbc8] sm:$0xff] }
 0x3c2   : > { %1374 = vmatprep.subr.mxu1 %v1305_v34  ;;  %v1536_v34 = vld [vmem:[#allocation2 + $0xbc0] sm:$0xff] }
 0x3c3   : > { %1375 = vmatpush2.msra.mxu1 %v1304_v35  ;;  %v1535_v35 = vld [vmem:[#allocation2 + $0xbb8] sm:$0xff] }
 0x3c4   : > { %1376 = vmatprep.subr.mxu1 %v1303_v36  ;;  %v1534_v36 = vld [vmem:[#allocation2 + $0xbb0] sm:$0xff] }
 0x3c5   : > { %1377 = vmatpush2.msra.mxu1 %v1302_v37  ;;  %v1533_v37 = vld [vmem:[#allocation2 + $0xba8] sm:$0xff] }
 0x3c6   : > { %1378 = vmatprep.subr.mxu1 %v1301_v38  ;;  %v1532_v38 = vld [vmem:[#allocation2 + $0xba0] sm:$0xff] }
 0x3c7   : > { %1379 = vmatpush2.msra.mxu1 %v1300_v40  ;;  %v1531_v40 = vld [vmem:[#allocation2 + $0xb98] sm:$0xff] }
 0x3c8   : > { %1380 = vmatprep.subr.mxu1 %v1299_v26  ;;  %v1530_v26 = vld [vmem:[#allocation2 + $0xb90] sm:$0xff] }
 0x3c9   : > { %1381 = vmatpush2.msra.mxu1 %v1298_v42  ;;  %v1529_v42 = vld [vmem:[#allocation2 + $0xb88] sm:$0xff] }
 0x3ca   : > { %1382 = vmatprep.subr.mxu1 %v1297_v43  ;;  %v1528_v43 = vld [vmem:[#allocation2 + $0xb80] sm:$0xff] }
 0x3cb   : > { %1383 = vmatpush2.msra.mxu1 %v1296_v44  ;;  %v1527_v44 = vld [vmem:[#allocation2 + $0xb78] sm:$0xff] }
 0x3cc   : > { %1384 = vmatprep.subr.mxu1 %v1295_v16  ;;  %v1526_v16 = vld [vmem:[#allocation2 + $0xb70] sm:$0xff] }
 0x3cd   : > { %1385 = vmatpush2.msra.mxu1 %v1294_v45  ;;  %v1525_v45 = vld [vmem:[#allocation2 + $0xb68] sm:$0xff] }
 0x3ce   : > { %1386 = vmatprep.subr.mxu1 %v1293_v17  ;;  %v1524_v17 = vld [vmem:[#allocation2 + $0xb60] sm:$0xff] }
 0x3cf   : > { %1387 = vmatpush2.msra.mxu1 %v1292_v46  ;;  %v1523_v46 = vld [vmem:[#allocation2 + $0xb58] sm:$0xff] }
 0x3d0   : > { %1389 = vmatmul.mubr.f32.vlgmr.msra.gmra.mxu1 %v10043_v47 }
 0x3d1   : > { %1690 = vmatprep.mubr.f32.mxu1 %v9843_v4 }
 0x450   : > { %v1252_v48 = vpop.f32.mrf.mxu1 }
 0x451   : > { %v10048_v49 = vadd.f32 %v1252_v48, %v10031_v39  ;;  %v1507_v39 = vld [vmem:[#allocation2 + $0xad8] sm:$0xff]  ;;  %v1522_v48 = vld [vmem:[#allocation2 + $0xb50] sm:$0xff] }
 0x452   : > { %v1254_v50 = vpop.f32.mrf.mxu1 }
 0x453   : > { %v10051_v51 = vadd.f32 %v1254_v50, %v10033_v41  ;;  %v1506_v41 = vld [vmem:[#allocation2 + $0xad0] sm:$0xff]  ;;  %v1521_v50 = vld [vmem:[#allocation2 + $0xb48] sm:$0xff] }
 0x490   : > { %v1390_v52 = vpop.f32.mrf.mxu1 }
 0x492   : > { %v1392_v53 = vpop.f32.mrf.mxu1 }
 0x493   : > { %7825 = vmatprep.subr.msk.mxu0 %vm519_vm0, %v1392_v53  ;;  %v1519_v53 = vld [vmem:[#allocation2 + $0xb38] sm:$0xff] }
 0x494   : > { %7826 = vmatpush1.msk.msra.mxu0 %vm519_vm0, %v1390_v52  ;;  %v1520_v52 = vld [vmem:[#allocation2 + $0xb40] sm:$0xff] }
 0x495   : > { %7827 = vmatmul.mubr.msk.f32.vlgmr.msra.gmra.mxu0 %vm515_vm1, %v7824_v54  ;;  %1544 = vmatprep.subr.mxu0 %v1511_v55  ;;  %v1518_v54 = vld [vmem:[#allocation2 + $0xb30] sm:$0xff]  ;;  %v1517_v55 = vld [vmem:[#allocation2 + $0xb28] sm:$0xff] }
 0x496   : > { %1545 = vmatpush1.msra.mxu0 %v1510_v56  ;;  %1608 = vmatprep.mubr.f32.mxu0 %v9993_v28  ;;  %v1516_v56 = vld [vmem:[#allocation2 + $0xb20] sm:$0xff] }
 0x497   : > { %1546 = vmatprep.subr.mxu0 %v1509_v57  ;;  %v1515_v57 = vld [vmem:[#allocation2 + $0xb18] sm:$0xff] }
 0x498   : > { %1547 = vmatpush1.msra.mxu0 %v1508_v58  ;;  %v1514_v58 = vld [vmem:[#allocation2 + $0xb10] sm:$0xff] }
 0x499   : > { %1548 = vmatprep.subr.mxu0 %v1507_v39  ;;  %v1513_v39 = vld [vmem:[#allocation2 + $0xb08] sm:$0xff] }
 0x49a   : > { %1549 = vmatpush1.msra.mxu0 %v1506_v41  ;;  %v1512_v41 = vld [vmem:[#allocation2 + $0xb00] sm:$0xff] }
 0x49b   : > { %1550 = vmatprep.subr.mxu0 %v1505_v59 }
 0x49c   : > { %1551 = vmatpush1.msra.mxu0 %v1504_v60 }
 0x49d   : > { %1552 = vmatprep.subr.mxu0 %v1503_v61 }
 0x49e   : > { %1553 = vmatpush1.msra.mxu0 %v1502_v62 }
 0x49f   : > { %1554 = vmatprep.subr.mxu0 %v1501_v63 }
 0x4a0   : > { %1555 = vmatpush1.msra.mxu0 %v1500_v0 }
 0x4a1   : > { %1556 = vmatprep.subr.mxu0 %v1499_v1  ;;  %v7828_v1 = vld [vmem:[%s9960_s8 + $0x14] sm:$0xf] }
 0x4a2   : > { %1557 = vmatpush1.msra.mxu0 %v1498_v2  ;;  %v1731_v2 = vld [vmem:[#allocation2 + $0xcf8] sm:$0xff] }
 0x4a3   : > { %1558 = vmatprep.subr.mxu0 %v1497_v3  ;;  %v1730_v3 = vld [vmem:[#allocation2 + $0xcf0] sm:$0xff] }
 0x4a4   : > { %1559 = vmatpush1.msra.mxu0 %v1496_v5  ;;  %v1729_v5 = vld [vmem:[#allocation2 + $0xce8] sm:$0xff] }
 0x4a5   : > { %1560 = vmatprep.subr.mxu0 %v1495_v6  ;;  %v1728_v6 = vld [vmem:[#allocation2 + $0xce0] sm:$0xff] }
 0x4a6   : > { %1561 = vmatpush1.msra.mxu0 %v1494_v7  ;;  %v1725_v7 = vld [vmem:[#allocation2 + $0xcc8] sm:$0xff] }
 0x4a7   : > { %1562 = vmatprep.subr.mxu0 %v1493_v8  ;;  %v1724_v8 = vld [vmem:[#allocation2 + $0xcc0] sm:$0xff] }
 0x4a8   : > { %1563 = vmatpush1.msra.mxu0 %v1492_v9  ;;  %v1723_v9 = vld [vmem:[#allocation2 + $0xcb8] sm:$0xff] }
 0x4a9   : > { %1564 = vmatprep.subr.mxu0 %v1491_v10  ;;  %v1722_v10 = vld [vmem:[#allocation2 + $0xcb0] sm:$0xff] }
 0x4aa   : > { %1565 = vmatpush1.msra.mxu0 %v1490_v11  ;;  %v1721_v11 = vld [vmem:[#allocation2 + $0xca8] sm:$0xff] }
 0x4ab   : > { %1566 = vmatprep.subr.mxu0 %v1489_v12  ;;  %v1720_v12 = vld [vmem:[#allocation2 + $0xca0] sm:$0xff] }
 0x4ac   : > { %1567 = vmatpush1.msra.mxu0 %v1488_v13  ;;  %v1719_v13 = vld [vmem:[#allocation2 + $0xc98] sm:$0xff] }
 0x4ad   : > { %1568 = vmatprep.subr.mxu0 %v1487_v14  ;;  %v1718_v14 = vld [vmem:[#allocation2 + $0xc90] sm:$0xff] }
 0x4ae   : > { %1569 = vmatpush1.msra.mxu0 %v1486_v15  ;;  %v1717_v15 = vld [vmem:[#allocation2 + $0xc88] sm:$0xff] }
 0x4af   : > { %1570 = vmatprep.subr.mxu0 %v1485_v18  ;;  %v1716_v18 = vld [vmem:[#allocation2 + $0xc80] sm:$0xff] }
 0x4b0   : > { %1571 = vmatpush1.msra.mxu0 %v1484_v19  ;;  %v1715_v19 = vld [vmem:[#allocation2 + $0xc78] sm:$0xff] }
 0x4b1   : > { %1572 = vmatprep.subr.mxu0 %v1483_v20  ;;  %v1714_v20 = vld [vmem:[#allocation2 + $0xc70] sm:$0xff] }
 0x4b2   : > { %1573 = vmatpush1.msra.mxu0 %v1482_v21  ;;  %v1713_v21 = vld [vmem:[#allocation2 + $0xc68] sm:$0xff] }
 0x4b3   : > { %1574 = vmatprep.subr.mxu0 %v1481_v22  ;;  %v1712_v22 = vld [vmem:[#allocation2 + $0xc60] sm:$0xff] }
 0x4b4   : > { %1575 = vmatpush1.msra.mxu0 %v1480_v23  ;;  %v1711_v23 = vld [vmem:[#allocation2 + $0xc58] sm:$0xff] }
 0x4b5   : > { %1576 = vmatprep.subr.mxu0 %v1543_v24  ;;  %v1710_v24 = vld [vmem:[#allocation2 + $0xc50] sm:$0xff] }
 0x4b6   : > { %1577 = vmatpush2.msra.mxu0 %v1542_v25  ;;  %v1709_v25 = vld [vmem:[#allocation2 + $0xc48] sm:$0xff] }
 0x4b7   : > { %1578 = vmatprep.subr.mxu0 %v1541_v27  ;;  %v1708_v27 = vld [vmem:[#allocation2 + $0xc40] sm:$0xff] }
 0x4b8   : > { %1579 = vmatpush2.msra.mxu0 %v1540_v29  ;;  %v1707_v29 = vld [vmem:[#allocation2 + $0xc38] sm:$0xff] }
 0x4b9   : > { %1580 = vmatprep.subr.mxu0 %v1539_v30  ;;  %v1706_v30 = vld [vmem:[#allocation2 + $0xc30] sm:$0xff] }
 0x4ba   : > { %1581 = vmatpush2.msra.mxu0 %v1538_v32  ;;  %v1705_v32 = vld [vmem:[#allocation2 + $0xc28] sm:$0xff] }
 0x4bb   : > { %1582 = vmatprep.subr.mxu0 %v1537_v33  ;;  %v1704_v33 = vld [vmem:[#allocation2 + $0xc20] sm:$0xff] }
 0x4bc   : > { %1583 = vmatpush2.msra.mxu0 %v1536_v34  ;;  %v1703_v34 = vld [vmem:[#allocation2 + $0xc18] sm:$0xff] }
 0x4bd   : > { %1584 = vmatprep.subr.mxu0 %v1535_v35  ;;  %v1702_v35 = vld [vmem:[#allocation2 + $0xc10] sm:$0xff] }
 0x4be   : > { %1585 = vmatpush2.msra.mxu0 %v1534_v36  ;;  %v1701_v36 = vld [vmem:[#allocation2 + $0xc08] sm:$0xff] }
 0x4bf   : > { %1586 = vmatprep.subr.mxu0 %v1533_v37  ;;  %v1700_v37 = vld [vmem:[#allocation2 + $0xc00] sm:$0xff] }
 0x4c0   : > { %1587 = vmatpush2.msra.mxu0 %v1532_v38  ;;  %v1763_v38 = vld [vmem:[#allocation2 + $0xdf8] sm:$0xff] }
 0x4c1   : > { %1588 = vmatprep.subr.mxu0 %v1531_v40  ;;  %v1762_v40 = vld [vmem:[#allocation2 + $0xdf0] sm:$0xff] }
 0x4c2   : > { %1589 = vmatpush2.msra.mxu0 %v1530_v26  ;;  %v1761_v26 = vld [vmem:[#allocation2 + $0xde8] sm:$0xff] }
 0x4c3   : > { %1590 = vmatprep.subr.mxu0 %v1529_v42  ;;  %v1760_v42 = vld [vmem:[#allocation2 + $0xde0] sm:$0xff] }
 0x4c4   : > { %1591 = vmatpush2.msra.mxu0 %v1528_v43  ;;  %v1759_v43 = vld [vmem:[#allocation2 + $0xdd8] sm:$0xff] }
 0x4c5   : > { %1592 = vmatprep.subr.mxu0 %v1527_v44  ;;  %v1758_v44 = vld [vmem:[#allocation2 + $0xdd0] sm:$0xff] }
 0x4c6   : > { %1593 = vmatpush2.msra.mxu0 %v1526_v16  ;;  %v1757_v16 = vld [vmem:[#allocation2 + $0xdc8] sm:$0xff] }
 0x4c7   : > { %1594 = vmatprep.subr.mxu0 %v1525_v45  ;;  %v1756_v45 = vld [vmem:[#allocation2 + $0xdc0] sm:$0xff] }
 0x4c8   : > { %1595 = vmatpush2.msra.mxu0 %v1524_v17  ;;  %v1755_v17 = vld [vmem:[#allocation2 + $0xdb8] sm:$0xff] }
 0x4c9   : > { %1596 = vmatprep.subr.mxu0 %v1523_v46  ;;  %v1754_v46 = vld [vmem:[#allocation2 + $0xdb0] sm:$0xff] }
 0x4ca   : > { %1597 = vmatpush2.msra.mxu0 %v1522_v48  ;;  %v1753_v48 = vld [vmem:[#allocation2 + $0xda8] sm:$0xff] }
 0x4cb   : > { %1598 = vmatprep.subr.mxu0 %v1521_v50  ;;  %v1752_v50 = vld [vmem:[#allocation2 + $0xda0] sm:$0xff] }
 0x4cc   : > { %1599 = vmatpush2.msra.mxu0 %v1520_v52  ;;  %v1751_v52 = vld [vmem:[#allocation2 + $0xd98] sm:$0xff] }
 0x4cd   : > { %1600 = vmatprep.subr.mxu0 %v1519_v53  ;;  %v1750_v53 = vld [vmem:[#allocation2 + $0xd90] sm:$0xff] }
 0x4ce   : > { %1601 = vmatpush2.msra.mxu0 %v1518_v54  ;;  %v1749_v54 = vld [vmem:[#allocation2 + $0xd88] sm:$0xff] }
 0x4cf   : > { %1602 = vmatprep.subr.mxu0 %v1517_v55  ;;  %v1748_v55 = vld [vmem:[#allocation2 + $0xd80] sm:$0xff] }
 0x4d0   : > { %1603 = vmatpush2.msra.mxu0 %v1516_v56  ;;  %v1747_v56 = vld [vmem:[#allocation2 + $0xd78] sm:$0xff] }
 0x4d1   : > { %1604 = vmatprep.subr.mxu0 %v1515_v57  ;;  %v1746_v57 = vld [vmem:[#allocation2 + $0xd70] sm:$0xff] }
 0x4d2   : > { %1605 = vmatpush2.msra.mxu0 %v1514_v58  ;;  %v1745_v58 = vld [vmem:[#allocation2 + $0xd68] sm:$0xff] }
 0x4d3   : > { %1606 = vmatprep.subr.mxu0 %v1513_v39  ;;  %v1744_v39 = vld [vmem:[#allocation2 + $0xd60] sm:$0xff] }
 0x4d4   : > { %1607 = vmatpush2.msra.mxu0 %v1512_v41  ;;  %v1743_v41 = vld [vmem:[#allocation2 + $0xd58] sm:$0xff] }
 0x4d5   : > { %1609 = vmatmul.mubr.f32.vlgmr.msra.gmra.mxu0 %v10043_v47 }
 0x4d6   : > { %1910 = vmatprep.mubr.f32.mxu0 %v9843_v4 }
 0x555   : > { %v1472_v59 = vpop.f32.mrf.mxu0 }
 0x556   : > { %v10061_v60 = vadd.f32 %v1472_v59, %v10048_v49  ;;  %v1727_v49 = vld [vmem:[#allocation2 + $0xcd8] sm:$0xff]  ;;  %v1742_v59 = vld [vmem:[#allocation2 + $0xd50] sm:$0xff] }
 0x557   : > { %v1474_v61 = vpop.f32.mrf.mxu0 }
 0x558   : > { %v10064_v62 = vadd.f32 %v1474_v61, %v10051_v51  ;;  %v1726_v51 = vld [vmem:[#allocation2 + $0xcd0] sm:$0xff]  ;;  %v1741_v61 = vld [vmem:[#allocation2 + $0xd48] sm:$0xff] }
 0x595   : > { %v1610_v63 = vpop.f32.mrf.mxu0 }
 0x597   : > { %v1612_v0 = vpop.f32.mrf.mxu0 }
 0x598   : > { %7829 = vmatprep.subr.msk.mxu1 %vm519_vm0, %v1612_v0  ;;  %v1739_v0 = vld [vmem:[#allocation2 + $0xd38] sm:$0xff] }
 0x599   : > { %7830 = vmatpush1.msk.msra.mxu1 %vm519_vm0, %v1610_v63  ;;  %v1740_v63 = vld [vmem:[#allocation2 + $0xd40] sm:$0xff] }
 0x59a   : > { %7831 = vmatmul.mubr.msk.f32.vlgmr.msra.gmra.mxu1 %vm515_vm1, %v7828_v1  ;;  %1764 = vmatprep.subr.mxu1 %v1731_v2  ;;  %v1738_v1 = vld [vmem:[#allocation2 + $0xd30] sm:$0xff]  ;;  %v1737_v2 = vld [vmem:[#allocation2 + $0xd28] sm:$0xff] }
 0x59b   : > { %1765 = vmatpush1.msra.mxu1 %v1730_v3  ;;  %1828 = vmatprep.mubr.f32.mxu1 %v9993_v28  ;;  %v1736_v3 = vld [vmem:[#allocation2 + $0xd20] sm:$0xff] }
 0x59c   : > { %1766 = vmatprep.subr.mxu1 %v1729_v5  ;;  %v1735_v5 = vld [vmem:[#allocation2 + $0xd18] sm:$0xff] }
 0x59d   : > { %1767 = vmatpush1.msra.mxu1 %v1728_v6  ;;  %v1734_v6 = vld [vmem:[#allocation2 + $0xd10] sm:$0xff] }
 0x59e   : > { %1768 = vmatprep.subr.mxu1 %v1727_v49  ;;  %v1733_v49 = vld [vmem:[#allocation2 + $0xd08] sm:$0xff] }
 0x59f   : > { %1769 = vmatpush1.msra.mxu1 %v1726_v51  ;;  %v1732_v51 = vld [vmem:[#allocation2 + $0xd00] sm:$0xff] }
 0x5a0   : > { %1770 = vmatprep.subr.mxu1 %v1725_v7 }
 0x5a1   : > { %1771 = vmatpush1.msra.mxu1 %v1724_v8 }
 0x5a2   : > { %1772 = vmatprep.subr.mxu1 %v1723_v9 }
 0x5a3   : > { %1773 = vmatpush1.msra.mxu1 %v1722_v10 }
 0x5a4   : > { %1774 = vmatprep.subr.mxu1 %v1721_v11 }
 0x5a5   : > { %1775 = vmatpush1.msra.mxu1 %v1720_v12 }
 0x5a6   : > { %1776 = vmatprep.subr.mxu1 %v1719_v13  ;;  %v7832_v13 = vld [vmem:[%s9960_s8 + $0x18] sm:$0xf] }
 0x5a7   : > { %1777 = vmatpush1.msra.mxu1 %v1718_v14  ;;  %v1951_v14 = vld [vmem:[#allocation2 + $0xef8] sm:$0xff] }
 0x5a8   : > { %1778 = vmatprep.subr.mxu1 %v1717_v15  ;;  %v1950_v15 = vld [vmem:[#allocation2 + $0xef0] sm:$0xff] }
 0x5a9   : > { %1779 = vmatpush1.msra.mxu1 %v1716_v18  ;;  %v1949_v18 = vld [vmem:[#allocation2 + $0xee8] sm:$0xff] }
 0x5aa   : > { %1780 = vmatprep.subr.mxu1 %v1715_v19  ;;  %v1948_v19 = vld [vmem:[#allocation2 + $0xee0] sm:$0xff] }
 0x5ab   : > { %1781 = vmatpush1.msra.mxu1 %v1714_v20  ;;  %v1945_v20 = vld [vmem:[#allocation2 + $0xec8] sm:$0xff] }
 0x5ac   : > { %1782 = vmatprep.subr.mxu1 %v1713_v21  ;;  %v1944_v21 = vld [vmem:[#allocation2 + $0xec0] sm:$0xff] }
 0x5ad   : > { %1783 = vmatpush1.msra.mxu1 %v1712_v22  ;;  %v1943_v22 = vld [vmem:[#allocation2 + $0xeb8] sm:$0xff] }
 0x5ae   : > { %1784 = vmatprep.subr.mxu1 %v1711_v23  ;;  %v1942_v23 = vld [vmem:[#allocation2 + $0xeb0] sm:$0xff] }
 0x5af   : > { %1785 = vmatpush1.msra.mxu1 %v1710_v24  ;;  %v1941_v24 = vld [vmem:[#allocation2 + $0xea8] sm:$0xff] }
 0x5b0   : > { %1786 = vmatprep.subr.mxu1 %v1709_v25  ;;  %v1940_v25 = vld [vmem:[#allocation2 + $0xea0] sm:$0xff] }
 0x5b1   : > { %1787 = vmatpush1.msra.mxu1 %v1708_v27  ;;  %v1939_v27 = vld [vmem:[#allocation2 + $0xe98] sm:$0xff] }
 0x5b2   : > { %1788 = vmatprep.subr.mxu1 %v1707_v29  ;;  %v1938_v29 = vld [vmem:[#allocation2 + $0xe90] sm:$0xff] }
 0x5b3   : > { %1789 = vmatpush1.msra.mxu1 %v1706_v30  ;;  %v1937_v30 = vld [vmem:[#allocation2 + $0xe88] sm:$0xff] }
 0x5b4   : > { %1790 = vmatprep.subr.mxu1 %v1705_v32  ;;  %v1936_v32 = vld [vmem:[#allocation2 + $0xe80] sm:$0xff] }
 0x5b5   : > { %1791 = vmatpush1.msra.mxu1 %v1704_v33  ;;  %v1935_v33 = vld [vmem:[#allocation2 + $0xe78] sm:$0xff] }
 0x5b6   : > { %1792 = vmatprep.subr.mxu1 %v1703_v34  ;;  %v1934_v34 = vld [vmem:[#allocation2 + $0xe70] sm:$0xff] }
 0x5b7   : > { %1793 = vmatpush1.msra.mxu1 %v1702_v35  ;;  %v1933_v35 = vld [vmem:[#allocation2 + $0xe68] sm:$0xff] }
 0x5b8   : > { %1794 = vmatprep.subr.mxu1 %v1701_v36  ;;  %v1932_v36 = vld [vmem:[#allocation2 + $0xe60] sm:$0xff] }
 0x5b9   : > { %1795 = vmatpush1.msra.mxu1 %v1700_v37  ;;  %v1931_v37 = vld [vmem:[#allocation2 + $0xe58] sm:$0xff] }
 0x5ba   : > { %1796 = vmatprep.subr.mxu1 %v1763_v38  ;;  %v1930_v38 = vld [vmem:[#allocation2 + $0xe50] sm:$0xff] }
 0x5bb   : > { %1797 = vmatpush2.msra.mxu1 %v1762_v40  ;;  %v1929_v40 = vld [vmem:[#allocation2 + $0xe48] sm:$0xff] }
 0x5bc   : > { %1798 = vmatprep.subr.mxu1 %v1761_v26  ;;  %v1928_v26 = vld [vmem:[#allocation2 + $0xe40] sm:$0xff] }
 0x5bd   : > { %1799 = vmatpush2.msra.mxu1 %v1760_v42  ;;  %v1927_v42 = vld [vmem:[#allocation2 + $0xe38] sm:$0xff] }
 0x5be   : > { %1800 = vmatprep.subr.mxu1 %v1759_v43  ;;  %v1926_v43 = vld [vmem:[#allocation2 + $0xe30] sm:$0xff] }
 0x5bf   : > { %1801 = vmatpush2.msra.mxu1 %v1758_v44  ;;  %v1925_v44 = vld [vmem:[#allocation2 + $0xe28] sm:$0xff] }
 0x5c0   : > { %1802 = vmatprep.subr.mxu1 %v1757_v16  ;;  %v1924_v16 = vld [vmem:[#allocation2 + $0xe20] sm:$0xff] }
 0x5c1   : > { %1803 = vmatpush2.msra.mxu1 %v1756_v45  ;;  %v1923_v45 = vld [vmem:[#allocation2 + $0xe18] sm:$0xff] }
 0x5c2   : > { %1804 = vmatprep.subr.mxu1 %v1755_v17  ;;  %v1922_v17 = vld [vmem:[#allocation2 + $0xe10] sm:$0xff] }
 0x5c3   : > { %1805 = vmatpush2.msra.mxu1 %v1754_v46  ;;  %v1921_v46 = vld [vmem:[#allocation2 + $0xe08] sm:$0xff] }
 0x5c4   : > { %1806 = vmatprep.subr.mxu1 %v1753_v48  ;;  %v1920_v48 = vld [vmem:[#allocation2 + $0xe00] sm:$0xff] }
 0x5c5   : > { %1807 = vmatpush2.msra.mxu1 %v1752_v50  ;;  %v1983_v50 = vld [vmem:[#allocation2 + $0xff8] sm:$0xff] }
 0x5c6   : > { %1808 = vmatprep.subr.mxu1 %v1751_v52  ;;  %v1982_v52 = vld [vmem:[#allocation2 + $0xff0] sm:$0xff] }
 0x5c7   : > { %1809 = vmatpush2.msra.mxu1 %v1750_v53  ;;  %v1981_v53 = vld [vmem:[#allocation2 + $0xfe8] sm:$0xff] }
 0x5c8   : > { %1810 = vmatprep.subr.mxu1 %v1749_v54  ;;  %v1980_v54 = vld [vmem:[#allocation2 + $0xfe0] sm:$0xff] }
 0x5c9   : > { %1811 = vmatpush2.msra.mxu1 %v1748_v55  ;;  %v1979_v55 = vld [vmem:[#allocation2 + $0xfd8] sm:$0xff] }
 0x5ca   : > { %1812 = vmatprep.subr.mxu1 %v1747_v56  ;;  %v1978_v56 = vld [vmem:[#allocation2 + $0xfd0] sm:$0xff] }
 0x5cb   : > { %1813 = vmatpush2.msra.mxu1 %v1746_v57  ;;  %v1977_v57 = vld [vmem:[#allocation2 + $0xfc8] sm:$0xff] }
 0x5cc   : > { %1814 = vmatprep.subr.mxu1 %v1745_v58  ;;  %v1976_v58 = vld [vmem:[#allocation2 + $0xfc0] sm:$0xff] }
 0x5cd   : > { %1815 = vmatpush2.msra.mxu1 %v1744_v39  ;;  %v1975_v39 = vld [vmem:[#allocation2 + $0xfb8] sm:$0xff] }
 0x5ce   : > { %1816 = vmatprep.subr.mxu1 %v1743_v41  ;;  %v1974_v41 = vld [vmem:[#allocation2 + $0xfb0] sm:$0xff] }
 0x5cf   : > { %1817 = vmatpush2.msra.mxu1 %v1742_v59  ;;  %v1973_v59 = vld [vmem:[#allocation2 + $0xfa8] sm:$0xff] }
 0x5d0   : > { %1818 = vmatprep.subr.mxu1 %v1741_v61  ;;  %v1972_v61 = vld [vmem:[#allocation2 + $0xfa0] sm:$0xff] }
 0x5d1   : > { %1819 = vmatpush2.msra.mxu1 %v1740_v63  ;;  %v1971_v63 = vld [vmem:[#allocation2 + $0xf98] sm:$0xff] }
 0x5d2   : > { %1820 = vmatprep.subr.mxu1 %v1739_v0  ;;  %v1970_v0 = vld [vmem:[#allocation2 + $0xf90] sm:$0xff] }
 0x5d3   : > { %1821 = vmatpush2.msra.mxu1 %v1738_v1  ;;  %v1969_v1 = vld [vmem:[#allocation2 + $0xf88] sm:$0xff] }
 0x5d4   : > { %1822 = vmatprep.subr.mxu1 %v1737_v2  ;;  %v1968_v2 = vld [vmem:[#allocation2 + $0xf80] sm:$0xff] }
 0x5d5   : > { %1823 = vmatpush2.msra.mxu1 %v1736_v3  ;;  %v1967_v3 = vld [vmem:[#allocation2 + $0xf78] sm:$0xff] }
 0x5d6   : > { %1824 = vmatprep.subr.mxu1 %v1735_v5  ;;  %v1966_v5 = vld [vmem:[#allocation2 + $0xf70] sm:$0xff] }
 0x5d7   : > { %1825 = vmatpush2.msra.mxu1 %v1734_v6  ;;  %v1965_v6 = vld [vmem:[#allocation2 + $0xf68] sm:$0xff] }
 0x5d8   : > { %1826 = vmatprep.subr.mxu1 %v1733_v49  ;;  %v1964_v49 = vld [vmem:[#allocation2 + $0xf60] sm:$0xff] }
 0x5d9   : > { %1827 = vmatpush2.msra.mxu1 %v1732_v51  ;;  %v1963_v51 = vld [vmem:[#allocation2 + $0xf58] sm:$0xff] }
 0x5da   : > { %1829 = vmatmul.mubr.f32.vlgmr.msra.gmra.mxu1 %v10043_v47 }
 0x5db   : > { %2130 = vmatprep.mubr.f32.mxu1 %v9843_v4 }
 0x65a   : > { %v1692_v7 = vpop.f32.mrf.mxu1 }
 0x65b   : > { %v10074_v8 = vadd.f32 %v1692_v7, %v10061_v60  ;;  %v1947_v60 = vld [vmem:[#allocation2 + $0xed8] sm:$0xff]  ;;  %v1962_v7 = vld [vmem:[#allocation2 + $0xf50] sm:$0xff] }
 0x65c   : > { %v1694_v9 = vpop.f32.mrf.mxu1 }
 0x65d   : > { %v10077_v10 = vadd.f32 %v1694_v9, %v10064_v62  ;;  %v1946_v62 = vld [vmem:[#allocation2 + $0xed0] sm:$0xff]  ;;  %v1961_v9 = vld [vmem:[#allocation2 + $0xf48] sm:$0xff] }
 0x69a   : > { %v1830_v11 = vpop.f32.mrf.mxu1 }
 0x69c   : > { %v1832_v12 = vpop.f32.mrf.mxu1 }
 0x69d   : > { %7833 = vmatprep.subr.msk.mxu0 %vm519_vm0, %v1832_v12  ;;  %v1959_v12 = vld [vmem:[#allocation2 + $0xf38] sm:$0xff] }
 0x69e   : > { %7834 = vmatpush1.msk.msra.mxu0 %vm519_vm0, %v1830_v11  ;;  %v1960_v11 = vld [vmem:[#allocation2 + $0xf40] sm:$0xff] }
 0x69f   : > { %7835 = vmatmul.mubr.msk.f32.vlgmr.msra.gmra.mxu0 %vm515_vm1, %v7832_v13  ;;  %1984 = vmatprep.subr.mxu0 %v1951_v14  ;;  %v1958_v13 = vld [vmem:[#allocation2 + $0xf30] sm:$0xff]  ;;  %v1957_v14 = vld [vmem:[#allocation2 + $0xf28] sm:$0xff] }
 0x6a0   : > { %1985 = vmatpush1.msra.mxu0 %v1950_v15  ;;  %2048 = vmatprep.mubr.f32.mxu0 %v9993_v28  ;;  %v1956_v15 = vld [vmem:[#allocation2 + $0xf20] sm:$0xff] }
 0x6a1   : > { %1986 = vmatprep.subr.mxu0 %v1949_v18  ;;  %v1955_v18 = vld [vmem:[#allocation2 + $0xf18] sm:$0xff] }
 0x6a2   : > { %1987 = vmatpush1.msra.mxu0 %v1948_v19  ;;  %v1954_v19 = vld [vmem:[#allocation2 + $0xf10] sm:$0xff] }
 0x6a3   : > { %1988 = vmatprep.subr.mxu0 %v1947_v60  ;;  %v1953_v60 = vld [vmem:[#allocation2 + $0xf08] sm:$0xff] }
 0x6a4   : > { %1989 = vmatpush1.msra.mxu0 %v1946_v62  ;;  %v1952_v62 = vld [vmem:[#allocation2 + $0xf00] sm:$0xff] }
 0x6a5   : > { %1990 = vmatprep.subr.mxu0 %v1945_v20 }
 0x6a6   : > { %1991 = vmatpush1.msra.mxu0 %v1944_v21 }
 0x6a7   : > { %1992 = vmatprep.subr.mxu0 %v1943_v22 }
 0x6a8   : > { %1993 = vmatpush1.msra.mxu0 %v1942_v23 }
 0x6a9   : > { %1994 = vmatprep.subr.mxu0 %v1941_v24 }
 0x6aa   : > { %1995 = vmatpush1.msra.mxu0 %v1940_v25 }
 0x6ab   : > { %1996 = vmatprep.subr.mxu0 %v1939_v27  ;;  %v7836_v27 = vld [vmem:[%s9960_s8 + $0x1c] sm:$0xf] }
 0x6ac   : > { %1997 = vmatpush1.msra.mxu0 %v1938_v29  ;;  %v2171_v29 = vld [vmem:[#allocation2 + $0x10f8] sm:$0xff] }
 0x6ad   : > { %1998 = vmatprep.subr.mxu0 %v1937_v30  ;;  %v2170_v30 = vld [vmem:[#allocation2 + $0x10f0] sm:$0xff] }
 0x6ae   : > { %1999 = vmatpush1.msra.mxu0 %v1936_v32  ;;  %v2168_v32 = vld [vmem:[#allocation2 + $0x10e0] sm:$0xff] }
 0x6af   : > { %2000 = vmatprep.subr.mxu0 %v1935_v33  ;;  %v2165_v33 = vld [vmem:[#allocation2 + $0x10c8] sm:$0xff] }
 0x6b0   : > { %2001 = vmatpush1.msra.mxu0 %v1934_v34  ;;  %v2164_v34 = vld [vmem:[#allocation2 + $0x10c0] sm:$0xff] }
 0x6b1   : > { %2002 = vmatprep.subr.mxu0 %v1933_v35  ;;  %v2163_v35 = vld [vmem:[#allocation2 + $0x10b8] sm:$0xff] }
 0x6b2   : > { %2003 = vmatpush1.msra.mxu0 %v1932_v36  ;;  %v2162_v36 = vld [vmem:[#allocation2 + $0x10b0] sm:$0xff] }
 0x6b3   : > { %2004 = vmatprep.subr.mxu0 %v1931_v37  ;;  %v2161_v37 = vld [vmem:[#allocation2 + $0x10a8] sm:$0xff] }
 0x6b4   : > { %2005 = vmatpush1.msra.mxu0 %v1930_v38  ;;  %v2160_v38 = vld [vmem:[#allocation2 + $0x10a0] sm:$0xff] }
 0x6b5   : > { %2006 = vmatprep.subr.mxu0 %v1929_v40  ;;  %v2159_v40 = vld [vmem:[#allocation2 + $0x1098] sm:$0xff] }
 0x6b6   : > { %2007 = vmatpush1.msra.mxu0 %v1928_v26  ;;  %v2158_v26 = vld [vmem:[#allocation2 + $0x1090] sm:$0xff] }
 0x6b7   : > { %2008 = vmatprep.subr.mxu0 %v1927_v42  ;;  %v2156_v42 = vld [vmem:[#allocation2 + $0x1080] sm:$0xff] }
 0x6b8   : > { %2009 = vmatpush1.msra.mxu0 %v1926_v43  ;;  %v2155_v43 = vld [vmem:[#allocation2 + $0x1078] sm:$0xff] }
 0x6b9   : > { %2010 = vmatprep.subr.mxu0 %v1925_v44  ;;  %v2154_v44 = vld [vmem:[#allocation2 + $0x1070] sm:$0xff] }
 0x6ba   : > { %2011 = vmatpush1.msra.mxu0 %v1924_v16  ;;  %v2153_v16 = vld [vmem:[#allocation2 + $0x1068] sm:$0xff] }
 0x6bb   : > { %2012 = vmatprep.subr.mxu0 %v1923_v45  ;;  %v2152_v45 = vld [vmem:[#allocation2 + $0x1060] sm:$0xff] }
 0x6bc   : > { %2013 = vmatpush1.msra.mxu0 %v1922_v17  ;;  %v2151_v17 = vld [vmem:[#allocation2 + $0x1058] sm:$0xff] }
 0x6bd   : > { %2014 = vmatprep.subr.mxu0 %v1921_v46  ;;  %v2150_v46 = vld [vmem:[#allocation2 + $0x1050] sm:$0xff] }
 0x6be   : > { %2015 = vmatpush1.msra.mxu0 %v1920_v48  ;;  %v2149_v48 = vld [vmem:[#allocation2 + $0x1048] sm:$0xff] }
 0x6bf   : > { %2016 = vmatprep.subr.mxu0 %v1983_v50  ;;  %v2148_v50 = vld [vmem:[#allocation2 + $0x1040] sm:$0xff] }
 0x6c0   : > { %2017 = vmatpush2.msra.mxu0 %v1982_v52  ;;  %v2147_v52 = vld [vmem:[#allocation2 + $0x1038] sm:$0xff] }
 0x6c1   : > { %2018 = vmatprep.subr.mxu0 %v1981_v53  ;;  %v2146_v53 = vld [vmem:[#allocation2 + $0x1030] sm:$0xff] }
 0x6c2   : > { %2019 = vmatpush2.msra.mxu0 %v1980_v54  ;;  %v2145_v54 = vld [vmem:[#allocation2 + $0x1028] sm:$0xff] }
 0x6c3   : > { %2020 = vmatprep.subr.mxu0 %v1979_v55  ;;  %v2144_v55 = vld [vmem:[#allocation2 + $0x1020] sm:$0xff] }
 0x6c4   : > { %2021 = vmatpush2.msra.mxu0 %v1978_v56  ;;  %v2143_v56 = vld [vmem:[#allocation2 + $0x1018] sm:$0xff] }
 0x6c5   : > { %2022 = vmatprep.subr.mxu0 %v1977_v57  ;;  %v2142_v57 = vld [vmem:[#allocation2 + $0x1010] sm:$0xff] }
 0x6c6   : > { %2023 = vmatpush2.msra.mxu0 %v1976_v58  ;;  %v2141_v58 = vld [vmem:[#allocation2 + $0x1008] sm:$0xff] }
 0x6c7   : > { %2024 = vmatprep.subr.mxu0 %v1975_v39  ;;  %v2140_v39 = vld [vmem:[#allocation2 + $0x1000] sm:$0xff] }
 0x6c8   : > { %2025 = vmatpush2.msra.mxu0 %v1974_v41  ;;  %v2203_v41 = vld [vmem:[#allocation2 + $0x11f8] sm:$0xff] }
 0x6c9   : > { %2026 = vmatprep.subr.mxu0 %v1973_v59  ;;  %v2202_v59 = vld [vmem:[#allocation2 + $0x11f0] sm:$0xff] }
 0x6ca   : > { %2027 = vmatpush2.msra.mxu0 %v1972_v61  ;;  %v2201_v61 = vld [vmem:[#allocation2 + $0x11e8] sm:$0xff] }
 0x6cb   : > { %2028 = vmatprep.subr.mxu0 %v1971_v63  ;;  %v2200_v63 = vld [vmem:[#allocation2 + $0x11e0] sm:$0xff] }
 0x6cc   : > { %2029 = vmatpush2.msra.mxu0 %v1970_v0  ;;  %v2199_v0 = vld [vmem:[#allocation2 + $0x11d8] sm:$0xff] }
 0x6cd   : > { %2030 = vmatprep.subr.mxu0 %v1969_v1  ;;  %v2198_v1 = vld [vmem:[#allocation2 + $0x11d0] sm:$0xff] }
 0x6ce   : > { %2031 = vmatpush2.msra.mxu0 %v1968_v2  ;;  %v2197_v2 = vld [vmem:[#allocation2 + $0x11c8] sm:$0xff] }
 0x6cf   : > { %2032 = vmatprep.subr.mxu0 %v1967_v3  ;;  %v2196_v3 = vld [vmem:[#allocation2 + $0x11c0] sm:$0xff] }
 0x6d0   : > { %2033 = vmatpush2.msra.mxu0 %v1966_v5  ;;  %v2195_v5 = vld [vmem:[#allocation2 + $0x11b8] sm:$0xff] }
 0x6d1   : > { %2034 = vmatprep.subr.mxu0 %v1965_v6  ;;  %v2194_v6 = vld [vmem:[#allocation2 + $0x11b0] sm:$0xff] }
 0x6d2   : > { %2035 = vmatpush2.msra.mxu0 %v1964_v49  ;;  %v2193_v49 = vld [vmem:[#allocation2 + $0x11a8] sm:$0xff] }
 0x6d3   : > { %2036 = vmatprep.subr.mxu0 %v1963_v51  ;;  %v2192_v51 = vld [vmem:[#allocation2 + $0x11a0] sm:$0xff] }
 0x6d4   : > { %2037 = vmatpush2.msra.mxu0 %v1962_v7  ;;  %v2191_v7 = vld [vmem:[#allocation2 + $0x1198] sm:$0xff] }
 0x6d5   : > { %2038 = vmatprep.subr.mxu0 %v1961_v9  ;;  %v2190_v9 = vld [vmem:[#allocation2 + $0x1190] sm:$0xff] }
 0x6d6   : > { %2039 = vmatpush2.msra.mxu0 %v1960_v11  ;;  %v2189_v11 = vld [vmem:[#allocation2 + $0x1188] sm:$0xff] }
 0x6d7   : > { %2040 = vmatprep.subr.mxu0 %v1959_v12  ;;  %v2188_v12 = vld [vmem:[#allocation2 + $0x1180] sm:$0xff] }
 0x6d8   : > { %2041 = vmatpush2.msra.mxu0 %v1958_v13  ;;  %v2187_v13 = vld [vmem:[#allocation2 + $0x1178] sm:$0xff] }
 0x6d9   : > { %2042 = vmatprep.subr.mxu0 %v1957_v14  ;;  %v2186_v14 = vld [vmem:[#allocation2 + $0x1170] sm:$0xff] }
 0x6da   : > { %2043 = vmatpush2.msra.mxu0 %v1956_v15  ;;  %v2185_v15 = vld [vmem:[#allocation2 + $0x1168] sm:$0xff] }
 0x6db   : > { %2044 = vmatprep.subr.mxu0 %v1955_v18  ;;  %v2184_v18 = vld [vmem:[#allocation2 + $0x1160] sm:$0xff] }
 0x6dc   : > { %2045 = vmatpush2.msra.mxu0 %v1954_v19  ;;  %v2183_v19 = vld [vmem:[#allocation2 + $0x1158] sm:$0xff] }
 0x6dd   : > { %2046 = vmatprep.subr.mxu0 %v1953_v60  ;;  %v2182_v60 = vld [vmem:[#allocation2 + $0x1150] sm:$0xff] }
 0x6de   : > { %2047 = vmatpush2.msra.mxu0 %v1952_v62  ;;  %v2181_v62 = vld [vmem:[#allocation2 + $0x1148] sm:$0xff] }
 0x6df   : > { %2049 = vmatmul.mubr.f32.vlgmr.msra.gmra.mxu0 %v10043_v47  ;;  %v2169_v47 = vld [vmem:[#allocation2 + $0x10e8] sm:$0xff] }
 0x6e0   : > { %2350 = vmatprep.mubr.f32.mxu0 %v9843_v4 }
 0x75f   : > { %v1912_v20 = vpop.f32.mrf.mxu0 }
 0x760   : > { %v10087_v21 = vadd.f32 %v1912_v20, %v10074_v8  ;;  %v2167_v8 = vld [vmem:[#allocation2 + $0x10d8] sm:$0xff]  ;;  %v2180_v20 = vld [vmem:[#allocation2 + $0x1140] sm:$0xff] }
 0x761   : > { %v1914_v22 = vpop.f32.mrf.mxu0 }
 0x762   : > { %v10090_v23 = vadd.f32 %v1914_v22, %v10077_v10  ;;  %v2166_v10 = vld [vmem:[#allocation2 + $0x10d0] sm:$0xff]  ;;  %v2179_v22 = vld [vmem:[#allocation2 + $0x1138] sm:$0xff] }
 0x79f   : > { %v2050_v24 = vpop.f32.mrf.mxu0 }
 0x7a1   : > { %v2052_v25 = vpop.f32.mrf.mxu0 }
 0x7a2   : > { %7837 = vmatprep.subr.msk.mxu1 %vm519_vm0, %v2052_v25  ;;  %v2177_v25 = vld [vmem:[#allocation2 + $0x1128] sm:$0xff] }
 0x7a3   : > { %7838 = vmatpush1.msk.msra.mxu1 %vm519_vm0, %v2050_v24  ;;  %v2178_v24 = vld [vmem:[#allocation2 + $0x1130] sm:$0xff] }
 0x7a4   : > { %7839 = vmatmul.mubr.msk.f32.vlgmr.msra.gmra.mxu1 %vm515_vm1, %v7836_v27  ;;  %2204 = vmatprep.subr.mxu1 %v2171_v29  ;;  %v2176_v27 = vld [vmem:[#allocation2 + $0x1120] sm:$0xff]  ;;  %v2175_v29 = vld [vmem:[#allocation2 + $0x1118] sm:$0xff] }
 0x7a5   : > { %2205 = vmatpush1.msra.mxu1 %v2170_v30  ;;  %2268 = vmatprep.mubr.f32.mxu1 %v9993_v28  ;;  %v2157_v28 = vld [vmem:[#allocation2 + $0x1088] sm:$0xff]  ;;  %v2174_v30 = vld [vmem:[#allocation2 + $0x1110] sm:$0xff] }
 0x7a6   : > { %2206 = vmatprep.subr.mxu1 %v2169_v47  ;;  %v2173_v47 = vld [vmem:[#allocation2 + $0x1108] sm:$0xff] }
 0x7a7   : > { %2207 = vmatpush1.msra.mxu1 %v2168_v32  ;;  %v2172_v32 = vld [vmem:[#allocation2 + $0x1100] sm:$0xff] }
 0x7a8   : > { %2208 = vmatprep.subr.mxu1 %v2167_v8  ;;  %v7992_v8 = vld [vmem:[%s10563_s7] sm:$0xff] }
 0x7a9   : > { %2209 = vmatpush1.msra.mxu1 %v2166_v10 }
 0x7aa   : > { %2210 = vmatprep.subr.mxu1 %v2165_v33 }
 0x7ab   : > { %2211 = vmatpush1.msra.mxu1 %v2164_v34 }
 0x7ac   : > { %2212 = vmatprep.subr.mxu1 %v2163_v35 }
 0x7ad   : > { %2213 = vmatpush1.msra.mxu1 %v2162_v36  ;;  %v10110_v36 = vld [vmem:[%s10563_s7 + $0x8] sm:$0xff] }
 0x7ae   : > { %2214 = vmatprep.subr.mxu1 %v2161_v37 }
 0x7af   : > { %2215 = vmatpush1.msra.mxu1 %v2160_v38 }
 0x7b0   : > { %2216 = vmatprep.subr.mxu1 %v2159_v40  ;;  %v7840_v40 = vld [vmem:[%s9960_s8 + $0x20] sm:$0xf] }
 0x7b1   : > { %2217 = vmatpush1.msra.mxu1 %v2158_v26  ;;  %v10115_v26 = vcombine.high %v10110_v36, %v10110_v36 }
 0x7b2   : > { %2218 = vmatprep.subr.mxu1 %v2157_v28  ;;  %v7995_v28 = vld [vmem:[#allocation2 + $0xe8] sm:$0xff] }
 0x7b3   : > { %2219 = vmatpush1.msra.mxu1 %v2156_v42  ;;  %v7996_v42 = vld [vmem:[#allocation2 + $0xe0] sm:$0xff] }
 0x7b4   : > { %2220 = vmatprep.subr.mxu1 %v2155_v43  ;;  %v7997_v43 = vld [vmem:[#allocation2 + $0xd8] sm:$0xff] }
 0x7b5   : > { %2221 = vmatpush1.msra.mxu1 %v2154_v44  ;;  %v7998_v44 = vld [vmem:[#allocation2 + $0xd0] sm:$0xff] }
 0x7b6   : > { %2222 = vmatprep.subr.mxu1 %v2153_v16  ;;  %v7999_v16 = vld [vmem:[#allocation2 + $0xc8] sm:$0xff] }
 0x7b7   : > { %2223 = vmatpush1.msra.mxu1 %v2152_v45  ;;  %v8000_v45 = vld [vmem:[#allocation2 + $0xc0] sm:$0xff] }
 0x7b8   : > { %2224 = vmatprep.subr.mxu1 %v2151_v17  ;;  %v8001_v17 = vld [vmem:[#allocation2 + $0xb8] sm:$0xff] }
 0x7b9   : > { %2225 = vmatpush1.msra.mxu1 %v2150_v46  ;;  %v8002_v46 = vld [vmem:[#allocation2 + $0xb0] sm:$0xff] }
 0x7ba   : > { %2226 = vmatprep.subr.mxu1 %v2149_v48  ;;  %v8003_v48 = vld [vmem:[#allocation2 + $0xa8] sm:$0xff] }
 0x7bb   : > { %2227 = vmatpush1.msra.mxu1 %v2148_v50  ;;  %v8004_v50 = vld [vmem:[#allocation2 + $0xa0] sm:$0xff] }
 0x7bc   : > { %2228 = vmatprep.subr.mxu1 %v2147_v52  ;;  %v8005_v52 = vld [vmem:[#allocation2 + $0x98] sm:$0xff] }
 0x7bd   : > { %2229 = vmatpush1.msra.mxu1 %v2146_v53  ;;  %v8006_v53 = vld [vmem:[#allocation2 + $0x90] sm:$0xff] }
 0x7be   : > { %2230 = vmatprep.subr.mxu1 %v2145_v54  ;;  %v8007_v54 = vld [vmem:[#allocation2 + $0x88] sm:$0xff] }
 0x7bf   : > { %2231 = vmatpush1.msra.mxu1 %v2144_v55  ;;  %v8008_v55 = vld [vmem:[#allocation2 + $0x80] sm:$0xff] }
 0x7c0   : > { %2232 = vmatprep.subr.mxu1 %v2143_v56  ;;  %v8009_v56 = vld [vmem:[#allocation2 + $0x78] sm:$0xff] }
 0x7c1   : > { %2233 = vmatpush1.msra.mxu1 %v2142_v57  ;;  %v8010_v57 = vld [vmem:[#allocation2 + $0x70] sm:$0xff] }
 0x7c2   : > { %2234 = vmatprep.subr.mxu1 %v2141_v58  ;;  %v8011_v58 = vld [vmem:[#allocation2 + $0x68] sm:$0xff] }
 0x7c3   : > { %2235 = vmatpush1.msra.mxu1 %v2140_v39  ;;  %v8012_v39 = vld [vmem:[#allocation2 + $0x60] sm:$0xff] }
 0x7c4   : > { %2236 = vmatprep.subr.mxu1 %v2203_v41  ;;  %v8013_v41 = vld [vmem:[#allocation2 + $0x58] sm:$0xff] }
 0x7c5   : > { %2237 = vmatpush2.msra.mxu1 %v2202_v59  ;;  %v8014_v59 = vld [vmem:[#allocation2 + $0x50] sm:$0xff] }
 0x7c6   : > { %2238 = vmatprep.subr.mxu1 %v2201_v61  ;;  %v8015_v61 = vld [vmem:[#allocation2 + $0x48] sm:$0xff] }
 0x7c7   : > { %2239 = vmatpush2.msra.mxu1 %v2200_v63  ;;  %v8016_v63 = vld [vmem:[#allocation2 + $0x40] sm:$0xff] }
 0x7c8   : > { %2240 = vmatprep.subr.mxu1 %v2199_v0  ;;  %v8017_v0 = vld [vmem:[#allocation2 + $0x38] sm:$0xff] }
 0x7c9   : > { %2241 = vmatpush2.msra.mxu1 %v2198_v1  ;;  %v8018_v1 = vld [vmem:[#allocation2 + $0x30] sm:$0xff] }
 0x7ca   : > { %2242 = vmatprep.subr.mxu1 %v2197_v2  ;;  %v8019_v2 = vld [vmem:[#allocation2 + $0x28] sm:$0xff] }
 0x7cb   : > { %2243 = vmatpush2.msra.mxu1 %v2196_v3  ;;  %v8020_v3 = vld [vmem:[#allocation2 + $0x20] sm:$0xff] }
 0x7cc   : > { %2244 = vmatprep.subr.mxu1 %v2195_v5  ;;  %v8021_v5 = vld [vmem:[#allocation2 + $0x18] sm:$0xff] }
 0x7cd   : > { %2245 = vmatpush2.msra.mxu1 %v2194_v6  ;;  %v8022_v6 = vld [vmem:[#allocation2 + $0x10] sm:$0xff] }
 0x7ce   : > { %2246 = vmatprep.subr.mxu1 %v2193_v49  ;;  %v8023_v49 = vld [vmem:[#allocation2 + $0x8] sm:$0xff] }
 0x7cf   : > { %2247 = vmatpush2.msra.mxu1 %v2192_v51  ;;  %v8024_v51 = vld [vmem:[#allocation2] sm:$0xff] }
 0x7d0   : > { %2248 = vmatprep.subr.mxu1 %v2191_v7  ;;  %v8025_v7 = vld [vmem:[#allocation2 + $0x1f8] sm:$0xff] }
 0x7d1   : > { %2249 = vmatpush2.msra.mxu1 %v2190_v9  ;;  %v8026_v9 = vld [vmem:[#allocation2 + $0x1f0] sm:$0xff] }
 0x7d2   : > { %2250 = vmatprep.subr.mxu1 %v2189_v11  ;;  %v8027_v11 = vld [vmem:[#allocation2 + $0x1e8] sm:$0xff] }
 0x7d3   : > { %2251 = vmatpush2.msra.mxu1 %v2188_v12  ;;  %v8028_v12 = vld [vmem:[#allocation2 + $0x1e0] sm:$0xff] }
 0x7d4   : > { %2252 = vmatprep.subr.mxu1 %v2187_v13  ;;  %v8029_v13 = vld [vmem:[#allocation2 + $0x1d8] sm:$0xff] }
 0x7d5   : > { %2253 = vmatpush2.msra.mxu1 %v2186_v14  ;;  %v8030_v14 = vld [vmem:[#allocation2 + $0x1d0] sm:$0xff] }
 0x7d6   : > { %2254 = vmatprep.subr.mxu1 %v2185_v15  ;;  %v8031_v15 = vld [vmem:[#allocation2 + $0x1c8] sm:$0xff] }
 0x7d7   : > { %2255 = vmatpush2.msra.mxu1 %v2184_v18  ;;  %v8032_v18 = vld [vmem:[#allocation2 + $0x1c0] sm:$0xff] }
 0x7d8   : > { %2256 = vmatprep.subr.mxu1 %v2183_v19  ;;  %v8033_v19 = vld [vmem:[#allocation2 + $0x1b8] sm:$0xff] }
 0x7d9   : > { %2257 = vmatpush2.msra.mxu1 %v2182_v60  ;;  %v8034_v60 = vld [vmem:[#allocation2 + $0x1b0] sm:$0xff] }
 0x7da   : > { %2258 = vmatprep.subr.mxu1 %v2181_v62  ;;  %v8035_v62 = vld [vmem:[#allocation2 + $0x1a8] sm:$0xff] }
 0x7db   : > { %2259 = vmatpush2.msra.mxu1 %v2180_v20  ;;  %v8036_v20 = vld [vmem:[#allocation2 + $0x1a0] sm:$0xff] }
 0x7dc   : > { %2260 = vmatprep.subr.mxu1 %v2179_v22  ;;  %v8037_v22 = vld [vmem:[#allocation2 + $0x198] sm:$0xff] }
 0x7dd   : > { %2261 = vmatpush2.msra.mxu1 %v2178_v24  ;;  %v8038_v24 = vld [vmem:[#allocation2 + $0x190] sm:$0xff] }
 0x7de   : > { %2262 = vmatprep.subr.mxu1 %v2177_v25  ;;  %v8039_v25 = vld [vmem:[#allocation2 + $0x188] sm:$0xff] }
 0x7df   : > { %2263 = vmatpush2.msra.mxu1 %v2176_v27  ;;  %v8040_v27 = vld [vmem:[#allocation2 + $0x180] sm:$0xff] }
 0x7e0   : > { %2264 = vmatprep.subr.mxu1 %v2175_v29  ;;  %v8041_v29 = vld [vmem:[#allocation2 + $0x178] sm:$0xff] }
 0x7e1   : > { %2265 = vmatpush2.msra.mxu1 %v2174_v30  ;;  %v8042_v30 = vld [vmem:[#allocation2 + $0x170] sm:$0xff] }
 0x7e2   : > { %2266 = vmatprep.subr.mxu1 %v2173_v47  ;;  %v8043_v47 = vld [vmem:[#allocation2 + $0x168] sm:$0xff] }
 0x7e3   : > { %2267 = vmatpush2.msra.mxu1 %v2172_v32  ;;  %v8044_v32 = vld [vmem:[#allocation2 + $0x160] sm:$0xff] }
 0x7e4   : > { %2269 = vmatmul.mubr.f32.vlgmr.msra.gmra.mxu1 %v7992_v8  ;;  %v8045_v8 = vld [vmem:[#allocation2 + $0x158] sm:$0xff] }
 0x7e5   : > { %2517 = vmatprep.mubr.f32.mxu1 %v9843_v4 }
 0x864   : > { %v2132_v10 = vpop.f32.mrf.mxu1 }
 0x865   : > { %v10102_v33 = vadd.f32 %v2132_v10, %v10087_v21  ;;  %v7993_v21 = vld [vmem:[#allocation2 + $0xf8] sm:$0xff]  ;;  %v8046_v10 = vld [vmem:[#allocation2 + $0x150] sm:$0xff] }
 0x866   : > { %v2134_v34 = vpop.f32.mrf.mxu1 }
 0x867   : > { %v10105_v35 = vadd.f32 %v2134_v34, %v10090_v23  ;;  %v7994_v23 = vld [vmem:[#allocation2 + $0xf0] sm:$0xff]  ;;  %v8047_v34 = vld [vmem:[#allocation2 + $0x148] sm:$0xff] }
 0x8a4   : > { %v2270_v37 = vpop.f32.mrf.mxu1 }
 0x8a6   : > { %v2272_v38 = vpop.f32.mrf.mxu1 }
 0x8a7   : > { %7841 = vmatprep.subr.msk.mxu0 %vm519_vm0, %v2272_v38  ;;  %v8049_v38 = vld [vmem:[#allocation2 + $0x138] sm:$0xff] }
 0x8a8   : > { %7842 = vmatpush1.msk.msra.mxu0 %vm519_vm0, %v2270_v37  ;;  %v8048_v37 = vld [vmem:[#allocation2 + $0x140] sm:$0xff] }
 0x8a9   : > { %7843 = vmatmul.mubr.msk.f32.vlgmr.msra.gmra.mxu0 %vm515_vm1, %v7840_v40  ;;  %2376 = vmatprep.subr.mxu0 %v7993_v21  ;;  %v8050_v40 = vld [vmem:[#allocation2 + $0x130] sm:$0xff]  ;;  %v8051_v21 = vld [vmem:[#allocation2 + $0x128] sm:$0xff] }
 0x8aa   : > { %2377 = vmatpush1.msra.mxu0 %v7994_v23  ;;  %2440 = vmatprep.mubr.f32.mxu0 %v10115_v26  ;;  %v8052_v23 = vld [vmem:[#allocation2 + $0x120] sm:$0xff] }
 0x8ab   : > { %2378 = vmatprep.subr.mxu0 %v7995_v28  ;;  %v8053_v28 = vld [vmem:[#allocation2 + $0x118] sm:$0xff] }
 0x8ac   : > { %2379 = vmatpush1.msra.mxu0 %v7996_v42  ;;  %v8054_v42 = vld [vmem:[#allocation2 + $0x110] sm:$0xff] }
 0x8ad   : > { %2380 = vmatprep.subr.mxu0 %v7997_v43  ;;  %v8055_v43 = vld [vmem:[#allocation2 + $0x108] sm:$0xff] }
 0x8ae   : > { %2381 = vmatpush1.msra.mxu0 %v7998_v44  ;;  %v8056_v44 = vld [vmem:[#allocation2 + $0x100] sm:$0xff] }
 0x8af   : > { %2382 = vmatprep.subr.mxu0 %v7999_v16 }
 0x8b0   : > { %2383 = vmatpush1.msra.mxu0 %v8000_v45 }
 0x8b1   : > { %2384 = vmatprep.subr.mxu0 %v8001_v17 }
 0x8b2   : > { %2385 = vmatpush1.msra.mxu0 %v8002_v46 }
 0x8b3   : > { %2386 = vmatprep.subr.mxu0 %v8003_v48 }
 0x8b4   : > { %2387 = vmatpush1.msra.mxu0 %v8004_v50 }
 0x8b5   : > { %2388 = vmatprep.subr.mxu0 %v8005_v52 }
 0x8b6   : > { %2389 = vmatpush1.msra.mxu0 %v8006_v53 }
 0x8b7   : > { %2390 = vmatprep.subr.mxu0 %v8007_v54 }
 0x8b8   : > { %2391 = vmatpush1.msra.mxu0 %v8008_v55 }
 0x8b9   : > { %2392 = vmatprep.subr.mxu0 %v8009_v56 }
 0x8ba   : > { %2393 = vmatpush1.msra.mxu0 %v8010_v57 }
 0x8bb   : > { %2394 = vmatprep.subr.mxu0 %v8011_v58  ;;  %v8057_v58 = vld [vmem:[%s9960_s8] sm:$0xf] }
 0x8bc   : > { %2395 = vmatpush1.msra.mxu0 %v8012_v39  ;;  %v8058_v39 = vld [vmem:[#allocation2 + $0x2f8] sm:$0xff] }
 0x8bd   : > { %2396 = vmatprep.subr.mxu0 %v8013_v41  ;;  %v8059_v41 = vld [vmem:[#allocation2 + $0x2f0] sm:$0xff] }
 0x8be   : > { %2397 = vmatpush1.msra.mxu0 %v8014_v59  ;;  %v8060_v59 = vld [vmem:[#allocation2 + $0x2e8] sm:$0xff] }
 0x8bf   : > { %2398 = vmatprep.subr.mxu0 %v8015_v61  ;;  %v8061_v61 = vld [vmem:[#allocation2 + $0x2e0] sm:$0xff] }
 0x8c0   : > { %2399 = vmatpush1.msra.mxu0 %v8016_v63  ;;  %v8062_v63 = vld [vmem:[#allocation2 + $0x2d8] sm:$0xff] }
 0x8c1   : > { %2400 = vmatprep.subr.mxu0 %v8017_v0  ;;  %v8063_v0 = vld [vmem:[#allocation2 + $0x2d0] sm:$0xff] }
 0x8c2   : > { %2401 = vmatpush1.msra.mxu0 %v8018_v1  ;;  %v8064_v1 = vld [vmem:[#allocation2 + $0x2c8] sm:$0xff] }
 0x8c3   : > { %2402 = vmatprep.subr.mxu0 %v8019_v2  ;;  %v8065_v2 = vld [vmem:[#allocation2 + $0x2c0] sm:$0xff] }
 0x8c4   : > { %2403 = vmatpush1.msra.mxu0 %v8020_v3  ;;  %v8066_v3 = vld [vmem:[#allocation2 + $0x2b8] sm:$0xff] }
 0x8c5   : > { %2404 = vmatprep.subr.mxu0 %v8021_v5  ;;  %v8067_v5 = vld [vmem:[#allocation2 + $0x2b0] sm:$0xff] }
 0x8c6   : > { %2405 = vmatpush1.msra.mxu0 %v8022_v6  ;;  %v8068_v6 = vld [vmem:[#allocation2 + $0x2a8] sm:$0xff] }
 0x8c7   : > { %2406 = vmatprep.subr.mxu0 %v8023_v49  ;;  %v8069_v49 = vld [vmem:[#allocation2 + $0x2a0] sm:$0xff] }
 0x8c8   : > { %2407 = vmatpush1.msra.mxu0 %v8024_v51  ;;  %v8070_v51 = vld [vmem:[#allocation2 + $0x298] sm:$0xff] }
 0x8c9   : > { %2408 = vmatprep.subr.mxu0 %v8025_v7  ;;  %v8071_v7 = vld [vmem:[#allocation2 + $0x290] sm:$0xff] }
 0x8ca   : > { %2409 = vmatpush2.msra.mxu0 %v8026_v9  ;;  %v8072_v9 = vld [vmem:[#allocation2 + $0x288] sm:$0xff] }
 0x8cb   : > { %2410 = vmatprep.subr.mxu0 %v8027_v11  ;;  %v8073_v11 = vld [vmem:[#allocation2 + $0x280] sm:$0xff] }
 0x8cc   : > { %2411 = vmatpush2.msra.mxu0 %v8028_v12  ;;  %v8074_v12 = vld [vmem:[#allocation2 + $0x278] sm:$0xff] }
 0x8cd   : > { %2412 = vmatprep.subr.mxu0 %v8029_v13  ;;  %v8075_v13 = vld [vmem:[#allocation2 + $0x270] sm:$0xff] }
 0x8ce   : > { %2413 = vmatpush2.msra.mxu0 %v8030_v14  ;;  %v8076_v14 = vld [vmem:[#allocation2 + $0x268] sm:$0xff] }
 0x8cf   : > { %2414 = vmatprep.subr.mxu0 %v8031_v15  ;;  %v8077_v15 = vld [vmem:[#allocation2 + $0x260] sm:$0xff] }
 0x8d0   : > { %2415 = vmatpush2.msra.mxu0 %v8032_v18  ;;  %v8078_v18 = vld [vmem:[#allocation2 + $0x258] sm:$0xff] }
 0x8d1   : > { %2416 = vmatprep.subr.mxu0 %v8033_v19  ;;  %v8079_v19 = vld [vmem:[#allocation2 + $0x250] sm:$0xff] }
 0x8d2   : > { %2417 = vmatpush2.msra.mxu0 %v8034_v60  ;;  %v8080_v60 = vld [vmem:[#allocation2 + $0x248] sm:$0xff] }
 0x8d3   : > { %2418 = vmatprep.subr.mxu0 %v8035_v62  ;;  %v8081_v62 = vld [vmem:[#allocation2 + $0x240] sm:$0xff] }
 0x8d4   : > { %2419 = vmatpush2.msra.mxu0 %v8036_v20  ;;  %v8082_v20 = vld [vmem:[#allocation2 + $0x238] sm:$0xff] }
 0x8d5   : > { %2420 = vmatprep.subr.mxu0 %v8037_v22  ;;  %v8083_v22 = vld [vmem:[#allocation2 + $0x230] sm:$0xff] }
 0x8d6   : > { %2421 = vmatpush2.msra.mxu0 %v8038_v24  ;;  %v8084_v24 = vld [vmem:[#allocation2 + $0x228] sm:$0xff] }
 0x8d7   : > { %2422 = vmatprep.subr.mxu0 %v8039_v25  ;;  %v8085_v25 = vld [vmem:[#allocation2 + $0x220] sm:$0xff] }
 0x8d8   : > { %2423 = vmatpush2.msra.mxu0 %v8040_v27  ;;  %v8086_v27 = vld [vmem:[#allocation2 + $0x218] sm:$0xff] }
 0x8d9   : > { %2424 = vmatprep.subr.mxu0 %v8041_v29  ;;  %v8087_v29 = vld [vmem:[#allocation2 + $0x210] sm:$0xff] }
 0x8da   : > { %2425 = vmatpush2.msra.mxu0 %v8042_v30  ;;  %v8088_v30 = vld [vmem:[#allocation2 + $0x208] sm:$0xff] }
 0x8db   : > { %2426 = vmatprep.subr.mxu0 %v8043_v47  ;;  %v8089_v47 = vld [vmem:[#allocation2 + $0x200] sm:$0xff] }
 0x8dc   : > { %2427 = vmatpush2.msra.mxu0 %v8044_v32  ;;  %v8090_v32 = vld [vmem:[#allocation2 + $0x3f8] sm:$0xff] }
 0x8dd   : > { %2428 = vmatprep.subr.mxu0 %v8045_v8  ;;  %v8091_v8 = vld [vmem:[#allocation2 + $0x3f0] sm:$0xff] }
 0x8de   : > { %2429 = vmatpush2.msra.mxu0 %v8046_v10  ;;  %v8092_v10 = vld [vmem:[#allocation2 + $0x3e8] sm:$0xff] }
 0x8df   : > { %2430 = vmatprep.subr.mxu0 %v8047_v34  ;;  %v8093_v34 = vld [vmem:[#allocation2 + $0x3e0] sm:$0xff] }
 0x8e0   : > { %2431 = vmatpush2.msra.mxu0 %v8048_v37  ;;  %v8094_v37 = vld [vmem:[#allocation2 + $0x3d8] sm:$0xff] }
 0x8e1   : > { %2432 = vmatprep.subr.mxu0 %v8049_v38  ;;  %v8095_v38 = vld [vmem:[#allocation2 + $0x3d0] sm:$0xff] }
 0x8e2   : > { %2433 = vmatpush2.msra.mxu0 %v8050_v40  ;;  %v8096_v40 = vld [vmem:[#allocation2 + $0x3c8] sm:$0xff] }
 0x8e3   : > { %2434 = vmatprep.subr.mxu0 %v8051_v21  ;;  %v8097_v21 = vld [vmem:[#allocation2 + $0x3c0] sm:$0xff] }
 0x8e4   : > { %2435 = vmatpush2.msra.mxu0 %v8052_v23  ;;  %v8098_v23 = vld [vmem:[#allocation2 + $0x3b8] sm:$0xff] }
 0x8e5   : > { %2436 = vmatprep.subr.mxu0 %v8053_v28  ;;  %v8099_v28 = vld [vmem:[#allocation2 + $0x3b0] sm:$0xff] }
 0x8e6   : > { %2437 = vmatpush2.msra.mxu0 %v8054_v42  ;;  %v8100_v42 = vld [vmem:[#allocation2 + $0x3a8] sm:$0xff] }
 0x8e7   : > { %2438 = vmatprep.subr.mxu0 %v8055_v43  ;;  %v8101_v43 = vld [vmem:[#allocation2 + $0x3a0] sm:$0xff] }
 0x8e8   : > { %2439 = vmatpush2.msra.mxu0 %v8056_v44  ;;  %v8102_v44 = vld [vmem:[#allocation2 + $0x398] sm:$0xff] }
 0x8e9   : > { %2441 = vmatmul.mubr.f32.vlgmr.msra.gmra.mxu0 %v10110_v36 }
 0x8ea   : > { %2667 = vmatprep.mubr.f32.mxu0 %v9843_v4 }
 0x969   : > { %v2352_v16 = vpop.f32.mrf.mxu0 }
 0x96a   : > { %v10124_v45 = vadd.f32 %v2352_v16, %v10102_v33  ;;  %v8103_v16 = vld [vmem:[#allocation2 + $0x390] sm:$0xff] }
 0x96b   : > { %v2354_v17 = vpop.f32.mrf.mxu0 }
 0x96c   : > { %v10127_v46 = vadd.f32 %v2354_v17, %v10105_v35  ;;  %v2365_v48 = vmul.f32 %v10124_v45, %v10124_v45  ;;  %v2359_v50 = vsel %vm519_vm0, %v10124_v45, 0.0  ;;  %v8104_v17 = vld [vmem:[#allocation2 + $0x388] sm:$0xff] }
 0x96e   : > { %v2360_v52 = vsel %vm519_vm0, %v10127_v46, 0.0  ;;  %v2366_v53 = vmul.f32 %v10127_v46, %v10127_v46  ;;  %v2367_v33 = vsel %vm519_vm0, %v2365_v48, 0.0  ;;  %v8105_v48 = vld [vmem:[#allocation2 + $0x380] sm:$0xff] }
 0x96f   : > { %v2361_v54 = vadd.f32 %v2360_v52, %v2359_v50  ;;  %v8106_v50 = vld [vmem:[#allocation2 + $0x378] sm:$0xff]  ;;  %v8107_v52 = vld [vmem:[#allocation2 + $0x370] sm:$0xff] }
 0x970   : > { %v2368_v55 = vsel %vm519_vm0, %v2366_v53, 0.0  ;;  %v8108_v53 = vld [vmem:[#allocation2 + $0x368] sm:$0xff] }
 0x971   : > { %2362 = vadd.xlane.f32.xlu0 %v2361_v54  ;;  %v2369_v35 = vadd.f32 %v2368_v55, %v2367_v33  ;;  %v8109_v54 = vld [vmem:[#allocation2 + $0x360] sm:$0xff]  ;;  %v8110_v33 = vld [vmem:[#allocation2 + $0x358] sm:$0xff]  ;;  %v8111_v55 = vld [vmem:[#allocation2 + $0x350] sm:$0xff] }
 0x973   : > { %2370 = vadd.xlane.f32.xlu1 %v2369_v35  ;;  %v8112_v35 = vld [vmem:[#allocation2 + $0x348] sm:$0xff] }
 0x9a9   : > { %v2442_v56 = vpop.f32.mrf.mxu0 }
 0x9ab   : > { %v2444_v57 = vpop.f32.mrf.mxu0 }
 0x9ac   : > { %7844 = vmatprep.subr.msk.mxu1 %vm519_vm0, %v2444_v57  ;;  %v8114_v57 = vld [vmem:[#allocation2 + $0x338] sm:$0xff] }
 0x9ad   : > { %7845 = vmatpush1.msk.msra.mxu1 %vm519_vm0, %v2442_v56  ;;  %v8113_v56 = vld [vmem:[#allocation2 + $0x340] sm:$0xff] }
 0x9ae   : > { %7846 = vmatmul.mubr.msk.f32.vlgmr.msra.gmra.mxu1 %vm515_vm1, %v8057_v58  ;;  %2526 = vmatprep.subr.mxu1 %v8058_v39  ;;  %v8115_v58 = vld [vmem:[#allocation2 + $0x330] sm:$0xff]  ;;  %v8116_v39 = vld [vmem:[#allocation2 + $0x328] sm:$0xff] }
 0x9af   : > { %2527 = vmatpush1.msra.mxu1 %v8059_v41  ;;  %2590 = vmatprep.mubr.f32.mxu1 %v10115_v26  ;;  %v8117_v41 = vld [vmem:[#allocation2 + $0x320] sm:$0xff] }
 0x9b0   : > { %2528 = vmatprep.subr.mxu1 %v8060_v59  ;;  %v8118_v59 = vld [vmem:[#allocation2 + $0x318] sm:$0xff] }
 0x9b1   : > { %2529 = vmatpush1.msra.mxu1 %v8061_v61  ;;  %v8119_v61 = vld [vmem:[#allocation2 + $0x310] sm:$0xff] }
 0x9b2   : > { %2530 = vmatprep.subr.mxu1 %v8062_v63  ;;  %v8120_v63 = vld [vmem:[#allocation2 + $0x308] sm:$0xff] }
 0x9b3   : > { %2531 = vmatpush1.msra.mxu1 %v8063_v0  ;;  %v8121_v0 = vld [vmem:[#allocation2 + $0x300] sm:$0xff] }
 0x9b4   : > { %2532 = vmatprep.subr.mxu1 %v8064_v1 }
 0x9b5   : > { %2533 = vmatpush1.msra.mxu1 %v8065_v2 }
 0x9b6   : > { %2534 = vmatprep.subr.mxu1 %v8066_v3 }
 0x9b7   : > { %2535 = vmatpush1.msra.mxu1 %v8067_v5 }
 0x9b8   : > { %2536 = vmatprep.subr.mxu1 %v8068_v6  ;;  %v8122_v6 = vld [vmem:[%s9960_s8 + $0x4] sm:$0xf] }
 0x9b9   : > { %2537 = vmatpush1.msra.mxu1 %v8069_v49  ;;  %v8123_v49 = vld [vmem:[#allocation2 + $0x4f8] sm:$0xff] }
 0x9ba   : > { %2538 = vmatprep.subr.mxu1 %v8070_v51  ;;  %v8124_v51 = vld [vmem:[#allocation2 + $0x4f0] sm:$0xff] }
 0x9bb   : > { %2539 = vmatpush1.msra.mxu1 %v8071_v7  ;;  %v8125_v7 = vld [vmem:[#allocation2 + $0x4e8] sm:$0xff] }
 0x9bc   : > { %2540 = vmatprep.subr.mxu1 %v8072_v9  ;;  %v8126_v9 = vld [vmem:[#allocation2 + $0x4e0] sm:$0xff] }
 0x9bd   : > { %2541 = vmatpush1.msra.mxu1 %v8073_v11  ;;  %v8127_v11 = vld [vmem:[#allocation2 + $0x4d8] sm:$0xff] }
 0x9be   : > { %2542 = vmatprep.subr.mxu1 %v8074_v12  ;;  %v8128_v12 = vld [vmem:[#allocation2 + $0x4d0] sm:$0xff] }
 0x9bf   : > { %2543 = vmatpush1.msra.mxu1 %v8075_v13  ;;  %v8129_v13 = vld [vmem:[#allocation2 + $0x4c8] sm:$0xff] }
 0x9c0   : > { %2544 = vmatprep.subr.mxu1 %v8076_v14  ;;  %v8130_v14 = vld [vmem:[#allocation2 + $0x4c0] sm:$0xff] }
 0x9c1   : > { %2545 = vmatpush1.msra.mxu1 %v8077_v15  ;;  %v8131_v15 = vld [vmem:[#allocation2 + $0x4b8] sm:$0xff] }
 0x9c2   : > { %2546 = vmatprep.subr.mxu1 %v8078_v18  ;;  %v8132_v18 = vld [vmem:[#allocation2 + $0x4b0] sm:$0xff] }
 0x9c3   : > { %2547 = vmatpush1.msra.mxu1 %v8079_v19  ;;  %v8133_v19 = vld [vmem:[#allocation2 + $0x4a8] sm:$0xff] }
 0x9c4   : > { %2548 = vmatprep.subr.mxu1 %v8080_v60  ;;  %v8134_v60 = vld [vmem:[#allocation2 + $0x4a0] sm:$0xff] }
 0x9c5   : > { %2549 = vmatpush1.msra.mxu1 %v8081_v62  ;;  %v8135_v62 = vld [vmem:[#allocation2 + $0x498] sm:$0xff] }
 0x9c6   : > { %2550 = vmatprep.subr.mxu1 %v8082_v20  ;;  %v8136_v20 = vld [vmem:[#allocation2 + $0x490] sm:$0xff] }
 0x9c7   : > { %2551 = vmatpush1.msra.mxu1 %v8083_v22  ;;  %v8137_v22 = vld [vmem:[#allocation2 + $0x488] sm:$0xff] }
 0x9c8   : > { %2552 = vmatprep.subr.mxu1 %v8084_v24  ;;  %v8138_v24 = vld [vmem:[#allocation2 + $0x480] sm:$0xff] }
 0x9c9   : > { %2553 = vmatpush1.msra.mxu1 %v8085_v25  ;;  %v8139_v25 = vld [vmem:[#allocation2 + $0x478] sm:$0xff] }
 0x9ca   : > { %2554 = vmatprep.subr.mxu1 %v8086_v27  ;;  %v8140_v27 = vld [vmem:[#allocation2 + $0x470] sm:$0xff] }
 0x9cb   : > { %2555 = vmatpush1.msra.mxu1 %v8087_v29  ;;  %v8141_v29 = vld [vmem:[#allocation2 + $0x468] sm:$0xff] }
 0x9cc   : > { %2556 = vmatprep.subr.mxu1 %v8088_v30  ;;  %v8142_v30 = vld [vmem:[#allocation2 + $0x460] sm:$0xff] }
 0x9cd   : > { %2557 = vmatpush1.msra.mxu1 %v8089_v47  ;;  %v8143_v47 = vld [vmem:[#allocation2 + $0x458] sm:$0xff] }
 0x9ce   : > { %2558 = vmatprep.subr.mxu1 %v8090_v32  ;;  %v8144_v32 = vld [vmem:[#allocation2 + $0x450] sm:$0xff] }
 0x9cf   : > { %2559 = vmatpush2.msra.mxu1 %v8091_v8  ;;  %v8145_v8 = vld [vmem:[#allocation2 + $0x448] sm:$0xff] }
 0x9d0   : > { %2560 = vmatprep.subr.mxu1 %v8092_v10  ;;  %v8146_v10 = vld [vmem:[#allocation2 + $0x440] sm:$0xff] }
 0x9d1   : > { %2561 = vmatpush2.msra.mxu1 %v8093_v34  ;;  %v8147_v34 = vld [vmem:[#allocation2 + $0x438] sm:$0xff] }
 0x9d2   : > { %2562 = vmatprep.subr.mxu1 %v8094_v37  ;;  %v8148_v37 = vld [vmem:[#allocation2 + $0x430] sm:$0xff] }
 0x9d3   : > { %2563 = vmatpush2.msra.mxu1 %v8095_v38  ;;  %v8149_v38 = vld [vmem:[#allocation2 + $0x428] sm:$0xff] }
 0x9d4   : > { %2564 = vmatprep.subr.mxu1 %v8096_v40  ;;  %v8150_v40 = vld [vmem:[#allocation2 + $0x420] sm:$0xff] }
 0x9d5   : > { %2565 = vmatpush2.msra.mxu1 %v8097_v21  ;;  %v8151_v21 = vld [vmem:[#allocation2 + $0x418] sm:$0xff] }
 0x9d6   : > { %2566 = vmatprep.subr.mxu1 %v8098_v23  ;;  %v8152_v23 = vld [vmem:[#allocation2 + $0x410] sm:$0xff] }
 0x9d7   : > { %2567 = vmatpush2.msra.mxu1 %v8099_v28  ;;  %v8153_v28 = vld [vmem:[#allocation2 + $0x408] sm:$0xff] }
 0x9d8   : > { %2568 = vmatprep.subr.mxu1 %v8100_v42  ;;  %v8154_v42 = vld [vmem:[#allocation2 + $0x400] sm:$0xff] }
 0x9d9   : > { %2569 = vmatpush2.msra.mxu1 %v8101_v43  ;;  %v8155_v43 = vld [vmem:[#allocation2 + $0x5f8] sm:$0xff] }
 0x9da   : > { %2570 = vmatprep.subr.mxu1 %v8102_v44  ;;  %v8156_v44 = vld [vmem:[#allocation2 + $0x5f0] sm:$0xff] }
 0x9db   : > { %2571 = vmatpush2.msra.mxu1 %v8103_v16  ;;  %v8157_v16 = vld [vmem:[#allocation2 + $0x5e8] sm:$0xff] }
 0x9dc   : > { %2572 = vmatprep.subr.mxu1 %v8104_v17  ;;  %v8158_v17 = vld [vmem:[#allocation2 + $0x5e0] sm:$0xff] }
 0x9dd   : > { %2573 = vmatpush2.msra.mxu1 %v8105_v48  ;;  %v8159_v48 = vld [vmem:[#allocation2 + $0x5d8] sm:$0xff] }
 0x9de   : > { %2574 = vmatprep.subr.mxu1 %v8106_v50  ;;  %v8160_v50 = vld [vmem:[#allocation2 + $0x5d0] sm:$0xff] }
 0x9df   : > { %2575 = vmatpush2.msra.mxu1 %v8107_v52  ;;  %v8161_v52 = vld [vmem:[#allocation2 + $0x5c8] sm:$0xff] }
 0x9e0   : > { %2576 = vmatprep.subr.mxu1 %v8108_v53  ;;  %v8162_v53 = vld [vmem:[#allocation2 + $0x5c0] sm:$0xff] }
 0x9e1   : > { %2577 = vmatpush2.msra.mxu1 %v8109_v54  ;;  %v8163_v54 = vld [vmem:[#allocation2 + $0x5b8] sm:$0xff] }
 0x9e2   : > { %2578 = vmatprep.subr.mxu1 %v8110_v33  ;;  %v8164_v33 = vld [vmem:[#allocation2 + $0x5b0] sm:$0xff] }
 0x9e3   : > { %2579 = vmatpush2.msra.mxu1 %v8111_v55  ;;  %v8165_v55 = vld [vmem:[#allocation2 + $0x5a8] sm:$0xff] }
 0x9e4   : > { %2580 = vmatprep.subr.mxu1 %v8112_v35  ;;  %v8166_v35 = vld [vmem:[#allocation2 + $0x5a0] sm:$0xff] }
 0x9e5   : > { %2581 = vmatpush2.msra.mxu1 %v8113_v56  ;;  %v8167_v56 = vld [vmem:[#allocation2 + $0x598] sm:$0xff] }
 0x9e6   : > { %2582 = vmatprep.subr.mxu1 %v8114_v57  ;;  %v8168_v57 = vld [vmem:[#allocation2 + $0x590] sm:$0xff] }
 0x9e7   : > { %2583 = vmatpush2.msra.mxu1 %v8115_v58  ;;  %v8169_v58 = vld [vmem:[#allocation2 + $0x588] sm:$0xff] }
 0x9e8   : > { %2584 = vmatprep.subr.mxu1 %v8116_v39  ;;  %v8170_v39 = vld [vmem:[#allocation2 + $0x580] sm:$0xff] }
 0x9e9   : > { %2585 = vmatpush2.msra.mxu1 %v8117_v41  ;;  %v8171_v41 = vld [vmem:[#allocation2 + $0x578] sm:$0xff] }
 0x9ea   : > { %2586 = vmatprep.subr.mxu1 %v8118_v59  ;;  %v8172_v59 = vld [vmem:[#allocation2 + $0x570] sm:$0xff] }
 0x9eb   : > { %2587 = vmatpush2.msra.mxu1 %v8119_v61  ;;  %v8173_v61 = vld [vmem:[#allocation2 + $0x568] sm:$0xff] }
 0x9ec   : > { %2588 = vmatprep.subr.mxu1 %v8120_v63  ;;  %v8174_v63 = vld [vmem:[#allocation2 + $0x560] sm:$0xff] }
 0x9ed   : > { %2589 = vmatpush2.msra.mxu1 %v8121_v0  ;;  %v8175_v0 = vld [vmem:[#allocation2 + $0x558] sm:$0xff] }
 0x9ee   : > { %2591 = vmatmul.mubr.f32.vlgmr.msra.gmra.mxu1 %v10110_v36 }
 0x9ef   : > { %2817 = vmatprep.mubr.f32.mxu1 %v9843_v4 }
 0xa6e   : > { %v10146_v1 = vpop.f32.mrf.mxu1 }
 0xa70   : > { %v10148_v2 = vpop.f32.mrf.mxu1 }
 0xaae   : > { %v2592_v3 = vpop.f32.mrf.mxu1 }
 0xab0   : > { %v2594_v5 = vpop.f32.mrf.mxu1 }
 0xab1   : > { %7847 = vmatprep.subr.msk.mxu0 %vm519_vm0, %v2594_v5  ;;  %v8177_v5 = vld [vmem:[#allocation2 + $0x548] sm:$0xff] }
 0xab2   : > { %7848 = vmatpush1.msk.msra.mxu0 %vm519_vm0, %v2592_v3  ;;  %v8176_v3 = vld [vmem:[#allocation2 + $0x550] sm:$0xff] }
 0xab3   : > { %7849 = vmatmul.mubr.msk.f32.vlgmr.msra.gmra.mxu0 %vm515_vm1, %v8122_v6  ;;  %2676 = vmatprep.subr.mxu0 %v8123_v49  ;;  %v8178_v6 = vld [vmem:[#allocation2 + $0x540] sm:$0xff]  ;;  %v8179_v49 = vld [vmem:[#allocation2 + $0x538] sm:$0xff] }
 0xab4   : > { %2677 = vmatpush1.msra.mxu0 %v8124_v51  ;;  %2740 = vmatprep.mubr.f32.mxu0 %v10115_v26  ;;  %v8180_v51 = vld [vmem:[#allocation2 + $0x530] sm:$0xff] }
 0xab5   : > { %2678 = vmatprep.subr.mxu0 %v8125_v7  ;;  %v8181_v7 = vld [vmem:[#allocation2 + $0x528] sm:$0xff] }
 0xab6   : > { %2679 = vmatpush1.msra.mxu0 %v8126_v9  ;;  %v8182_v9 = vld [vmem:[#allocation2 + $0x520] sm:$0xff] }
 0xab7   : > { %2680 = vmatprep.subr.mxu0 %v8127_v11  ;;  %v8183_v11 = vld [vmem:[#allocation2 + $0x518] sm:$0xff] }
 0xab8   : > { %2681 = vmatpush1.msra.mxu0 %v8128_v12  ;;  %v8184_v12 = vld [vmem:[#allocation2 + $0x510] sm:$0xff] }
 0xab9   : > { %2682 = vmatprep.subr.mxu0 %v8129_v13  ;;  %v8185_v13 = vld [vmem:[#allocation2 + $0x508] sm:$0xff] }
 0xaba   : > { %2683 = vmatpush1.msra.mxu0 %v8130_v14  ;;  %v8186_v14 = vld [vmem:[#allocation2 + $0x500] sm:$0xff] }
 0xabb   : > { %2684 = vmatprep.subr.mxu0 %v8131_v15  ;;  %v2524_v15 = vadd.f32 %v10146_v1, %v10025_v31  ;;  %v8189_v1 = vld [vmem:[#allocation2 + $0x6f0] sm:$0xff] }
 0xabc   : > { %2685 = vmatpush1.msra.mxu0 %v8132_v18 }
 0xabd   : > { %2686 = vmatprep.subr.mxu0 %v8133_v19  ;;  %v2525_v19 = vadd.f32 %v10148_v2, %v10025_v31  ;;  %v8190_v31 = vld [vmem:[#allocation2 + $0x6e8] sm:$0xff]  ;;  %v8191_v2 = vld [vmem:[#allocation2 + $0x6e0] sm:$0xff] }
 0xabe   : > { %2687 = vmatpush1.msra.mxu0 %v8134_v60 }
 0xabf   : > { %2688 = vmatprep.subr.mxu0 %v8135_v62 }
 0xac0   : > { %2689 = vmatpush1.msra.mxu0 %v8136_v20 }
 0xac1   : > { %2690 = vmatprep.subr.mxu0 %v8137_v22 }
 0xac2   : > { %2691 = vmatpush1.msra.mxu0 %v8138_v24 }
 0xac3   : > { %2692 = vmatprep.subr.mxu0 %v8139_v25  ;;  %v8187_v25 = vld [vmem:[%s9960_s8 + $0x8] sm:$0xf] }
 0xac4   : > { %2693 = vmatpush1.msra.mxu0 %v8140_v27  ;;  %v8188_v27 = vld [vmem:[#allocation2 + $0x6f8] sm:$0xff] }
 0xac5   : > { %2694 = vmatprep.subr.mxu0 %v8141_v29  ;;  %v8192_v29 = vld [vmem:[#allocation2 + $0x6d8] sm:$0xff] }
 0xac6   : > { %2695 = vmatpush1.msra.mxu0 %v8142_v30  ;;  %v8193_v30 = vld [vmem:[#allocation2 + $0x6d0] sm:$0xff] }
 0xac7   : > { %2696 = vmatprep.subr.mxu0 %v8143_v47  ;;  %v8194_v47 = vld [vmem:[#allocation2 + $0x6c8] sm:$0xff] }
 0xac8   : > { %2697 = vmatpush1.msra.mxu0 %v8144_v32  ;;  %v8195_v32 = vld [vmem:[#allocation2 + $0x6c0] sm:$0xff] }
 0xac9   : > { %2698 = vmatprep.subr.mxu0 %v8145_v8  ;;  %v8196_v8 = vld [vmem:[#allocation2 + $0x6b8] sm:$0xff] }
 0xaca   : > { %2699 = vmatpush1.msra.mxu0 %v8146_v10  ;;  %v8197_v10 = vld [vmem:[#allocation2 + $0x6b0] sm:$0xff] }
 0xacb   : > { %2700 = vmatprep.subr.mxu0 %v8147_v34  ;;  %v8198_v34 = vld [vmem:[#allocation2 + $0x6a8] sm:$0xff] }
 0xacc   : > { %2701 = vmatpush1.msra.mxu0 %v8148_v37  ;;  %v8199_v37 = vld [vmem:[#allocation2 + $0x6a0] sm:$0xff] }
 0xacd   : > { %2702 = vmatprep.subr.mxu0 %v8149_v38  ;;  %v8200_v38 = vld [vmem:[#allocation2 + $0x698] sm:$0xff] }
 0xace   : > { %2703 = vmatpush1.msra.mxu0 %v8150_v40  ;;  %v8201_v40 = vld [vmem:[#allocation2 + $0x690] sm:$0xff] }
 0xacf   : > { %2704 = vmatprep.subr.mxu0 %v8151_v21  ;;  %v8202_v21 = vld [vmem:[#allocation2 + $0x688] sm:$0xff] }
 0xad0   : > { %2705 = vmatpush1.msra.mxu0 %v8152_v23  ;;  %v8203_v23 = vld [vmem:[#allocation2 + $0x680] sm:$0xff] }
 0xad1   : > { %2706 = vmatprep.subr.mxu0 %v8153_v28  ;;  %v8204_v28 = vld [vmem:[#allocation2 + $0x678] sm:$0xff] }
 0xad2   : > { %2707 = vmatpush1.msra.mxu0 %v8154_v42  ;;  %v8205_v42 = vld [vmem:[#allocation2 + $0x670] sm:$0xff] }
 0xad3   : > { %2708 = vmatprep.subr.mxu0 %v8155_v43  ;;  %v8206_v43 = vld [vmem:[#allocation2 + $0x668] sm:$0xff] }
 0xad4   : > { %2709 = vmatpush2.msra.mxu0 %v8156_v44  ;;  %v8207_v44 = vld [vmem:[#allocation2 + $0x660] sm:$0xff] }
 0xad5   : > { %2710 = vmatprep.subr.mxu0 %v8157_v16  ;;  %v8208_v16 = vld [vmem:[#allocation2 + $0x658] sm:$0xff] }
 0xad6   : > { %2711 = vmatpush2.msra.mxu0 %v8158_v17  ;;  %v8209_v17 = vld [vmem:[#allocation2 + $0x650] sm:$0xff] }
 0xad7   : > { %2712 = vmatprep.subr.mxu0 %v8159_v48  ;;  %v8210_v48 = vld [vmem:[#allocation2 + $0x648] sm:$0xff] }
 0xad8   : > { %2713 = vmatpush2.msra.mxu0 %v8160_v50  ;;  %v8211_v50 = vld [vmem:[#allocation2 + $0x640] sm:$0xff] }
 0xad9   : > { %2714 = vmatprep.subr.mxu0 %v8161_v52  ;;  %v8212_v52 = vld [vmem:[#allocation2 + $0x638] sm:$0xff] }
 0xada   : > { %2715 = vmatpush2.msra.mxu0 %v8162_v53  ;;  %v8213_v53 = vld [vmem:[#allocation2 + $0x630] sm:$0xff] }
 0xadb   : > { %2716 = vmatprep.subr.mxu0 %v8163_v54  ;;  %v8214_v54 = vld [vmem:[#allocation2 + $0x628] sm:$0xff] }
 0xadc   : > { %2717 = vmatpush2.msra.mxu0 %v8164_v33  ;;  %v8215_v33 = vld [vmem:[#allocation2 + $0x620] sm:$0xff] }
 0xadd   : > { %2718 = vmatprep.subr.mxu0 %v8165_v55  ;;  %v8216_v55 = vld [vmem:[#allocation2 + $0x618] sm:$0xff] }
 0xade   : > { %2719 = vmatpush2.msra.mxu0 %v8166_v35  ;;  %v8217_v35 = vld [vmem:[#allocation2 + $0x610] sm:$0xff] }
 0xadf   : > { %2720 = vmatprep.subr.mxu0 %v8167_v56  ;;  %v8218_v56 = vld [vmem:[#allocation2 + $0x608] sm:$0xff] }
 0xae0   : > { %2721 = vmatpush2.msra.mxu0 %v8168_v57  ;;  %v8219_v57 = vld [vmem:[#allocation2 + $0x600] sm:$0xff] }
 0xae1   : > { %2722 = vmatprep.subr.mxu0 %v8169_v58  ;;  %v8220_v58 = vld [vmem:[#allocation2 + $0x7f8] sm:$0xff] }
 0xae2   : > { %2723 = vmatpush2.msra.mxu0 %v8170_v39  ;;  %v8221_v39 = vld [vmem:[#allocation2 + $0x7f0] sm:$0xff] }
 0xae3   : > { %2724 = vmatprep.subr.mxu0 %v8171_v41  ;;  %v8222_v41 = vld [vmem:[#allocation2 + $0x7e8] sm:$0xff] }
 0xae4   : > { %2725 = vmatpush2.msra.mxu0 %v8172_v59  ;;  %v8223_v59 = vld [vmem:[#allocation2 + $0x7e0] sm:$0xff] }
 0xae5   : > { %2726 = vmatprep.subr.mxu0 %v8173_v61  ;;  %v8224_v61 = vld [vmem:[#allocation2 + $0x7d8] sm:$0xff] }
 0xae6   : > { %2727 = vmatpush2.msra.mxu0 %v8174_v63  ;;  %v8225_v63 = vld [vmem:[#allocation2 + $0x7d0] sm:$0xff] }
 0xae7   : > { %2728 = vmatprep.subr.mxu0 %v8175_v0  ;;  %v8226_v0 = vld [vmem:[#allocation2 + $0x7c8] sm:$0xff] }
 0xae8   : > { %2729 = vmatpush2.msra.mxu0 %v8176_v3  ;;  %v8227_v3 = vld [vmem:[#allocation2 + $0x7c0] sm:$0xff] }
 0xae9   : > { %2730 = vmatprep.subr.mxu0 %v8177_v5  ;;  %v8228_v5 = vld [vmem:[#allocation2 + $0x7b8] sm:$0xff] }
 0xaea   : > { %2731 = vmatpush2.msra.mxu0 %v8178_v6  ;;  %v8229_v6 = vld [vmem:[#allocation2 + $0x7b0] sm:$0xff] }
 0xaeb   : > { %2732 = vmatprep.subr.mxu0 %v8179_v49  ;;  %v8230_v49 = vld [vmem:[#allocation2 + $0x7a8] sm:$0xff] }
 0xaec   : > { %2733 = vmatpush2.msra.mxu0 %v8180_v51  ;;  %v8231_v51 = vld [vmem:[#allocation2 + $0x7a0] sm:$0xff] }
 0xaed   : > { %2734 = vmatprep.subr.mxu0 %v8181_v7  ;;  %v8232_v7 = vld [vmem:[#allocation2 + $0x798] sm:$0xff] }
 0xaee   : > { %2735 = vmatpush2.msra.mxu0 %v8182_v9  ;;  %v8233_v9 = vld [vmem:[#allocation2 + $0x790] sm:$0xff] }
 0xaef   : > { %2736 = vmatprep.subr.mxu0 %v8183_v11  ;;  %v8234_v11 = vld [vmem:[#allocation2 + $0x788] sm:$0xff] }
 0xaf0   : > { %2737 = vmatpush2.msra.mxu0 %v8184_v12  ;;  %v8235_v12 = vld [vmem:[#allocation2 + $0x780] sm:$0xff] }
 0xaf1   : > { %2738 = vmatprep.subr.mxu0 %v8185_v13  ;;  %v8236_v13 = vld [vmem:[#allocation2 + $0x778] sm:$0xff] }
 0xaf2   : > { %2739 = vmatpush2.msra.mxu0 %v8186_v14  ;;  %v8237_v14 = vld [vmem:[#allocation2 + $0x770] sm:$0xff] }
 0xaf3   : > { %2741 = vmatmul.mubr.f32.vlgmr.msra.gmra.mxu0 %v10110_v36 }
 0xaf4   : > { %2967 = vmatprep.mubr.f32.mxu0 %v9843_v4 }
 0xb73   : > { %v2669_v18 = vpop.f32.mrf.mxu0 }
 0xb74   : > { %v10161_v60 = vadd.f32 %v2669_v18, %v2524_v15  ;;  %v8238_v15 = vld [vmem:[#allocation2 + $0x768] sm:$0xff]  ;;  %v8239_v18 = vld [vmem:[#allocation2 + $0x760] sm:$0xff] }
 0xb75   : > { %v2671_v62 = vpop.f32.mrf.mxu0 }
 0xb76   : > { %v10163_v20 = vadd.f32 %v2671_v62, %v2525_v19  ;;  %v8240_v19 = vld [vmem:[#allocation2 + $0x758] sm:$0xff]  ;;  %v8241_v62 = vld [vmem:[#allocation2 + $0x750] sm:$0xff] }
 0xbb3   : > { %v2742_v22 = vpop.f32.mrf.mxu0 }
 0xbb5   : > { %v2744_v24 = vpop.f32.mrf.mxu0 }
 0xbb6   : > { %7850 = vmatprep.subr.msk.mxu1 %vm519_vm0, %v2744_v24  ;;  %v8243_v24 = vld [vmem:[#allocation2 + $0x740] sm:$0xff] }
 0xbb7   : > { %7851 = vmatpush1.msk.msra.mxu1 %vm519_vm0, %v2742_v22  ;;  %v8242_v22 = vld [vmem:[#allocation2 + $0x748] sm:$0xff] }
 0xbb8   : > { %7852 = vmatmul.mubr.msk.f32.vlgmr.msra.gmra.mxu1 %vm515_vm1, %v8187_v25  ;;  %2826 = vmatprep.subr.mxu1 %v8188_v27  ;;  %v8244_v25 = vld [vmem:[#allocation2 + $0x738] sm:$0xff]  ;;  %v8245_v27 = vld [vmem:[#allocation2 + $0x730] sm:$0xff] }
 0xbb9   : > { %2827 = vmatpush1.msra.mxu1 %v8189_v1  ;;  %2890 = vmatprep.mubr.f32.mxu1 %v10115_v26  ;;  %v8246_v1 = vld [vmem:[#allocation2 + $0x728] sm:$0xff] }
 0xbba   : > { %2828 = vmatprep.subr.mxu1 %v8190_v31  ;;  %v8247_v31 = vld [vmem:[#allocation2 + $0x720] sm:$0xff] }
 0xbbb   : > { %2829 = vmatpush1.msra.mxu1 %v8191_v2  ;;  %v8248_v2 = vld [vmem:[#allocation2 + $0x718] sm:$0xff] }
 0xbbc   : > { %2830 = vmatprep.subr.mxu1 %v8192_v29  ;;  %v8249_v29 = vld [vmem:[#allocation2 + $0x710] sm:$0xff] }
 0xbbd   : > { %2831 = vmatpush1.msra.mxu1 %v8193_v30  ;;  %v8250_v30 = vld [vmem:[#allocation2 + $0x708] sm:$0xff] }
 0xbbe   : > { %2832 = vmatprep.subr.mxu1 %v8194_v47  ;;  %v8251_v47 = vld [vmem:[#allocation2 + $0x700] sm:$0xff] }
 0xbbf   : > { %2833 = vmatpush1.msra.mxu1 %v8195_v32 }
 0xbc0   : > { %2834 = vmatprep.subr.mxu1 %v8196_v8 }
 0xbc1   : > { %2835 = vmatpush1.msra.mxu1 %v8197_v10 }
 0xbc2   : > { %2836 = vmatprep.subr.mxu1 %v8198_v34 }
 0xbc3   : > { %2837 = vmatpush1.msra.mxu1 %v8199_v37 }
 0xbc4   : > { %2838 = vmatprep.subr.mxu1 %v8200_v38 }
 0xbc5   : > { %2839 = vmatpush1.msra.mxu1 %v8201_v40  ;;  %v8252_v40 = vld [vmem:[%s9960_s8 + $0xc] sm:$0xf] }
 0xbc6   : > { %2840 = vmatprep.subr.mxu1 %v8202_v21  ;;  %v8253_v21 = vld [vmem:[#allocation2 + $0x8f8] sm:$0xff] }
 0xbc7   : > { %2841 = vmatpush1.msra.mxu1 %v8203_v23  ;;  %v8254_v23 = vld [vmem:[#allocation2 + $0x8f0] sm:$0xff] }
 0xbc8   : > { %2842 = vmatprep.subr.mxu1 %v8204_v28  ;;  %v8256_v28 = vld [vmem:[#allocation2 + $0x8e0] sm:$0xff] }
 0xbc9   : > { %2843 = vmatpush1.msra.mxu1 %v8205_v42  ;;  %v8258_v42 = vld [vmem:[#allocation2 + $0x8d0] sm:$0xff] }
 0xbca   : > { %2844 = vmatprep.subr.mxu1 %v8206_v43  ;;  %v8259_v43 = vld [vmem:[#allocation2 + $0x8c8] sm:$0xff] }
 0xbcb   : > { %2845 = vmatpush1.msra.mxu1 %v8207_v44  ;;  %v8260_v44 = vld [vmem:[#allocation2 + $0x8c0] sm:$0xff] }
 0xbcc   : > { %2846 = vmatprep.subr.mxu1 %v8208_v16  ;;  %v8261_v16 = vld [vmem:[#allocation2 + $0x8b8] sm:$0xff] }
 0xbcd   : > { %2847 = vmatpush1.msra.mxu1 %v8209_v17  ;;  %v8262_v17 = vld [vmem:[#allocation2 + $0x8b0] sm:$0xff] }
 0xbce   : > { %2848 = vmatprep.subr.mxu1 %v8210_v48  ;;  %v8263_v48 = vld [vmem:[#allocation2 + $0x8a8] sm:$0xff] }
 0xbcf   : > { %2849 = vmatpush1.msra.mxu1 %v8211_v50  ;;  %v8264_v50 = vld [vmem:[#allocation2 + $0x8a0] sm:$0xff] }
 0xbd0   : > { %2850 = vmatprep.subr.mxu1 %v8212_v52  ;;  %v8265_v52 = vld [vmem:[#allocation2 + $0x898] sm:$0xff] }
 0xbd1   : > { %2851 = vmatpush1.msra.mxu1 %v8213_v53  ;;  %v8266_v53 = vld [vmem:[#allocation2 + $0x890] sm:$0xff] }
 0xbd2   : > { %2852 = vmatprep.subr.mxu1 %v8214_v54  ;;  %v8267_v54 = vld [vmem:[#allocation2 + $0x888] sm:$0xff] }
 0xbd3   : > { %2853 = vmatpush1.msra.mxu1 %v8215_v33  ;;  %v8268_v33 = vld [vmem:[#allocation2 + $0x880] sm:$0xff] }
 0xbd4   : > { %2854 = vmatprep.subr.mxu1 %v8216_v55  ;;  %v8269_v55 = vld [vmem:[#allocation2 + $0x878] sm:$0xff] }
 0xbd5   : > { %2855 = vmatpush1.msra.mxu1 %v8217_v35  ;;  %v8270_v35 = vld [vmem:[#allocation2 + $0x870] sm:$0xff] }
 0xbd6   : > { %2856 = vmatprep.subr.mxu1 %v8218_v56  ;;  %v8271_v56 = vld [vmem:[#allocation2 + $0x868] sm:$0xff] }
 0xbd7   : > { %2857 = vmatpush1.msra.mxu1 %v8219_v57  ;;  %v8272_v57 = vld [vmem:[#allocation2 + $0x860] sm:$0xff] }
 0xbd8   : > { %2858 = vmatprep.subr.mxu1 %v8220_v58  ;;  %v8273_v58 = vld [vmem:[#allocation2 + $0x858] sm:$0xff] }
 0xbd9   : > { %2859 = vmatpush2.msra.mxu1 %v8221_v39  ;;  %v8274_v39 = vld [vmem:[#allocation2 + $0x850] sm:$0xff] }
 0xbda   : > { %2860 = vmatprep.subr.mxu1 %v8222_v41  ;;  %v8275_v41 = vld [vmem:[#allocation2 + $0x848] sm:$0xff] }
 0xbdb   : > { %2861 = vmatpush2.msra.mxu1 %v8223_v59  ;;  %v8276_v59 = vld [vmem:[#allocation2 + $0x840] sm:$0xff] }
 0xbdc   : > { %2862 = vmatprep.subr.mxu1 %v8224_v61  ;;  %v8277_v61 = vld [vmem:[#allocation2 + $0x838] sm:$0xff] }
 0xbdd   : > { %2863 = vmatpush2.msra.mxu1 %v8225_v63  ;;  %v8278_v63 = vld [vmem:[#allocation2 + $0x830] sm:$0xff] }
 0xbde   : > { %2864 = vmatprep.subr.mxu1 %v8226_v0  ;;  %v8279_v0 = vld [vmem:[#allocation2 + $0x828] sm:$0xff] }
 0xbdf   : > { %2865 = vmatpush2.msra.mxu1 %v8227_v3  ;;  %v8280_v3 = vld [vmem:[#allocation2 + $0x820] sm:$0xff] }
 0xbe0   : > { %2866 = vmatprep.subr.mxu1 %v8228_v5  ;;  %v8281_v5 = vld [vmem:[#allocation2 + $0x818] sm:$0xff] }
 0xbe1   : > { %2867 = vmatpush2.msra.mxu1 %v8229_v6  ;;  %v8282_v6 = vld [vmem:[#allocation2 + $0x810] sm:$0xff] }
 0xbe2   : > { %2868 = vmatprep.subr.mxu1 %v8230_v49  ;;  %v8283_v49 = vld [vmem:[#allocation2 + $0x808] sm:$0xff] }
 0xbe3   : > { %2869 = vmatpush2.msra.mxu1 %v8231_v51  ;;  %v8284_v51 = vld [vmem:[#allocation2 + $0x800] sm:$0xff] }
 0xbe4   : > { %2870 = vmatprep.subr.mxu1 %v8232_v7  ;;  %v8285_v7 = vld [vmem:[#allocation2 + $0x9f8] sm:$0xff] }
 0xbe5   : > { %2871 = vmatpush2.msra.mxu1 %v8233_v9  ;;  %v8286_v9 = vld [vmem:[#allocation2 + $0x9f0] sm:$0xff] }
 0xbe6   : > { %2872 = vmatprep.subr.mxu1 %v8234_v11  ;;  %v8287_v11 = vld [vmem:[#allocation2 + $0x9e8] sm:$0xff] }
 0xbe7   : > { %2873 = vmatpush2.msra.mxu1 %v8235_v12  ;;  %v8288_v12 = vld [vmem:[#allocation2 + $0x9e0] sm:$0xff] }
 0xbe8   : > { %2874 = vmatprep.subr.mxu1 %v8236_v13  ;;  %v8289_v13 = vld [vmem:[#allocation2 + $0x9d8] sm:$0xff] }
 0xbe9   : > { %2875 = vmatpush2.msra.mxu1 %v8237_v14  ;;  %v8290_v14 = vld [vmem:[#allocation2 + $0x9d0] sm:$0xff] }
 0xbea   : > { %2876 = vmatprep.subr.mxu1 %v8238_v15  ;;  %v8291_v15 = vld [vmem:[#allocation2 + $0x9c8] sm:$0xff] }
 0xbeb   : > { %2877 = vmatpush2.msra.mxu1 %v8239_v18  ;;  %v8292_v18 = vld [vmem:[#allocation2 + $0x9c0] sm:$0xff] }
 0xbec   : > { %2878 = vmatprep.subr.mxu1 %v8240_v19  ;;  %v8293_v19 = vld [vmem:[#allocation2 + $0x9b8] sm:$0xff] }
 0xbed   : > { %2879 = vmatpush2.msra.mxu1 %v8241_v62  ;;  %v8294_v62 = vld [vmem:[#allocation2 + $0x9b0] sm:$0xff] }
 0xbee   : > { %2880 = vmatprep.subr.mxu1 %v8242_v22  ;;  %v8295_v22 = vld [vmem:[#allocation2 + $0x9a8] sm:$0xff] }
 0xbef   : > { %2881 = vmatpush2.msra.mxu1 %v8243_v24  ;;  %v8296_v24 = vld [vmem:[#allocation2 + $0x9a0] sm:$0xff] }
 0xbf0   : > { %2882 = vmatprep.subr.mxu1 %v8244_v25  ;;  %v8297_v25 = vld [vmem:[#allocation2 + $0x998] sm:$0xff] }
 0xbf1   : > { %2883 = vmatpush2.msra.mxu1 %v8245_v27  ;;  %v8298_v27 = vld [vmem:[#allocation2 + $0x990] sm:$0xff] }
 0xbf2   : > { %2884 = vmatprep.subr.mxu1 %v8246_v1  ;;  %v8299_v1 = vld [vmem:[#allocation2 + $0x988] sm:$0xff] }
 0xbf3   : > { %2885 = vmatpush2.msra.mxu1 %v8247_v31  ;;  %v8300_v31 = vld [vmem:[#allocation2 + $0x980] sm:$0xff] }
 0xbf4   : > { %2886 = vmatprep.subr.mxu1 %v8248_v2  ;;  %v8301_v2 = vld [vmem:[#allocation2 + $0x978] sm:$0xff] }
 0xbf5   : > { %2887 = vmatpush2.msra.mxu1 %v8249_v29  ;;  %v8302_v29 = vld [vmem:[#allocation2 + $0x970] sm:$0xff] }
 0xbf6   : > { %2888 = vmatprep.subr.mxu1 %v8250_v30  ;;  %v8303_v30 = vld [vmem:[#allocation2 + $0x968] sm:$0xff] }
 0xbf7   : > { %2889 = vmatpush2.msra.mxu1 %v8251_v47  ;;  %v8304_v47 = vld [vmem:[#allocation2 + $0x960] sm:$0xff] }
 0xbf8   : > { %2891 = vmatmul.mubr.f32.vlgmr.msra.gmra.mxu1 %v10110_v36 }
 0xbf9   : > { %3117 = vmatprep.mubr.f32.mxu1 %v9843_v4 }
 0xc78   : > { %v2819_v32 = vpop.f32.mrf.mxu1 }
 0xc79   : > { %v10173_v8 = vadd.f32 %v2819_v32, %v10161_v60  ;;  %v8255_v60 = vld [vmem:[#allocation2 + $0x8e8] sm:$0xff]  ;;  %v8305_v32 = vld [vmem:[#allocation2 + $0x958] sm:$0xff] }
 0xc7a   : > { %v2821_v10 = vpop.f32.mrf.mxu1 }
 0xc7b   : > { %v10176_v34 = vadd.f32 %v2821_v10, %v10163_v20  ;;  %v8257_v20 = vld [vmem:[#allocation2 + $0x8d8] sm:$0xff]  ;;  %v8306_v10 = vld [vmem:[#allocation2 + $0x950] sm:$0xff] }
 0xcb8   : > { %v2892_v37 = vpop.f32.mrf.mxu1 }
 0xcba   : > { %v2894_v38 = vpop.f32.mrf.mxu1 }
 0xcbb   : > { %7853 = vmatprep.subr.msk.mxu0 %vm519_vm0, %v2894_v38  ;;  %v8308_v38 = vld [vmem:[#allocation2 + $0x940] sm:$0xff] }
 0xcbc   : > { %7854 = vmatpush1.msk.msra.mxu0 %vm519_vm0, %v2892_v37  ;;  %v8307_v37 = vld [vmem:[#allocation2 + $0x948] sm:$0xff] }
 0xcbd   : > { %7855 = vmatmul.mubr.msk.f32.vlgmr.msra.gmra.mxu0 %vm515_vm1, %v8252_v40  ;;  %2976 = vmatprep.subr.mxu0 %v8253_v21  ;;  %v8309_v40 = vld [vmem:[#allocation2 + $0x938] sm:$0xff]  ;;  %v8310_v21 = vld [vmem:[#allocation2 + $0x930] sm:$0xff] }
 0xcbe   : > { %2977 = vmatpush1.msra.mxu0 %v8254_v23  ;;  %3040 = vmatprep.mubr.f32.mxu0 %v10115_v26  ;;  %v8311_v23 = vld [vmem:[#allocation2 + $0x928] sm:$0xff] }
 0xcbf   : > { %2978 = vmatprep.subr.mxu0 %v8255_v60  ;;  %v8312_v60 = vld [vmem:[#allocation2 + $0x920] sm:$0xff] }
 0xcc0   : > { %2979 = vmatpush1.msra.mxu0 %v8256_v28  ;;  %v8313_v28 = vld [vmem:[#allocation2 + $0x918] sm:$0xff] }
 0xcc1   : > { %2980 = vmatprep.subr.mxu0 %v8257_v20  ;;  %v8314_v20 = vld [vmem:[#allocation2 + $0x910] sm:$0xff] }
 0xcc2   : > { %2981 = vmatpush1.msra.mxu0 %v8258_v42  ;;  %v8315_v42 = vld [vmem:[#allocation2 + $0x908] sm:$0xff] }
 0xcc3   : > { %2982 = vmatprep.subr.mxu0 %v8259_v43  ;;  %v8316_v43 = vld [vmem:[#allocation2 + $0x900] sm:$0xff] }
 0xcc4   : > { %2983 = vmatpush1.msra.mxu0 %v8260_v44 }
 0xcc5   : > { %2984 = vmatprep.subr.mxu0 %v8261_v16 }
 0xcc6   : > { %2985 = vmatpush1.msra.mxu0 %v8262_v17 }
 0xcc7   : > { %2986 = vmatprep.subr.mxu0 %v8263_v48 }
 0xcc8   : > { %2987 = vmatpush1.msra.mxu0 %v8264_v50 }
 0xcc9   : > { %2988 = vmatprep.subr.mxu0 %v8265_v52 }
 0xcca   : > { %2989 = vmatpush1.msra.mxu0 %v8266_v53  ;;  %v8317_v53 = vld [vmem:[%s9960_s8 + $0x10] sm:$0xf] }
 0xccb   : > { %2990 = vmatprep.subr.mxu0 %v8267_v54  ;;  %v8318_v54 = vld [vmem:[#allocation2 + $0xaf8] sm:$0xff] }
 0xccc   : > { %2991 = vmatpush1.msra.mxu0 %v8268_v33  ;;  %v8319_v33 = vld [vmem:[#allocation2 + $0xaf0] sm:$0xff] }
 0xccd   : > { %2992 = vmatprep.subr.mxu0 %v8269_v55  ;;  %v8321_v55 = vld [vmem:[#allocation2 + $0xae0] sm:$0xff] }
 0xcce   : > { %2993 = vmatpush1.msra.mxu0 %v8270_v35  ;;  %v8323_v35 = vld [vmem:[#allocation2 + $0xad0] sm:$0xff] }
 0xccf   : > { %2994 = vmatprep.subr.mxu0 %v8271_v56  ;;  %v8324_v56 = vld [vmem:[#allocation2 + $0xac8] sm:$0xff] }
 0xcd0   : > { %2995 = vmatpush1.msra.mxu0 %v8272_v57  ;;  %v8325_v57 = vld [vmem:[#allocation2 + $0xac0] sm:$0xff] }
 0xcd1   : > { %2996 = vmatprep.subr.mxu0 %v8273_v58  ;;  %v8326_v58 = vld [vmem:[#allocation2 + $0xab8] sm:$0xff] }
 0xcd2   : > { %2997 = vmatpush1.msra.mxu0 %v8274_v39  ;;  %v8327_v39 = vld [vmem:[#allocation2 + $0xab0] sm:$0xff] }
 0xcd3   : > { %2998 = vmatprep.subr.mxu0 %v8275_v41  ;;  %v8328_v41 = vld [vmem:[#allocation2 + $0xaa8] sm:$0xff] }
 0xcd4   : > { %2999 = vmatpush1.msra.mxu0 %v8276_v59  ;;  %v8329_v59 = vld [vmem:[#allocation2 + $0xaa0] sm:$0xff] }
 0xcd5   : > { %3000 = vmatprep.subr.mxu0 %v8277_v61  ;;  %v8330_v61 = vld [vmem:[#allocation2 + $0xa98] sm:$0xff] }
 0xcd6   : > { %3001 = vmatpush1.msra.mxu0 %v8278_v63  ;;  %v8331_v63 = vld [vmem:[#allocation2 + $0xa90] sm:$0xff] }
 0xcd7   : > { %3002 = vmatprep.subr.mxu0 %v8279_v0  ;;  %v8332_v0 = vld [vmem:[#allocation2 + $0xa88] sm:$0xff] }
 0xcd8   : > { %3003 = vmatpush1.msra.mxu0 %v8280_v3  ;;  %v8333_v3 = vld [vmem:[#allocation2 + $0xa80] sm:$0xff] }
 0xcd9   : > { %3004 = vmatprep.subr.mxu0 %v8281_v5  ;;  %v8334_v5 = vld [vmem:[#allocation2 + $0xa78] sm:$0xff] }
 0xcda   : > { %3005 = vmatpush1.msra.mxu0 %v8282_v6  ;;  %v8335_v6 = vld [vmem:[#allocation2 + $0xa70] sm:$0xff] }
 0xcdb   : > { %3006 = vmatprep.subr.mxu0 %v8283_v49  ;;  %v8336_v49 = vld [vmem:[#allocation2 + $0xa68] sm:$0xff] }
 0xcdc   : > { %3007 = vmatpush1.msra.mxu0 %v8284_v51  ;;  %v8337_v51 = vld [vmem:[#allocation2 + $0xa60] sm:$0xff] }
 0xcdd   : > { %3008 = vmatprep.subr.mxu0 %v8285_v7  ;;  %v8338_v7 = vld [vmem:[#allocation2 + $0xa58] sm:$0xff] }
 0xcde   : > { %3009 = vmatpush2.msra.mxu0 %v8286_v9  ;;  %v8339_v9 = vld [vmem:[#allocation2 + $0xa50] sm:$0xff] }
 0xcdf   : > { %3010 = vmatprep.subr.mxu0 %v8287_v11  ;;  %v8340_v11 = vld [vmem:[#allocation2 + $0xa48] sm:$0xff] }
 0xce0   : > { %3011 = vmatpush2.msra.mxu0 %v8288_v12  ;;  %v8341_v12 = vld [vmem:[#allocation2 + $0xa40] sm:$0xff] }
 0xce1   : > { %3012 = vmatprep.subr.mxu0 %v8289_v13  ;;  %v8342_v13 = vld [vmem:[#allocation2 + $0xa38] sm:$0xff] }
 0xce2   : > { %3013 = vmatpush2.msra.mxu0 %v8290_v14  ;;  %v8343_v14 = vld [vmem:[#allocation2 + $0xa30] sm:$0xff] }
 0xce3   : > { %3014 = vmatprep.subr.mxu0 %v8291_v15  ;;  %v8344_v15 = vld [vmem:[#allocation2 + $0xa28] sm:$0xff] }
 0xce4   : > { %3015 = vmatpush2.msra.mxu0 %v8292_v18  ;;  %v8345_v18 = vld [vmem:[#allocation2 + $0xa20] sm:$0xff] }
 0xce5   : > { %3016 = vmatprep.subr.mxu0 %v8293_v19  ;;  %v8346_v19 = vld [vmem:[#allocation2 + $0xa18] sm:$0xff] }
 0xce6   : > { %3017 = vmatpush2.msra.mxu0 %v8294_v62  ;;  %v8347_v62 = vld [vmem:[#allocation2 + $0xa10] sm:$0xff] }
 0xce7   : > { %3018 = vmatprep.subr.mxu0 %v8295_v22  ;;  %v8348_v22 = vld [vmem:[#allocation2 + $0xa08] sm:$0xff] }
 0xce8   : > { %3019 = vmatpush2.msra.mxu0 %v8296_v24  ;;  %v8349_v24 = vld [vmem:[#allocation2 + $0xa00] sm:$0xff] }
 0xce9   : > { %3020 = vmatprep.subr.mxu0 %v8297_v25  ;;  %v8350_v25 = vld [vmem:[#allocation2 + $0xbf8] sm:$0xff] }
 0xcea   : > { %3021 = vmatpush2.msra.mxu0 %v8298_v27  ;;  %v8351_v27 = vld [vmem:[#allocation2 + $0xbf0] sm:$0xff] }
 0xceb   : > { %3022 = vmatprep.subr.mxu0 %v8299_v1  ;;  %v8352_v1 = vld [vmem:[#allocation2 + $0xbe8] sm:$0xff] }
 0xcec   : > { %3023 = vmatpush2.msra.mxu0 %v8300_v31  ;;  %v8353_v31 = vld [vmem:[#allocation2 + $0xbe0] sm:$0xff] }
 0xced   : > { %3024 = vmatprep.subr.mxu0 %v8301_v2  ;;  %v8354_v2 = vld [vmem:[#allocation2 + $0xbd8] sm:$0xff] }
 0xcee   : > { %3025 = vmatpush2.msra.mxu0 %v8302_v29  ;;  %v8355_v29 = vld [vmem:[#allocation2 + $0xbd0] sm:$0xff] }
 0xcef   : > { %3026 = vmatprep.subr.mxu0 %v8303_v30  ;;  %v8356_v30 = vld [vmem:[#allocation2 + $0xbc8] sm:$0xff] }
 0xcf0   : > { %3027 = vmatpush2.msra.mxu0 %v8304_v47  ;;  %v8357_v47 = vld [vmem:[#allocation2 + $0xbc0] sm:$0xff] }
 0xcf1   : > { %3028 = vmatprep.subr.mxu0 %v8305_v32  ;;  %v8358_v32 = vld [vmem:[#allocation2 + $0xbb8] sm:$0xff] }
 0xcf2   : > { %3029 = vmatpush2.msra.mxu0 %v8306_v10  ;;  %v8359_v10 = vld [vmem:[#allocation2 + $0xbb0] sm:$0xff] }
 0xcf3   : > { %3030 = vmatprep.subr.mxu0 %v8307_v37  ;;  %v8360_v37 = vld [vmem:[#allocation2 + $0xba8] sm:$0xff] }
 0xcf4   : > { %3031 = vmatpush2.msra.mxu0 %v8308_v38  ;;  %v8361_v38 = vld [vmem:[#allocation2 + $0xba0] sm:$0xff] }
 0xcf5   : > { %3032 = vmatprep.subr.mxu0 %v8309_v40  ;;  %v8362_v40 = vld [vmem:[#allocation2 + $0xb98] sm:$0xff] }
 0xcf6   : > { %3033 = vmatpush2.msra.mxu0 %v8310_v21  ;;  %v8363_v21 = vld [vmem:[#allocation2 + $0xb90] sm:$0xff] }
 0xcf7   : > { %3034 = vmatprep.subr.mxu0 %v8311_v23  ;;  %v8364_v23 = vld [vmem:[#allocation2 + $0xb88] sm:$0xff] }
 0xcf8   : > { %3035 = vmatpush2.msra.mxu0 %v8312_v60  ;;  %v8365_v60 = vld [vmem:[#allocation2 + $0xb80] sm:$0xff] }
 0xcf9   : > { %3036 = vmatprep.subr.mxu0 %v8313_v28  ;;  %v8366_v28 = vld [vmem:[#allocation2 + $0xb78] sm:$0xff] }
 0xcfa   : > { %3037 = vmatpush2.msra.mxu0 %v8314_v20  ;;  %v8367_v20 = vld [vmem:[#allocation2 + $0xb70] sm:$0xff] }
 0xcfb   : > { %3038 = vmatprep.subr.mxu0 %v8315_v42  ;;  %v8368_v42 = vld [vmem:[#allocation2 + $0xb68] sm:$0xff] }
 0xcfc   : > { %3039 = vmatpush2.msra.mxu0 %v8316_v43  ;;  %v8369_v43 = vld [vmem:[#allocation2 + $0xb60] sm:$0xff] }
 0xcfd   : > { %3041 = vmatmul.mubr.f32.vlgmr.msra.gmra.mxu0 %v10110_v36 }
 0xcfe   : > { %3267 = vmatprep.mubr.f32.mxu0 %v9843_v4 }
 0xd7d   : > { %v2969_v44 = vpop.f32.mrf.mxu0 }
 0xd7e   : > { %v10186_v16 = vadd.f32 %v2969_v44, %v10173_v8  ;;  %v8320_v8 = vld [vmem:[#allocation2 + $0xae8] sm:$0xff]  ;;  %v8370_v44 = vld [vmem:[#allocation2 + $0xb58] sm:$0xff] }
 0xd7f   : > { %v2971_v17 = vpop.f32.mrf.mxu0 }
 0xd80   : > { %v10189_v48 = vadd.f32 %v2971_v17, %v10176_v34  ;;  %v8322_v34 = vld [vmem:[#allocation2 + $0xad8] sm:$0xff]  ;;  %v8371_v17 = vld [vmem:[#allocation2 + $0xb50] sm:$0xff] }
 0xdbd   : > { %v3042_v50 = vpop.f32.mrf.mxu0 }
 0xdbf   : > { %v3044_v52 = vpop.f32.mrf.mxu0 }
 0xdc0   : > { %7856 = vmatprep.subr.msk.mxu1 %vm519_vm0, %v3044_v52  ;;  %v8373_v52 = vld [vmem:[#allocation2 + $0xb40] sm:$0xff] }
 0xdc1   : > { %7857 = vmatpush1.msk.msra.mxu1 %vm519_vm0, %v3042_v50  ;;  %v8372_v50 = vld [vmem:[#allocation2 + $0xb48] sm:$0xff] }
 0xdc2   : > { %7858 = vmatmul.mubr.msk.f32.vlgmr.msra.gmra.mxu1 %vm515_vm1, %v8317_v53  ;;  %3126 = vmatprep.subr.mxu1 %v8318_v54  ;;  %v8374_v53 = vld [vmem:[#allocation2 + $0xb38] sm:$0xff]  ;;  %v8375_v54 = vld [vmem:[#allocation2 + $0xb30] sm:$0xff] }
 0xdc3   : > { %3127 = vmatpush1.msra.mxu1 %v8319_v33  ;;  %3190 = vmatprep.mubr.f32.mxu1 %v10115_v26  ;;  %v8376_v33 = vld [vmem:[#allocation2 + $0xb28] sm:$0xff] }
 0xdc4   : > { %3128 = vmatprep.subr.mxu1 %v8320_v8  ;;  %v8377_v8 = vld [vmem:[#allocation2 + $0xb20] sm:$0xff] }
 0xdc5   : > { %3129 = vmatpush1.msra.mxu1 %v8321_v55  ;;  %v8378_v55 = vld [vmem:[#allocation2 + $0xb18] sm:$0xff] }
 0xdc6   : > { %3130 = vmatprep.subr.mxu1 %v8322_v34  ;;  %v8379_v34 = vld [vmem:[#allocation2 + $0xb10] sm:$0xff] }
 0xdc7   : > { %3131 = vmatpush1.msra.mxu1 %v8323_v35  ;;  %v8380_v35 = vld [vmem:[#allocation2 + $0xb08] sm:$0xff] }
 0xdc8   : > { %3132 = vmatprep.subr.mxu1 %v8324_v56  ;;  %v8381_v56 = vld [vmem:[#allocation2 + $0xb00] sm:$0xff] }
 0xdc9   : > { %3133 = vmatpush1.msra.mxu1 %v8325_v57 }
 0xdca   : > { %3134 = vmatprep.subr.mxu1 %v8326_v58 }
 0xdcb   : > { %3135 = vmatpush1.msra.mxu1 %v8327_v39 }
 0xdcc   : > { %3136 = vmatprep.subr.mxu1 %v8328_v41 }
 0xdcd   : > { %3137 = vmatpush1.msra.mxu1 %v8329_v59 }
 0xdce   : > { %3138 = vmatprep.subr.mxu1 %v8330_v61 }
 0xdcf   : > { %3139 = vmatpush1.msra.mxu1 %v8331_v63  ;;  %v8382_v63 = vld [vmem:[%s9960_s8 + $0x14] sm:$0xf] }
 0xdd0   : > { %3140 = vmatprep.subr.mxu1 %v8332_v0  ;;  %v8384_v0 = vld [vmem:[#allocation2 + $0xcf0] sm:$0xff] }
 0xdd1   : > { %3141 = vmatpush1.msra.mxu1 %v8333_v3  ;;  %v8386_v3 = vld [vmem:[#allocation2 + $0xce0] sm:$0xff] }
 0xdd2   : > { %3142 = vmatprep.subr.mxu1 %v8334_v5  ;;  %v8388_v5 = vld [vmem:[#allocation2 + $0xcd0] sm:$0xff] }
 0xdd3   : > { %3143 = vmatpush1.msra.mxu1 %v8335_v6  ;;  %v8389_v6 = vld [vmem:[#allocation2 + $0xcc8] sm:$0xff] }
 0xdd4   : > { %3144 = vmatprep.subr.mxu1 %v8336_v49  ;;  %v8390_v49 = vld [vmem:[#allocation2 + $0xcc0] sm:$0xff] }
 0xdd5   : > { %3145 = vmatpush1.msra.mxu1 %v8337_v51  ;;  %v8391_v51 = vld [vmem:[#allocation2 + $0xcb8] sm:$0xff] }
 0xdd6   : > { %3146 = vmatprep.subr.mxu1 %v8338_v7  ;;  %v8392_v7 = vld [vmem:[#allocation2 + $0xcb0] sm:$0xff] }
 0xdd7   : > { %3147 = vmatpush1.msra.mxu1 %v8339_v9  ;;  %v8393_v9 = vld [vmem:[#allocation2 + $0xca8] sm:$0xff] }
 0xdd8   : > { %3148 = vmatprep.subr.mxu1 %v8340_v11  ;;  %v8394_v11 = vld [vmem:[#allocation2 + $0xca0] sm:$0xff] }
 0xdd9   : > { %3149 = vmatpush1.msra.mxu1 %v8341_v12  ;;  %v8395_v12 = vld [vmem:[#allocation2 + $0xc98] sm:$0xff] }
 0xdda   : > { %3150 = vmatprep.subr.mxu1 %v8342_v13  ;;  %v8396_v13 = vld [vmem:[#allocation2 + $0xc90] sm:$0xff] }
 0xddb   : > { %3151 = vmatpush1.msra.mxu1 %v8343_v14  ;;  %v8397_v14 = vld [vmem:[#allocation2 + $0xc88] sm:$0xff] }
 0xddc   : > { %3152 = vmatprep.subr.mxu1 %v8344_v15  ;;  %v8398_v15 = vld [vmem:[#allocation2 + $0xc80] sm:$0xff] }
 0xddd   : > { %3153 = vmatpush1.msra.mxu1 %v8345_v18  ;;  %v8399_v18 = vld [vmem:[#allocation2 + $0xc78] sm:$0xff] }
 0xdde   : > { %3154 = vmatprep.subr.mxu1 %v8346_v19  ;;  %v8400_v19 = vld [vmem:[#allocation2 + $0xc70] sm:$0xff] }
 0xddf   : > { %3155 = vmatpush1.msra.mxu1 %v8347_v62  ;;  %v8401_v62 = vld [vmem:[#allocation2 + $0xc68] sm:$0xff] }
 0xde0   : > { %3156 = vmatprep.subr.mxu1 %v8348_v22  ;;  %v8402_v22 = vld [vmem:[#allocation2 + $0xc60] sm:$0xff] }
 0xde1   : > { %3157 = vmatpush1.msra.mxu1 %v8349_v24  ;;  %v8403_v24 = vld [vmem:[#allocation2 + $0xc58] sm:$0xff] }
 0xde2   : > { %3158 = vmatprep.subr.mxu1 %v8350_v25  ;;  %v8404_v25 = vld [vmem:[#allocation2 + $0xc50] sm:$0xff] }
 0xde3   : > { %3159 = vmatpush2.msra.mxu1 %v8351_v27  ;;  %v8405_v27 = vld [vmem:[#allocation2 + $0xc48] sm:$0xff] }
 0xde4   : > { %3160 = vmatprep.subr.mxu1 %v8352_v1  ;;  %v8406_v1 = vld [vmem:[#allocation2 + $0xc40] sm:$0xff] }
 0xde5   : > { %3161 = vmatpush2.msra.mxu1 %v8353_v31  ;;  %v8407_v31 = vld [vmem:[#allocation2 + $0xc38] sm:$0xff] }
 0xde6   : > { %3162 = vmatprep.subr.mxu1 %v8354_v2  ;;  %v8408_v2 = vld [vmem:[#allocation2 + $0xc30] sm:$0xff] }
 0xde7   : > { %3163 = vmatpush2.msra.mxu1 %v8355_v29  ;;  %v8409_v29 = vld [vmem:[#allocation2 + $0xc28] sm:$0xff] }
 0xde8   : > { %3164 = vmatprep.subr.mxu1 %v8356_v30  ;;  %v8410_v30 = vld [vmem:[#allocation2 + $0xc20] sm:$0xff] }
 0xde9   : > { %3165 = vmatpush2.msra.mxu1 %v8357_v47  ;;  %v8411_v47 = vld [vmem:[#allocation2 + $0xc18] sm:$0xff] }
 0xdea   : > { %3166 = vmatprep.subr.mxu1 %v8358_v32  ;;  %v8412_v32 = vld [vmem:[#allocation2 + $0xc10] sm:$0xff] }
 0xdeb   : > { %3167 = vmatpush2.msra.mxu1 %v8359_v10  ;;  %v8413_v10 = vld [vmem:[#allocation2 + $0xc08] sm:$0xff] }
 0xdec   : > { %3168 = vmatprep.subr.mxu1 %v8360_v37  ;;  %v8414_v37 = vld [vmem:[#allocation2 + $0xc00] sm:$0xff] }
 0xded   : > { %3169 = vmatpush2.msra.mxu1 %v8361_v38  ;;  %v8415_v38 = vld [vmem:[#allocation2 + $0xdf8] sm:$0xff] }
 0xdee   : > { %3170 = vmatprep.subr.mxu1 %v8362_v40  ;;  %v8416_v40 = vld [vmem:[#allocation2 + $0xdf0] sm:$0xff] }
 0xdef   : > { %3171 = vmatpush2.msra.mxu1 %v8363_v21  ;;  %v8417_v21 = vld [vmem:[#allocation2 + $0xde8] sm:$0xff] }
 0xdf0   : > { %3172 = vmatprep.subr.mxu1 %v8364_v23  ;;  %v8418_v23 = vld [vmem:[#allocation2 + $0xde0] sm:$0xff] }
 0xdf1   : > { %3173 = vmatpush2.msra.mxu1 %v8365_v60  ;;  %v8419_v60 = vld [vmem:[#allocation2 + $0xdd8] sm:$0xff] }
 0xdf2   : > { %3174 = vmatprep.subr.mxu1 %v8366_v28  ;;  %v8420_v28 = vld [vmem:[#allocation2 + $0xdd0] sm:$0xff] }
 0xdf3   : > { %3175 = vmatpush2.msra.mxu1 %v8367_v20  ;;  %v8421_v20 = vld [vmem:[#allocation2 + $0xdc8] sm:$0xff] }
 0xdf4   : > { %3176 = vmatprep.subr.mxu1 %v8368_v42  ;;  %v8422_v42 = vld [vmem:[#allocation2 + $0xdc0] sm:$0xff] }
 0xdf5   : > { %3177 = vmatpush2.msra.mxu1 %v8369_v43  ;;  %v8423_v43 = vld [vmem:[#allocation2 + $0xdb8] sm:$0xff] }
 0xdf6   : > { %3178 = vmatprep.subr.mxu1 %v8370_v44  ;;  %v8424_v44 = vld [vmem:[#allocation2 + $0xdb0] sm:$0xff] }
 0xdf7   : > { %3179 = vmatpush2.msra.mxu1 %v8371_v17  ;;  %v8425_v17 = vld [vmem:[#allocation2 + $0xda8] sm:$0xff] }
 0xdf8   : > { %3180 = vmatprep.subr.mxu1 %v8372_v50  ;;  %v8426_v50 = vld [vmem:[#allocation2 + $0xda0] sm:$0xff] }
 0xdf9   : > { %3181 = vmatpush2.msra.mxu1 %v8373_v52  ;;  %v8427_v52 = vld [vmem:[#allocation2 + $0xd98] sm:$0xff] }
 0xdfa   : > { %3182 = vmatprep.subr.mxu1 %v8374_v53  ;;  %v8428_v53 = vld [vmem:[#allocation2 + $0xd90] sm:$0xff] }
 0xdfb   : > { %3183 = vmatpush2.msra.mxu1 %v8375_v54  ;;  %v8429_v54 = vld [vmem:[#allocation2 + $0xd88] sm:$0xff] }
 0xdfc   : > { %3184 = vmatprep.subr.mxu1 %v8376_v33  ;;  %v8430_v33 = vld [vmem:[#allocation2 + $0xd80] sm:$0xff] }
 0xdfd   : > { %3185 = vmatpush2.msra.mxu1 %v8377_v8  ;;  %v8431_v8 = vld [vmem:[#allocation2 + $0xd78] sm:$0xff] }
 0xdfe   : > { %3186 = vmatprep.subr.mxu1 %v8378_v55  ;;  %v8432_v55 = vld [vmem:[#allocation2 + $0xd70] sm:$0xff] }
 0xdff   : > { %3187 = vmatpush2.msra.mxu1 %v8379_v34  ;;  %v8433_v34 = vld [vmem:[#allocation2 + $0xd68] sm:$0xff] }
 0xe00   : > { %3188 = vmatprep.subr.mxu1 %v8380_v35  ;;  %v8434_v35 = vld [vmem:[#allocation2 + $0xd60] sm:$0xff] }
 0xe01   : > { %3189 = vmatpush2.msra.mxu1 %v8381_v56  ;;  %v8435_v56 = vld [vmem:[#allocation2 + $0xd58] sm:$0xff] }
 0xe02   : > { %3191 = vmatmul.mubr.f32.vlgmr.msra.gmra.mxu1 %v10110_v36  ;;  %v8383_v36 = vld [vmem:[#allocation2 + $0xcf8] sm:$0xff] }
 0xe03   : > { %3417 = vmatprep.mubr.f32.mxu1 %v9843_v4 }
 0xe82   : > { %v3119_v57 = vpop.f32.mrf.mxu1 }
 0xe83   : > { %v10199_v58 = vadd.f32 %v3119_v57, %v10186_v16  ;;  %v8385_v16 = vld [vmem:[#allocation2 + $0xce8] sm:$0xff]  ;;  %v8436_v57 = vld [vmem:[#allocation2 + $0xd50] sm:$0xff] }
 0xe84   : > { %v3121_v39 = vpop.f32.mrf.mxu1 }
 0xe85   : > { %v10202_v41 = vadd.f32 %v3121_v39, %v10189_v48  ;;  %v8387_v48 = vld [vmem:[#allocation2 + $0xcd8] sm:$0xff]  ;;  %v8437_v39 = vld [vmem:[#allocation2 + $0xd48] sm:$0xff] }
 0xec2   : > { %v3192_v59 = vpop.f32.mrf.mxu1 }
 0xec4   : > { %v3194_v61 = vpop.f32.mrf.mxu1 }
 0xec5   : > { %7859 = vmatprep.subr.msk.mxu0 %vm519_vm0, %v3194_v61  ;;  %v8439_v61 = vld [vmem:[#allocation2 + $0xd38] sm:$0xff] }
 0xec6   : > { %7860 = vmatpush1.msk.msra.mxu0 %vm519_vm0, %v3192_v59  ;;  %v8438_v59 = vld [vmem:[#allocation2 + $0xd40] sm:$0xff] }
 0xec7   : > { %7861 = vmatmul.mubr.msk.f32.vlgmr.msra.gmra.mxu0 %vm515_vm1, %v8382_v63  ;;  %3276 = vmatprep.subr.mxu0 %v8383_v36  ;;  %v8440_v63 = vld [vmem:[#allocation2 + $0xd30] sm:$0xff]  ;;  %v8441_v36 = vld [vmem:[#allocation2 + $0xd28] sm:$0xff] }
 0xec8   : > { %3277 = vmatpush1.msra.mxu0 %v8384_v0  ;;  %3340 = vmatprep.mubr.f32.mxu0 %v10115_v26  ;;  %v8442_v0 = vld [vmem:[#allocation2 + $0xd20] sm:$0xff] }
 0xec9   : > { %3278 = vmatprep.subr.mxu0 %v8385_v16  ;;  %v8443_v16 = vld [vmem:[#allocation2 + $0xd18] sm:$0xff] }
 0xeca   : > { %3279 = vmatpush1.msra.mxu0 %v8386_v3  ;;  %v8444_v3 = vld [vmem:[#allocation2 + $0xd10] sm:$0xff] }
 0xecb   : > { %3280 = vmatprep.subr.mxu0 %v8387_v48  ;;  %v8445_v48 = vld [vmem:[#allocation2 + $0xd08] sm:$0xff] }
 0xecc   : > { %3281 = vmatpush1.msra.mxu0 %v8388_v5  ;;  %v8446_v5 = vld [vmem:[#allocation2 + $0xd00] sm:$0xff] }
 0xecd   : > { %3282 = vmatprep.subr.mxu0 %v8389_v6  ;;  %v10212_v6 = vld [vmem:[%s10563_s7 + $0x8] sm:$0xff] }
 0xece   : > { %3283 = vmatpush1.msra.mxu0 %v8390_v49 }
 0xecf   : > { %3284 = vmatprep.subr.mxu0 %v8391_v51 }
 0xed0   : > { %3285 = vmatpush1.msra.mxu0 %v8392_v7 }
 0xed1   : > { %3286 = vmatprep.subr.mxu0 %v8393_v9 }
 0xed2   : > { %3287 = vmatpush1.msra.mxu0 %v8394_v11 }
 0xed3   : > { %3288 = vmatprep.subr.mxu0 %v8395_v12 }
 0xed4   : > { %3289 = vmatpush1.msra.mxu0 %v8396_v13  ;;  %v8448_v13 = vld [vmem:[%s9960_s8 + $0x18] sm:$0xf] }
 0xed5   : > { %3290 = vmatprep.subr.mxu0 %v8397_v14  ;;  %v8449_v14 = vld [vmem:[#allocation2 + $0xef8] sm:$0xff] }
 0xed6   : > { %3291 = vmatpush1.msra.mxu0 %v8398_v15  ;;  %v8450_v15 = vld [vmem:[#allocation2 + $0xef0] sm:$0xff] }
 0xed7   : > { %3292 = vmatprep.subr.mxu0 %v8399_v18  ;;  %v8452_v18 = vld [vmem:[#allocation2 + $0xee0] sm:$0xff] }
 0xed8   : > { %3293 = vmatpush1.msra.mxu0 %v8400_v19  ;;  %v8454_v19 = vld [vmem:[#allocation2 + $0xed0] sm:$0xff] }
 0xed9   : > { %3294 = vmatprep.subr.mxu0 %v8401_v62  ;;  %v8455_v62 = vld [vmem:[#allocation2 + $0xec8] sm:$0xff] }
 0xeda   : > { %3295 = vmatpush1.msra.mxu0 %v8402_v22  ;;  %v8456_v22 = vld [vmem:[#allocation2 + $0xec0] sm:$0xff] }
 0xedb   : > { %3296 = vmatprep.subr.mxu0 %v8403_v24  ;;  %v8457_v24 = vld [vmem:[#allocation2 + $0xeb8] sm:$0xff] }
 0xedc   : > { %3297 = vmatpush1.msra.mxu0 %v8404_v25  ;;  %v8458_v25 = vld [vmem:[#allocation2 + $0xeb0] sm:$0xff] }
 0xedd   : > { %3298 = vmatprep.subr.mxu0 %v8405_v27  ;;  %v8459_v27 = vld [vmem:[#allocation2 + $0xea8] sm:$0xff] }
 0xede   : > { %3299 = vmatpush1.msra.mxu0 %v8406_v1  ;;  %v8460_v1 = vld [vmem:[#allocation2 + $0xea0] sm:$0xff] }
 0xedf   : > { %3300 = vmatprep.subr.mxu0 %v8407_v31  ;;  %v8461_v31 = vld [vmem:[#allocation2 + $0xe98] sm:$0xff] }
 0xee0   : > { %3301 = vmatpush1.msra.mxu0 %v8408_v2  ;;  %v8462_v2 = vld [vmem:[#allocation2 + $0xe90] sm:$0xff] }
 0xee1   : > { %3302 = vmatprep.subr.mxu0 %v8409_v29  ;;  %v8463_v29 = vld [vmem:[#allocation2 + $0xe88] sm:$0xff] }
 0xee2   : > { %3303 = vmatpush1.msra.mxu0 %v8410_v30  ;;  %v8464_v30 = vld [vmem:[#allocation2 + $0xe80] sm:$0xff] }
 0xee3   : > { %3304 = vmatprep.subr.mxu0 %v8411_v47  ;;  %v8465_v47 = vld [vmem:[#allocation2 + $0xe78] sm:$0xff] }
 0xee4   : > { %3305 = vmatpush1.msra.mxu0 %v8412_v32  ;;  %v8466_v32 = vld [vmem:[#allocation2 + $0xe70] sm:$0xff] }
 0xee5   : > { %3306 = vmatprep.subr.mxu0 %v8413_v10  ;;  %v8467_v10 = vld [vmem:[#allocation2 + $0xe68] sm:$0xff] }
 0xee6   : > { %3307 = vmatpush1.msra.mxu0 %v8414_v37  ;;  %v8468_v37 = vld [vmem:[#allocation2 + $0xe60] sm:$0xff] }
 0xee7   : > { %3308 = vmatprep.subr.mxu0 %v8415_v38  ;;  %v8469_v38 = vld [vmem:[#allocation2 + $0xe58] sm:$0xff] }
 0xee8   : > { %3309 = vmatpush2.msra.mxu0 %v8416_v40  ;;  %v8470_v40 = vld [vmem:[#allocation2 + $0xe50] sm:$0xff] }
 0xee9   : > { %3310 = vmatprep.subr.mxu0 %v8417_v21  ;;  %v8471_v21 = vld [vmem:[#allocation2 + $0xe48] sm:$0xff] }
 0xeea   : > { %3311 = vmatpush2.msra.mxu0 %v8418_v23  ;;  %v8472_v23 = vld [vmem:[#allocation2 + $0xe40] sm:$0xff] }
 0xeeb   : > { %3312 = vmatprep.subr.mxu0 %v8419_v60  ;;  %v8473_v60 = vld [vmem:[#allocation2 + $0xe38] sm:$0xff] }
 0xeec   : > { %3313 = vmatpush2.msra.mxu0 %v8420_v28  ;;  %v8474_v28 = vld [vmem:[#allocation2 + $0xe30] sm:$0xff] }
 0xeed   : > { %3314 = vmatprep.subr.mxu0 %v8421_v20  ;;  %v8475_v20 = vld [vmem:[#allocation2 + $0xe28] sm:$0xff] }
 0xeee   : > { %3315 = vmatpush2.msra.mxu0 %v8422_v42  ;;  %v8476_v42 = vld [vmem:[#allocation2 + $0xe20] sm:$0xff] }
 0xeef   : > { %3316 = vmatprep.subr.mxu0 %v8423_v43  ;;  %v8477_v43 = vld [vmem:[#allocation2 + $0xe18] sm:$0xff] }
 0xef0   : > { %3317 = vmatpush2.msra.mxu0 %v8424_v44  ;;  %v8478_v44 = vld [vmem:[#allocation2 + $0xe10] sm:$0xff] }
 0xef1   : > { %3318 = vmatprep.subr.mxu0 %v8425_v17  ;;  %v8479_v17 = vld [vmem:[#allocation2 + $0xe08] sm:$0xff] }
 0xef2   : > { %3319 = vmatpush2.msra.mxu0 %v8426_v50  ;;  %v8480_v50 = vld [vmem:[#allocation2 + $0xe00] sm:$0xff] }
 0xef3   : > { %3320 = vmatprep.subr.mxu0 %v8427_v52  ;;  %v8481_v52 = vld [vmem:[#allocation2 + $0xff8] sm:$0xff] }
 0xef4   : > { %3321 = vmatpush2.msra.mxu0 %v8428_v53  ;;  %v8482_v53 = vld [vmem:[#allocation2 + $0xff0] sm:$0xff] }
 0xef5   : > { %3322 = vmatprep.subr.mxu0 %v8429_v54  ;;  %v8483_v54 = vld [vmem:[#allocation2 + $0xfe8] sm:$0xff] }
 0xef6   : > { %3323 = vmatpush2.msra.mxu0 %v8430_v33  ;;  %v8484_v33 = vld [vmem:[#allocation2 + $0xfe0] sm:$0xff] }
 0xef7   : > { %3324 = vmatprep.subr.mxu0 %v8431_v8  ;;  %v8485_v8 = vld [vmem:[#allocation2 + $0xfd8] sm:$0xff] }
 0xef8   : > { %3325 = vmatpush2.msra.mxu0 %v8432_v55  ;;  %v8486_v55 = vld [vmem:[#allocation2 + $0xfd0] sm:$0xff] }
 0xef9   : > { %3326 = vmatprep.subr.mxu0 %v8433_v34  ;;  %v8487_v34 = vld [vmem:[#allocation2 + $0xfc8] sm:$0xff] }
 0xefa   : > { %3327 = vmatpush2.msra.mxu0 %v8434_v35  ;;  %v8488_v35 = vld [vmem:[#allocation2 + $0xfc0] sm:$0xff] }
 0xefb   : > { %3328 = vmatprep.subr.mxu0 %v8435_v56  ;;  %v8489_v56 = vld [vmem:[#allocation2 + $0xfb8] sm:$0xff] }
 0xefc   : > { %3329 = vmatpush2.msra.mxu0 %v8436_v57  ;;  %v8490_v57 = vld [vmem:[#allocation2 + $0xfb0] sm:$0xff] }
 0xefd   : > { %3330 = vmatprep.subr.mxu0 %v8437_v39  ;;  %v8491_v39 = vld [vmem:[#allocation2 + $0xfa8] sm:$0xff] }
 0xefe   : > { %3331 = vmatpush2.msra.mxu0 %v8438_v59  ;;  %v8492_v59 = vld [vmem:[#allocation2 + $0xfa0] sm:$0xff] }
 0xeff   : > { %3332 = vmatprep.subr.mxu0 %v8439_v61  ;;  %v8493_v61 = vld [vmem:[#allocation2 + $0xf98] sm:$0xff] }
 0xf00   : > { %3333 = vmatpush2.msra.mxu0 %v8440_v63  ;;  %v8494_v63 = vld [vmem:[#allocation2 + $0xf90] sm:$0xff] }
 0xf01   : > { %3334 = vmatprep.subr.mxu0 %v8441_v36  ;;  %v8495_v36 = vld [vmem:[#allocation2 + $0xf88] sm:$0xff] }
 0xf02   : > { %3335 = vmatpush2.msra.mxu0 %v8442_v0  ;;  %v8496_v0 = vld [vmem:[#allocation2 + $0xf80] sm:$0xff] }
 0xf03   : > { %3336 = vmatprep.subr.mxu0 %v8443_v16  ;;  %v8497_v16 = vld [vmem:[#allocation2 + $0xf78] sm:$0xff] }
 0xf04   : > { %3337 = vmatpush2.msra.mxu0 %v8444_v3  ;;  %v8498_v3 = vld [vmem:[#allocation2 + $0xf70] sm:$0xff] }
 0xf05   : > { %3338 = vmatprep.subr.mxu0 %v8445_v48  ;;  %v8499_v48 = vld [vmem:[#allocation2 + $0xf68] sm:$0xff] }
 0xf06   : > { %3339 = vmatpush2.msra.mxu0 %v8446_v5  ;;  %v8500_v5 = vld [vmem:[#allocation2 + $0xf60] sm:$0xff] }
 0xf07   : > { %3341 = vmatmul.mubr.f32.vlgmr.msra.gmra.mxu0 %v10212_v6 }
 0xf08   : > { %3567 = vmatprep.mubr.f32.mxu0 %v9843_v4 }
 0xf87   : > { %v3269_v49 = vpop.f32.mrf.mxu0 }
 0xf88   : > { %v10217_v51 = vadd.f32 %v3269_v49, %v10199_v58  ;;  %v8451_v58 = vld [vmem:[#allocation2 + $0xee8] sm:$0xff]  ;;  %v8501_v49 = vld [vmem:[#allocation2 + $0xf58] sm:$0xff] }
 0xf89   : > { %v3271_v7 = vpop.f32.mrf.mxu0 }
 0xf8a   : > { %v10220_v9 = vadd.f32 %v3271_v7, %v10202_v41  ;;  %v8453_v41 = vld [vmem:[#allocation2 + $0xed8] sm:$0xff]  ;;  %v8502_v7 = vld [vmem:[#allocation2 + $0xf50] sm:$0xff] }
 0xfc7   : > { %v3342_v11 = vpop.f32.mrf.mxu0 }
 0xfc9   : > { %v3344_v12 = vpop.f32.mrf.mxu0 }
 0xfca   : > { %7862 = vmatprep.subr.msk.mxu1 %vm519_vm0, %v3344_v12  ;;  %v8504_v12 = vld [vmem:[#allocation2 + $0xf40] sm:$0xff] }
 0xfcb   : > { %7863 = vmatpush1.msk.msra.mxu1 %vm519_vm0, %v3342_v11  ;;  %v8503_v11 = vld [vmem:[#allocation2 + $0xf48] sm:$0xff] }
 0xfcc   : > { %7864 = vmatmul.mubr.msk.f32.vlgmr.msra.gmra.mxu1 %vm515_vm1, %v8448_v13  ;;  %3426 = vmatprep.subr.mxu1 %v8449_v14  ;;  %v8505_v13 = vld [vmem:[#allocation2 + $0xf38] sm:$0xff]  ;;  %v8506_v14 = vld [vmem:[#allocation2 + $0xf30] sm:$0xff] }
 0xfcd   : > { %3427 = vmatpush1.msra.mxu1 %v8450_v15  ;;  %3490 = vmatprep.mubr.f32.mxu1 %v10115_v26  ;;  %v8507_v15 = vld [vmem:[#allocation2 + $0xf28] sm:$0xff] }
 0xfce   : > { %3428 = vmatprep.subr.mxu1 %v8451_v58  ;;  %v8508_v58 = vld [vmem:[#allocation2 + $0xf20] sm:$0xff] }
 0xfcf   : > { %3429 = vmatpush1.msra.mxu1 %v8452_v18  ;;  %v8509_v18 = vld [vmem:[#allocation2 + $0xf18] sm:$0xff] }
 0xfd0   : > { %3430 = vmatprep.subr.mxu1 %v8453_v41  ;;  %v8510_v41 = vld [vmem:[#allocation2 + $0xf10] sm:$0xff] }
 0xfd1   : > { %3431 = vmatpush1.msra.mxu1 %v8454_v19  ;;  %v8511_v19 = vld [vmem:[#allocation2 + $0xf08] sm:$0xff] }
 0xfd2   : > { %3432 = vmatprep.subr.mxu1 %v8455_v62  ;;  %v8512_v62 = vld [vmem:[#allocation2 + $0xf00] sm:$0xff] }
 0xfd3   : > { %3433 = vmatpush1.msra.mxu1 %v8456_v22 }
 0xfd4   : > { %3434 = vmatprep.subr.mxu1 %v8457_v24 }
 0xfd5   : > { %3435 = vmatpush1.msra.mxu1 %v8458_v25 }
 0xfd6   : > { %3436 = vmatprep.subr.mxu1 %v8459_v27 }
 0xfd7   : > { %3437 = vmatpush1.msra.mxu1 %v8460_v1 }
 0xfd8   : > { %3438 = vmatprep.subr.mxu1 %v8461_v31 }
 0xfd9   : > { %3439 = vmatpush1.msra.mxu1 %v8462_v2  ;;  %v8513_v2 = vld [vmem:[%s9960_s8 + $0x1c] sm:$0xf] }
 0xfda   : > { %3440 = vmatprep.subr.mxu1 %v8463_v29  ;;  %v8514_v29 = vld [vmem:[#allocation2 + $0x10f8] sm:$0xff] }
 0xfdb   : > { %3441 = vmatpush1.msra.mxu1 %v8464_v30  ;;  %v8515_v30 = vld [vmem:[#allocation2 + $0x10f0] sm:$0xff] }
 0xfdc   : > { %3442 = vmatprep.subr.mxu1 %v8465_v47  ;;  %v8517_v47 = vld [vmem:[#allocation2 + $0x10e0] sm:$0xff] }
 0xfdd   : > { %3443 = vmatpush1.msra.mxu1 %v8466_v32  ;;  %v8519_v32 = vld [vmem:[#allocation2 + $0x10d0] sm:$0xff] }
 0xfde   : > { %3444 = vmatprep.subr.mxu1 %v8467_v10  ;;  %v8520_v10 = vld [vmem:[#allocation2 + $0x10c8] sm:$0xff] }
 0xfdf   : > { %3445 = vmatpush1.msra.mxu1 %v8468_v37  ;;  %v8521_v37 = vld [vmem:[#allocation2 + $0x10c0] sm:$0xff] }
 0xfe0   : > { %3446 = vmatprep.subr.mxu1 %v8469_v38  ;;  %v8522_v38 = vld [vmem:[#allocation2 + $0x10b8] sm:$0xff] }
 0xfe1   : > { %3447 = vmatpush1.msra.mxu1 %v8470_v40  ;;  %v8523_v40 = vld [vmem:[#allocation2 + $0x10b0] sm:$0xff] }
 0xfe2   : > { %3448 = vmatprep.subr.mxu1 %v8471_v21  ;;  %v8524_v21 = vld [vmem:[#allocation2 + $0x10a8] sm:$0xff] }
 0xfe3   : > { %3449 = vmatpush1.msra.mxu1 %v8472_v23  ;;  %v8525_v23 = vld [vmem:[#allocation2 + $0x10a0] sm:$0xff] }
 0xfe4   : > { %3450 = vmatprep.subr.mxu1 %v8473_v60  ;;  %v8527_v60 = vld [vmem:[#allocation2 + $0x1090] sm:$0xff] }
 0xfe5   : > { %3451 = vmatpush1.msra.mxu1 %v8474_v28  ;;  %v8528_v28 = vld [vmem:[#allocation2 + $0x1088] sm:$0xff] }
 0xfe6   : > { %3452 = vmatprep.subr.mxu1 %v8475_v20  ;;  %v8529_v20 = vld [vmem:[#allocation2 + $0x1080] sm:$0xff] }
 0xfe7   : > { %3453 = vmatpush1.msra.mxu1 %v8476_v42  ;;  %v8530_v42 = vld [vmem:[#allocation2 + $0x1078] sm:$0xff] }
 0xfe8   : > { %3454 = vmatprep.subr.mxu1 %v8477_v43  ;;  %v8531_v43 = vld [vmem:[#allocation2 + $0x1070] sm:$0xff] }
 0xfe9   : > { %3455 = vmatpush1.msra.mxu1 %v8478_v44  ;;  %v8532_v44 = vld [vmem:[#allocation2 + $0x1068] sm:$0xff] }
 0xfea   : > { %3456 = vmatprep.subr.mxu1 %v8479_v17  ;;  %v8533_v17 = vld [vmem:[#allocation2 + $0x1060] sm:$0xff] }
 0xfeb   : > { %3457 = vmatpush1.msra.mxu1 %v8480_v50  ;;  %v8534_v50 = vld [vmem:[#allocation2 + $0x1058] sm:$0xff] }
 0xfec   : > { %3458 = vmatprep.subr.mxu1 %v8481_v52  ;;  %v8535_v52 = vld [vmem:[#allocation2 + $0x1050] sm:$0xff] }
 0xfed   : > { %3459 = vmatpush2.msra.mxu1 %v8482_v53  ;;  %v8536_v53 = vld [vmem:[#allocation2 + $0x1048] sm:$0xff] }
 0xfee   : > { %3460 = vmatprep.subr.mxu1 %v8483_v54  ;;  %v8537_v54 = vld [vmem:[#allocation2 + $0x1040] sm:$0xff] }
 0xfef   : > { %3461 = vmatpush2.msra.mxu1 %v8484_v33  ;;  %v8538_v33 = vld [vmem:[#allocation2 + $0x1038] sm:$0xff] }
 0xff0   : > { %3462 = vmatprep.subr.mxu1 %v8485_v8  ;;  %v8539_v8 = vld [vmem:[#allocation2 + $0x1030] sm:$0xff] }
 0xff1   : > { %3463 = vmatpush2.msra.mxu1 %v8486_v55  ;;  %v8540_v55 = vld [vmem:[#allocation2 + $0x1028] sm:$0xff] }
 0xff2   : > { %3464 = vmatprep.subr.mxu1 %v8487_v34  ;;  %v8541_v34 = vld [vmem:[#allocation2 + $0x1020] sm:$0xff] }
 0xff3   : > { %3465 = vmatpush2.msra.mxu1 %v8488_v35  ;;  %v8542_v35 = vld [vmem:[#allocation2 + $0x1018] sm:$0xff] }
 0xff4   : > { %3466 = vmatprep.subr.mxu1 %v8489_v56  ;;  %v8543_v56 = vld [vmem:[#allocation2 + $0x1010] sm:$0xff] }
 0xff5   : > { %3467 = vmatpush2.msra.mxu1 %v8490_v57  ;;  %v8544_v57 = vld [vmem:[#allocation2 + $0x1008] sm:$0xff] }
 0xff6   : > { %3468 = vmatprep.subr.mxu1 %v8491_v39  ;;  %v8545_v39 = vld [vmem:[#allocation2 + $0x1000] sm:$0xff] }
 0xff7   : > { %3469 = vmatpush2.msra.mxu1 %v8492_v59  ;;  %v8546_v59 = vld [vmem:[#allocation2 + $0x11f8] sm:$0xff] }
 0xff8   : > { %3470 = vmatprep.subr.mxu1 %v8493_v61  ;;  %v8547_v61 = vld [vmem:[#allocation2 + $0x11f0] sm:$0xff] }
 0xff9   : > { %3471 = vmatpush2.msra.mxu1 %v8494_v63  ;;  %v8548_v63 = vld [vmem:[#allocation2 + $0x11e8] sm:$0xff] }
 0xffa   : > { %3472 = vmatprep.subr.mxu1 %v8495_v36  ;;  %v8549_v36 = vld [vmem:[#allocation2 + $0x11e0] sm:$0xff] }
 0xffb   : > { %3473 = vmatpush2.msra.mxu1 %v8496_v0  ;;  %v8550_v0 = vld [vmem:[#allocation2 + $0x11d8] sm:$0xff] }
 0xffc   : > { %3474 = vmatprep.subr.mxu1 %v8497_v16  ;;  %v8551_v16 = vld [vmem:[#allocation2 + $0x11d0] sm:$0xff] }
 0xffd   : > { %3475 = vmatpush2.msra.mxu1 %v8498_v3  ;;  %v8552_v3 = vld [vmem:[#allocation2 + $0x11c8] sm:$0xff] }
 0xffe   : > { %3476 = vmatprep.subr.mxu1 %v8499_v48  ;;  %v8553_v48 = vld [vmem:[#allocation2 + $0x11c0] sm:$0xff] }
 0xfff   : > { %3477 = vmatpush2.msra.mxu1 %v8500_v5  ;;  %v8554_v5 = vld [vmem:[#allocation2 + $0x11b8] sm:$0xff] }
0x1000   : > { %3478 = vmatprep.subr.mxu1 %v8501_v49  ;;  %v8555_v49 = vld [vmem:[#allocation2 + $0x11b0] sm:$0xff] }
0x1001   : > { %3479 = vmatpush2.msra.mxu1 %v8502_v7  ;;  %v8556_v7 = vld [vmem:[#allocation2 + $0x11a8] sm:$0xff] }
0x1002   : > { %3480 = vmatprep.subr.mxu1 %v8503_v11  ;;  %v8557_v11 = vld [vmem:[#allocation2 + $0x11a0] sm:$0xff] }
0x1003   : > { %3481 = vmatpush2.msra.mxu1 %v8504_v12  ;;  %v8558_v12 = vld [vmem:[#allocation2 + $0x1198] sm:$0xff] }
0x1004   : > { %3482 = vmatprep.subr.mxu1 %v8505_v13  ;;  %v8559_v13 = vld [vmem:[#allocation2 + $0x1190] sm:$0xff] }
0x1005   : > { %3483 = vmatpush2.msra.mxu1 %v8506_v14  ;;  %v8560_v14 = vld [vmem:[#allocation2 + $0x1188] sm:$0xff] }
0x1006   : > { %3484 = vmatprep.subr.mxu1 %v8507_v15  ;;  %v8561_v15 = vld [vmem:[#allocation2 + $0x1180] sm:$0xff] }
0x1007   : > { %3485 = vmatpush2.msra.mxu1 %v8508_v58  ;;  %v8562_v58 = vld [vmem:[#allocation2 + $0x1178] sm:$0xff] }
0x1008   : > { %3486 = vmatprep.subr.mxu1 %v8509_v18  ;;  %v8563_v18 = vld [vmem:[#allocation2 + $0x1170] sm:$0xff] }
0x1009   : > { %3487 = vmatpush2.msra.mxu1 %v8510_v41  ;;  %v8564_v41 = vld [vmem:[#allocation2 + $0x1168] sm:$0xff] }
0x100a   : > { %3488 = vmatprep.subr.mxu1 %v8511_v19  ;;  %v8565_v19 = vld [vmem:[#allocation2 + $0x1160] sm:$0xff] }
0x100b   : > { %3489 = vmatpush2.msra.mxu1 %v8512_v62  ;;  %v8566_v62 = vld [vmem:[#allocation2 + $0x1158] sm:$0xff] }
0x100c   : > { %3491 = vmatmul.mubr.f32.vlgmr.msra.gmra.mxu1 %v10212_v6 }
0x100d   : > { %3717 = vmatprep.mubr.f32.mxu1 %v9843_v4 }
0x108c   : > { %v3419_v22 = vpop.f32.mrf.mxu1 }
0x108d   : > { %v10230_v24 = vadd.f32 %v3419_v22, %v10217_v51  ;;  %v8516_v51 = vld [vmem:[#allocation2 + $0x10e8] sm:$0xff]  ;;  %v8567_v22 = vld [vmem:[#allocation2 + $0x1150] sm:$0xff] }
0x108e   : > { %v3421_v25 = vpop.f32.mrf.mxu1 }
0x108f   : > { %v10233_v27 = vadd.f32 %v3421_v25, %v10220_v9  ;;  %v8518_v9 = vld [vmem:[#allocation2 + $0x10d8] sm:$0xff]  ;;  %v8568_v25 = vld [vmem:[#allocation2 + $0x1148] sm:$0xff] }
0x10cc   : > { %v3492_v1 = vpop.f32.mrf.mxu1 }
0x10ce   : > { %v3494_v31 = vpop.f32.mrf.mxu1 }
0x10cf   : > { %7865 = vmatprep.subr.msk.mxu0 %vm519_vm0, %v3494_v31  ;;  %v8570_v31 = vld [vmem:[#allocation2 + $0x1138] sm:$0xff] }
0x10d0   : > { %7866 = vmatpush1.msk.msra.mxu0 %vm519_vm0, %v3492_v1  ;;  %v8569_v1 = vld [vmem:[#allocation2 + $0x1140] sm:$0xff] }
0x10d1   : > { %7867 = vmatmul.mubr.msk.f32.vlgmr.msra.gmra.mxu0 %vm515_vm1, %v8513_v2  ;;  %3576 = vmatprep.subr.mxu0 %v8514_v29  ;;  %v8571_v2 = vld [vmem:[#allocation2 + $0x1130] sm:$0xff]  ;;  %v8572_v29 = vld [vmem:[#allocation2 + $0x1128] sm:$0xff] }
0x10d2   : > { %3577 = vmatpush1.msra.mxu0 %v8515_v30  ;;  %3640 = vmatprep.mubr.f32.mxu0 %v10115_v26  ;;  %v8526_v26 = vld [vmem:[#allocation2 + $0x1098] sm:$0xff]  ;;  %v8573_v30 = vld [vmem:[#allocation2 + $0x1120] sm:$0xff] }
0x10d3   : > { %3578 = vmatprep.subr.mxu0 %v8516_v51  ;;  %v8574_v51 = vld [vmem:[#allocation2 + $0x1118] sm:$0xff] }
0x10d4   : > { %3579 = vmatpush1.msra.mxu0 %v8517_v47  ;;  %v8575_v47 = vld [vmem:[#allocation2 + $0x1110] sm:$0xff] }
0x10d5   : > { %3580 = vmatprep.subr.mxu0 %v8518_v9  ;;  %v8576_v9 = vld [vmem:[#allocation2 + $0x1108] sm:$0xff] }
0x10d6   : > { %3581 = vmatpush1.msra.mxu0 %v8519_v32  ;;  %v8577_v32 = vld [vmem:[#allocation2 + $0x1100] sm:$0xff] }
0x10d7   : > { %3582 = vmatprep.subr.mxu0 %v8520_v10 }
0x10d8   : > { %3583 = vmatpush1.msra.mxu0 %v8521_v37 }
0x10d9   : > { %3584 = vmatprep.subr.mxu0 %v8522_v38 }
0x10da   : > { %3585 = vmatpush1.msra.mxu0 %v8523_v40 }
0x10db   : > { %3586 = vmatprep.subr.mxu0 %v8524_v21 }
0x10dc   : > { %3587 = vmatpush1.msra.mxu0 %v8525_v23 }
0x10dd   : > { %3588 = vmatprep.subr.mxu0 %v8526_v26  ;;  %v8578_v26 = vld [vmem:[%s9960_s8 + $0x20] sm:$0xf] }
0x10de   : > { %3589 = vmatpush1.msra.mxu0 %v8527_v60 }
0x10df   : > { %3590 = vmatprep.subr.mxu0 %v8528_v28 }
0x10e0   : > { %3591 = vmatpush1.msra.mxu0 %v8529_v20 }
0x10e1   : > { %3592 = vmatprep.subr.mxu0 %v8530_v42 }
0x10e2   : > { %3593 = vmatpush1.msra.mxu0 %v8531_v43 }
0x10e3   : > { %3594 = vmatprep.subr.mxu0 %v8532_v44 }
0x10e4   : > { %3595 = vmatpush1.msra.mxu0 %v8533_v17 }
0x10e5   : > { %3596 = vmatprep.subr.mxu0 %v8534_v50 }
0x10e6   : > { %3597 = vmatpush1.msra.mxu0 %v8535_v52 }
0x10e7   : > { %3598 = vmatprep.subr.mxu0 %v8536_v53  ;;  %v3898_v53 = vld [vmem:[#allocation4 + $0x3c8] sm:$0xff] }
0x10e8   : > { %3599 = vmatpush1.msra.mxu0 %v8537_v54  ;;  %v3900_v54 = vld [vmem:[#allocation4 + $0x3d8] sm:$0xff] }
0x10e9   : > { %3600 = vmatprep.subr.mxu0 %v8538_v33  ;;  %v3897_v33 = vld [vmem:[#allocation4 + $0x3c0] sm:$0xff] }
0x10ea   : > { %3601 = vmatpush1.msra.mxu0 %v8539_v8  ;;  %v3899_v8 = vld [vmem:[#allocation4 + $0x3d0] sm:$0xff] }
0x10eb   : > { %3602 = vmatprep.subr.mxu0 %v8540_v55  ;;  %v3890_v55 = vld [vmem:[#allocation4 + $0x388] sm:$0xff] }
0x10ec   : > { %3603 = vmatpush1.msra.mxu0 %v8541_v34  ;;  %v3892_v34 = vld [vmem:[#allocation4 + $0x398] sm:$0xff] }
0x10ed   : > { %3604 = vmatprep.subr.mxu0 %v8542_v35  ;;  %v3889_v35 = vld [vmem:[#allocation4 + $0x380] sm:$0xff] }
0x10ee   : > { %3605 = vmatpush1.msra.mxu0 %v8543_v56  ;;  %v3891_v56 = vld [vmem:[#allocation4 + $0x390] sm:$0xff] }
0x10ef   : > { %3606 = vmatprep.subr.mxu0 %v8544_v57  ;;  %v3882_v57 = vld [vmem:[#allocation4 + $0x348] sm:$0xff] }
0x10f0   : > { %3607 = vmatpush1.msra.mxu0 %v8545_v39  ;;  %v3884_v39 = vld [vmem:[#allocation4 + $0x358] sm:$0xff] }
0x10f1   : > { %3608 = vmatprep.subr.mxu0 %v8546_v59  ;;  %v3881_v59 = vld [vmem:[#allocation4 + $0x340] sm:$0xff] }
0x10f2   : > { %3609 = vmatpush2.msra.mxu0 %v8547_v61  ;;  %v3883_v61 = vld [vmem:[#allocation4 + $0x350] sm:$0xff] }
0x10f3   : > { %3610 = vmatprep.subr.mxu0 %v8548_v63  ;;  %v3874_v63 = vld [vmem:[#allocation4 + $0x308] sm:$0xff] }
0x10f4   : > { %3611 = vmatpush2.msra.mxu0 %v8549_v36  ;;  %v3876_v36 = vld [vmem:[#allocation4 + $0x318] sm:$0xff] }
0x10f5   : > { %3612 = vmatprep.subr.mxu0 %v8550_v0  ;;  %v3873_v0 = vld [vmem:[#allocation4 + $0x300] sm:$0xff] }
0x10f6   : > { %3613 = vmatpush2.msra.mxu0 %v8551_v16  ;;  %v3875_v16 = vld [vmem:[#allocation4 + $0x310] sm:$0xff] }
0x10f7   : > { %3614 = vmatprep.subr.mxu0 %v8552_v3  ;;  %v3866_v3 = vld [vmem:[#allocation4 + $0x2c8] sm:$0xff] }
0x10f8   : > { %3615 = vmatpush2.msra.mxu0 %v8553_v48  ;;  %v3868_v48 = vld [vmem:[#allocation4 + $0x2d8] sm:$0xff] }
0x10f9   : > { %3616 = vmatprep.subr.mxu0 %v8554_v5  ;;  %v3865_v5 = vld [vmem:[#allocation4 + $0x2c0] sm:$0xff] }
0x10fa   : > { %3617 = vmatpush2.msra.mxu0 %v8555_v49  ;;  %v3867_v49 = vld [vmem:[#allocation4 + $0x2d0] sm:$0xff] }
0x10fb   : > { %3618 = vmatprep.subr.mxu0 %v8556_v7  ;;  %v3858_v7 = vld [vmem:[#allocation4 + $0x288] sm:$0xff] }
0x10fc   : > { %3619 = vmatpush2.msra.mxu0 %v8557_v11  ;;  %v3860_v11 = vld [vmem:[#allocation4 + $0x298] sm:$0xff] }
0x10fd   : > { %3620 = vmatprep.subr.mxu0 %v8558_v12  ;;  %v3857_v12 = vld [vmem:[#allocation4 + $0x280] sm:$0xff] }
0x10fe   : > { %3621 = vmatpush2.msra.mxu0 %v8559_v13  ;;  %v3859_v13 = vld [vmem:[#allocation4 + $0x290] sm:$0xff] }
0x10ff   : > { %3622 = vmatprep.subr.mxu0 %v8560_v14  ;;  %v3850_v14 = vld [vmem:[#allocation4 + $0x248] sm:$0xff] }
0x1100   : > { %3623 = vmatpush2.msra.mxu0 %v8561_v15  ;;  %v3852_v15 = vld [vmem:[#allocation4 + $0x258] sm:$0xff] }
0x1101   : > { %3624 = vmatprep.subr.mxu0 %v8562_v58  ;;  %v3849_v58 = vld [vmem:[#allocation4 + $0x240] sm:$0xff] }
0x1102   : > { %3625 = vmatpush2.msra.mxu0 %v8563_v18  ;;  %v3851_v18 = vld [vmem:[#allocation4 + $0x250] sm:$0xff] }
0x1103   : > { %3626 = vmatprep.subr.mxu0 %v8564_v41  ;;  %v3842_v41 = vld [vmem:[#allocation4 + $0x208] sm:$0xff] }
0x1104   : > { %3627 = vmatpush2.msra.mxu0 %v8565_v19  ;;  %v3844_v19 = vld [vmem:[#allocation4 + $0x218] sm:$0xff] }
0x1105   : > { %3628 = vmatprep.subr.mxu0 %v8566_v62  ;;  %v3841_v62 = vld [vmem:[#allocation4 + $0x200] sm:$0xff] }
0x1106   : > { %3629 = vmatpush2.msra.mxu0 %v8567_v22  ;;  %v3843_v22 = vld [vmem:[#allocation4 + $0x210] sm:$0xff] }
0x1107   : > { %3630 = vmatprep.subr.mxu0 %v8568_v25  ;;  %v3834_v25 = vld [vmem:[#allocation4 + $0x1c8] sm:$0xff] }
0x1108   : > { %3631 = vmatpush2.msra.mxu0 %v8569_v1  ;;  %v3836_v1 = vld [vmem:[#allocation4 + $0x1d8] sm:$0xff] }
0x1109   : > { %3632 = vmatprep.subr.mxu0 %v8570_v31  ;;  %v3833_v31 = vld [vmem:[#allocation4 + $0x1c0] sm:$0xff] }
0x110a   : > { %3633 = vmatpush2.msra.mxu0 %v8571_v2  ;;  %v3835_v2 = vld [vmem:[#allocation4 + $0x1d0] sm:$0xff] }
0x110b   : > { %3634 = vmatprep.subr.mxu0 %v8572_v29  ;;  %v3826_v29 = vld [vmem:[#allocation4 + $0x188] sm:$0xff] }
0x110c   : > { %3635 = vmatpush2.msra.mxu0 %v8573_v30  ;;  %v3828_v30 = vld [vmem:[#allocation4 + $0x198] sm:$0xff] }
0x110d   : > { %3636 = vmatprep.subr.mxu0 %v8574_v51  ;;  %v3825_v51 = vld [vmem:[#allocation4 + $0x180] sm:$0xff] }
0x110e   : > { %3637 = vmatpush2.msra.mxu0 %v8575_v47  ;;  %v3827_v47 = vld [vmem:[#allocation4 + $0x190] sm:$0xff] }
0x110f   : > { %3638 = vmatprep.subr.mxu0 %v8576_v9  ;;  %v3818_v9 = vld [vmem:[#allocation4 + $0x148] sm:$0xff] }
0x1110   : > { %3639 = vmatpush2.msra.mxu0 %v8577_v32  ;;  %v3820_v32 = vld [vmem:[#allocation4 + $0x158] sm:$0xff] }
0x1111   : > { %3641 = vmatmul.mubr.f32.vlgmr.msra.gmra.mxu0 %v10212_v6  ;;  %4104 = vmatprep.subr.mxu0 %v3900_v54  ;;  %v3778_v54 = vld [vmem:[#allocation4 + $0x8] sm:$0xff] }
0x1112   : > { %4105 = vmatpush1.msra.mxu0 %v3899_v8  ;;  %v3777_v8 = vld [vmem:[#allocation4] sm:$0xff] }
0x1113   : > { %4106 = vmatprep.subr.mxu0 %v3892_v34  ;;  %v4026_v34 = vld [vmem:[#allocation4 + $0x7c8] sm:$0xff] }
0x1114   : > { %4107 = vmatpush1.msra.mxu0 %v3891_v56  ;;  %v4025_v56 = vld [vmem:[#allocation4 + $0x7c0] sm:$0xff] }
0x1115   : > { %4108 = vmatprep.subr.mxu0 %v3884_v39  ;;  %v4018_v39 = vld [vmem:[#allocation4 + $0x788] sm:$0xff] }
0x1116   : > { %4109 = vmatpush1.msra.mxu0 %v3883_v61  ;;  %v4017_v61 = vld [vmem:[#allocation4 + $0x780] sm:$0xff] }
0x1117   : > { %4110 = vmatprep.subr.mxu0 %v3876_v36  ;;  %v4010_v36 = vld [vmem:[#allocation4 + $0x748] sm:$0xff] }
0x1118   : > { %4111 = vmatpush1.msra.mxu0 %v3875_v16  ;;  %v4009_v16 = vld [vmem:[#allocation4 + $0x740] sm:$0xff] }
0x1119   : > { %4112 = vmatprep.subr.mxu0 %v3868_v48  ;;  %v4002_v48 = vld [vmem:[#allocation4 + $0x708] sm:$0xff] }
0x111a   : > { %4113 = vmatpush1.msra.mxu0 %v3867_v49  ;;  %v4001_v49 = vld [vmem:[#allocation4 + $0x700] sm:$0xff] }
0x111b   : > { %4114 = vmatprep.subr.mxu0 %v3860_v11  ;;  %v3994_v11 = vld [vmem:[#allocation4 + $0x6c8] sm:$0xff] }
0x111c   : > { %4115 = vmatpush1.msra.mxu0 %v3859_v13  ;;  %v3993_v13 = vld [vmem:[#allocation4 + $0x6c0] sm:$0xff] }
0x111d   : > { %4116 = vmatprep.subr.mxu0 %v3852_v15  ;;  %v3986_v15 = vld [vmem:[#allocation4 + $0x688] sm:$0xff] }
0x111e   : > { %4117 = vmatpush1.msra.mxu0 %v3851_v18  ;;  %v3985_v18 = vld [vmem:[#allocation4 + $0x680] sm:$0xff] }
0x111f   : > { %4118 = vmatprep.subr.mxu0 %v3844_v19  ;;  %v3978_v19 = vld [vmem:[#allocation4 + $0x648] sm:$0xff] }
0x1120   : > { %4119 = vmatpush1.msra.mxu0 %v3843_v22  ;;  %v3977_v22 = vld [vmem:[#allocation4 + $0x640] sm:$0xff] }
0x1121   : > { %4120 = vmatprep.subr.mxu0 %v3836_v1  ;;  %v3970_v1 = vld [vmem:[#allocation4 + $0x608] sm:$0xff] }
0x1122   : > { %4121 = vmatpush1.msra.mxu0 %v3835_v2  ;;  %v3969_v2 = vld [vmem:[#allocation4 + $0x600] sm:$0xff] }
0x1123   : > { %4122 = vmatprep.subr.mxu0 %v3828_v30  ;;  %v3962_v30 = vld [vmem:[#allocation4 + $0x5c8] sm:$0xff] }
0x1124   : > { %4123 = vmatpush1.msra.mxu0 %v3827_v47  ;;  %v3961_v47 = vld [vmem:[#allocation4 + $0x5c0] sm:$0xff] }
0x1125   : > { %4124 = vmatprep.subr.mxu0 %v3820_v32  ;;  %v3954_v32 = vld [vmem:[#allocation4 + $0x588] sm:$0xff] }
0x1191   : > { %v3569_v10 = vpop.f32.mrf.mxu0 }
0x1192   : > { %v3574_v37 = vadd.f32 %v3569_v10, %v10230_v24  ;;  %v3817_v10 = vld [vmem:[#allocation4 + $0x140] sm:$0xff] }
0x1193   : > { %v3571_v38 = vpop.f32.mrf.mxu0 }
0x1194   : > { %v3575_v40 = vadd.f32 %v3571_v38, %v10233_v27  ;;  %v3810_v38 = vld [vmem:[#allocation4 + $0x108] sm:$0xff] }
0x11d1   : > { %v3642_v21 = vpop.f32.mrf.mxu0 }
0x11d3   : > { %v3644_v23 = vpop.f32.mrf.mxu0 }
0x11d4   : > { %7868 = vmatprep.subr.msk.mxu1 %vm519_vm0, %v3644_v23  ;;  %v3811_v23 = vld [vmem:[#allocation4 + $0x110] sm:$0xff] }
0x11d5   : > { %7869 = vmatpush1.msk.msra.mxu1 %vm519_vm0, %v3642_v21  ;;  %v3809_v21 = vld [vmem:[#allocation4 + $0x100] sm:$0xff] }
0x11d6   : > { %7870 = vmatmul.mubr.msk.f32.vlgmr.msra.gmra.mxu1 %vm515_vm1, %v8578_v26  ;;  %4033 = vmatprep.subr.mxu1 %v3898_v53  ;;  %v3802_v26 = vld [vmem:[#allocation4 + $0xc8] sm:$0xff]  ;;  %v3787_v53 = vld [vmem:[#allocation4 + $0x50] sm:$0xff] }
0x11d7   : > { %4034 = vmatpush1.msra.mxu1 %v3897_v33  ;;  %v3780_v33 = vld [vmem:[#allocation4 + $0x18] sm:$0xff] }
0x11d8   : > { %4035 = vmatprep.subr.mxu1 %v3890_v55  ;;  %v3779_v55 = vld [vmem:[#allocation4 + $0x10] sm:$0xff] }
0x11d9   : > { %4036 = vmatpush1.msra.mxu1 %v3889_v35  ;;  %v4028_v35 = vld [vmem:[#allocation4 + $0x7d8] sm:$0xff] }
0x11da   : > { %4037 = vmatprep.subr.mxu1 %v3882_v57  ;;  %v4027_v57 = vld [vmem:[#allocation4 + $0x7d0] sm:$0xff] }
0x11db   : > { %4038 = vmatpush1.msra.mxu1 %v3881_v59  ;;  %v4020_v59 = vld [vmem:[#allocation4 + $0x798] sm:$0xff] }
0x11dc   : > { %4039 = vmatprep.subr.mxu1 %v3874_v63  ;;  %v4019_v63 = vld [vmem:[#allocation4 + $0x790] sm:$0xff] }
0x11dd   : > { %4040 = vmatpush1.msra.mxu1 %v3873_v0  ;;  %v4012_v0 = vld [vmem:[#allocation4 + $0x758] sm:$0xff] }
0x11de   : > { %4041 = vmatprep.subr.mxu1 %v3866_v3  ;;  %v4011_v3 = vld [vmem:[#allocation4 + $0x750] sm:$0xff] }
0x11df   : > { %4042 = vmatpush1.msra.mxu1 %v3865_v5  ;;  %v4004_v5 = vld [vmem:[#allocation4 + $0x718] sm:$0xff] }
0x11e0   : > { %4043 = vmatprep.subr.mxu1 %v3858_v7  ;;  %v4003_v7 = vld [vmem:[#allocation4 + $0x710] sm:$0xff] }
0x11e1   : > { %4044 = vmatpush1.msra.mxu1 %v3857_v12  ;;  %v3996_v12 = vld [vmem:[#allocation4 + $0x6d8] sm:$0xff] }
0x11e2   : > { %4045 = vmatprep.subr.mxu1 %v3850_v14  ;;  %v3995_v14 = vld [vmem:[#allocation4 + $0x6d0] sm:$0xff] }
0x11e3   : > { %4046 = vmatpush1.msra.mxu1 %v3849_v58  ;;  %v3988_v58 = vld [vmem:[#allocation4 + $0x698] sm:$0xff] }
0x11e4   : > { %4047 = vmatprep.subr.mxu1 %v3842_v41  ;;  %v3987_v41 = vld [vmem:[#allocation4 + $0x690] sm:$0xff] }
0x11e5   : > { %4048 = vmatpush1.msra.mxu1 %v3841_v62  ;;  %v3980_v62 = vld [vmem:[#allocation4 + $0x658] sm:$0xff] }
0x11e6   : > { %4049 = vmatprep.subr.mxu1 %v3834_v25  ;;  %v3979_v25 = vld [vmem:[#allocation4 + $0x650] sm:$0xff] }
0x11e7   : > { %4050 = vmatpush1.msra.mxu1 %v3833_v31  ;;  %v3972_v31 = vld [vmem:[#allocation4 + $0x618] sm:$0xff] }
0x11e8   : > { %4051 = vmatprep.subr.mxu1 %v3826_v29  ;;  %v3971_v29 = vld [vmem:[#allocation4 + $0x610] sm:$0xff] }
0x11e9   : > { %4052 = vmatpush1.msra.mxu1 %v3825_v51  ;;  %v3964_v51 = vld [vmem:[#allocation4 + $0x5d8] sm:$0xff] }
0x11ea   : > { %4053 = vmatprep.subr.mxu1 %v3818_v9  ;;  %v3963_v9 = vld [vmem:[#allocation4 + $0x5d0] sm:$0xff] }
0x11eb   : > { %4054 = vmatpush1.msra.mxu1 %v3817_v10  ;;  %v3956_v10 = vld [vmem:[#allocation4 + $0x598] sm:$0xff] }
0x11ec   : > { %4055 = vmatprep.subr.mxu1 %v3810_v38  ;;  %v3955_v38 = vld [vmem:[#allocation4 + $0x590] sm:$0xff] }
0x11ed   : > { %4056 = vmatpush1.msra.mxu1 %v3809_v21  ;;  %v3948_v21 = vld [vmem:[#allocation4 + $0x558] sm:$0xff] }
0x11ee   : > { %4057 = vmatprep.subr.mxu1 %v3802_v26  ;;  %v3947_v26 = vld [vmem:[#allocation4 + $0x550] sm:$0xff] }
0x1296   : > { %v3719_v60 = vpop.f32.mrf.mxu1 }
0x1297   : > { %v10247_v28 = vadd.f32 %v3719_v60, %v3574_v37  ;;  %v3819_v37 = vld [vmem:[#allocation4 + $0x150] sm:$0xff]  ;;  %v3804_v60 = vld [vmem:[#allocation4 + $0xd8] sm:$0xff] }
0x1298   : > { %v3721_v20 = vpop.f32.mrf.mxu1  ;;  %4125 = vmatpush1.msra.mxu0 %v3819_v37  ;;  %v3953_v37 = vld [vmem:[#allocation4 + $0x580] sm:$0xff] }
0x1299   : > { %v10249_v6 = vadd.f32 %v3721_v20, %v3575_v40  ;;  %v3726_v24 = vsel %vm519_vm0, %v10247_v28, 0.0  ;;  %v3732_v42 = vmul.f32 %v10247_v28, %v10247_v28  ;;  %v3812_v40 = vld [vmem:[#allocation4 + $0x118] sm:$0xff]  ;;  %v3801_v20 = vld [vmem:[#allocation4 + $0xc0] sm:$0xff] }
0x129a   : > { %4126 = vmatprep.subr.mxu0 %v3812_v40  ;;  %4058 = vmatpush1.msra.mxu1 %v3801_v20  ;;  %v3946_v40 = vld [vmem:[#allocation4 + $0x548] sm:$0xff]  ;;  %v3940_v20 = vld [vmem:[#allocation4 + $0x518] sm:$0xff] }
0x129b   : > { %v3727_v27 = vsel %vm519_vm0, %v10249_v6, 0.0  ;;  %v3733_v43 = vmul.f32 %v10249_v6, %v10249_v6  ;;  %v3734_v50 = vsel %vm519_vm0, %v3732_v42, 0.0  ;;  %4127 = vmatpush1.msra.mxu0 %v3811_v23  ;;  %v3796_v42 = vld [vmem:[#allocation4 + $0x98] sm:$0xff]  ;;  %v3945_v23 = vld [vmem:[#allocation4 + $0x540] sm:$0xff] }
0x129c   : > { %v3728_v44 = vadd.f32 %v3727_v27, %v3726_v24  ;;  %v3803_v24 = vld [vmem:[#allocation4 + $0xd0] sm:$0xff]  ;;  %v3794_v27 = vld [vmem:[#allocation4 + $0x88] sm:$0xff]  ;;  %4128 = vmatprep.subr.mxu0 %v3804_v60 }
0x129d   : > { %v3735_v17 = vsel %vm519_vm0, %v3733_v43, 0.0  ;;  %v3793_v43 = vld [vmem:[#allocation4 + $0x80] sm:$0xff]  ;;  %4129 = vmatpush1.msra.mxu0 %v3803_v24  ;;  %4059 = vmatprep.subr.mxu1 %v3794_v27  ;;  %v3938_v60 = vld [vmem:[#allocation4 + $0x508] sm:$0xff]  ;;  %v2371_v24 = vpop.xlane.xlu1 %2370  ;;  %v2363_v27 = vpop.xlane.xlu0 %2362 }
0x129e   : > { %3729 = vadd.xlane.f32.xlu1 %v3728_v44  ;;  %v3736_v52 = vadd.f32 %v3735_v17, %v3734_v50  ;;  %v3795_v44 = vld [vmem:[#allocation4 + $0x90] sm:$0xff]  ;;  %v3786_v17 = vld [vmem:[#allocation4 + $0x48] sm:$0xff]  ;;  %v3788_v50 = vld [vmem:[#allocation4 + $0x58] sm:$0xff]  ;;  %4130 = vmatprep.subr.mxu0 %v3796_v42 }
0x129f   : > { %4060 = vmatpush1.msra.mxu1 %v3793_v43  ;;  %4131 = vmatpush1.msra.mxu0 %v3795_v44 }
0x12a0   : > { %4061 = vmatprep.subr.mxu1 %v3786_v17  ;;  %4132 = vmatprep.subr.mxu0 %v3788_v50 }
0x12a1   : > { %4133 = vmatpush1.msra.mxu0 %v3787_v53 }
0x12a2   : > { %3737 = vadd.xlane.f32.xlu1 %v3736_v52  ;;  %v3785_v52 = vld [vmem:[#allocation4 + $0x40] sm:$0xff]  ;;  %4134 = vmatprep.subr.mxu0 %v3780_v33 }
0x12a3   : > { %4062 = vmatpush1.msra.mxu1 %v3785_v52  ;;  %4135 = vmatpush1.msra.mxu0 %v3779_v55  ;;  %v3937_v55 = vld [vmem:[#allocation4 + $0x500] sm:$0xff] }
0x12a4   : > { %4063 = vmatprep.subr.mxu1 %v3778_v54  ;;  %4136 = vmatprep.subr.mxu0 %v4028_v35  ;;  %v3930_v35 = vld [vmem:[#allocation4 + $0x4c8] sm:$0xff] }
0x12a5   : > { %4064 = vmatpush1.msra.mxu1 %v3777_v8  ;;  %4137 = vmatpush2.msra.mxu0 %v4027_v57  ;;  %v7803_v8 = vld [vmem:[%s9970_s14 + $0x4] sm:$0xf]  ;;  %v3932_v57 = vld [vmem:[#allocation4 + $0x4d8] sm:$0xff] }
0x12a6   : > { %4065 = vmatprep.subr.mxu1 %v4026_v34  ;;  %4138 = vmatprep.subr.mxu0 %v4020_v59  ;;  %v3939_v34 = vld [vmem:[#allocation4 + $0x510] sm:$0xff] }
0x12a7   : > { %4066 = vmatpush2.msra.mxu1 %v4025_v56  ;;  %4139 = vmatpush2.msra.mxu0 %v4019_v63  ;;  %v3931_v59 = vld [vmem:[#allocation4 + $0x4d0] sm:$0xff]  ;;  %v3922_v63 = vld [vmem:[#allocation4 + $0x488] sm:$0xff] }
0x12a8   : > { %4067 = vmatprep.subr.mxu1 %v4018_v39  ;;  %4140 = vmatprep.subr.mxu0 %v4012_v0  ;;  %v3929_v39 = vld [vmem:[#allocation4 + $0x4c0] sm:$0xff] }
0x12a9   : > { %4068 = vmatpush2.msra.mxu1 %v4017_v61  ;;  %4141 = vmatpush2.msra.mxu0 %v4011_v3  ;;  %v3921_v0 = vld [vmem:[#allocation4 + $0x480] sm:$0xff]  ;;  %v7804_v3 = vld [vmem:[%s9970_s14 + $0x8] sm:$0xf] }
0x12aa   : > { %4069 = vmatprep.subr.mxu1 %v4010_v36  ;;  %4142 = vmatprep.subr.mxu0 %v4004_v5  ;;  %v3924_v36 = vld [vmem:[#allocation4 + $0x498] sm:$0xff] }
0x12ab   : > { %4070 = vmatpush2.msra.mxu1 %v4009_v16  ;;  %4143 = vmatpush2.msra.mxu0 %v4003_v7  ;;  %v3923_v16 = vld [vmem:[#allocation4 + $0x490] sm:$0xff]  ;;  %v3916_v5 = vld [vmem:[#allocation4 + $0x458] sm:$0xff] }
0x12ac   : > { %4071 = vmatprep.subr.mxu1 %v4002_v48  ;;  %4144 = vmatprep.subr.mxu0 %v3996_v12  ;;  %v3914_v48 = vld [vmem:[#allocation4 + $0x448] sm:$0xff]  ;;  %v3915_v7 = vld [vmem:[#allocation4 + $0x450] sm:$0xff]  ;;  %v3908_v12 = vld [vmem:[#allocation4 + $0x418] sm:$0xff] }
0x12ad   : > { %4072 = vmatpush2.msra.mxu1 %v4001_v49  ;;  %4145 = vmatpush2.msra.mxu0 %v3995_v14  ;;  %v3913_v49 = vld [vmem:[#allocation4 + $0x440] sm:$0xff]  ;;  %v3907_v14 = vld [vmem:[#allocation4 + $0x410] sm:$0xff] }
0x12ae   : > { %4073 = vmatprep.subr.mxu1 %v3994_v11  ;;  %4146 = vmatprep.subr.mxu0 %v3988_v58  ;;  %v3906_v11 = vld [vmem:[#allocation4 + $0x408] sm:$0xff] }
0x12af   : > { %4074 = vmatpush2.msra.mxu1 %v3993_v13  ;;  %4147 = vmatpush2.msra.mxu0 %v3987_v41  ;;  %v3905_v13 = vld [vmem:[#allocation4 + $0x400] sm:$0xff]  ;;  %v3902_v58 = vld [vmem:[#allocation4 + $0x3e8] sm:$0xff] }
0x12b0   : > { %4075 = vmatprep.subr.mxu1 %v3986_v15  ;;  %4148 = vmatprep.subr.mxu0 %v3980_v62  ;;  %v7805_v15 = vld [vmem:[%s9970_s14 + $0xc] sm:$0xf] }
0x12b1   : > { %4076 = vmatpush2.msra.mxu1 %v3985_v18  ;;  %4149 = vmatpush2.msra.mxu0 %v3979_v25  ;;  %v3904_v18 = vld [vmem:[#allocation4 + $0x3f8] sm:$0xff] }
0x12b2   : > { %4077 = vmatprep.subr.mxu1 %v3978_v19  ;;  %4150 = vmatprep.subr.mxu0 %v3972_v31 }
0x12b3   : > { %4078 = vmatpush2.msra.mxu1 %v3977_v22  ;;  %4151 = vmatpush2.msra.mxu0 %v3971_v29 }
0x12b4   : > { %4079 = vmatprep.subr.mxu1 %v3970_v1  ;;  %4152 = vmatprep.subr.mxu0 %v3964_v51 }
0x12b5   : > { %4080 = vmatpush2.msra.mxu1 %v3969_v2  ;;  %4153 = vmatpush2.msra.mxu0 %v3963_v9 }
0x12b6   : > { %4081 = vmatprep.subr.mxu1 %v3962_v30  ;;  %4154 = vmatprep.subr.mxu0 %v3956_v10 }
0x12b7   : > { %4082 = vmatpush2.msra.mxu1 %v3961_v47  ;;  %4155 = vmatpush2.msra.mxu0 %v3955_v38  ;;  %v3903_v38 = vld [vmem:[#allocation4 + $0x3f0] sm:$0xff] }
0x12b8   : > { %4083 = vmatprep.subr.mxu1 %v3954_v32  ;;  %4156 = vmatprep.subr.mxu0 %v3948_v21  ;;  %v3893_v21 = vld [vmem:[#allocation4 + $0x3a0] sm:$0xff] }
0x12b9   : > { %4084 = vmatpush2.msra.mxu1 %v3953_v37  ;;  %4157 = vmatpush2.msra.mxu0 %v3947_v26  ;;  %v3886_v26 = vld [vmem:[#allocation4 + $0x368] sm:$0xff] }
0x12ba   : > { %4085 = vmatprep.subr.mxu1 %v3946_v40  ;;  %4158 = vmatprep.subr.mxu0 %v3940_v20  ;;  %v3896_v40 = vld [vmem:[#allocation4 + $0x3b8] sm:$0xff]  ;;  %v3885_v20 = vld [vmem:[#allocation4 + $0x360] sm:$0xff] }
0x12bb   : > { %4086 = vmatpush2.msra.mxu1 %v3945_v23  ;;  %4159 = vmatpush2.msra.mxu0 %v3939_v34  ;;  %v3895_v23 = vld [vmem:[#allocation4 + $0x3b0] sm:$0xff]  ;;  %v3854_v34 = vld [vmem:[#allocation4 + $0x268] sm:$0xff] }
0x12bc   : > { %4087 = vmatprep.subr.mxu1 %v3938_v60  ;;  %4160 = vmatprep.subr.mxu0 %v3932_v57  ;;  %v3888_v60 = vld [vmem:[#allocation4 + $0x378] sm:$0xff]  ;;  %v3855_v57 = vld [vmem:[#allocation4 + $0x270] sm:$0xff] }
0x12bd   : > { %4088 = vmatpush2.msra.mxu1 %v3937_v55  ;;  %4161 = vmatpush2.msra.mxu0 %v3931_v59  ;;  %v3863_v55 = vld [vmem:[#allocation4 + $0x2b0] sm:$0xff]  ;;  %v3848_v59 = vld [vmem:[#allocation4 + $0x238] sm:$0xff] }
0x12be   : > { %4089 = vmatprep.subr.mxu1 %v3930_v35  ;;  %4162 = vmatprep.subr.mxu0 %v3924_v36  ;;  %v3856_v35 = vld [vmem:[#allocation4 + $0x278] sm:$0xff]  ;;  %v3838_v36 = vld [vmem:[#allocation4 + $0x1e8] sm:$0xff] }
0x12bf   : > { %4090 = vmatpush2.msra.mxu1 %v3929_v39  ;;  %4163 = vmatpush2.msra.mxu0 %v3923_v16  ;;  %v3846_v39 = vld [vmem:[#allocation4 + $0x228] sm:$0xff]  ;;  %v3837_v16 = vld [vmem:[#allocation4 + $0x1e0] sm:$0xff] }
0x12c0   : > { %4091 = vmatprep.subr.mxu1 %v3922_v63  ;;  %4164 = vmatprep.subr.mxu0 %v3916_v5  ;;  %v3847_v63 = vld [vmem:[#allocation4 + $0x230] sm:$0xff]  ;;  %v3832_v5 = vld [vmem:[#allocation4 + $0x1b8] sm:$0xff] }
0x12c1   : > { %4092 = vmatpush2.msra.mxu1 %v3921_v0  ;;  %4165 = vmatpush2.msra.mxu0 %v3915_v7  ;;  %v3840_v0 = vld [vmem:[#allocation4 + $0x1f8] sm:$0xff]  ;;  %v3831_v7 = vld [vmem:[#allocation4 + $0x1b0] sm:$0xff] }
0x12c2   : > { %4093 = vmatprep.subr.mxu1 %v3914_v48  ;;  %4166 = vmatprep.subr.mxu0 %v3908_v12  ;;  %v3830_v48 = vld [vmem:[#allocation4 + $0x1a8] sm:$0xff]  ;;  %v3824_v12 = vld [vmem:[#allocation4 + $0x178] sm:$0xff] }
0x12c3   : > { %4094 = vmatpush2.msra.mxu1 %v3913_v49  ;;  %4167 = vmatpush2.msra.mxu0 %v3907_v14  ;;  %v3829_v49 = vld [vmem:[#allocation4 + $0x1a0] sm:$0xff]  ;;  %v3823_v14 = vld [vmem:[#allocation4 + $0x170] sm:$0xff] }
0x12c4   : > { %4095 = vmatprep.subr.mxu1 %v3906_v11  ;;  %4246 = vmatprep.subr.mxu0 %v3904_v18  ;;  %v3822_v11 = vld [vmem:[#allocation4 + $0x168] sm:$0xff]  ;;  %v3813_v18 = vld [vmem:[#allocation4 + $0x120] sm:$0xff] }
0x12c5   : > { %4096 = vmatpush2.msra.mxu1 %v3905_v13  ;;  %v3821_v13 = vld [vmem:[#allocation4 + $0x160] sm:$0xff] }
0x12c6   : > { %4175 = vmatprep.subr.mxu1 %v3902_v58  ;;  %v3816_v58 = vld [vmem:[#allocation4 + $0x138] sm:$0xff] }
0x1327   : > { %v3730_v42 = vpop.xlane.xlu1 %3729 }
0x1328   : > { %v3731_v43 = vadd.f32 %v3730_v42, %v2363_v27  ;;  %v3878_v27 = vld [vmem:[#allocation4 + $0x328] sm:$0xff]  ;;  %v3880_v42 = vld [vmem:[#allocation4 + $0x338] sm:$0xff] }
0x132a   : > { %v10261_v44 = vmul.f32 0.001953125, %v3731_v43  ;;  %v3877_v43 = vld [vmem:[#allocation4 + $0x320] sm:$0xff] }
0x132b   : > { %v3738_v17 = vpop.xlane.xlu1 %3737 }
0x132c   : > { %v3739_v50 = vadd.f32 %v3738_v17, %v2371_v24  ;;  %v3742_v53 = vmul.f32 %v10261_v44, %v10261_v44  ;;  %v3763_v19 = vsub.f32 %v10247_v28, %v10261_v44  ;;  %v3764_v62 = vsub.f32 %v10249_v6, %v10261_v44  ;;  %v3887_v24 = vld [vmem:[#allocation4 + $0x370] sm:$0xff]  ;;  %v3870_v17 = vld [vmem:[#allocation4 + $0x2e8] sm:$0xff] }
0x132d   : > { %v3747_v22 = vsub.f32 %v10124_v45, %v10261_v44  ;;  %v3748_v25 = vsub.f32 %v10127_v46, %v10261_v44  ;;  %v3901_v45 = vld [vmem:[#allocation4 + $0x3e0] sm:$0xff]  ;;  %v3894_v46 = vld [vmem:[#allocation4 + $0x3a8] sm:$0xff]  ;;  %v3879_v44 = vld [vmem:[#allocation4 + $0x330] sm:$0xff] }
0x132e   : > { %v3741_v52 = vmul.f32 0.001953125, %v3739_v50  ;;  %v3872_v50 = vld [vmem:[#allocation4 + $0x2f8] sm:$0xff] }
0x1330   : > { %v3743_v54 = vsub.f32 %v3741_v52, %v3742_v53  ;;  %v3869_v52 = vld [vmem:[#allocation4 + $0x2e0] sm:$0xff]  ;;  %v3871_v53 = vld [vmem:[#allocation4 + $0x2f0] sm:$0xff] }
0x1332   : > { %v3744_v33 = vadd.f32 1e-05, %v3743_v54  ;;  %v3862_v54 = vld [vmem:[#allocation4 + $0x2a8] sm:$0xff] }
0x1334   : > { %7987 = vrsqrt.f32 %v3744_v33  ;;  %v3864_v33 = vld [vmem:[#allocation4 + $0x2b8] sm:$0xff] }
0x1341   : > { %v7988_v56 = vpop.eup %7987 }
0x1342   : > { %v3746_v61 = vmul.f32 %v7988_v56, %v7803_v8  ;;  %v3861_v8 = vld [vmem:[#allocation4 + $0x2a0] sm:$0xff] }
0x1343   : > { %v3853_v56 = vld [vmem:[#allocation4 + $0x260] sm:$0xff] }
0x1344   : > { %3751 = vperm.xlu1 %7984, %v3746_v61   ;;  %v3845_v61 = vld [vmem:[#allocation4 + $0x220] sm:$0xff] }
0x1348   : > { %3758 = vperm.xlu1 %7984, %v7804_v3   ;;  %v3839_v3 = vld [vmem:[#allocation4 + $0x1f0] sm:$0xff] }
0x134c   : > { %4883 = vperm.xlu1 %7984, %v7805_v15   ;;  %v3814_v15 = vld [vmem:[#allocation4 + $0x128] sm:$0xff] }
0x13bf   : > { %v3752_v41 = vpop.permute.xlu1 %3751 }
0x13c0   : > { %v3765_v1 = vmul.f32 %v3763_v19, %v3752_v41  ;;  %v3766_v31 = vmul.f32 %v3764_v62, %v3752_v41  ;;  %v3754_v29 = vmul.f32 %v3752_v41, %v3747_v22  ;;  %v3755_v30 = vmul.f32 %v3752_v41, %v3748_v25  ;;  %v3815_v41 = vld [vmem:[#allocation4 + $0x130] sm:$0xff]  ;;  %v3806_v19 = vld [vmem:[#allocation4 + $0xe8] sm:$0xff]  ;;  %v3808_v62 = vld [vmem:[#allocation4 + $0xf8] sm:$0xff] }
0x13c1   : > { %v3805_v22 = vld [vmem:[#allocation4 + $0xe0] sm:$0xff]  ;;  %v3807_v25 = vld [vmem:[#allocation4 + $0xf0] sm:$0xff] }
0x13c3   : > { %v3759_v2 = vpop.permute.xlu1 %3758 }
0x13c4   : > { %v3767_v51 = vadd.f32 %v3765_v1, %v3759_v2  ;;  %v3768_v47 = vadd.f32 %v3766_v31, %v3759_v2  ;;  %v3761_v9 = vadd.f32 %v3759_v2, %v3754_v29  ;;  %v3762_v32 = vadd.f32 %v3759_v2, %v3755_v30  ;;  %v3798_v1 = vld [vmem:[#allocation4 + $0xa8] sm:$0xff]  ;;  %v3800_v31 = vld [vmem:[#allocation4 + $0xb8] sm:$0xff]  ;;  %v3797_v2 = vld [vmem:[#allocation4 + $0xa0] sm:$0xff] }
0x13c5   : > { %v3799_v29 = vld [vmem:[#allocation4 + $0xb0] sm:$0xff]  ;;  %v3790_v30 = vld [vmem:[#allocation4 + $0x68] sm:$0xff] }
0x13c6   : > { %v3771_v10 = vrot.slane %v3767_v51, 4  ;;  %v3772_v28 = vrot.slane %v3768_v47, 4  ;;  %v3792_v51 = vld [vmem:[#allocation4 + $0x78] sm:$0xff]  ;;  %v3789_v47 = vld [vmem:[#allocation4 + $0x60] sm:$0xff] }
0x13c8   : > { %v3776_v37 = vsel %vm519_vm0, %v3762_v32, %v3772_v28  ;;  %v10278_v6 = vsel %vm519_vm0, %v3761_v9, %v3771_v10  ;;  %v3791_v9 = vld [vmem:[#allocation4 + $0x70] sm:$0xff]  ;;  %v3782_v32 = vld [vmem:[#allocation4 + $0x28] sm:$0xff]  ;;  %v3784_v10 = vld [vmem:[#allocation4 + $0x38] sm:$0xff] }
0x13c9   : > { %4097 = vmatprep.mubr.f32.mxu1 %v3776_v37  ;;  %4168 = vmatprep.mubr.f32.mxu0 %v3776_v37  ;;  %v3781_v28 = vld [vmem:[#allocation4 + $0x20] sm:$0xff] }
0x13ca   : > { %4098 = vmatmul.mubr.f32.vlgmr.msra.gmra.mxu1 %v10278_v6  ;;  %4169 = vmatmul.mubr.f32.vlgmr.msra.gmra.mxu0 %v10278_v6 }
0x13cb   : > { %4176 = vmatpush1.msra.mxu1 %v3901_v45  ;;  %4247 = vmatpush1.msra.mxu0 %v3903_v38  ;;  %v4030_v45 = vld [vmem:[#allocation4 + $0x7e8] sm:$0xff]  ;;  %v4032_v38 = vld [vmem:[#allocation4 + $0x7f8] sm:$0xff] }
0x13cc   : > { %4177 = vmatprep.subr.mxu1 %v3894_v46  ;;  %4239 = vmatprep.mubr.f32.mxu1 %v3776_v37  ;;  %v4029_v46 = vld [vmem:[#allocation4 + $0x7e0] sm:$0xff] }
0x13cd   : > { %4248 = vmatprep.subr.mxu0 %v3896_v40  ;;  %4310 = vmatprep.mubr.f32.mxu0 %v3776_v37  ;;  %v3783_v37 = vld [vmem:[#allocation4 + $0x30] sm:$0xff] }
0x13ce   : > { %4178 = vmatpush1.msra.mxu1 %v3893_v21  ;;  %4249 = vmatpush1.msra.mxu0 %v3895_v23  ;;  %v4031_v40 = vld [vmem:[#allocation4 + $0x7f0] sm:$0xff]  ;;  %v4022_v21 = vld [vmem:[#allocation4 + $0x7a8] sm:$0xff]  ;;  %v4024_v23 = vld [vmem:[#allocation4 + $0x7b8] sm:$0xff] }
0x13cf   : > { %4179 = vmatprep.subr.mxu1 %v3886_v26  ;;  %4250 = vmatprep.subr.mxu0 %v3888_v60  ;;  %v4021_v26 = vld [vmem:[#allocation4 + $0x7a0] sm:$0xff]  ;;  %v4023_v60 = vld [vmem:[#allocation4 + $0x7b0] sm:$0xff] }
0x13d0   : > { %4180 = vmatpush1.msra.mxu1 %v3885_v20  ;;  %4251 = vmatpush1.msra.mxu0 %v3887_v24  ;;  %v4014_v20 = vld [vmem:[#allocation4 + $0x768] sm:$0xff]  ;;  %v4016_v24 = vld [vmem:[#allocation4 + $0x778] sm:$0xff] }
0x13d1   : > { %4181 = vmatprep.subr.mxu1 %v3878_v27  ;;  %4252 = vmatprep.subr.mxu0 %v3880_v42  ;;  %v4013_v27 = vld [vmem:[#allocation4 + $0x760] sm:$0xff]  ;;  %v4015_v42 = vld [vmem:[#allocation4 + $0x770] sm:$0xff] }
0x13d2   : > { %4182 = vmatpush1.msra.mxu1 %v3877_v43  ;;  %4253 = vmatpush1.msra.mxu0 %v3879_v44  ;;  %v4006_v43 = vld [vmem:[#allocation4 + $0x728] sm:$0xff]  ;;  %v4008_v44 = vld [vmem:[#allocation4 + $0x738] sm:$0xff] }
0x13d3   : > { %4183 = vmatprep.subr.mxu1 %v3870_v17  ;;  %4254 = vmatprep.subr.mxu0 %v3872_v50  ;;  %v4005_v17 = vld [vmem:[#allocation4 + $0x720] sm:$0xff]  ;;  %v4007_v50 = vld [vmem:[#allocation4 + $0x730] sm:$0xff] }
0x13d4   : > { %4184 = vmatpush1.msra.mxu1 %v3869_v52  ;;  %4255 = vmatpush1.msra.mxu0 %v3871_v53  ;;  %v3998_v52 = vld [vmem:[#allocation4 + $0x6e8] sm:$0xff]  ;;  %v4000_v53 = vld [vmem:[#allocation4 + $0x6f8] sm:$0xff] }
0x13d5   : > { %4185 = vmatprep.subr.mxu1 %v3862_v54  ;;  %4256 = vmatprep.subr.mxu0 %v3864_v33  ;;  %v3997_v54 = vld [vmem:[#allocation4 + $0x6e0] sm:$0xff]  ;;  %v3999_v33 = vld [vmem:[#allocation4 + $0x6f0] sm:$0xff] }
0x13d6   : > { %4186 = vmatpush1.msra.mxu1 %v3861_v8  ;;  %4257 = vmatpush1.msra.mxu0 %v3863_v55  ;;  %v3990_v8 = vld [vmem:[#allocation4 + $0x6a8] sm:$0xff]  ;;  %v3992_v55 = vld [vmem:[#allocation4 + $0x6b8] sm:$0xff] }
0x13d7   : > { %4187 = vmatprep.subr.mxu1 %v3854_v34  ;;  %4258 = vmatprep.subr.mxu0 %v3856_v35  ;;  %v3989_v34 = vld [vmem:[#allocation4 + $0x6a0] sm:$0xff]  ;;  %v3991_v35 = vld [vmem:[#allocation4 + $0x6b0] sm:$0xff] }
0x13d8   : > { %4188 = vmatpush1.msra.mxu1 %v3853_v56  ;;  %4259 = vmatpush1.msra.mxu0 %v3855_v57  ;;  %v3982_v56 = vld [vmem:[#allocation4 + $0x668] sm:$0xff]  ;;  %v3984_v57 = vld [vmem:[#allocation4 + $0x678] sm:$0xff] }
0x13d9   : > { %4189 = vmatprep.subr.mxu1 %v3846_v39  ;;  %4260 = vmatprep.subr.mxu0 %v3848_v59  ;;  %v3981_v39 = vld [vmem:[#allocation4 + $0x660] sm:$0xff]  ;;  %v3983_v59 = vld [vmem:[#allocation4 + $0x670] sm:$0xff] }
0x13da   : > { %4190 = vmatpush1.msra.mxu1 %v3845_v61  ;;  %4261 = vmatpush1.msra.mxu0 %v3847_v63  ;;  %v3974_v61 = vld [vmem:[#allocation4 + $0x628] sm:$0xff]  ;;  %v3976_v63 = vld [vmem:[#allocation4 + $0x638] sm:$0xff] }
0x13db   : > { %4191 = vmatprep.subr.mxu1 %v3838_v36  ;;  %4262 = vmatprep.subr.mxu0 %v3840_v0  ;;  %v3973_v36 = vld [vmem:[#allocation4 + $0x620] sm:$0xff]  ;;  %v3975_v0 = vld [vmem:[#allocation4 + $0x630] sm:$0xff] }
0x13dc   : > { %4192 = vmatpush1.msra.mxu1 %v3837_v16  ;;  %4263 = vmatpush1.msra.mxu0 %v3839_v3  ;;  %v3966_v16 = vld [vmem:[#allocation4 + $0x5e8] sm:$0xff]  ;;  %v3968_v3 = vld [vmem:[#allocation4 + $0x5f8] sm:$0xff] }
0x13dd   : > { %4193 = vmatprep.subr.mxu1 %v3830_v48  ;;  %4264 = vmatprep.subr.mxu0 %v3832_v5  ;;  %v3965_v48 = vld [vmem:[#allocation4 + $0x5e0] sm:$0xff]  ;;  %v3967_v5 = vld [vmem:[#allocation4 + $0x5f0] sm:$0xff] }
0x13de   : > { %4194 = vmatpush1.msra.mxu1 %v3829_v49  ;;  %4265 = vmatpush1.msra.mxu0 %v3831_v7  ;;  %v3958_v49 = vld [vmem:[#allocation4 + $0x5a8] sm:$0xff]  ;;  %v3960_v7 = vld [vmem:[#allocation4 + $0x5b8] sm:$0xff] }
0x13df   : > { %4195 = vmatprep.subr.mxu1 %v3822_v11  ;;  %4266 = vmatprep.subr.mxu0 %v3824_v12  ;;  %v3957_v11 = vld [vmem:[#allocation4 + $0x5a0] sm:$0xff]  ;;  %v3959_v12 = vld [vmem:[#allocation4 + $0x5b0] sm:$0xff] }
0x13e0   : > { %4196 = vmatpush1.msra.mxu1 %v3821_v13  ;;  %4267 = vmatpush1.msra.mxu0 %v3823_v14  ;;  %v3950_v13 = vld [vmem:[#allocation4 + $0x568] sm:$0xff]  ;;  %v3952_v14 = vld [vmem:[#allocation4 + $0x578] sm:$0xff] }
0x13e1   : > { %4197 = vmatprep.subr.mxu1 %v3814_v15  ;;  %4268 = vmatprep.subr.mxu0 %v3816_v58  ;;  %v3949_v15 = vld [vmem:[#allocation4 + $0x560] sm:$0xff]  ;;  %v3951_v58 = vld [vmem:[#allocation4 + $0x570] sm:$0xff] }
0x13e2   : > { %4198 = vmatpush1.msra.mxu1 %v3813_v18  ;;  %4269 = vmatpush1.msra.mxu0 %v3815_v41  ;;  %v3942_v18 = vld [vmem:[#allocation4 + $0x528] sm:$0xff]  ;;  %v3944_v41 = vld [vmem:[#allocation4 + $0x538] sm:$0xff] }
0x13e3   : > { %4199 = vmatprep.subr.mxu1 %v3806_v19  ;;  %4270 = vmatprep.subr.mxu0 %v3808_v62  ;;  %v3941_v19 = vld [vmem:[#allocation4 + $0x520] sm:$0xff]  ;;  %v3943_v62 = vld [vmem:[#allocation4 + $0x530] sm:$0xff] }
0x13e4   : > { %4200 = vmatpush1.msra.mxu1 %v3805_v22  ;;  %4271 = vmatpush1.msra.mxu0 %v3807_v25  ;;  %v3934_v22 = vld [vmem:[#allocation4 + $0x4e8] sm:$0xff]  ;;  %v3936_v25 = vld [vmem:[#allocation4 + $0x4f8] sm:$0xff] }
0x13e5   : > { %4201 = vmatprep.subr.mxu1 %v3798_v1  ;;  %4272 = vmatprep.subr.mxu0 %v3800_v31  ;;  %v3933_v1 = vld [vmem:[#allocation4 + $0x4e0] sm:$0xff]  ;;  %v3935_v31 = vld [vmem:[#allocation4 + $0x4f0] sm:$0xff] }
0x13e6   : > { %4202 = vmatpush1.msra.mxu1 %v3797_v2  ;;  %4273 = vmatpush1.msra.mxu0 %v3799_v29  ;;  %v3926_v2 = vld [vmem:[#allocation4 + $0x4a8] sm:$0xff]  ;;  %v3928_v29 = vld [vmem:[#allocation4 + $0x4b8] sm:$0xff] }
0x13e7   : > { %4203 = vmatprep.subr.mxu1 %v3790_v30  ;;  %4274 = vmatprep.subr.mxu0 %v3792_v51  ;;  %v3925_v30 = vld [vmem:[#allocation4 + $0x4a0] sm:$0xff]  ;;  %v3927_v51 = vld [vmem:[#allocation4 + $0x4b0] sm:$0xff] }
0x13e8   : > { %4204 = vmatpush1.msra.mxu1 %v3789_v47  ;;  %4275 = vmatpush1.msra.mxu0 %v3791_v9  ;;  %v3918_v47 = vld [vmem:[#allocation4 + $0x468] sm:$0xff]  ;;  %v3920_v9 = vld [vmem:[#allocation4 + $0x478] sm:$0xff] }
0x13e9   : > { %4205 = vmatprep.subr.mxu1 %v3782_v32  ;;  %4276 = vmatprep.subr.mxu0 %v3784_v10  ;;  %v3917_v32 = vld [vmem:[#allocation4 + $0x460] sm:$0xff]  ;;  %v3919_v10 = vld [vmem:[#allocation4 + $0x470] sm:$0xff] }
0x13ea   : > { %4206 = vmatpush1.msra.mxu1 %v3781_v28  ;;  %4277 = vmatpush1.msra.mxu0 %v3783_v37  ;;  %v3910_v28 = vld [vmem:[#allocation4 + $0x428] sm:$0xff]  ;;  %v3912_v37 = vld [vmem:[#allocation4 + $0x438] sm:$0xff] }
0x13eb   : > { %4207 = vmatprep.subr.mxu1 %v4030_v45  ;;  %4278 = vmatprep.subr.mxu0 %v4032_v38  ;;  %v3909_v45 = vld [vmem:[#allocation4 + $0x420] sm:$0xff]  ;;  %v3911_v38 = vld [vmem:[#allocation4 + $0x430] sm:$0xff] }
0x13ec   : > { %4208 = vmatpush2.msra.mxu1 %v4029_v46  ;;  %4279 = vmatpush2.msra.mxu0 %v4031_v40  ;;  %v4372_v46 = vld [vmem:[#allocation6 + $0xf8] sm:$0xff] }
0x13ed   : > { %4209 = vmatprep.subr.mxu1 %v4022_v21  ;;  %4280 = vmatprep.subr.mxu0 %v4024_v23  ;;  %v4436_v40 = vld [vmem:[#allocation6 + $0x2f8] sm:$0xff]  ;;  %v4371_v21 = vld [vmem:[#allocation6 + $0xf0] sm:$0xff] }
0x13ee   : > { %4210 = vmatpush2.msra.mxu1 %v4021_v26  ;;  %4281 = vmatpush2.msra.mxu0 %v4023_v60  ;;  %v4435_v23 = vld [vmem:[#allocation6 + $0x2f0] sm:$0xff]  ;;  %v4370_v26 = vld [vmem:[#allocation6 + $0xe8] sm:$0xff] }
0x13ef   : > { %4211 = vmatprep.subr.mxu1 %v4014_v20  ;;  %4282 = vmatprep.subr.mxu0 %v4016_v24  ;;  %v4434_v60 = vld [vmem:[#allocation6 + $0x2e8] sm:$0xff]  ;;  %v4369_v20 = vld [vmem:[#allocation6 + $0xe0] sm:$0xff] }
0x13f0   : > { %4212 = vmatpush2.msra.mxu1 %v4013_v27  ;;  %4283 = vmatpush2.msra.mxu0 %v4015_v42  ;;  %v4433_v24 = vld [vmem:[#allocation6 + $0x2e0] sm:$0xff]  ;;  %v4368_v27 = vld [vmem:[#allocation6 + $0xd8] sm:$0xff] }
0x13f1   : > { %4213 = vmatprep.subr.mxu1 %v4006_v43  ;;  %4284 = vmatprep.subr.mxu0 %v4008_v44  ;;  %v4432_v42 = vld [vmem:[#allocation6 + $0x2d8] sm:$0xff]  ;;  %v4367_v43 = vld [vmem:[#allocation6 + $0xd0] sm:$0xff] }
0x13f2   : > { %4214 = vmatpush2.msra.mxu1 %v4005_v17  ;;  %4285 = vmatpush2.msra.mxu0 %v4007_v50  ;;  %v4431_v44 = vld [vmem:[#allocation6 + $0x2d0] sm:$0xff]  ;;  %v4366_v17 = vld [vmem:[#allocation6 + $0xc8] sm:$0xff] }
0x13f3   : > { %4215 = vmatprep.subr.mxu1 %v3998_v52  ;;  %4286 = vmatprep.subr.mxu0 %v4000_v53  ;;  %v4430_v50 = vld [vmem:[#allocation6 + $0x2c8] sm:$0xff]  ;;  %v4429_v52 = vld [vmem:[#allocation6 + $0x2c0] sm:$0xff]  ;;  %v4364_v53 = vld [vmem:[#allocation6 + $0xb8] sm:$0xff] }
0x13f4   : > { %4216 = vmatpush2.msra.mxu1 %v3997_v54  ;;  %4287 = vmatpush2.msra.mxu0 %v3999_v33  ;;  %v4428_v54 = vld [vmem:[#allocation6 + $0x2b8] sm:$0xff]  ;;  %v4363_v33 = vld [vmem:[#allocation6 + $0xb0] sm:$0xff] }
0x13f5   : > { %4217 = vmatprep.subr.mxu1 %v3990_v8  ;;  %4288 = vmatprep.subr.mxu0 %v3992_v55  ;;  %v4427_v8 = vld [vmem:[#allocation6 + $0x2b0] sm:$0xff]  ;;  %v4362_v55 = vld [vmem:[#allocation6 + $0xa8] sm:$0xff] }
0x13f6   : > { %4218 = vmatpush2.msra.mxu1 %v3989_v34  ;;  %4289 = vmatpush2.msra.mxu0 %v3991_v35  ;;  %v4426_v34 = vld [vmem:[#allocation6 + $0x2a8] sm:$0xff]  ;;  %v4361_v35 = vld [vmem:[#allocation6 + $0xa0] sm:$0xff] }
0x13f7   : > { %4219 = vmatprep.subr.mxu1 %v3982_v56  ;;  %4290 = vmatprep.subr.mxu0 %v3984_v57  ;;  %v4425_v56 = vld [vmem:[#allocation6 + $0x2a0] sm:$0xff]  ;;  %v4360_v57 = vld [vmem:[#allocation6 + $0x98] sm:$0xff] }
0x13f8   : > { %4220 = vmatpush2.msra.mxu1 %v3981_v39  ;;  %4291 = vmatpush2.msra.mxu0 %v3983_v59  ;;  %v4424_v39 = vld [vmem:[#allocation6 + $0x298] sm:$0xff]  ;;  %v4359_v59 = vld [vmem:[#allocation6 + $0x90] sm:$0xff] }
0x13f9   : > { %4221 = vmatprep.subr.mxu1 %v3974_v61  ;;  %4292 = vmatprep.subr.mxu0 %v3976_v63  ;;  %v4423_v61 = vld [vmem:[#allocation6 + $0x290] sm:$0xff]  ;;  %v4358_v63 = vld [vmem:[#allocation6 + $0x88] sm:$0xff] }
0x13fa   : > { %4222 = vmatpush2.msra.mxu1 %v3973_v36  ;;  %4293 = vmatpush2.msra.mxu0 %v3975_v0  ;;  %v4422_v36 = vld [vmem:[#allocation6 + $0x288] sm:$0xff]  ;;  %v4357_v0 = vld [vmem:[#allocation6 + $0x80] sm:$0xff] }
0x13fb   : > { %4223 = vmatprep.subr.mxu1 %v3966_v16  ;;  %4294 = vmatprep.subr.mxu0 %v3968_v3  ;;  %v4421_v16 = vld [vmem:[#allocation6 + $0x280] sm:$0xff]  ;;  %v4356_v3 = vld [vmem:[#allocation6 + $0x78] sm:$0xff] }
0x13fc   : > { %4224 = vmatpush2.msra.mxu1 %v3965_v48  ;;  %4295 = vmatpush2.msra.mxu0 %v3967_v5  ;;  %v4420_v48 = vld [vmem:[#allocation6 + $0x278] sm:$0xff]  ;;  %v4355_v5 = vld [vmem:[#allocation6 + $0x70] sm:$0xff] }
0x13fd   : > { %4225 = vmatprep.subr.mxu1 %v3958_v49  ;;  %4296 = vmatprep.subr.mxu0 %v3960_v7  ;;  %v4419_v49 = vld [vmem:[#allocation6 + $0x270] sm:$0xff]  ;;  %v4354_v7 = vld [vmem:[#allocation6 + $0x68] sm:$0xff] }
0x13fe   : > { %4226 = vmatpush2.msra.mxu1 %v3957_v11  ;;  %4297 = vmatpush2.msra.mxu0 %v3959_v12  ;;  %v4418_v11 = vld [vmem:[#allocation6 + $0x268] sm:$0xff]  ;;  %v4353_v12 = vld [vmem:[#allocation6 + $0x60] sm:$0xff] }
0x13ff   : > { %4227 = vmatprep.subr.mxu1 %v3950_v13  ;;  %4298 = vmatprep.subr.mxu0 %v3952_v14  ;;  %v4417_v13 = vld [vmem:[#allocation6 + $0x260] sm:$0xff]  ;;  %v4352_v14 = vld [vmem:[#allocation6 + $0x58] sm:$0xff] }
0x1400   : > { %4228 = vmatpush2.msra.mxu1 %v3949_v15  ;;  %4299 = vmatpush2.msra.mxu0 %v3951_v58  ;;  %v4416_v15 = vld [vmem:[#allocation6 + $0x258] sm:$0xff]  ;;  %v4351_v58 = vld [vmem:[#allocation6 + $0x50] sm:$0xff] }
0x1401   : > { %4229 = vmatprep.subr.mxu1 %v3942_v18  ;;  %4300 = vmatprep.subr.mxu0 %v3944_v41  ;;  %v4415_v18 = vld [vmem:[#allocation6 + $0x250] sm:$0xff]  ;;  %v4350_v41 = vld [vmem:[#allocation6 + $0x48] sm:$0xff] }
0x1402   : > { %4230 = vmatpush2.msra.mxu1 %v3941_v19  ;;  %4301 = vmatpush2.msra.mxu0 %v3943_v62  ;;  %v4414_v19 = vld [vmem:[#allocation6 + $0x248] sm:$0xff]  ;;  %v4349_v62 = vld [vmem:[#allocation6 + $0x40] sm:$0xff] }
0x1403   : > { %4231 = vmatprep.subr.mxu1 %v3934_v22  ;;  %4302 = vmatprep.subr.mxu0 %v3936_v25  ;;  %v4413_v22 = vld [vmem:[#allocation6 + $0x240] sm:$0xff]  ;;  %v4348_v25 = vld [vmem:[#allocation6 + $0x38] sm:$0xff] }
0x1404   : > { %4232 = vmatpush2.msra.mxu1 %v3933_v1  ;;  %4303 = vmatpush2.msra.mxu0 %v3935_v31  ;;  %v4412_v1 = vld [vmem:[#allocation6 + $0x238] sm:$0xff]  ;;  %v4347_v31 = vld [vmem:[#allocation6 + $0x30] sm:$0xff] }
0x1405   : > { %4233 = vmatprep.subr.mxu1 %v3926_v2  ;;  %4304 = vmatprep.subr.mxu0 %v3928_v29  ;;  %v4411_v2 = vld [vmem:[#allocation6 + $0x230] sm:$0xff]  ;;  %v4346_v29 = vld [vmem:[#allocation6 + $0x28] sm:$0xff] }
0x1406   : > { %4234 = vmatpush2.msra.mxu1 %v3925_v30  ;;  %4305 = vmatpush2.msra.mxu0 %v3927_v51  ;;  %v4410_v30 = vld [vmem:[#allocation6 + $0x228] sm:$0xff]  ;;  %v4345_v51 = vld [vmem:[#allocation6 + $0x20] sm:$0xff] }
0x1407   : > { %4235 = vmatprep.subr.mxu1 %v3918_v47  ;;  %4306 = vmatprep.subr.mxu0 %v3920_v9  ;;  %v4409_v47 = vld [vmem:[#allocation6 + $0x220] sm:$0xff]  ;;  %v4344_v9 = vld [vmem:[#allocation6 + $0x18] sm:$0xff] }
0x1408   : > { %4236 = vmatpush2.msra.mxu1 %v3917_v32  ;;  %4307 = vmatpush2.msra.mxu0 %v3919_v10  ;;  %v4408_v32 = vld [vmem:[#allocation6 + $0x218] sm:$0xff]  ;;  %v4343_v10 = vld [vmem:[#allocation6 + $0x10] sm:$0xff] }
0x1409   : > { %4237 = vmatprep.subr.mxu1 %v3910_v28  ;;  %4308 = vmatprep.subr.mxu0 %v3912_v37  ;;  %v4407_v28 = vld [vmem:[#allocation6 + $0x210] sm:$0xff]  ;;  %v4342_v37 = vld [vmem:[#allocation6 + $0x8] sm:$0xff] }
0x140a   : > { %4238 = vmatpush2.msra.mxu1 %v3909_v45  ;;  %4309 = vmatpush2.msra.mxu0 %v3911_v38  ;;  %v4406_v45 = vld [vmem:[#allocation6 + $0x208] sm:$0xff]  ;;  %v4341_v38 = vld [vmem:[#allocation6] sm:$0xff] }
0x140b   : > { %4240 = vmatmul.mubr.f32.vlgmr.msra.gmra.mxu1 %v10278_v6  ;;  %4311 = vmatmul.mubr.f32.vlgmr.msra.gmra.mxu0 %v10278_v6  ;;  %v4365_v6 = vld [vmem:[#allocation6 + $0xc0] sm:$0xff] }
0x140c   : > { %4597 = vmatprep.subr.mxu1 %v4372_v46  ;;  %4668 = vmatprep.subr.mxu0 %v4436_v40  ;;  %v4405_v46 = vld [vmem:[#allocation6 + $0x200] sm:$0xff]  ;;  %v4404_v40 = vld [vmem:[#allocation6 + $0x1f8] sm:$0xff] }
0x140d   : > { %4598 = vmatpush1.msra.mxu1 %v4371_v21  ;;  %4669 = vmatpush1.msra.mxu0 %v4435_v23  ;;  %v4468_v21 = vld [vmem:[#allocation6 + $0x3f8] sm:$0xff]  ;;  %v4403_v23 = vld [vmem:[#allocation6 + $0x1f0] sm:$0xff] }
0x140e   : > { %4599 = vmatprep.subr.mxu1 %v4370_v26  ;;  %4670 = vmatprep.subr.mxu0 %v4434_v60  ;;  %v4467_v26 = vld [vmem:[#allocation6 + $0x3f0] sm:$0xff]  ;;  %v4402_v60 = vld [vmem:[#allocation6 + $0x1e8] sm:$0xff] }
0x140f   : > { %4600 = vmatpush1.msra.mxu1 %v4369_v20  ;;  %4671 = vmatpush1.msra.mxu0 %v4433_v24  ;;  %v4466_v20 = vld [vmem:[#allocation6 + $0x3e8] sm:$0xff]  ;;  %v4401_v24 = vld [vmem:[#allocation6 + $0x1e0] sm:$0xff] }
0x1410   : > { %4601 = vmatprep.subr.mxu1 %v4368_v27  ;;  %4672 = vmatprep.subr.mxu0 %v4432_v42  ;;  %v4465_v27 = vld [vmem:[#allocation6 + $0x3e0] sm:$0xff]  ;;  %v4400_v42 = vld [vmem:[#allocation6 + $0x1d8] sm:$0xff] }
0x1411   : > { %4602 = vmatpush1.msra.mxu1 %v4367_v43  ;;  %4673 = vmatpush1.msra.mxu0 %v4431_v44  ;;  %v4464_v43 = vld [vmem:[#allocation6 + $0x3d8] sm:$0xff]  ;;  %v4399_v44 = vld [vmem:[#allocation6 + $0x1d0] sm:$0xff] }
0x1412   : > { %4603 = vmatprep.subr.mxu1 %v4366_v17  ;;  %4674 = vmatprep.subr.mxu0 %v4430_v50  ;;  %v4463_v17 = vld [vmem:[#allocation6 + $0x3d0] sm:$0xff]  ;;  %v4398_v50 = vld [vmem:[#allocation6 + $0x1c8] sm:$0xff] }
0x1413   : > { %4604 = vmatpush1.msra.mxu1 %v4365_v6  ;;  %4675 = vmatpush1.msra.mxu0 %v4429_v52  ;;  %v4462_v6 = vld [vmem:[#allocation6 + $0x3c8] sm:$0xff]  ;;  %v4397_v52 = vld [vmem:[#allocation6 + $0x1c0] sm:$0xff] }
0x1414   : > { %4605 = vmatprep.subr.mxu1 %v4364_v53  ;;  %4676 = vmatprep.subr.mxu0 %v4428_v54  ;;  %v4461_v53 = vld [vmem:[#allocation6 + $0x3c0] sm:$0xff]  ;;  %v4396_v54 = vld [vmem:[#allocation6 + $0x1b8] sm:$0xff] }
0x1415   : > { %4606 = vmatpush1.msra.mxu1 %v4363_v33  ;;  %4677 = vmatpush1.msra.mxu0 %v4427_v8  ;;  %v4460_v33 = vld [vmem:[#allocation6 + $0x3b8] sm:$0xff]  ;;  %v4395_v8 = vld [vmem:[#allocation6 + $0x1b0] sm:$0xff] }
0x1416   : > { %4607 = vmatprep.subr.mxu1 %v4362_v55  ;;  %4678 = vmatprep.subr.mxu0 %v4426_v34  ;;  %v4459_v55 = vld [vmem:[#allocation6 + $0x3b0] sm:$0xff]  ;;  %v4394_v34 = vld [vmem:[#allocation6 + $0x1a8] sm:$0xff] }
0x1417   : > { %4608 = vmatpush1.msra.mxu1 %v4361_v35  ;;  %4679 = vmatpush1.msra.mxu0 %v4425_v56  ;;  %v4458_v35 = vld [vmem:[#allocation6 + $0x3a8] sm:$0xff]  ;;  %v4393_v56 = vld [vmem:[#allocation6 + $0x1a0] sm:$0xff] }
0x1418   : > { %4609 = vmatprep.subr.mxu1 %v4360_v57  ;;  %4680 = vmatprep.subr.mxu0 %v4424_v39  ;;  %v4457_v57 = vld [vmem:[#allocation6 + $0x3a0] sm:$0xff]  ;;  %v4392_v39 = vld [vmem:[#allocation6 + $0x198] sm:$0xff] }
0x1419   : > { %4610 = vmatpush1.msra.mxu1 %v4359_v59  ;;  %4681 = vmatpush1.msra.mxu0 %v4423_v61  ;;  %v4456_v59 = vld [vmem:[#allocation6 + $0x398] sm:$0xff]  ;;  %v4391_v61 = vld [vmem:[#allocation6 + $0x190] sm:$0xff] }
0x141a   : > { %4611 = vmatprep.subr.mxu1 %v4358_v63  ;;  %4682 = vmatprep.subr.mxu0 %v4422_v36  ;;  %v4455_v63 = vld [vmem:[#allocation6 + $0x390] sm:$0xff]  ;;  %v4390_v36 = vld [vmem:[#allocation6 + $0x188] sm:$0xff] }
0x141b   : > { %4612 = vmatpush1.msra.mxu1 %v4357_v0  ;;  %4683 = vmatpush1.msra.mxu0 %v4421_v16  ;;  %v4454_v0 = vld [vmem:[#allocation6 + $0x388] sm:$0xff]  ;;  %v4389_v16 = vld [vmem:[#allocation6 + $0x180] sm:$0xff] }
0x141c   : > { %4613 = vmatprep.subr.mxu1 %v4356_v3  ;;  %4684 = vmatprep.subr.mxu0 %v4420_v48  ;;  %v4453_v3 = vld [vmem:[#allocation6 + $0x380] sm:$0xff]  ;;  %v4388_v48 = vld [vmem:[#allocation6 + $0x178] sm:$0xff] }
0x141d   : > { %4614 = vmatpush1.msra.mxu1 %v4355_v5  ;;  %4685 = vmatpush1.msra.mxu0 %v4419_v49  ;;  %v4452_v5 = vld [vmem:[#allocation6 + $0x378] sm:$0xff]  ;;  %v4387_v49 = vld [vmem:[#allocation6 + $0x170] sm:$0xff] }
0x141e   : > { %4615 = vmatprep.subr.mxu1 %v4354_v7  ;;  %4686 = vmatprep.subr.mxu0 %v4418_v11  ;;  %v4451_v7 = vld [vmem:[#allocation6 + $0x370] sm:$0xff]  ;;  %v4386_v11 = vld [vmem:[#allocation6 + $0x168] sm:$0xff] }
0x141f   : > { %4616 = vmatpush1.msra.mxu1 %v4353_v12  ;;  %4687 = vmatpush1.msra.mxu0 %v4417_v13  ;;  %v4450_v12 = vld [vmem:[#allocation6 + $0x368] sm:$0xff]  ;;  %v4385_v13 = vld [vmem:[#allocation6 + $0x160] sm:$0xff] }
0x1420   : > { %4617 = vmatprep.subr.mxu1 %v4352_v14  ;;  %4688 = vmatprep.subr.mxu0 %v4416_v15  ;;  %v4449_v14 = vld [vmem:[#allocation6 + $0x360] sm:$0xff]  ;;  %v4384_v15 = vld [vmem:[#allocation6 + $0x158] sm:$0xff] }
0x1421   : > { %4618 = vmatpush1.msra.mxu1 %v4351_v58  ;;  %4689 = vmatpush1.msra.mxu0 %v4415_v18  ;;  %v4448_v58 = vld [vmem:[#allocation6 + $0x358] sm:$0xff]  ;;  %v4383_v18 = vld [vmem:[#allocation6 + $0x150] sm:$0xff] }
0x1422   : > { %4619 = vmatprep.subr.mxu1 %v4350_v41  ;;  %4690 = vmatprep.subr.mxu0 %v4414_v19  ;;  %v4447_v41 = vld [vmem:[#allocation6 + $0x350] sm:$0xff]  ;;  %v4382_v19 = vld [vmem:[#allocation6 + $0x148] sm:$0xff] }
0x1423   : > { %4620 = vmatpush1.msra.mxu1 %v4349_v62  ;;  %4691 = vmatpush1.msra.mxu0 %v4413_v22  ;;  %v4446_v62 = vld [vmem:[#allocation6 + $0x348] sm:$0xff]  ;;  %v4381_v22 = vld [vmem:[#allocation6 + $0x140] sm:$0xff] }
0x1424   : > { %4621 = vmatprep.subr.mxu1 %v4348_v25  ;;  %4692 = vmatprep.subr.mxu0 %v4412_v1  ;;  %v4445_v25 = vld [vmem:[#allocation6 + $0x340] sm:$0xff]  ;;  %v4380_v1 = vld [vmem:[#allocation6 + $0x138] sm:$0xff] }
0x1425   : > { %4622 = vmatpush1.msra.mxu1 %v4347_v31  ;;  %4693 = vmatpush1.msra.mxu0 %v4411_v2  ;;  %v4444_v31 = vld [vmem:[#allocation6 + $0x338] sm:$0xff]  ;;  %v4379_v2 = vld [vmem:[#allocation6 + $0x130] sm:$0xff] }
0x1426   : > { %4623 = vmatprep.subr.mxu1 %v4346_v29  ;;  %4694 = vmatprep.subr.mxu0 %v4410_v30  ;;  %v4443_v29 = vld [vmem:[#allocation6 + $0x330] sm:$0xff]  ;;  %v4378_v30 = vld [vmem:[#allocation6 + $0x128] sm:$0xff] }
0x1427   : > { %4624 = vmatpush1.msra.mxu1 %v4345_v51  ;;  %4695 = vmatpush1.msra.mxu0 %v4409_v47  ;;  %v4442_v51 = vld [vmem:[#allocation6 + $0x328] sm:$0xff]  ;;  %v4377_v47 = vld [vmem:[#allocation6 + $0x120] sm:$0xff] }
0x1428   : > { %4625 = vmatprep.subr.mxu1 %v4344_v9  ;;  %4696 = vmatprep.subr.mxu0 %v4408_v32  ;;  %v4441_v9 = vld [vmem:[#allocation6 + $0x320] sm:$0xff]  ;;  %v4376_v32 = vld [vmem:[#allocation6 + $0x118] sm:$0xff] }
0x1429   : > { %4626 = vmatpush1.msra.mxu1 %v4343_v10  ;;  %4697 = vmatpush1.msra.mxu0 %v4407_v28  ;;  %v4440_v10 = vld [vmem:[#allocation6 + $0x318] sm:$0xff]  ;;  %v4375_v28 = vld [vmem:[#allocation6 + $0x110] sm:$0xff] }
0x142a   : > { %4627 = vmatprep.subr.mxu1 %v4342_v37  ;;  %4698 = vmatprep.subr.mxu0 %v4406_v45  ;;  %v4439_v37 = vld [vmem:[#allocation6 + $0x310] sm:$0xff]  ;;  %v4374_v45 = vld [vmem:[#allocation6 + $0x108] sm:$0xff] }
0x142b   : > { %4628 = vmatpush1.msra.mxu1 %v4341_v38  ;;  %4699 = vmatpush1.msra.mxu0 %v4405_v46  ;;  %v4438_v38 = vld [vmem:[#allocation6 + $0x308] sm:$0xff]  ;;  %v4373_v46 = vld [vmem:[#allocation6 + $0x100] sm:$0xff] }
0x142c   : > { %4629 = vmatprep.subr.mxu1 %v4404_v40  ;;  %4700 = vmatprep.subr.mxu0 %v4468_v21  ;;  %v4437_v40 = vld [vmem:[#allocation6 + $0x300] sm:$0xff]  ;;  %v4500_v21 = vld [vmem:[#allocation6 + $0x4f8] sm:$0xff] }
0x142d   : > { %4630 = vmatpush2.msra.mxu1 %v4403_v23  ;;  %4701 = vmatpush2.msra.mxu0 %v4467_v26  ;;  %v4564_v23 = vld [vmem:[#allocation6 + $0x6f8] sm:$0xff] }
0x142e   : > { %4631 = vmatprep.subr.mxu1 %v4402_v60  ;;  %4702 = vmatprep.subr.mxu0 %v4466_v20 }
0x142f   : > { %4632 = vmatpush2.msra.mxu1 %v4401_v24  ;;  %4703 = vmatpush2.msra.mxu0 %v4465_v27 }
0x1430   : > { %4633 = vmatprep.subr.mxu1 %v4400_v42  ;;  %4704 = vmatprep.subr.mxu0 %v4464_v43 }
0x1431   : > { %4634 = vmatpush2.msra.mxu1 %v4399_v44  ;;  %4705 = vmatpush2.msra.mxu0 %v4463_v17 }
0x1432   : > { %4635 = vmatprep.subr.mxu1 %v4398_v50  ;;  %4706 = vmatprep.subr.mxu0 %v4462_v6  ;;  %v4499_v6 = vld [vmem:[#allocation6 + $0x4f0] sm:$0xff] }
0x1433   : > { %4636 = vmatpush2.msra.mxu1 %v4397_v52  ;;  %4707 = vmatpush2.msra.mxu0 %v4461_v53  ;;  %v4563_v52 = vld [vmem:[#allocation6 + $0x6f0] sm:$0xff] }
0x1434   : > { %4637 = vmatprep.subr.mxu1 %v4396_v54  ;;  %4708 = vmatprep.subr.mxu0 %v4460_v33  ;;  %v4498_v33 = vld [vmem:[#allocation6 + $0x4e8] sm:$0xff] }
0x1435   : > { %4638 = vmatpush2.msra.mxu1 %v4395_v8  ;;  %4709 = vmatpush2.msra.mxu0 %v4459_v55  ;;  %v4562_v8 = vld [vmem:[#allocation6 + $0x6e8] sm:$0xff]  ;;  %v4497_v55 = vld [vmem:[#allocation6 + $0x4e0] sm:$0xff] }
0x1436   : > { %4639 = vmatprep.subr.mxu1 %v4394_v34  ;;  %4710 = vmatprep.subr.mxu0 %v4458_v35  ;;  %v4561_v34 = vld [vmem:[#allocation6 + $0x6e0] sm:$0xff]  ;;  %v4496_v35 = vld [vmem:[#allocation6 + $0x4d8] sm:$0xff] }
0x1437   : > { %4640 = vmatpush2.msra.mxu1 %v4393_v56  ;;  %4711 = vmatpush2.msra.mxu0 %v4457_v57  ;;  %v4560_v56 = vld [vmem:[#allocation6 + $0x6d8] sm:$0xff]  ;;  %v4495_v57 = vld [vmem:[#allocation6 + $0x4d0] sm:$0xff] }
0x1438   : > { %4641 = vmatprep.subr.mxu1 %v4392_v39  ;;  %4712 = vmatprep.subr.mxu0 %v4456_v59  ;;  %v4559_v39 = vld [vmem:[#allocation6 + $0x6d0] sm:$0xff]  ;;  %v4494_v59 = vld [vmem:[#allocation6 + $0x4c8] sm:$0xff] }
0x1439   : > { %4642 = vmatpush2.msra.mxu1 %v4391_v61  ;;  %4713 = vmatpush2.msra.mxu0 %v4455_v63  ;;  %v4558_v61 = vld [vmem:[#allocation6 + $0x6c8] sm:$0xff]  ;;  %v4493_v63 = vld [vmem:[#allocation6 + $0x4c0] sm:$0xff] }
0x143a   : > { %4643 = vmatprep.subr.mxu1 %v4390_v36  ;;  %4714 = vmatprep.subr.mxu0 %v4454_v0  ;;  %v4557_v36 = vld [vmem:[#allocation6 + $0x6c0] sm:$0xff]  ;;  %v4492_v0 = vld [vmem:[#allocation6 + $0x4b8] sm:$0xff] }
0x143b   : > { %4644 = vmatpush2.msra.mxu1 %v4389_v16  ;;  %4715 = vmatpush2.msra.mxu0 %v4453_v3  ;;  %v4556_v16 = vld [vmem:[#allocation6 + $0x6b8] sm:$0xff]  ;;  %v4491_v3 = vld [vmem:[#allocation6 + $0x4b0] sm:$0xff] }
0x143c   : > { %4645 = vmatprep.subr.mxu1 %v4388_v48  ;;  %4716 = vmatprep.subr.mxu0 %v4452_v5  ;;  %v4555_v48 = vld [vmem:[#allocation6 + $0x6b0] sm:$0xff]  ;;  %v4490_v5 = vld [vmem:[#allocation6 + $0x4a8] sm:$0xff] }
0x143d   : > { %4646 = vmatpush2.msra.mxu1 %v4387_v49  ;;  %4717 = vmatpush2.msra.mxu0 %v4451_v7  ;;  %v4554_v49 = vld [vmem:[#allocation6 + $0x6a8] sm:$0xff]  ;;  %v4489_v7 = vld [vmem:[#allocation6 + $0x4a0] sm:$0xff] }
0x143e   : > { %4647 = vmatprep.subr.mxu1 %v4386_v11  ;;  %4718 = vmatprep.subr.mxu0 %v4450_v12  ;;  %v4553_v11 = vld [vmem:[#allocation6 + $0x6a0] sm:$0xff]  ;;  %v4488_v12 = vld [vmem:[#allocation6 + $0x498] sm:$0xff] }
0x143f   : > { %4648 = vmatpush2.msra.mxu1 %v4385_v13  ;;  %4719 = vmatpush2.msra.mxu0 %v4449_v14  ;;  %v4552_v13 = vld [vmem:[#allocation6 + $0x698] sm:$0xff]  ;;  %v4487_v14 = vld [vmem:[#allocation6 + $0x490] sm:$0xff] }
0x1440   : > { %4649 = vmatprep.subr.mxu1 %v4384_v15  ;;  %4720 = vmatprep.subr.mxu0 %v4448_v58  ;;  %v4551_v15 = vld [vmem:[#allocation6 + $0x690] sm:$0xff]  ;;  %v4486_v58 = vld [vmem:[#allocation6 + $0x488] sm:$0xff] }
0x1441   : > { %4650 = vmatpush2.msra.mxu1 %v4383_v18  ;;  %4721 = vmatpush2.msra.mxu0 %v4447_v41  ;;  %v4550_v18 = vld [vmem:[#allocation6 + $0x688] sm:$0xff]  ;;  %v4485_v41 = vld [vmem:[#allocation6 + $0x480] sm:$0xff] }
0x1442   : > { %4651 = vmatprep.subr.mxu1 %v4382_v19  ;;  %4722 = vmatprep.subr.mxu0 %v4446_v62  ;;  %v4549_v19 = vld [vmem:[#allocation6 + $0x680] sm:$0xff]  ;;  %v4484_v62 = vld [vmem:[#allocation6 + $0x478] sm:$0xff] }
0x1443   : > { %4652 = vmatpush2.msra.mxu1 %v4381_v22  ;;  %4723 = vmatpush2.msra.mxu0 %v4445_v25  ;;  %v4548_v22 = vld [vmem:[#allocation6 + $0x678] sm:$0xff]  ;;  %v4483_v25 = vld [vmem:[#allocation6 + $0x470] sm:$0xff] }
0x1444   : > { %4653 = vmatprep.subr.mxu1 %v4380_v1  ;;  %4724 = vmatprep.subr.mxu0 %v4444_v31  ;;  %v4547_v1 = vld [vmem:[#allocation6 + $0x670] sm:$0xff]  ;;  %v4482_v31 = vld [vmem:[#allocation6 + $0x468] sm:$0xff] }
0x1445   : > { %4654 = vmatpush2.msra.mxu1 %v4379_v2  ;;  %4725 = vmatpush2.msra.mxu0 %v4443_v29  ;;  %v4546_v2 = vld [vmem:[#allocation6 + $0x668] sm:$0xff]  ;;  %v4481_v29 = vld [vmem:[#allocation6 + $0x460] sm:$0xff] }
0x1446   : > { %4655 = vmatprep.subr.mxu1 %v4378_v30  ;;  %4726 = vmatprep.subr.mxu0 %v4442_v51  ;;  %v4545_v30 = vld [vmem:[#allocation6 + $0x660] sm:$0xff]  ;;  %v4480_v51 = vld [vmem:[#allocation6 + $0x458] sm:$0xff] }
0x1447   : > { %4656 = vmatpush2.msra.mxu1 %v4377_v47  ;;  %4727 = vmatpush2.msra.mxu0 %v4441_v9  ;;  %v4544_v47 = vld [vmem:[#allocation6 + $0x658] sm:$0xff]  ;;  %v4479_v9 = vld [vmem:[#allocation6 + $0x450] sm:$0xff] }
0x1448   : > { %4657 = vmatprep.subr.mxu1 %v4376_v32  ;;  %4728 = vmatprep.subr.mxu0 %v4440_v10  ;;  %v4543_v32 = vld [vmem:[#allocation6 + $0x650] sm:$0xff]  ;;  %v4478_v10 = vld [vmem:[#allocation6 + $0x448] sm:$0xff] }
0x1449   : > { %4658 = vmatpush2.msra.mxu1 %v4375_v28  ;;  %4729 = vmatpush2.msra.mxu0 %v4439_v37  ;;  %v4542_v28 = vld [vmem:[#allocation6 + $0x648] sm:$0xff]  ;;  %v4477_v37 = vld [vmem:[#allocation6 + $0x440] sm:$0xff] }
0x144a   : > { %4659 = vmatprep.subr.mxu1 %v4374_v45  ;;  %4730 = vmatprep.subr.mxu0 %v4438_v38  ;;  %v4541_v45 = vld [vmem:[#allocation6 + $0x640] sm:$0xff]  ;;  %v4476_v38 = vld [vmem:[#allocation6 + $0x438] sm:$0xff] }
0x144b   : > { %4660 = vmatpush2.msra.mxu1 %v4373_v46  ;;  %4731 = vmatpush2.msra.mxu0 %v4437_v40  ;;  %v4540_v46 = vld [vmem:[#allocation6 + $0x638] sm:$0xff]  ;;  %v4475_v40 = vld [vmem:[#allocation6 + $0x430] sm:$0xff] }
0x144c   : > { %4739 = vmatprep.subr.mxu1 %v4500_v21  ;;  %4810 = vmatprep.subr.mxu0 %v4564_v23  ;;  %v4539_v21 = vld [vmem:[#allocation6 + $0x630] sm:$0xff]  ;;  %v4474_v23 = vld [vmem:[#allocation6 + $0x428] sm:$0xff] }
0x148a   : > { %v4099_v26 = vpop.f32.mrf.mxu1  ;;  %v4170_v60 = vpop.f32.mrf.mxu0 }
0x148b   : > { %vm4317_vm2 = vcmp.ge.f32.partialorder %v4099_v26, 0.0  ;;  %v4325_v20 = vmul.f32 0.01, %v4099_v26  ;;  %vm4319_vm3 = vcmp.ge.f32.partialorder %v4170_v60, 0.0  ;;  %v4327_v24 = vmul.f32 0.01, %v4170_v60 }
0x148c   : > { %v4101_v27 = vpop.f32.mrf.mxu1  ;;  %v4172_v42 = vpop.f32.mrf.mxu0 }
0x148d   : > { %vm4318_vm4 = vcmp.ge.f32.partialorder %v4101_v27, 0.0  ;;  %v4326_v43 = vmul.f32 0.01, %v4101_v27  ;;  %vm4320_vm5 = vcmp.ge.f32.partialorder %v4172_v42, 0.0  ;;  %v4328_v44 = vmul.f32 0.01, %v4172_v42 }
0x148e   : > { %v4333_v53 = vsel %vm4317_vm2, %v4099_v26, %v4325_v20  ;;  %v4335_v54 = vsel %vm4319_vm3, %v4170_v60, %v4327_v24  ;;  %v4538_v26 = vld [vmem:[#allocation6 + $0x628] sm:$0xff]  ;;  %v4473_v60 = vld [vmem:[#allocation6 + $0x420] sm:$0xff]  ;;  %v4472_v24 = vld [vmem:[#allocation6 + $0x418] sm:$0xff] }
0x148f   : > { %v4334_v17 = vsel %vm4318_vm4, %v4101_v27, %v4326_v43  ;;  %v4336_v50 = vsel %vm4320_vm5, %v4172_v42, %v4328_v44  ;;  %v4537_v20 = vld [vmem:[#allocation6 + $0x620] sm:$0xff]  ;;  %v4536_v27 = vld [vmem:[#allocation6 + $0x618] sm:$0xff]  ;;  %v4471_v42 = vld [vmem:[#allocation6 + $0x410] sm:$0xff] }
0x1490   : > { %4661 = vmatprep.mubr.f32.mxu1 %v4334_v17  ;;  %4732 = vmatprep.mubr.f32.mxu0 %v4336_v50  ;;  %v4535_v43 = vld [vmem:[#allocation6 + $0x610] sm:$0xff]  ;;  %v4470_v44 = vld [vmem:[#allocation6 + $0x408] sm:$0xff]  ;;  %v4469_v50 = vld [vmem:[#allocation6 + $0x400] sm:$0xff] }
0x1491   : > { %4662 = vmatmul.mubr.f32.vlgmr.msra.gmra.mxu1 %v4333_v53  ;;  %4733 = vmatmul.mubr.f32.vlgmr.msra.gmra.mxu0 %v4335_v54  ;;  %v4534_v17 = vld [vmem:[#allocation6 + $0x608] sm:$0xff]  ;;  %v4596_v53 = vld [vmem:[#allocation6 + $0x7f8] sm:$0xff]  ;;  %v4531_v54 = vld [vmem:[#allocation6 + $0x5f0] sm:$0xff] }
0x1492   : > { %4740 = vmatpush1.msra.mxu1 %v4499_v6  ;;  %4811 = vmatpush1.msra.mxu0 %v4563_v52  ;;  %v4533_v6 = vld [vmem:[#allocation6 + $0x600] sm:$0xff]  ;;  %v4532_v52 = vld [vmem:[#allocation6 + $0x5f8] sm:$0xff] }
0x1493   : > { %4741 = vmatprep.subr.mxu1 %v4498_v33  ;;  %4812 = vmatprep.subr.mxu0 %v4562_v8  ;;  %v4595_v33 = vld [vmem:[#allocation6 + $0x7f0] sm:$0xff]  ;;  %v4530_v8 = vld [vmem:[#allocation6 + $0x5e8] sm:$0xff] }
0x1494   : > { %4742 = vmatpush1.msra.mxu1 %v4497_v55  ;;  %4813 = vmatpush1.msra.mxu0 %v4561_v34  ;;  %v4594_v55 = vld [vmem:[#allocation6 + $0x7e8] sm:$0xff]  ;;  %v4529_v34 = vld [vmem:[#allocation6 + $0x5e0] sm:$0xff] }
0x1495   : > { %4743 = vmatprep.subr.mxu1 %v4496_v35  ;;  %4814 = vmatprep.subr.mxu0 %v4560_v56  ;;  %v4593_v35 = vld [vmem:[#allocation6 + $0x7e0] sm:$0xff]  ;;  %v4528_v56 = vld [vmem:[#allocation6 + $0x5d8] sm:$0xff] }
0x1496   : > { %4744 = vmatpush1.msra.mxu1 %v4495_v57  ;;  %4815 = vmatpush1.msra.mxu0 %v4559_v39  ;;  %v4592_v57 = vld [vmem:[#allocation6 + $0x7d8] sm:$0xff]  ;;  %v4527_v39 = vld [vmem:[#allocation6 + $0x5d0] sm:$0xff] }
0x1497   : > { %4745 = vmatprep.subr.mxu1 %v4494_v59  ;;  %4816 = vmatprep.subr.mxu0 %v4558_v61  ;;  %v4591_v59 = vld [vmem:[#allocation6 + $0x7d0] sm:$0xff]  ;;  %v4526_v61 = vld [vmem:[#allocation6 + $0x5c8] sm:$0xff] }
0x1498   : > { %4746 = vmatpush1.msra.mxu1 %v4493_v63  ;;  %4817 = vmatpush1.msra.mxu0 %v4557_v36  ;;  %v4590_v63 = vld [vmem:[#allocation6 + $0x7c8] sm:$0xff]  ;;  %v4525_v36 = vld [vmem:[#allocation6 + $0x5c0] sm:$0xff] }
0x1499   : > { %4747 = vmatprep.subr.mxu1 %v4492_v0  ;;  %4818 = vmatprep.subr.mxu0 %v4556_v16  ;;  %v4589_v0 = vld [vmem:[#allocation6 + $0x7c0] sm:$0xff]  ;;  %v4524_v16 = vld [vmem:[#allocation6 + $0x5b8] sm:$0xff] }
0x149a   : > { %4748 = vmatpush1.msra.mxu1 %v4491_v3  ;;  %4819 = vmatpush1.msra.mxu0 %v4555_v48  ;;  %v4588_v3 = vld [vmem:[#allocation6 + $0x7b8] sm:$0xff]  ;;  %v4523_v48 = vld [vmem:[#allocation6 + $0x5b0] sm:$0xff] }
0x149b   : > { %4749 = vmatprep.subr.mxu1 %v4490_v5  ;;  %4820 = vmatprep.subr.mxu0 %v4554_v49  ;;  %v4587_v5 = vld [vmem:[#allocation6 + $0x7b0] sm:$0xff]  ;;  %v4522_v49 = vld [vmem:[#allocation6 + $0x5a8] sm:$0xff] }
0x149c   : > { %4750 = vmatpush1.msra.mxu1 %v4489_v7  ;;  %4821 = vmatpush1.msra.mxu0 %v4553_v11  ;;  %v4586_v7 = vld [vmem:[#allocation6 + $0x7a8] sm:$0xff]  ;;  %v4521_v11 = vld [vmem:[#allocation6 + $0x5a0] sm:$0xff] }
0x149d   : > { %4751 = vmatprep.subr.mxu1 %v4488_v12  ;;  %4822 = vmatprep.subr.mxu0 %v4552_v13  ;;  %v4585_v12 = vld [vmem:[#allocation6 + $0x7a0] sm:$0xff]  ;;  %v4520_v13 = vld [vmem:[#allocation6 + $0x598] sm:$0xff] }
0x149e   : > { %4752 = vmatpush1.msra.mxu1 %v4487_v14  ;;  %4823 = vmatpush1.msra.mxu0 %v4551_v15  ;;  %v4584_v14 = vld [vmem:[#allocation6 + $0x798] sm:$0xff]  ;;  %v4519_v15 = vld [vmem:[#allocation6 + $0x590] sm:$0xff] }
0x149f   : > { %4753 = vmatprep.subr.mxu1 %v4486_v58  ;;  %4824 = vmatprep.subr.mxu0 %v4550_v18  ;;  %v4583_v58 = vld [vmem:[#allocation6 + $0x790] sm:$0xff]  ;;  %v4518_v18 = vld [vmem:[#allocation6 + $0x588] sm:$0xff] }
0x14a0   : > { %4754 = vmatpush1.msra.mxu1 %v4485_v41  ;;  %4825 = vmatpush1.msra.mxu0 %v4549_v19  ;;  %v4582_v41 = vld [vmem:[#allocation6 + $0x788] sm:$0xff]  ;;  %v4517_v19 = vld [vmem:[#allocation6 + $0x580] sm:$0xff] }
0x14a1   : > { %4755 = vmatprep.subr.mxu1 %v4484_v62  ;;  %4826 = vmatprep.subr.mxu0 %v4548_v22  ;;  %v4581_v62 = vld [vmem:[#allocation6 + $0x780] sm:$0xff]  ;;  %v4516_v22 = vld [vmem:[#allocation6 + $0x578] sm:$0xff] }
0x14a2   : > { %4756 = vmatpush1.msra.mxu1 %v4483_v25  ;;  %4827 = vmatpush1.msra.mxu0 %v4547_v1  ;;  %v4580_v25 = vld [vmem:[#allocation6 + $0x778] sm:$0xff]  ;;  %v4515_v1 = vld [vmem:[#allocation6 + $0x570] sm:$0xff] }
0x14a3   : > { %4757 = vmatprep.subr.mxu1 %v4482_v31  ;;  %4828 = vmatprep.subr.mxu0 %v4546_v2  ;;  %v4579_v31 = vld [vmem:[#allocation6 + $0x770] sm:$0xff]  ;;  %v4514_v2 = vld [vmem:[#allocation6 + $0x568] sm:$0xff] }
0x14a4   : > { %4758 = vmatpush1.msra.mxu1 %v4481_v29  ;;  %4829 = vmatpush1.msra.mxu0 %v4545_v30  ;;  %v4578_v29 = vld [vmem:[#allocation6 + $0x768] sm:$0xff]  ;;  %v4513_v30 = vld [vmem:[#allocation6 + $0x560] sm:$0xff] }
0x14a5   : > { %4759 = vmatprep.subr.mxu1 %v4480_v51  ;;  %4830 = vmatprep.subr.mxu0 %v4544_v47  ;;  %v4577_v51 = vld [vmem:[#allocation6 + $0x760] sm:$0xff]  ;;  %v4512_v47 = vld [vmem:[#allocation6 + $0x558] sm:$0xff] }
0x14a6   : > { %4760 = vmatpush1.msra.mxu1 %v4479_v9  ;;  %4831 = vmatpush1.msra.mxu0 %v4543_v32  ;;  %v4576_v9 = vld [vmem:[#allocation6 + $0x758] sm:$0xff]  ;;  %v4511_v32 = vld [vmem:[#allocation6 + $0x550] sm:$0xff] }
0x14a7   : > { %4761 = vmatprep.subr.mxu1 %v4478_v10  ;;  %4832 = vmatprep.subr.mxu0 %v4542_v28  ;;  %v4575_v10 = vld [vmem:[#allocation6 + $0x750] sm:$0xff]  ;;  %v4510_v28 = vld [vmem:[#allocation6 + $0x548] sm:$0xff] }
0x14a8   : > { %4762 = vmatpush1.msra.mxu1 %v4477_v37  ;;  %4833 = vmatpush1.msra.mxu0 %v4541_v45  ;;  %v4574_v37 = vld [vmem:[#allocation6 + $0x748] sm:$0xff]  ;;  %v4509_v45 = vld [vmem:[#allocation6 + $0x540] sm:$0xff] }
0x14a9   : > { %4763 = vmatprep.subr.mxu1 %v4476_v38  ;;  %4834 = vmatprep.subr.mxu0 %v4540_v46  ;;  %v4573_v38 = vld [vmem:[#allocation6 + $0x740] sm:$0xff]  ;;  %v4508_v46 = vld [vmem:[#allocation6 + $0x538] sm:$0xff] }
0x14aa   : > { %4764 = vmatpush1.msra.mxu1 %v4475_v40  ;;  %4835 = vmatpush1.msra.mxu0 %v4539_v21  ;;  %v4572_v40 = vld [vmem:[#allocation6 + $0x738] sm:$0xff]  ;;  %v4507_v21 = vld [vmem:[#allocation6 + $0x530] sm:$0xff] }
0x14ab   : > { %4765 = vmatprep.subr.mxu1 %v4474_v23  ;;  %4836 = vmatprep.subr.mxu0 %v4538_v26  ;;  %v4571_v23 = vld [vmem:[#allocation6 + $0x730] sm:$0xff]  ;;  %v4506_v26 = vld [vmem:[#allocation6 + $0x528] sm:$0xff] }
0x14ac   : > { %4766 = vmatpush1.msra.mxu1 %v4473_v60  ;;  %4837 = vmatpush1.msra.mxu0 %v4537_v20  ;;  %v4570_v60 = vld [vmem:[#allocation6 + $0x728] sm:$0xff]  ;;  %v4505_v20 = vld [vmem:[#allocation6 + $0x520] sm:$0xff] }
0x14ad   : > { %4767 = vmatprep.subr.mxu1 %v4472_v24  ;;  %4838 = vmatprep.subr.mxu0 %v4536_v27  ;;  %v4569_v24 = vld [vmem:[#allocation6 + $0x720] sm:$0xff]  ;;  %v4504_v27 = vld [vmem:[#allocation6 + $0x518] sm:$0xff] }
0x14ae   : > { %4768 = vmatpush1.msra.mxu1 %v4471_v42  ;;  %4839 = vmatpush1.msra.mxu0 %v4535_v43  ;;  %v4568_v42 = vld [vmem:[#allocation6 + $0x718] sm:$0xff] }
0x14af   : > { %4769 = vmatprep.subr.mxu1 %v4470_v44  ;;  %4840 = vmatprep.subr.mxu0 %v4534_v17  ;;  %v4503_v17 = vld [vmem:[#allocation6 + $0x510] sm:$0xff] }
0x14b0   : > { %4770 = vmatpush1.msra.mxu1 %v4469_v50  ;;  %4841 = vmatpush1.msra.mxu0 %v4533_v6  ;;  %v4567_v50 = vld [vmem:[#allocation6 + $0x710] sm:$0xff]  ;;  %v4502_v6 = vld [vmem:[#allocation6 + $0x508] sm:$0xff] }
0x14b1   : > { %4771 = vmatprep.subr.mxu1 %v4532_v52  ;;  %4842 = vmatprep.subr.mxu0 %v4596_v53  ;;  %v4566_v52 = vld [vmem:[#allocation6 + $0x708] sm:$0xff]  ;;  %v4501_v53 = vld [vmem:[#allocation6 + $0x500] sm:$0xff] }
0x14b2   : > { %4772 = vmatpush2.msra.mxu1 %v4531_v54  ;;  %4843 = vmatpush2.msra.mxu0 %v4595_v33  ;;  %v4565_v54 = vld [vmem:[#allocation6 + $0x700] sm:$0xff] }
0x14b3   : > { %4773 = vmatprep.subr.mxu1 %v4530_v8  ;;  %4844 = vmatprep.subr.mxu0 %v4594_v55 }
0x14b4   : > { %4774 = vmatpush2.msra.mxu1 %v4529_v34  ;;  %4845 = vmatpush2.msra.mxu0 %v4593_v35 }
0x14b5   : > { %4775 = vmatprep.subr.mxu1 %v4528_v56  ;;  %4846 = vmatprep.subr.mxu0 %v4592_v57 }
0x14b6   : > { %4776 = vmatpush2.msra.mxu1 %v4527_v39  ;;  %4847 = vmatpush2.msra.mxu0 %v4591_v59 }
0x14b7   : > { %4777 = vmatprep.subr.mxu1 %v4526_v61  ;;  %4848 = vmatprep.subr.mxu0 %v4590_v63  ;;  %v8579_v63 = vld [vmem:[#allocation2 + $0xf8] sm:$0xff] }
0x14b8   : > { %4778 = vmatpush2.msra.mxu1 %v4525_v36  ;;  %4849 = vmatpush2.msra.mxu0 %v4589_v0  ;;  %v8580_v36 = vld [vmem:[#allocation2 + $0xf0] sm:$0xff]  ;;  %v8581_v0 = vld [vmem:[#allocation2 + $0xe8] sm:$0xff] }
0x14b9   : > { %4779 = vmatprep.subr.mxu1 %v4524_v16  ;;  %4850 = vmatprep.subr.mxu0 %v4588_v3  ;;  %v8582_v16 = vld [vmem:[#allocation2 + $0xe0] sm:$0xff]  ;;  %v8583_v3 = vld [vmem:[#allocation2 + $0xd8] sm:$0xff] }
0x14ba   : > { %4780 = vmatpush2.msra.mxu1 %v4523_v48  ;;  %4851 = vmatpush2.msra.mxu0 %v4587_v5  ;;  %v8584_v48 = vld [vmem:[#allocation2 + $0xd0] sm:$0xff]  ;;  %v8585_v5 = vld [vmem:[#allocation2 + $0xc8] sm:$0xff] }
0x14bb   : > { %4781 = vmatprep.subr.mxu1 %v4522_v49  ;;  %4852 = vmatprep.subr.mxu0 %v4586_v7  ;;  %v8586_v49 = vld [vmem:[#allocation2 + $0xc0] sm:$0xff]  ;;  %v8587_v7 = vld [vmem:[#allocation2 + $0xb8] sm:$0xff] }
0x14bc   : > { %4782 = vmatpush2.msra.mxu1 %v4521_v11  ;;  %4853 = vmatpush2.msra.mxu0 %v4585_v12  ;;  %v8588_v11 = vld [vmem:[#allocation2 + $0xb0] sm:$0xff]  ;;  %v8589_v12 = vld [vmem:[#allocation2 + $0xa8] sm:$0xff] }
0x14bd   : > { %4783 = vmatprep.subr.mxu1 %v4520_v13  ;;  %4854 = vmatprep.subr.mxu0 %v4584_v14  ;;  %v8590_v13 = vld [vmem:[#allocation2 + $0xa0] sm:$0xff]  ;;  %v8591_v14 = vld [vmem:[#allocation2 + $0x98] sm:$0xff] }
0x14be   : > { %4784 = vmatpush2.msra.mxu1 %v4519_v15  ;;  %4855 = vmatpush2.msra.mxu0 %v4583_v58  ;;  %v8592_v15 = vld [vmem:[#allocation2 + $0x90] sm:$0xff]  ;;  %v8593_v58 = vld [vmem:[#allocation2 + $0x88] sm:$0xff] }
0x14bf   : > { %4785 = vmatprep.subr.mxu1 %v4518_v18  ;;  %4856 = vmatprep.subr.mxu0 %v4582_v41  ;;  %v8594_v18 = vld [vmem:[#allocation2 + $0x80] sm:$0xff]  ;;  %v8595_v41 = vld [vmem:[#allocation2 + $0x78] sm:$0xff] }
0x14c0   : > { %4786 = vmatpush2.msra.mxu1 %v4517_v19  ;;  %4857 = vmatpush2.msra.mxu0 %v4581_v62  ;;  %v8596_v19 = vld [vmem:[#allocation2 + $0x70] sm:$0xff]  ;;  %v8597_v62 = vld [vmem:[#allocation2 + $0x68] sm:$0xff] }
0x14c1   : > { %4787 = vmatprep.subr.mxu1 %v4516_v22  ;;  %4858 = vmatprep.subr.mxu0 %v4580_v25  ;;  %v8598_v22 = vld [vmem:[#allocation2 + $0x60] sm:$0xff]  ;;  %v8599_v25 = vld [vmem:[#allocation2 + $0x58] sm:$0xff] }
0x14c2   : > { %4788 = vmatpush2.msra.mxu1 %v4515_v1  ;;  %4859 = vmatpush2.msra.mxu0 %v4579_v31  ;;  %v8600_v1 = vld [vmem:[#allocation2 + $0x50] sm:$0xff]  ;;  %v8601_v31 = vld [vmem:[#allocation2 + $0x48] sm:$0xff] }
0x14c3   : > { %4789 = vmatprep.subr.mxu1 %v4514_v2  ;;  %4860 = vmatprep.subr.mxu0 %v4578_v29  ;;  %v8602_v2 = vld [vmem:[#allocation2 + $0x40] sm:$0xff]  ;;  %v8603_v29 = vld [vmem:[#allocation2 + $0x38] sm:$0xff] }
0x14c4   : > { %4790 = vmatpush2.msra.mxu1 %v4513_v30  ;;  %4861 = vmatpush2.msra.mxu0 %v4577_v51  ;;  %v8604_v30 = vld [vmem:[#allocation2 + $0x30] sm:$0xff]  ;;  %v8605_v51 = vld [vmem:[#allocation2 + $0x28] sm:$0xff] }
0x14c5   : > { %4791 = vmatprep.subr.mxu1 %v4512_v47  ;;  %4862 = vmatprep.subr.mxu0 %v4576_v9  ;;  %v8606_v47 = vld [vmem:[#allocation2 + $0x20] sm:$0xff]  ;;  %v8607_v9 = vld [vmem:[#allocation2 + $0x18] sm:$0xff] }
0x14c6   : > { %4792 = vmatpush2.msra.mxu1 %v4511_v32  ;;  %4863 = vmatpush2.msra.mxu0 %v4575_v10  ;;  %v8608_v32 = vld [vmem:[#allocation2 + $0x10] sm:$0xff]  ;;  %v8609_v10 = vld [vmem:[#allocation2 + $0x8] sm:$0xff] }
0x14c7   : > { %4793 = vmatprep.subr.mxu1 %v4510_v28  ;;  %4864 = vmatprep.subr.mxu0 %v4574_v37  ;;  %v8610_v28 = vld [vmem:[#allocation2] sm:$0xff]  ;;  %v8611_v37 = vld [vmem:[#allocation2 + $0x1f8] sm:$0xff] }
0x14c8   : > { %4794 = vmatpush2.msra.mxu1 %v4509_v45  ;;  %4865 = vmatpush2.msra.mxu0 %v4573_v38  ;;  %v8612_v45 = vld [vmem:[#allocation2 + $0x1f0] sm:$0xff]  ;;  %v8613_v38 = vld [vmem:[#allocation2 + $0x1e8] sm:$0xff] }
0x14c9   : > { %4795 = vmatprep.subr.mxu1 %v4508_v46  ;;  %4866 = vmatprep.subr.mxu0 %v4572_v40  ;;  %v8614_v46 = vld [vmem:[#allocation2 + $0x1e0] sm:$0xff]  ;;  %v8615_v40 = vld [vmem:[#allocation2 + $0x1d8] sm:$0xff] }
0x14ca   : > { %4796 = vmatpush2.msra.mxu1 %v4507_v21  ;;  %4867 = vmatpush2.msra.mxu0 %v4571_v23  ;;  %v8616_v21 = vld [vmem:[#allocation2 + $0x1d0] sm:$0xff]  ;;  %v8617_v23 = vld [vmem:[#allocation2 + $0x1c8] sm:$0xff] }
0x14cb   : > { %v4241_v43 = vpop.f32.mrf.mxu1  ;;  %v4312_v44 = vpop.f32.mrf.mxu0  ;;  %4797 = vmatprep.subr.mxu1 %v4506_v26  ;;  %4868 = vmatprep.subr.mxu0 %v4570_v60  ;;  %v8618_v26 = vld [vmem:[#allocation2 + $0x1c0] sm:$0xff]  ;;  %v8619_v60 = vld [vmem:[#allocation2 + $0x1b8] sm:$0xff] }
0x14cc   : > { %4798 = vmatpush2.msra.mxu1 %v4505_v20  ;;  %4869 = vmatpush2.msra.mxu0 %v4569_v24  ;;  %vm4321_vm6 = vcmp.ge.f32.partialorder %v4241_v43, 0.0  ;;  %v4329_v33 = vmul.f32 0.01, %v4241_v43  ;;  %vm4323_vm7 = vcmp.ge.f32.partialorder %v4312_v44, 0.0  ;;  %v4331_v8 = vmul.f32 0.01, %v4312_v44 }
0x14cd   : > { %v4243_v55 = vpop.f32.mrf.mxu1  ;;  %v4314_v34 = vpop.f32.mrf.mxu0  ;;  %4799 = vmatprep.subr.mxu1 %v4504_v27  ;;  %4870 = vmatprep.subr.mxu0 %v4568_v42  ;;  %v8620_v20 = vld [vmem:[#allocation2 + $0x1b0] sm:$0xff]  ;;  %v8621_v24 = vld [vmem:[#allocation2 + $0x1a8] sm:$0xff]  ;;  %v8622_v27 = vld [vmem:[#allocation2 + $0x1a0] sm:$0xff] }
0x14ce   : > { %vm4322_vm8 = vcmp.ge.f32.partialorder %v4243_v55, 0.0  ;;  %v4330_v35 = vmul.f32 0.01, %v4243_v55  ;;  %vm4324_vm9 = vcmp.ge.f32.partialorder %v4314_v34, 0.0  ;;  %v4332_v56 = vmul.f32 0.01, %v4314_v34  ;;  %4800 = vmatpush2.msra.mxu1 %v4503_v17  ;;  %4871 = vmatpush2.msra.mxu0 %v4567_v50 }
0x14cf   : > { %4801 = vmatprep.subr.mxu1 %v4502_v6  ;;  %4872 = vmatprep.subr.mxu0 %v4566_v52  ;;  %v4337_v59 = vsel %vm4321_vm6, %v4241_v43, %v4329_v33  ;;  %v4339_v61 = vsel %vm4323_vm7, %v4312_v44, %v4331_v8  ;;  %v8623_v42 = vld [vmem:[#allocation2 + $0x198] sm:$0xff]  ;;  %v8624_v43 = vld [vmem:[#allocation2 + $0x190] sm:$0xff]  ;;  %v8625_v44 = vld [vmem:[#allocation2 + $0x188] sm:$0xff] }
0x14d0   : > { %4802 = vmatpush2.msra.mxu1 %v4501_v53  ;;  %v4338_v57 = vsel %vm4322_vm8, %v4243_v55, %v4330_v35  ;;  %4873 = vmatpush2.msra.mxu0 %v4565_v54  ;;  %v4340_v39 = vsel %vm4324_vm9, %v4314_v34, %v4332_v56  ;;  %v8626_v17 = vld [vmem:[#allocation2 + $0x180] sm:$0xff]  ;;  %v8627_v50 = vld [vmem:[#allocation2 + $0x178] sm:$0xff]  ;;  %v8628_v6 = vld [vmem:[#allocation2 + $0x170] sm:$0xff] }
0x14d1   : > { %4803 = vmatprep.mubr.f32.mxu1 %v4338_v57  ;;  %4874 = vmatprep.mubr.f32.mxu0 %v4340_v39  ;;  %v8629_v52 = vld [vmem:[#allocation2 + $0x168] sm:$0xff]  ;;  %v8630_v53 = vld [vmem:[#allocation2 + $0x160] sm:$0xff]  ;;  %v8631_v54 = vld [vmem:[#allocation2 + $0x158] sm:$0xff] }
0x14d2   : > { %4804 = vmatmul.mubr.f32.vlgmr.msra.gmra.mxu1 %v4337_v59  ;;  %4875 = vmatmul.mubr.f32.vlgmr.msra.gmra.mxu0 %v4339_v61  ;;  %v8632_v33 = vld [vmem:[#allocation2 + $0x150] sm:$0xff]  ;;  %v8633_v8 = vld [vmem:[#allocation2 + $0x148] sm:$0xff]  ;;  %v8634_v55 = vld [vmem:[#allocation2 + $0x140] sm:$0xff] }
0x14d3   : > { %4887 = vmatprep.subr.mxu1 %v8579_v63  ;;  %5032 = vmatprep.mubr.f32.mxu0 %v9843_v4  ;;  %v8635_v34 = vld [vmem:[#allocation2 + $0x138] sm:$0xff]  ;;  %v8636_v35 = vld [vmem:[#allocation2 + $0x130] sm:$0xff]  ;;  %v8637_v56 = vld [vmem:[#allocation2 + $0x128] sm:$0xff] }
0x14d4   : > { %4888 = vmatpush1.msra.mxu1 %v8580_v36  ;;  %v8638_v57 = vld [vmem:[#allocation2 + $0x120] sm:$0xff]  ;;  %v8639_v39 = vld [vmem:[#allocation2 + $0x118] sm:$0xff]  ;;  %v8640_v59 = vld [vmem:[#allocation2 + $0x110] sm:$0xff] }
0x14d5   : > { %4889 = vmatprep.subr.mxu1 %v8581_v0  ;;  %v8641_v61 = vld [vmem:[#allocation2 + $0x108] sm:$0xff]  ;;  %v8642_v63 = vld [vmem:[#allocation2 + $0x100] sm:$0xff] }
0x14d6   : > { %4890 = vmatpush1.msra.mxu1 %v8582_v16 }
0x14d7   : > { %4891 = vmatprep.subr.mxu1 %v8583_v3 }
0x14d8   : > { %4892 = vmatpush1.msra.mxu1 %v8584_v48 }
0x14d9   : > { %4893 = vmatprep.subr.mxu1 %v8585_v5 }
0x14da   : > { %4894 = vmatpush1.msra.mxu1 %v8586_v49 }
0x14db   : > { %4895 = vmatprep.subr.mxu1 %v8587_v7 }
0x14dc   : > { %4896 = vmatpush1.msra.mxu1 %v8588_v11 }
0x14dd   : > { %4897 = vmatprep.subr.mxu1 %v8589_v12 }
0x14de   : > { %4898 = vmatpush1.msra.mxu1 %v8590_v13 }
0x14df   : > { %4899 = vmatprep.subr.mxu1 %v8591_v14 }
0x14e0   : > { %4900 = vmatpush1.msra.mxu1 %v8592_v15 }
0x14e1   : > { %4901 = vmatprep.subr.mxu1 %v8593_v58 }
0x14e2   : > { %4902 = vmatpush1.msra.mxu1 %v8594_v18 }
0x14e3   : > { %4903 = vmatprep.subr.mxu1 %v8595_v41 }
0x14e4   : > { %4904 = vmatpush1.msra.mxu1 %v8596_v19  ;;  %v4958_v19 = vld [vmem:[%s9965_s11] sm:$0xf] }
0x14e5   : > { %4905 = vmatprep.subr.mxu1 %v8597_v62  ;;  %v8643_v62 = vld [vmem:[#allocation2 + $0x2f8] sm:$0xff] }
0x14e6   : > { %4906 = vmatpush1.msra.mxu1 %v8598_v22  ;;  %v8644_v22 = vld [vmem:[#allocation2 + $0x2f0] sm:$0xff] }
0x14e7   : > { %4907 = vmatprep.subr.mxu1 %v8599_v25  ;;  %v8645_v25 = vld [vmem:[#allocation2 + $0x2e8] sm:$0xff] }
0x14e8   : > { %4908 = vmatpush1.msra.mxu1 %v8600_v1  ;;  %v8646_v1 = vld [vmem:[#allocation2 + $0x2e0] sm:$0xff] }
0x14e9   : > { %4909 = vmatprep.subr.mxu1 %v8601_v31  ;;  %v8647_v31 = vld [vmem:[#allocation2 + $0x2d8] sm:$0xff] }
0x14ea   : > { %4910 = vmatpush1.msra.mxu1 %v8602_v2  ;;  %v8648_v2 = vld [vmem:[#allocation2 + $0x2d0] sm:$0xff] }
0x14eb   : > { %4911 = vmatprep.subr.mxu1 %v8603_v29  ;;  %v8649_v29 = vld [vmem:[#allocation2 + $0x2c8] sm:$0xff] }
0x14ec   : > { %4912 = vmatpush1.msra.mxu1 %v8604_v30  ;;  %v8650_v30 = vld [vmem:[#allocation2 + $0x2c0] sm:$0xff] }
0x14ed   : > { %4913 = vmatprep.subr.mxu1 %v8605_v51  ;;  %v8651_v51 = vld [vmem:[#allocation2 + $0x2b8] sm:$0xff] }
0x14ee   : > { %4914 = vmatpush1.msra.mxu1 %v8606_v47  ;;  %v8652_v47 = vld [vmem:[#allocation2 + $0x2b0] sm:$0xff] }
0x14ef   : > { %4915 = vmatprep.subr.mxu1 %v8607_v9  ;;  %v8653_v9 = vld [vmem:[#allocation2 + $0x2a8] sm:$0xff] }
0x14f0   : > { %4916 = vmatpush1.msra.mxu1 %v8608_v32  ;;  %v8654_v32 = vld [vmem:[#allocation2 + $0x2a0] sm:$0xff] }
0x14f1   : > { %4917 = vmatprep.subr.mxu1 %v8609_v10  ;;  %v8655_v10 = vld [vmem:[#allocation2 + $0x298] sm:$0xff] }
0x14f2   : > { %4918 = vmatpush1.msra.mxu1 %v8610_v28  ;;  %v8656_v28 = vld [vmem:[#allocation2 + $0x290] sm:$0xff] }
0x14f3   : > { %4919 = vmatprep.subr.mxu1 %v8611_v37  ;;  %v8657_v37 = vld [vmem:[#allocation2 + $0x288] sm:$0xff] }
0x14f4   : > { %4920 = vmatpush2.msra.mxu1 %v8612_v45  ;;  %v8658_v45 = vld [vmem:[#allocation2 + $0x280] sm:$0xff] }
0x14f5   : > { %4921 = vmatprep.subr.mxu1 %v8613_v38  ;;  %v8659_v38 = vld [vmem:[#allocation2 + $0x278] sm:$0xff] }
0x14f6   : > { %4922 = vmatpush2.msra.mxu1 %v8614_v46  ;;  %v8660_v46 = vld [vmem:[#allocation2 + $0x270] sm:$0xff] }
0x14f7   : > { %4923 = vmatprep.subr.mxu1 %v8615_v40  ;;  %v8661_v40 = vld [vmem:[#allocation2 + $0x268] sm:$0xff] }
0x14f8   : > { %4924 = vmatpush2.msra.mxu1 %v8616_v21  ;;  %v8662_v21 = vld [vmem:[#allocation2 + $0x260] sm:$0xff] }
0x14f9   : > { %4925 = vmatprep.subr.mxu1 %v8617_v23  ;;  %v8663_v23 = vld [vmem:[#allocation2 + $0x258] sm:$0xff] }
0x14fa   : > { %4926 = vmatpush2.msra.mxu1 %v8618_v26  ;;  %v8664_v26 = vld [vmem:[#allocation2 + $0x250] sm:$0xff] }
0x14fb   : > { %4927 = vmatprep.subr.mxu1 %v8619_v60  ;;  %v8665_v60 = vld [vmem:[#allocation2 + $0x248] sm:$0xff] }
0x14fc   : > { %4928 = vmatpush2.msra.mxu1 %v8620_v20  ;;  %v8666_v20 = vld [vmem:[#allocation2 + $0x240] sm:$0xff] }
0x14fd   : > { %4929 = vmatprep.subr.mxu1 %v8621_v24  ;;  %v8667_v24 = vld [vmem:[#allocation2 + $0x238] sm:$0xff] }
0x14fe   : > { %4930 = vmatpush2.msra.mxu1 %v8622_v27  ;;  %v8668_v27 = vld [vmem:[#allocation2 + $0x230] sm:$0xff] }
0x14ff   : > { %4931 = vmatprep.subr.mxu1 %v8623_v42  ;;  %v8669_v42 = vld [vmem:[#allocation2 + $0x228] sm:$0xff] }
0x1500   : > { %4932 = vmatpush2.msra.mxu1 %v8624_v43  ;;  %v8670_v43 = vld [vmem:[#allocation2 + $0x220] sm:$0xff] }
0x1501   : > { %4933 = vmatprep.subr.mxu1 %v8625_v44  ;;  %v8671_v44 = vld [vmem:[#allocation2 + $0x218] sm:$0xff] }
0x1502   : > { %4934 = vmatpush2.msra.mxu1 %v8626_v17  ;;  %v8672_v17 = vld [vmem:[#allocation2 + $0x210] sm:$0xff] }
0x1503   : > { %4935 = vmatprep.subr.mxu1 %v8627_v50  ;;  %v8673_v50 = vld [vmem:[#allocation2 + $0x208] sm:$0xff] }
0x1504   : > { %4936 = vmatpush2.msra.mxu1 %v8628_v6  ;;  %v8674_v6 = vld [vmem:[#allocation2 + $0x200] sm:$0xff] }
0x1505   : > { %4937 = vmatprep.subr.mxu1 %v8629_v52  ;;  %v8675_v52 = vld [vmem:[#allocation2 + $0x3f8] sm:$0xff] }
0x1506   : > { %4938 = vmatpush2.msra.mxu1 %v8630_v53  ;;  %v8676_v53 = vld [vmem:[#allocation2 + $0x3f0] sm:$0xff] }
0x1507   : > { %4939 = vmatprep.subr.mxu1 %v8631_v54  ;;  %v8677_v54 = vld [vmem:[#allocation2 + $0x3e8] sm:$0xff] }
0x1508   : > { %4940 = vmatpush2.msra.mxu1 %v8632_v33  ;;  %v8678_v33 = vld [vmem:[#allocation2 + $0x3e0] sm:$0xff] }
0x1509   : > { %4941 = vmatprep.subr.mxu1 %v8633_v8  ;;  %v8679_v8 = vld [vmem:[#allocation2 + $0x3d8] sm:$0xff] }
0x150a   : > { %4942 = vmatpush2.msra.mxu1 %v8634_v55  ;;  %v8680_v55 = vld [vmem:[#allocation2 + $0x3d0] sm:$0xff] }
0x150b   : > { %4943 = vmatprep.subr.mxu1 %v8635_v34  ;;  %v8681_v34 = vld [vmem:[#allocation2 + $0x3c8] sm:$0xff] }
0x150c   : > { %4944 = vmatpush2.msra.mxu1 %v8636_v35  ;;  %v8682_v35 = vld [vmem:[#allocation2 + $0x3c0] sm:$0xff] }
0x150d   : > { %4945 = vmatprep.subr.mxu1 %v8637_v56  ;;  %v8683_v56 = vld [vmem:[#allocation2 + $0x3b8] sm:$0xff] }
0x150e   : > { %4946 = vmatpush2.msra.mxu1 %v8638_v57  ;;  %v8684_v57 = vld [vmem:[#allocation2 + $0x3b0] sm:$0xff] }
0x150f   : > { %4947 = vmatprep.subr.mxu1 %v8639_v39  ;;  %v8685_v39 = vld [vmem:[#allocation2 + $0x3a8] sm:$0xff] }
0x1510   : > { %4948 = vmatpush2.msra.mxu1 %v8640_v59  ;;  %v8686_v59 = vld [vmem:[#allocation2 + $0x3a0] sm:$0xff] }
0x1511   : > { %4949 = vmatprep.subr.mxu1 %v8641_v61  ;;  %v8687_v61 = vld [vmem:[#allocation2 + $0x398] sm:$0xff] }
0x1512   : > { %4950 = vmatpush2.msra.mxu1 %v8642_v63  ;;  %v8688_v63 = vld [vmem:[#allocation2 + $0x390] sm:$0xff] }
0x1551   : > { %v4663_v36 = vpop.f32.mrf.mxu1  ;;  %v4734_v0 = vpop.f32.mrf.mxu0 }
0x1552   : > { %v4735_v48 = vadd.f32 %v4734_v0, %v4663_v36  ;;  %v8689_v36 = vld [vmem:[#allocation2 + $0x388] sm:$0xff]  ;;  %v8690_v0 = vld [vmem:[#allocation2 + $0x380] sm:$0xff] }
0x1553   : > { %v4665_v16 = vpop.f32.mrf.mxu1  ;;  %v4736_v3 = vpop.f32.mrf.mxu0 }
0x1554   : > { %v4737_v7 = vadd.f32 %v4736_v3, %v4665_v16  ;;  %v8691_v16 = vld [vmem:[#allocation2 + $0x378] sm:$0xff]  ;;  %v8692_v3 = vld [vmem:[#allocation2 + $0x370] sm:$0xff] }
0x1592   : > { %v4805_v5 = vpop.f32.mrf.mxu1  ;;  %v4876_v49 = vpop.f32.mrf.mxu0 }
0x1593   : > { %v4806_v11 = vadd.f32 %v4805_v5, %v4735_v48  ;;  %v8693_v48 = vld [vmem:[#allocation2 + $0x368] sm:$0xff]  ;;  %v8694_v5 = vld [vmem:[#allocation2 + $0x360] sm:$0xff] }
0x1594   : > { %v4807_v12 = vpop.f32.mrf.mxu1  ;;  %v4878_v14 = vpop.f32.mrf.mxu0 }
0x1595   : > { %v4808_v13 = vadd.f32 %v4807_v12, %v4737_v7  ;;  %v10290_v58 = vadd.f32 %v4876_v49, %v4806_v11  ;;  %v8695_v49 = vld [vmem:[#allocation2 + $0x358] sm:$0xff]  ;;  %v8696_v7 = vld [vmem:[#allocation2 + $0x350] sm:$0xff]  ;;  %v8697_v11 = vld [vmem:[#allocation2 + $0x348] sm:$0xff] }
0x1596   : > { %v8698_v12 = vld [vmem:[#allocation2 + $0x340] sm:$0xff] }
0x1597   : > { %v10288_v15 = vadd.f32 %v4878_v14, %v4808_v13  ;;  %v8699_v13 = vld [vmem:[#allocation2 + $0x338] sm:$0xff]  ;;  %v8700_v14 = vld [vmem:[#allocation2 + $0x330] sm:$0xff] }
0x1599   : > { %4951 = vmatprep.mubr.f32.mxu1 %v10288_v15 }
0x159a   : > { %4952 = vmatmul.mubr.f32.vlgmr.msra.gmra.mxu1 %v10290_v58 }
0x159b   : > { %5187 = vmatprep.mubr.f32.mxu1 %v9843_v4 }
0x165a   : > { %v4953_v18 = vpop.f32.mrf.mxu1 }
0x165c   : > { %v4955_v41 = vpop.f32.mrf.mxu1 }
0x165d   : > { %7871 = vmatprep.subr.msk.mxu0 %vm519_vm0, %v4955_v41  ;;  %v8702_v41 = vld [vmem:[#allocation2 + $0x320] sm:$0xff] }
0x165e   : > { %7872 = vmatpush1.msk.msra.mxu0 %vm519_vm0, %v4953_v18  ;;  %v8701_v18 = vld [vmem:[#allocation2 + $0x328] sm:$0xff] }
0x165f   : > { %7873 = vmatmul.mubr.msk.f32.vlgmr.msra.gmra.mxu0 %vm515_vm1, %v4958_v19  ;;  %5041 = vmatprep.subr.mxu0 %v8643_v62  ;;  %v8703_v19 = vld [vmem:[#allocation2 + $0x318] sm:$0xff]  ;;  %v8704_v62 = vld [vmem:[#allocation2 + $0x310] sm:$0xff] }
0x1660   : > { %5042 = vmatpush1.msra.mxu0 %v8644_v22  ;;  %5105 = vmatprep.mubr.f32.mxu0 %v10288_v15  ;;  %v8705_v22 = vld [vmem:[#allocation2 + $0x308] sm:$0xff] }
0x1661   : > { %5043 = vmatprep.subr.mxu0 %v8645_v25  ;;  %v8706_v25 = vld [vmem:[#allocation2 + $0x300] sm:$0xff] }
0x1662   : > { %5044 = vmatpush1.msra.mxu0 %v8646_v1 }
0x1663   : > { %5045 = vmatprep.subr.mxu0 %v8647_v31 }
0x1664   : > { %5046 = vmatpush1.msra.mxu0 %v8648_v2 }
0x1665   : > { %5047 = vmatprep.subr.mxu0 %v8649_v29 }
0x1666   : > { %5048 = vmatpush1.msra.mxu0 %v8650_v30  ;;  %v7874_v30 = vld [vmem:[%s9965_s11 + $0x4] sm:$0xf] }
0x1667   : > { %5049 = vmatprep.subr.mxu0 %v8651_v51  ;;  %v8707_v51 = vld [vmem:[#allocation2 + $0x4f8] sm:$0xff] }
0x1668   : > { %5050 = vmatpush1.msra.mxu0 %v8652_v47  ;;  %v8708_v47 = vld [vmem:[#allocation2 + $0x4f0] sm:$0xff] }
0x1669   : > { %5051 = vmatprep.subr.mxu0 %v8653_v9  ;;  %v8709_v9 = vld [vmem:[#allocation2 + $0x4e8] sm:$0xff] }
0x166a   : > { %5052 = vmatpush1.msra.mxu0 %v8654_v32  ;;  %v8710_v32 = vld [vmem:[#allocation2 + $0x4e0] sm:$0xff] }
0x166b   : > { %5053 = vmatprep.subr.mxu0 %v8655_v10  ;;  %v8711_v10 = vld [vmem:[#allocation2 + $0x4d8] sm:$0xff] }
0x166c   : > { %5054 = vmatpush1.msra.mxu0 %v8656_v28  ;;  %v8712_v28 = vld [vmem:[#allocation2 + $0x4d0] sm:$0xff] }
0x166d   : > { %5055 = vmatprep.subr.mxu0 %v8657_v37  ;;  %v8713_v37 = vld [vmem:[#allocation2 + $0x4c8] sm:$0xff] }
0x166e   : > { %5056 = vmatpush1.msra.mxu0 %v8658_v45  ;;  %v8714_v45 = vld [vmem:[#allocation2 + $0x4c0] sm:$0xff] }
0x166f   : > { %5057 = vmatprep.subr.mxu0 %v8659_v38  ;;  %v8715_v38 = vld [vmem:[#allocation2 + $0x4b8] sm:$0xff] }
0x1670   : > { %5058 = vmatpush1.msra.mxu0 %v8660_v46  ;;  %v8716_v46 = vld [vmem:[#allocation2 + $0x4b0] sm:$0xff] }
0x1671   : > { %5059 = vmatprep.subr.mxu0 %v8661_v40  ;;  %v8717_v40 = vld [vmem:[#allocation2 + $0x4a8] sm:$0xff] }
0x1672   : > { %5060 = vmatpush1.msra.mxu0 %v8662_v21  ;;  %v8718_v21 = vld [vmem:[#allocation2 + $0x4a0] sm:$0xff] }
0x1673   : > { %5061 = vmatprep.subr.mxu0 %v8663_v23  ;;  %v8719_v23 = vld [vmem:[#allocation2 + $0x498] sm:$0xff] }
0x1674   : > { %5062 = vmatpush1.msra.mxu0 %v8664_v26  ;;  %v8720_v26 = vld [vmem:[#allocation2 + $0x490] sm:$0xff] }
0x1675   : > { %5063 = vmatprep.subr.mxu0 %v8665_v60  ;;  %v8721_v60 = vld [vmem:[#allocation2 + $0x488] sm:$0xff] }
0x1676   : > { %5064 = vmatpush1.msra.mxu0 %v8666_v20  ;;  %v8722_v20 = vld [vmem:[#allocation2 + $0x480] sm:$0xff] }
0x1677   : > { %5065 = vmatprep.subr.mxu0 %v8667_v24  ;;  %v8723_v24 = vld [vmem:[#allocation2 + $0x478] sm:$0xff] }
0x1678   : > { %5066 = vmatpush1.msra.mxu0 %v8668_v27  ;;  %v8724_v27 = vld [vmem:[#allocation2 + $0x470] sm:$0xff] }
0x1679   : > { %5067 = vmatprep.subr.mxu0 %v8669_v42  ;;  %v8725_v42 = vld [vmem:[#allocation2 + $0x468] sm:$0xff] }
0x167a   : > { %5068 = vmatpush1.msra.mxu0 %v8670_v43  ;;  %v8726_v43 = vld [vmem:[#allocation2 + $0x460] sm:$0xff] }
0x167b   : > { %5069 = vmatprep.subr.mxu0 %v8671_v44  ;;  %v8727_v44 = vld [vmem:[#allocation2 + $0x458] sm:$0xff] }
0x167c   : > { %5070 = vmatpush1.msra.mxu0 %v8672_v17  ;;  %v8728_v17 = vld [vmem:[#allocation2 + $0x450] sm:$0xff] }
0x167d   : > { %5071 = vmatprep.subr.mxu0 %v8673_v50  ;;  %v8729_v50 = vld [vmem:[#allocation2 + $0x448] sm:$0xff] }
0x167e   : > { %5072 = vmatpush1.msra.mxu0 %v8674_v6  ;;  %v8730_v6 = vld [vmem:[#allocation2 + $0x440] sm:$0xff] }
0x167f   : > { %5073 = vmatprep.subr.mxu0 %v8675_v52  ;;  %v8731_v52 = vld [vmem:[#allocation2 + $0x438] sm:$0xff] }
0x1680   : > { %5074 = vmatpush2.msra.mxu0 %v8676_v53  ;;  %v8732_v53 = vld [vmem:[#allocation2 + $0x430] sm:$0xff] }
0x1681   : > { %5075 = vmatprep.subr.mxu0 %v8677_v54  ;;  %v8733_v54 = vld [vmem:[#allocation2 + $0x428] sm:$0xff] }
0x1682   : > { %5076 = vmatpush2.msra.mxu0 %v8678_v33  ;;  %v8734_v33 = vld [vmem:[#allocation2 + $0x420] sm:$0xff] }
0x1683   : > { %5077 = vmatprep.subr.mxu0 %v8679_v8  ;;  %v8735_v8 = vld [vmem:[#allocation2 + $0x418] sm:$0xff] }
0x1684   : > { %5078 = vmatpush2.msra.mxu0 %v8680_v55  ;;  %v8736_v55 = vld [vmem:[#allocation2 + $0x410] sm:$0xff] }
0x1685   : > { %5079 = vmatprep.subr.mxu0 %v8681_v34  ;;  %v8737_v34 = vld [vmem:[#allocation2 + $0x408] sm:$0xff] }
0x1686   : > { %5080 = vmatpush2.msra.mxu0 %v8682_v35  ;;  %v8738_v35 = vld [vmem:[#allocation2 + $0x400] sm:$0xff] }
0x1687   : > { %5081 = vmatprep.subr.mxu0 %v8683_v56  ;;  %v8739_v56 = vld [vmem:[#allocation2 + $0x5f8] sm:$0xff] }
0x1688   : > { %5082 = vmatpush2.msra.mxu0 %v8684_v57  ;;  %v8740_v57 = vld [vmem:[#allocation2 + $0x5f0] sm:$0xff] }
0x1689   : > { %5083 = vmatprep.subr.mxu0 %v8685_v39  ;;  %v8741_v39 = vld [vmem:[#allocation2 + $0x5e8] sm:$0xff] }
0x168a   : > { %5084 = vmatpush2.msra.mxu0 %v8686_v59  ;;  %v8742_v59 = vld [vmem:[#allocation2 + $0x5e0] sm:$0xff] }
0x168b   : > { %5085 = vmatprep.subr.mxu0 %v8687_v61  ;;  %v8743_v61 = vld [vmem:[#allocation2 + $0x5d8] sm:$0xff] }
0x168c   : > { %5086 = vmatpush2.msra.mxu0 %v8688_v63  ;;  %v8744_v63 = vld [vmem:[#allocation2 + $0x5d0] sm:$0xff] }
0x168d   : > { %5087 = vmatprep.subr.mxu0 %v8689_v36  ;;  %v8745_v36 = vld [vmem:[#allocation2 + $0x5c8] sm:$0xff] }
0x168e   : > { %5088 = vmatpush2.msra.mxu0 %v8690_v0  ;;  %v8746_v0 = vld [vmem:[#allocation2 + $0x5c0] sm:$0xff] }
0x168f   : > { %5089 = vmatprep.subr.mxu0 %v8691_v16  ;;  %v8747_v16 = vld [vmem:[#allocation2 + $0x5b8] sm:$0xff] }
0x1690   : > { %5090 = vmatpush2.msra.mxu0 %v8692_v3  ;;  %v8748_v3 = vld [vmem:[#allocation2 + $0x5b0] sm:$0xff] }
0x1691   : > { %5091 = vmatprep.subr.mxu0 %v8693_v48  ;;  %v8749_v48 = vld [vmem:[#allocation2 + $0x5a8] sm:$0xff] }
0x1692   : > { %5092 = vmatpush2.msra.mxu0 %v8694_v5  ;;  %v8750_v5 = vld [vmem:[#allocation2 + $0x5a0] sm:$0xff] }
0x1693   : > { %5093 = vmatprep.subr.mxu0 %v8695_v49  ;;  %v8751_v49 = vld [vmem:[#allocation2 + $0x598] sm:$0xff] }
0x1694   : > { %5094 = vmatpush2.msra.mxu0 %v8696_v7  ;;  %v8752_v7 = vld [vmem:[#allocation2 + $0x590] sm:$0xff] }
0x1695   : > { %5095 = vmatprep.subr.mxu0 %v8697_v11  ;;  %v8753_v11 = vld [vmem:[#allocation2 + $0x588] sm:$0xff] }
0x1696   : > { %5096 = vmatpush2.msra.mxu0 %v8698_v12  ;;  %v8754_v12 = vld [vmem:[#allocation2 + $0x580] sm:$0xff] }
0x1697   : > { %5097 = vmatprep.subr.mxu0 %v8699_v13  ;;  %v8755_v13 = vld [vmem:[#allocation2 + $0x578] sm:$0xff] }
0x1698   : > { %5098 = vmatpush2.msra.mxu0 %v8700_v14  ;;  %v8756_v14 = vld [vmem:[#allocation2 + $0x570] sm:$0xff] }
0x1699   : > { %5099 = vmatprep.subr.mxu0 %v8701_v18  ;;  %v8757_v18 = vld [vmem:[#allocation2 + $0x568] sm:$0xff] }
0x169a   : > { %5100 = vmatpush2.msra.mxu0 %v8702_v41  ;;  %v8758_v41 = vld [vmem:[#allocation2 + $0x560] sm:$0xff] }
0x169b   : > { %5101 = vmatprep.subr.mxu0 %v8703_v19  ;;  %v8759_v19 = vld [vmem:[#allocation2 + $0x558] sm:$0xff] }
0x169c   : > { %5102 = vmatpush2.msra.mxu0 %v8704_v62  ;;  %v8760_v62 = vld [vmem:[#allocation2 + $0x550] sm:$0xff] }
0x169d   : > { %5103 = vmatprep.subr.mxu0 %v8705_v22  ;;  %v8761_v22 = vld [vmem:[#allocation2 + $0x548] sm:$0xff] }
0x169e   : > { %5104 = vmatpush2.msra.mxu0 %v8706_v25  ;;  %v8762_v25 = vld [vmem:[#allocation2 + $0x540] sm:$0xff] }
0x169f   : > { %5106 = vmatmul.mubr.f32.vlgmr.msra.gmra.mxu0 %v10290_v58 }
0x16a0   : > { %5342 = vmatprep.mubr.f32.mxu0 %v9843_v4 }
0x171f   : > { %v10302_v1 = vpop.f32.mrf.mxu0 }
0x1721   : > { %v10304_v31 = vpop.f32.mrf.mxu0 }
0x175f   : > { %v5107_v2 = vpop.f32.mrf.mxu0 }
0x1761   : > { %v5109_v29 = vpop.f32.mrf.mxu0 }
0x1762   : > { %7875 = vmatprep.subr.msk.mxu1 %vm519_vm0, %v5109_v29  ;;  %v8764_v29 = vld [vmem:[#allocation2 + $0x530] sm:$0xff] }
0x1763   : > { %7876 = vmatpush1.msk.msra.mxu1 %vm519_vm0, %v5107_v2  ;;  %v8763_v2 = vld [vmem:[#allocation2 + $0x538] sm:$0xff] }
0x1764   : > { %7877 = vmatmul.mubr.msk.f32.vlgmr.msra.gmra.mxu1 %vm515_vm1, %v7874_v30  ;;  %5196 = vmatprep.subr.mxu1 %v8707_v51  ;;  %v8765_v30 = vld [vmem:[#allocation2 + $0x528] sm:$0xff]  ;;  %v8766_v51 = vld [vmem:[#allocation2 + $0x520] sm:$0xff] }
0x1765   : > { %5197 = vmatpush1.msra.mxu1 %v8708_v47  ;;  %5260 = vmatprep.mubr.f32.mxu1 %v10288_v15  ;;  %v8767_v47 = vld [vmem:[#allocation2 + $0x518] sm:$0xff] }
0x1766   : > { %5198 = vmatprep.subr.mxu1 %v8709_v9  ;;  %v8768_v9 = vld [vmem:[#allocation2 + $0x510] sm:$0xff] }
0x1767   : > { %5199 = vmatpush1.msra.mxu1 %v8710_v32  ;;  %v8769_v32 = vld [vmem:[#allocation2 + $0x508] sm:$0xff] }
0x1768   : > { %5200 = vmatprep.subr.mxu1 %v8711_v10  ;;  %v8770_v10 = vld [vmem:[#allocation2 + $0x500] sm:$0xff] }
0x1769   : > { %5201 = vmatpush1.msra.mxu1 %v8712_v28  ;;  %v10313_v28 = vpop.permute.xlu1 %4883 }
0x176a   : > { %5202 = vmatprep.subr.mxu1 %v8713_v37  ;;  %v5039_v37 = vadd.f32 %v10302_v1, %v10313_v28  ;;  %v8772_v1 = vld [vmem:[#allocation2 + $0x6f0] sm:$0xff] }
0x176b   : > { %5203 = vmatpush1.msra.mxu1 %v8714_v45 }
0x176c   : > { %5204 = vmatprep.subr.mxu1 %v8715_v38  ;;  %v5040_v38 = vadd.f32 %v10304_v31, %v10313_v28  ;;  %v8773_v31 = vld [vmem:[#allocation2 + $0x6e8] sm:$0xff] }
0x176d   : > { %5205 = vmatpush1.msra.mxu1 %v8716_v46 }
0x176e   : > { %5206 = vmatprep.subr.mxu1 %v8717_v40 }
0x176f   : > { %5207 = vmatpush1.msra.mxu1 %v8718_v21 }
0x1770   : > { %5208 = vmatprep.subr.mxu1 %v8719_v23 }
0x1771   : > { %5209 = vmatpush1.msra.mxu1 %v8720_v26 }
0x1772   : > { %5210 = vmatprep.subr.mxu1 %v8721_v60  ;;  %v7878_v60 = vld [vmem:[%s9965_s11 + $0x8] sm:$0xf] }
0x1773   : > { %5211 = vmatpush1.msra.mxu1 %v8722_v20  ;;  %v8771_v20 = vld [vmem:[#allocation2 + $0x6f8] sm:$0xff] }
0x1774   : > { %5212 = vmatprep.subr.mxu1 %v8723_v24  ;;  %v8774_v24 = vld [vmem:[#allocation2 + $0x6e0] sm:$0xff] }
0x1775   : > { %5213 = vmatpush1.msra.mxu1 %v8724_v27  ;;  %v8775_v27 = vld [vmem:[#allocation2 + $0x6d8] sm:$0xff] }
0x1776   : > { %5214 = vmatprep.subr.mxu1 %v8725_v42  ;;  %v8776_v42 = vld [vmem:[#allocation2 + $0x6d0] sm:$0xff] }
0x1777   : > { %5215 = vmatpush1.msra.mxu1 %v8726_v43  ;;  %v8777_v43 = vld [vmem:[#allocation2 + $0x6c8] sm:$0xff] }
0x1778   : > { %5216 = vmatprep.subr.mxu1 %v8727_v44  ;;  %v8778_v44 = vld [vmem:[#allocation2 + $0x6c0] sm:$0xff] }
0x1779   : > { %5217 = vmatpush1.msra.mxu1 %v8728_v17  ;;  %v8779_v17 = vld [vmem:[#allocation2 + $0x6b8] sm:$0xff] }
0x177a   : > { %5218 = vmatprep.subr.mxu1 %v8729_v50  ;;  %v8780_v50 = vld [vmem:[#allocation2 + $0x6b0] sm:$0xff] }
0x177b   : > { %5219 = vmatpush1.msra.mxu1 %v8730_v6  ;;  %v8781_v6 = vld [vmem:[#allocation2 + $0x6a8] sm:$0xff] }
0x177c   : > { %5220 = vmatprep.subr.mxu1 %v8731_v52  ;;  %v8782_v52 = vld [vmem:[#allocation2 + $0x6a0] sm:$0xff] }
0x177d   : > { %5221 = vmatpush1.msra.mxu1 %v8732_v53  ;;  %v8783_v53 = vld [vmem:[#allocation2 + $0x698] sm:$0xff] }
0x177e   : > { %5222 = vmatprep.subr.mxu1 %v8733_v54  ;;  %v8784_v54 = vld [vmem:[#allocation2 + $0x690] sm:$0xff] }
0x177f   : > { %5223 = vmatpush1.msra.mxu1 %v8734_v33  ;;  %v8785_v33 = vld [vmem:[#allocation2 + $0x688] sm:$0xff] }
0x1780   : > { %5224 = vmatprep.subr.mxu1 %v8735_v8  ;;  %v8786_v8 = vld [vmem:[#allocation2 + $0x680] sm:$0xff] }
0x1781   : > { %5225 = vmatpush1.msra.mxu1 %v8736_v55  ;;  %v8787_v55 = vld [vmem:[#allocation2 + $0x678] sm:$0xff] }
0x1782   : > { %5226 = vmatprep.subr.mxu1 %v8737_v34  ;;  %v8788_v34 = vld [vmem:[#allocation2 + $0x670] sm:$0xff] }
0x1783   : > { %5227 = vmatpush1.msra.mxu1 %v8738_v35  ;;  %v8789_v35 = vld [vmem:[#allocation2 + $0x668] sm:$0xff] }
0x1784   : > { %5228 = vmatprep.subr.mxu1 %v8739_v56  ;;  %v8790_v56 = vld [vmem:[#allocation2 + $0x660] sm:$0xff] }
0x1785   : > { %5229 = vmatpush2.msra.mxu1 %v8740_v57  ;;  %v8791_v57 = vld [vmem:[#allocation2 + $0x658] sm:$0xff] }
0x1786   : > { %5230 = vmatprep.subr.mxu1 %v8741_v39  ;;  %v8792_v39 = vld [vmem:[#allocation2 + $0x650] sm:$0xff] }
0x1787   : > { %5231 = vmatpush2.msra.mxu1 %v8742_v59  ;;  %v8793_v59 = vld [vmem:[#allocation2 + $0x648] sm:$0xff] }
0x1788   : > { %5232 = vmatprep.subr.mxu1 %v8743_v61  ;;  %v8794_v61 = vld [vmem:[#allocation2 + $0x640] sm:$0xff] }
0x1789   : > { %5233 = vmatpush2.msra.mxu1 %v8744_v63  ;;  %v8795_v63 = vld [vmem:[#allocation2 + $0x638] sm:$0xff] }
0x178a   : > { %5234 = vmatprep.subr.mxu1 %v8745_v36  ;;  %v8796_v36 = vld [vmem:[#allocation2 + $0x630] sm:$0xff] }
0x178b   : > { %5235 = vmatpush2.msra.mxu1 %v8746_v0  ;;  %v8797_v0 = vld [vmem:[#allocation2 + $0x628] sm:$0xff] }
0x178c   : > { %5236 = vmatprep.subr.mxu1 %v8747_v16  ;;  %v8798_v16 = vld [vmem:[#allocation2 + $0x620] sm:$0xff] }
0x178d   : > { %5237 = vmatpush2.msra.mxu1 %v8748_v3  ;;  %v8799_v3 = vld [vmem:[#allocation2 + $0x618] sm:$0xff] }
0x178e   : > { %5238 = vmatprep.subr.mxu1 %v8749_v48  ;;  %v8800_v48 = vld [vmem:[#allocation2 + $0x610] sm:$0xff] }
0x178f   : > { %5239 = vmatpush2.msra.mxu1 %v8750_v5  ;;  %v8801_v5 = vld [vmem:[#allocation2 + $0x608] sm:$0xff] }
0x1790   : > { %5240 = vmatprep.subr.mxu1 %v8751_v49  ;;  %v8802_v49 = vld [vmem:[#allocation2 + $0x600] sm:$0xff] }
0x1791   : > { %5241 = vmatpush2.msra.mxu1 %v8752_v7  ;;  %v8803_v7 = vld [vmem:[#allocation2 + $0x7f8] sm:$0xff] }
0x1792   : > { %5242 = vmatprep.subr.mxu1 %v8753_v11  ;;  %v8804_v11 = vld [vmem:[#allocation2 + $0x7f0] sm:$0xff] }
0x1793   : > { %5243 = vmatpush2.msra.mxu1 %v8754_v12  ;;  %v8805_v12 = vld [vmem:[#allocation2 + $0x7e8] sm:$0xff] }
0x1794   : > { %5244 = vmatprep.subr.mxu1 %v8755_v13  ;;  %v8806_v13 = vld [vmem:[#allocation2 + $0x7e0] sm:$0xff] }
0x1795   : > { %5245 = vmatpush2.msra.mxu1 %v8756_v14  ;;  %v8807_v14 = vld [vmem:[#allocation2 + $0x7d8] sm:$0xff] }
0x1796   : > { %5246 = vmatprep.subr.mxu1 %v8757_v18  ;;  %v8808_v18 = vld [vmem:[#allocation2 + $0x7d0] sm:$0xff] }
0x1797   : > { %5247 = vmatpush2.msra.mxu1 %v8758_v41  ;;  %v8809_v41 = vld [vmem:[#allocation2 + $0x7c8] sm:$0xff] }
0x1798   : > { %5248 = vmatprep.subr.mxu1 %v8759_v19  ;;  %v8810_v19 = vld [vmem:[#allocation2 + $0x7c0] sm:$0xff] }
0x1799   : > { %5249 = vmatpush2.msra.mxu1 %v8760_v62  ;;  %v8811_v62 = vld [vmem:[#allocation2 + $0x7b8] sm:$0xff] }
0x179a   : > { %5250 = vmatprep.subr.mxu1 %v8761_v22  ;;  %v8812_v22 = vld [vmem:[#allocation2 + $0x7b0] sm:$0xff] }
0x179b   : > { %5251 = vmatpush2.msra.mxu1 %v8762_v25  ;;  %v8813_v25 = vld [vmem:[#allocation2 + $0x7a8] sm:$0xff] }
0x179c   : > { %5252 = vmatprep.subr.mxu1 %v8763_v2  ;;  %v8814_v2 = vld [vmem:[#allocation2 + $0x7a0] sm:$0xff] }
0x179d   : > { %5253 = vmatpush2.msra.mxu1 %v8764_v29  ;;  %v8815_v29 = vld [vmem:[#allocation2 + $0x798] sm:$0xff] }
0x179e   : > { %5254 = vmatprep.subr.mxu1 %v8765_v30  ;;  %v8816_v30 = vld [vmem:[#allocation2 + $0x790] sm:$0xff] }
0x179f   : > { %5255 = vmatpush2.msra.mxu1 %v8766_v51  ;;  %v8817_v51 = vld [vmem:[#allocation2 + $0x788] sm:$0xff] }
0x17a0   : > { %5256 = vmatprep.subr.mxu1 %v8767_v47  ;;  %v8818_v47 = vld [vmem:[#allocation2 + $0x780] sm:$0xff] }
0x17a1   : > { %5257 = vmatpush2.msra.mxu1 %v8768_v9  ;;  %v8819_v9 = vld [vmem:[#allocation2 + $0x778] sm:$0xff] }
0x17a2   : > { %5258 = vmatprep.subr.mxu1 %v8769_v32  ;;  %v8820_v32 = vld [vmem:[#allocation2 + $0x770] sm:$0xff] }
0x17a3   : > { %5259 = vmatpush2.msra.mxu1 %v8770_v10  ;;  %v8821_v10 = vld [vmem:[#allocation2 + $0x768] sm:$0xff] }
0x17a4   : > { %5261 = vmatmul.mubr.f32.vlgmr.msra.gmra.mxu1 %v10290_v58 }
0x17a5   : > { %5497 = vmatprep.mubr.f32.mxu1 %v9843_v4 }
0x1824   : > { %v5189_v45 = vpop.f32.mrf.mxu1 }
0x1825   : > { %v10319_v46 = vadd.f32 %v5189_v45, %v5039_v37  ;;  %v8822_v37 = vld [vmem:[#allocation2 + $0x760] sm:$0xff]  ;;  %v8823_v45 = vld [vmem:[#allocation2 + $0x758] sm:$0xff] }
0x1826   : > { %v5191_v40 = vpop.f32.mrf.mxu1 }
0x1827   : > { %v10321_v21 = vadd.f32 %v5191_v40, %v5040_v38  ;;  %v8824_v38 = vld [vmem:[#allocation2 + $0x750] sm:$0xff]  ;;  %v8825_v40 = vld [vmem:[#allocation2 + $0x748] sm:$0xff] }
0x1864   : > { %v5262_v23 = vpop.f32.mrf.mxu1 }
0x1866   : > { %v5264_v26 = vpop.f32.mrf.mxu1 }
0x1867   : > { %7879 = vmatprep.subr.msk.mxu0 %vm519_vm0, %v5264_v26  ;;  %v8827_v26 = vld [vmem:[#allocation2 + $0x738] sm:$0xff] }
0x1868   : > { %7880 = vmatpush1.msk.msra.mxu0 %vm519_vm0, %v5262_v23  ;;  %v8826_v23 = vld [vmem:[#allocation2 + $0x740] sm:$0xff] }
0x1869   : > { %7881 = vmatmul.mubr.msk.f32.vlgmr.msra.gmra.mxu0 %vm515_vm1, %v7878_v60  ;;  %5351 = vmatprep.subr.mxu0 %v8771_v20  ;;  %v8828_v60 = vld [vmem:[#allocation2 + $0x730] sm:$0xff]  ;;  %v8829_v20 = vld [vmem:[#allocation2 + $0x728] sm:$0xff] }
0x186a   : > { %5352 = vmatpush1.msra.mxu0 %v8772_v1  ;;  %5415 = vmatprep.mubr.f32.mxu0 %v10288_v15  ;;  %v8830_v1 = vld [vmem:[#allocation2 + $0x720] sm:$0xff] }
0x186b   : > { %5353 = vmatprep.subr.mxu0 %v8773_v31  ;;  %v8831_v31 = vld [vmem:[#allocation2 + $0x718] sm:$0xff] }
0x186c   : > { %5354 = vmatpush1.msra.mxu0 %v8774_v24  ;;  %v8832_v24 = vld [vmem:[#allocation2 + $0x710] sm:$0xff] }
0x186d   : > { %5355 = vmatprep.subr.mxu0 %v8775_v27  ;;  %v8833_v27 = vld [vmem:[#allocation2 + $0x708] sm:$0xff] }
0x186e   : > { %5356 = vmatpush1.msra.mxu0 %v8776_v42  ;;  %v8834_v42 = vld [vmem:[#allocation2 + $0x700] sm:$0xff] }
0x186f   : > { %5357 = vmatprep.subr.mxu0 %v8777_v43 }
0x1870   : > { %5358 = vmatpush1.msra.mxu0 %v8778_v44 }
0x1871   : > { %5359 = vmatprep.subr.mxu0 %v8779_v17 }
0x1872   : > { %5360 = vmatpush1.msra.mxu0 %v8780_v50 }
0x1873   : > { %5361 = vmatprep.subr.mxu0 %v8781_v6 }
0x1874   : > { %5362 = vmatpush1.msra.mxu0 %v8782_v52 }
0x1875   : > { %5363 = vmatprep.subr.mxu0 %v8783_v53  ;;  %v7882_v53 = vld [vmem:[%s9965_s11 + $0xc] sm:$0xf] }
0x1876   : > { %5364 = vmatpush1.msra.mxu0 %v8784_v54  ;;  %v8835_v54 = vld [vmem:[#allocation2 + $0x8f8] sm:$0xff] }
0x1877   : > { %5365 = vmatprep.subr.mxu0 %v8785_v33  ;;  %v8836_v33 = vld [vmem:[#allocation2 + $0x8f0] sm:$0xff] }
0x1878   : > { %5366 = vmatpush1.msra.mxu0 %v8786_v8  ;;  %v8838_v8 = vld [vmem:[#allocation2 + $0x8e0] sm:$0xff] }
0x1879   : > { %5367 = vmatprep.subr.mxu0 %v8787_v55  ;;  %v8840_v55 = vld [vmem:[#allocation2 + $0x8d0] sm:$0xff] }
0x187a   : > { %5368 = vmatpush1.msra.mxu0 %v8788_v34  ;;  %v8841_v34 = vld [vmem:[#allocation2 + $0x8c8] sm:$0xff] }
0x187b   : > { %5369 = vmatprep.subr.mxu0 %v8789_v35  ;;  %v8842_v35 = vld [vmem:[#allocation2 + $0x8c0] sm:$0xff] }
0x187c   : > { %5370 = vmatpush1.msra.mxu0 %v8790_v56  ;;  %v8843_v56 = vld [vmem:[#allocation2 + $0x8b8] sm:$0xff] }
0x187d   : > { %5371 = vmatprep.subr.mxu0 %v8791_v57  ;;  %v8844_v57 = vld [vmem:[#allocation2 + $0x8b0] sm:$0xff] }
0x187e   : > { %5372 = vmatpush1.msra.mxu0 %v8792_v39  ;;  %v8845_v39 = vld [vmem:[#allocation2 + $0x8a8] sm:$0xff] }
0x187f   : > { %5373 = vmatprep.subr.mxu0 %v8793_v59  ;;  %v8846_v59 = vld [vmem:[#allocation2 + $0x8a0] sm:$0xff] }
0x1880   : > { %5374 = vmatpush1.msra.mxu0 %v8794_v61  ;;  %v8847_v61 = vld [vmem:[#allocation2 + $0x898] sm:$0xff] }
0x1881   : > { %5375 = vmatprep.subr.mxu0 %v8795_v63  ;;  %v8848_v63 = vld [vmem:[#allocation2 + $0x890] sm:$0xff] }
0x1882   : > { %5376 = vmatpush1.msra.mxu0 %v8796_v36  ;;  %v8849_v36 = vld [vmem:[#allocation2 + $0x888] sm:$0xff] }
0x1883   : > { %5377 = vmatprep.subr.mxu0 %v8797_v0  ;;  %v8850_v0 = vld [vmem:[#allocation2 + $0x880] sm:$0xff] }
0x1884   : > { %5378 = vmatpush1.msra.mxu0 %v8798_v16  ;;  %v8851_v16 = vld [vmem:[#allocation2 + $0x878] sm:$0xff] }
0x1885   : > { %5379 = vmatprep.subr.mxu0 %v8799_v3  ;;  %v8852_v3 = vld [vmem:[#allocation2 + $0x870] sm:$0xff] }
0x1886   : > { %5380 = vmatpush1.msra.mxu0 %v8800_v48  ;;  %v8853_v48 = vld [vmem:[#allocation2 + $0x868] sm:$0xff] }
0x1887   : > { %5381 = vmatprep.subr.mxu0 %v8801_v5  ;;  %v8854_v5 = vld [vmem:[#allocation2 + $0x860] sm:$0xff] }
0x1888   : > { %5382 = vmatpush1.msra.mxu0 %v8802_v49  ;;  %v8855_v49 = vld [vmem:[#allocation2 + $0x858] sm:$0xff] }
0x1889   : > { %5383 = vmatprep.subr.mxu0 %v8803_v7  ;;  %v8856_v7 = vld [vmem:[#allocation2 + $0x850] sm:$0xff] }
0x188a   : > { %5384 = vmatpush2.msra.mxu0 %v8804_v11  ;;  %v8857_v11 = vld [vmem:[#allocation2 + $0x848] sm:$0xff] }
0x188b   : > { %5385 = vmatprep.subr.mxu0 %v8805_v12  ;;  %v8858_v12 = vld [vmem:[#allocation2 + $0x840] sm:$0xff] }
0x188c   : > { %5386 = vmatpush2.msra.mxu0 %v8806_v13  ;;  %v8859_v13 = vld [vmem:[#allocation2 + $0x838] sm:$0xff] }
0x188d   : > { %5387 = vmatprep.subr.mxu0 %v8807_v14  ;;  %v8860_v14 = vld [vmem:[#allocation2 + $0x830] sm:$0xff] }
0x188e   : > { %5388 = vmatpush2.msra.mxu0 %v8808_v18  ;;  %v8861_v18 = vld [vmem:[#allocation2 + $0x828] sm:$0xff] }
0x188f   : > { %5389 = vmatprep.subr.mxu0 %v8809_v41  ;;  %v8862_v41 = vld [vmem:[#allocation2 + $0x820] sm:$0xff] }
0x1890   : > { %5390 = vmatpush2.msra.mxu0 %v8810_v19  ;;  %v8863_v19 = vld [vmem:[#allocation2 + $0x818] sm:$0xff] }
0x1891   : > { %5391 = vmatprep.subr.mxu0 %v8811_v62  ;;  %v8864_v62 = vld [vmem:[#allocation2 + $0x810] sm:$0xff] }
0x1892   : > { %5392 = vmatpush2.msra.mxu0 %v8812_v22  ;;  %v8865_v22 = vld [vmem:[#allocation2 + $0x808] sm:$0xff] }
0x1893   : > { %5393 = vmatprep.subr.mxu0 %v8813_v25  ;;  %v8866_v25 = vld [vmem:[#allocation2 + $0x800] sm:$0xff] }
0x1894   : > { %5394 = vmatpush2.msra.mxu0 %v8814_v2  ;;  %v8867_v2 = vld [vmem:[#allocation2 + $0x9f8] sm:$0xff] }
0x1895   : > { %5395 = vmatprep.subr.mxu0 %v8815_v29  ;;  %v8868_v29 = vld [vmem:[#allocation2 + $0x9f0] sm:$0xff] }
0x1896   : > { %5396 = vmatpush2.msra.mxu0 %v8816_v30  ;;  %v8869_v30 = vld [vmem:[#allocation2 + $0x9e8] sm:$0xff] }
0x1897   : > { %5397 = vmatprep.subr.mxu0 %v8817_v51  ;;  %v8870_v51 = vld [vmem:[#allocation2 + $0x9e0] sm:$0xff] }
0x1898   : > { %5398 = vmatpush2.msra.mxu0 %v8818_v47  ;;  %v8871_v47 = vld [vmem:[#allocation2 + $0x9d8] sm:$0xff] }
0x1899   : > { %5399 = vmatprep.subr.mxu0 %v8819_v9  ;;  %v8872_v9 = vld [vmem:[#allocation2 + $0x9d0] sm:$0xff] }
0x189a   : > { %5400 = vmatpush2.msra.mxu0 %v8820_v32  ;;  %v8873_v32 = vld [vmem:[#allocation2 + $0x9c8] sm:$0xff] }
0x189b   : > { %5401 = vmatprep.subr.mxu0 %v8821_v10  ;;  %v8874_v10 = vld [vmem:[#allocation2 + $0x9c0] sm:$0xff] }
0x189c   : > { %5402 = vmatpush2.msra.mxu0 %v8822_v37  ;;  %v8875_v37 = vld [vmem:[#allocation2 + $0x9b8] sm:$0xff] }
0x189d   : > { %5403 = vmatprep.subr.mxu0 %v8823_v45  ;;  %v8876_v45 = vld [vmem:[#allocation2 + $0x9b0] sm:$0xff] }
0x189e   : > { %5404 = vmatpush2.msra.mxu0 %v8824_v38  ;;  %v8877_v38 = vld [vmem:[#allocation2 + $0x9a8] sm:$0xff] }
0x189f   : > { %5405 = vmatprep.subr.mxu0 %v8825_v40  ;;  %v8878_v40 = vld [vmem:[#allocation2 + $0x9a0] sm:$0xff] }
0x18a0   : > { %5406 = vmatpush2.msra.mxu0 %v8826_v23  ;;  %v8879_v23 = vld [vmem:[#allocation2 + $0x998] sm:$0xff] }
0x18a1   : > { %5407 = vmatprep.subr.mxu0 %v8827_v26  ;;  %v8880_v26 = vld [vmem:[#allocation2 + $0x990] sm:$0xff] }
0x18a2   : > { %5408 = vmatpush2.msra.mxu0 %v8828_v60  ;;  %v8881_v60 = vld [vmem:[#allocation2 + $0x988] sm:$0xff] }
0x18a3   : > { %5409 = vmatprep.subr.mxu0 %v8829_v20  ;;  %v8882_v20 = vld [vmem:[#allocation2 + $0x980] sm:$0xff] }
0x18a4   : > { %5410 = vmatpush2.msra.mxu0 %v8830_v1  ;;  %v8883_v1 = vld [vmem:[#allocation2 + $0x978] sm:$0xff] }
0x18a5   : > { %5411 = vmatprep.subr.mxu0 %v8831_v31  ;;  %v8884_v31 = vld [vmem:[#allocation2 + $0x970] sm:$0xff] }
0x18a6   : > { %5412 = vmatpush2.msra.mxu0 %v8832_v24  ;;  %v8885_v24 = vld [vmem:[#allocation2 + $0x968] sm:$0xff] }
0x18a7   : > { %5413 = vmatprep.subr.mxu0 %v8833_v27  ;;  %v8886_v27 = vld [vmem:[#allocation2 + $0x960] sm:$0xff] }
0x18a8   : > { %5414 = vmatpush2.msra.mxu0 %v8834_v42  ;;  %v8887_v42 = vld [vmem:[#allocation2 + $0x958] sm:$0xff] }
0x18a9   : > { %5416 = vmatmul.mubr.f32.vlgmr.msra.gmra.mxu0 %v10290_v58 }
0x18aa   : > { %5652 = vmatprep.mubr.f32.mxu0 %v9843_v4 }
0x1929   : > { %v5344_v43 = vpop.f32.mrf.mxu0 }
0x192a   : > { %v10331_v44 = vadd.f32 %v5344_v43, %v10319_v46  ;;  %v8837_v46 = vld [vmem:[#allocation2 + $0x8e8] sm:$0xff]  ;;  %v8888_v43 = vld [vmem:[#allocation2 + $0x950] sm:$0xff] }
0x192b   : > { %v5346_v17 = vpop.f32.mrf.mxu0 }
0x192c   : > { %v10334_v50 = vadd.f32 %v5346_v17, %v10321_v21  ;;  %v8839_v21 = vld [vmem:[#allocation2 + $0x8d8] sm:$0xff]  ;;  %v8889_v17 = vld [vmem:[#allocation2 + $0x948] sm:$0xff] }
0x1969   : > { %v5417_v6 = vpop.f32.mrf.mxu0 }
0x196b   : > { %v5419_v52 = vpop.f32.mrf.mxu0 }
0x196c   : > { %7883 = vmatprep.subr.msk.mxu1 %vm519_vm0, %v5419_v52  ;;  %v8891_v52 = vld [vmem:[#allocation2 + $0x938] sm:$0xff] }
0x196d   : > { %7884 = vmatpush1.msk.msra.mxu1 %vm519_vm0, %v5417_v6  ;;  %v8890_v6 = vld [vmem:[#allocation2 + $0x940] sm:$0xff] }
0x196e   : > { %7885 = vmatmul.mubr.msk.f32.vlgmr.msra.gmra.mxu1 %vm515_vm1, %v7882_v53  ;;  %5506 = vmatprep.subr.mxu1 %v8835_v54  ;;  %v8892_v53 = vld [vmem:[#allocation2 + $0x930] sm:$0xff]  ;;  %v8893_v54 = vld [vmem:[#allocation2 + $0x928] sm:$0xff] }
0x196f   : > { %5507 = vmatpush1.msra.mxu1 %v8836_v33  ;;  %5570 = vmatprep.mubr.f32.mxu1 %v10288_v15  ;;  %v8894_v33 = vld [vmem:[#allocation2 + $0x920] sm:$0xff] }
0x1970   : > { %5508 = vmatprep.subr.mxu1 %v8837_v46  ;;  %v8895_v46 = vld [vmem:[#allocation2 + $0x918] sm:$0xff] }
0x1971   : > { %5509 = vmatpush1.msra.mxu1 %v8838_v8  ;;  %v8896_v8 = vld [vmem:[#allocation2 + $0x910] sm:$0xff] }
0x1972   : > { %5510 = vmatprep.subr.mxu1 %v8839_v21  ;;  %v8897_v21 = vld [vmem:[#allocation2 + $0x908] sm:$0xff] }
0x1973   : > { %5511 = vmatpush1.msra.mxu1 %v8840_v55  ;;  %v8898_v55 = vld [vmem:[#allocation2 + $0x900] sm:$0xff] }
0x1974   : > { %5512 = vmatprep.subr.mxu1 %v8841_v34 }
0x1975   : > { %5513 = vmatpush1.msra.mxu1 %v8842_v35 }
0x1976   : > { %5514 = vmatprep.subr.mxu1 %v8843_v56 }
0x1977   : > { %5515 = vmatpush1.msra.mxu1 %v8844_v57 }
0x1978   : > { %5516 = vmatprep.subr.mxu1 %v8845_v39 }
0x1979   : > { %5517 = vmatpush1.msra.mxu1 %v8846_v59 }
0x197a   : > { %5518 = vmatprep.subr.mxu1 %v8847_v61  ;;  %v7886_v61 = vld [vmem:[%s9965_s11 + $0x10] sm:$0xf] }
0x197b   : > { %5519 = vmatpush1.msra.mxu1 %v8848_v63  ;;  %v8899_v63 = vld [vmem:[#allocation2 + $0xaf8] sm:$0xff] }
0x197c   : > { %5520 = vmatprep.subr.mxu1 %v8849_v36  ;;  %v8900_v36 = vld [vmem:[#allocation2 + $0xaf0] sm:$0xff] }
0x197d   : > { %5521 = vmatpush1.msra.mxu1 %v8850_v0  ;;  %v8902_v0 = vld [vmem:[#allocation2 + $0xae0] sm:$0xff] }
0x197e   : > { %5522 = vmatprep.subr.mxu1 %v8851_v16  ;;  %v8904_v16 = vld [vmem:[#allocation2 + $0xad0] sm:$0xff] }
0x197f   : > { %5523 = vmatpush1.msra.mxu1 %v8852_v3  ;;  %v8905_v3 = vld [vmem:[#allocation2 + $0xac8] sm:$0xff] }
0x1980   : > { %5524 = vmatprep.subr.mxu1 %v8853_v48  ;;  %v8906_v48 = vld [vmem:[#allocation2 + $0xac0] sm:$0xff] }
0x1981   : > { %5525 = vmatpush1.msra.mxu1 %v8854_v5  ;;  %v8907_v5 = vld [vmem:[#allocation2 + $0xab8] sm:$0xff] }
0x1982   : > { %5526 = vmatprep.subr.mxu1 %v8855_v49  ;;  %v8908_v49 = vld [vmem:[#allocation2 + $0xab0] sm:$0xff] }
0x1983   : > { %5527 = vmatpush1.msra.mxu1 %v8856_v7  ;;  %v8909_v7 = vld [vmem:[#allocation2 + $0xaa8] sm:$0xff] }
0x1984   : > { %5528 = vmatprep.subr.mxu1 %v8857_v11  ;;  %v8910_v11 = vld [vmem:[#allocation2 + $0xaa0] sm:$0xff] }
0x1985   : > { %5529 = vmatpush1.msra.mxu1 %v8858_v12  ;;  %v8911_v12 = vld [vmem:[#allocation2 + $0xa98] sm:$0xff] }
0x1986   : > { %5530 = vmatprep.subr.mxu1 %v8859_v13  ;;  %v8912_v13 = vld [vmem:[#allocation2 + $0xa90] sm:$0xff] }
0x1987   : > { %5531 = vmatpush1.msra.mxu1 %v8860_v14  ;;  %v8913_v14 = vld [vmem:[#allocation2 + $0xa88] sm:$0xff] }
0x1988   : > { %5532 = vmatprep.subr.mxu1 %v8861_v18  ;;  %v8914_v18 = vld [vmem:[#allocation2 + $0xa80] sm:$0xff] }
0x1989   : > { %5533 = vmatpush1.msra.mxu1 %v8862_v41  ;;  %v8915_v41 = vld [vmem:[#allocation2 + $0xa78] sm:$0xff] }
0x198a   : > { %5534 = vmatprep.subr.mxu1 %v8863_v19  ;;  %v8916_v19 = vld [vmem:[#allocation2 + $0xa70] sm:$0xff] }
0x198b   : > { %5535 = vmatpush1.msra.mxu1 %v8864_v62  ;;  %v8917_v62 = vld [vmem:[#allocation2 + $0xa68] sm:$0xff] }
0x198c   : > { %5536 = vmatprep.subr.mxu1 %v8865_v22  ;;  %v8918_v22 = vld [vmem:[#allocation2 + $0xa60] sm:$0xff] }
0x198d   : > { %5537 = vmatpush1.msra.mxu1 %v8866_v25  ;;  %v8919_v25 = vld [vmem:[#allocation2 + $0xa58] sm:$0xff] }
0x198e   : > { %5538 = vmatprep.subr.mxu1 %v8867_v2  ;;  %v8920_v2 = vld [vmem:[#allocation2 + $0xa50] sm:$0xff] }
0x198f   : > { %5539 = vmatpush2.msra.mxu1 %v8868_v29  ;;  %v8921_v29 = vld [vmem:[#allocation2 + $0xa48] sm:$0xff] }
0x1990   : > { %5540 = vmatprep.subr.mxu1 %v8869_v30  ;;  %v8922_v30 = vld [vmem:[#allocation2 + $0xa40] sm:$0xff] }
0x1991   : > { %5541 = vmatpush2.msra.mxu1 %v8870_v51  ;;  %v8923_v51 = vld [vmem:[#allocation2 + $0xa38] sm:$0xff] }
0x1992   : > { %5542 = vmatprep.subr.mxu1 %v8871_v47  ;;  %v8924_v47 = vld [vmem:[#allocation2 + $0xa30] sm:$0xff] }
0x1993   : > { %5543 = vmatpush2.msra.mxu1 %v8872_v9  ;;  %v8925_v9 = vld [vmem:[#allocation2 + $0xa28] sm:$0xff] }
0x1994   : > { %5544 = vmatprep.subr.mxu1 %v8873_v32  ;;  %v8926_v32 = vld [vmem:[#allocation2 + $0xa20] sm:$0xff] }
0x1995   : > { %5545 = vmatpush2.msra.mxu1 %v8874_v10  ;;  %v8927_v10 = vld [vmem:[#allocation2 + $0xa18] sm:$0xff] }
0x1996   : > { %5546 = vmatprep.subr.mxu1 %v8875_v37  ;;  %v8928_v37 = vld [vmem:[#allocation2 + $0xa10] sm:$0xff] }
0x1997   : > { %5547 = vmatpush2.msra.mxu1 %v8876_v45  ;;  %v8929_v45 = vld [vmem:[#allocation2 + $0xa08] sm:$0xff] }
0x1998   : > { %5548 = vmatprep.subr.mxu1 %v8877_v38  ;;  %v8930_v38 = vld [vmem:[#allocation2 + $0xa00] sm:$0xff] }
0x1999   : > { %5549 = vmatpush2.msra.mxu1 %v8878_v40  ;;  %v8931_v40 = vld [vmem:[#allocation2 + $0xbf8] sm:$0xff] }
0x199a   : > { %5550 = vmatprep.subr.mxu1 %v8879_v23  ;;  %v8932_v23 = vld [vmem:[#allocation2 + $0xbf0] sm:$0xff] }
0x199b   : > { %5551 = vmatpush2.msra.mxu1 %v8880_v26  ;;  %v8933_v26 = vld [vmem:[#allocation2 + $0xbe8] sm:$0xff] }
0x199c   : > { %5552 = vmatprep.subr.mxu1 %v8881_v60  ;;  %v8934_v60 = vld [vmem:[#allocation2 + $0xbe0] sm:$0xff] }
0x199d   : > { %5553 = vmatpush2.msra.mxu1 %v8882_v20  ;;  %v8935_v20 = vld [vmem:[#allocation2 + $0xbd8] sm:$0xff] }
0x199e   : > { %5554 = vmatprep.subr.mxu1 %v8883_v1  ;;  %v8936_v1 = vld [vmem:[#allocation2 + $0xbd0] sm:$0xff] }
0x199f   : > { %5555 = vmatpush2.msra.mxu1 %v8884_v31  ;;  %v8937_v31 = vld [vmem:[#allocation2 + $0xbc8] sm:$0xff] }
0x19a0   : > { %5556 = vmatprep.subr.mxu1 %v8885_v24  ;;  %v8938_v24 = vld [vmem:[#allocation2 + $0xbc0] sm:$0xff] }
0x19a1   : > { %5557 = vmatpush2.msra.mxu1 %v8886_v27  ;;  %v8939_v27 = vld [vmem:[#allocation2 + $0xbb8] sm:$0xff] }
0x19a2   : > { %5558 = vmatprep.subr.mxu1 %v8887_v42  ;;  %v8940_v42 = vld [vmem:[#allocation2 + $0xbb0] sm:$0xff] }
0x19a3   : > { %5559 = vmatpush2.msra.mxu1 %v8888_v43  ;;  %v8941_v43 = vld [vmem:[#allocation2 + $0xba8] sm:$0xff] }
0x19a4   : > { %5560 = vmatprep.subr.mxu1 %v8889_v17  ;;  %v8942_v17 = vld [vmem:[#allocation2 + $0xba0] sm:$0xff] }
0x19a5   : > { %5561 = vmatpush2.msra.mxu1 %v8890_v6  ;;  %v8943_v6 = vld [vmem:[#allocation2 + $0xb98] sm:$0xff] }
0x19a6   : > { %5562 = vmatprep.subr.mxu1 %v8891_v52  ;;  %v8944_v52 = vld [vmem:[#allocation2 + $0xb90] sm:$0xff] }
0x19a7   : > { %5563 = vmatpush2.msra.mxu1 %v8892_v53  ;;  %v8945_v53 = vld [vmem:[#allocation2 + $0xb88] sm:$0xff] }
0x19a8   : > { %5564 = vmatprep.subr.mxu1 %v8893_v54  ;;  %v8946_v54 = vld [vmem:[#allocation2 + $0xb80] sm:$0xff] }
0x19a9   : > { %5565 = vmatpush2.msra.mxu1 %v8894_v33  ;;  %v8947_v33 = vld [vmem:[#allocation2 + $0xb78] sm:$0xff] }
0x19aa   : > { %5566 = vmatprep.subr.mxu1 %v8895_v46  ;;  %v8948_v46 = vld [vmem:[#allocation2 + $0xb70] sm:$0xff] }
0x19ab   : > { %5567 = vmatpush2.msra.mxu1 %v8896_v8  ;;  %v8949_v8 = vld [vmem:[#allocation2 + $0xb68] sm:$0xff] }
0x19ac   : > { %5568 = vmatprep.subr.mxu1 %v8897_v21  ;;  %v8950_v21 = vld [vmem:[#allocation2 + $0xb60] sm:$0xff] }
0x19ad   : > { %5569 = vmatpush2.msra.mxu1 %v8898_v55  ;;  %v8951_v55 = vld [vmem:[#allocation2 + $0xb58] sm:$0xff] }
0x19ae   : > { %5571 = vmatmul.mubr.f32.vlgmr.msra.gmra.mxu1 %v10290_v58 }
0x19af   : > { %5807 = vmatprep.mubr.f32.mxu1 %v9843_v4 }
0x1a2e   : > { %v5499_v34 = vpop.f32.mrf.mxu1 }
0x1a2f   : > { %v10344_v35 = vadd.f32 %v5499_v34, %v10331_v44  ;;  %v8901_v44 = vld [vmem:[#allocation2 + $0xae8] sm:$0xff]  ;;  %v8952_v34 = vld [vmem:[#allocation2 + $0xb50] sm:$0xff] }
0x1a30   : > { %v5501_v56 = vpop.f32.mrf.mxu1 }
0x1a31   : > { %v10347_v57 = vadd.f32 %v5501_v56, %v10334_v50  ;;  %v8903_v50 = vld [vmem:[#allocation2 + $0xad8] sm:$0xff]  ;;  %v8953_v56 = vld [vmem:[#allocation2 + $0xb48] sm:$0xff] }
0x1a6e   : > { %v5572_v39 = vpop.f32.mrf.mxu1 }
0x1a70   : > { %v5574_v59 = vpop.f32.mrf.mxu1 }
0x1a71   : > { %7887 = vmatprep.subr.msk.mxu0 %vm519_vm0, %v5574_v59  ;;  %v8955_v59 = vld [vmem:[#allocation2 + $0xb38] sm:$0xff] }
0x1a72   : > { %7888 = vmatpush1.msk.msra.mxu0 %vm519_vm0, %v5572_v39  ;;  %v8954_v39 = vld [vmem:[#allocation2 + $0xb40] sm:$0xff] }
0x1a73   : > { %7889 = vmatmul.mubr.msk.f32.vlgmr.msra.gmra.mxu0 %vm515_vm1, %v7886_v61  ;;  %5661 = vmatprep.subr.mxu0 %v8899_v63  ;;  %v8956_v61 = vld [vmem:[#allocation2 + $0xb30] sm:$0xff]  ;;  %v8957_v63 = vld [vmem:[#allocation2 + $0xb28] sm:$0xff] }
0x1a74   : > { %5662 = vmatpush1.msra.mxu0 %v8900_v36  ;;  %5725 = vmatprep.mubr.f32.mxu0 %v10288_v15  ;;  %v8958_v36 = vld [vmem:[#allocation2 + $0xb20] sm:$0xff] }
0x1a75   : > { %5663 = vmatprep.subr.mxu0 %v8901_v44  ;;  %v8959_v44 = vld [vmem:[#allocation2 + $0xb18] sm:$0xff] }
0x1a76   : > { %5664 = vmatpush1.msra.mxu0 %v8902_v0  ;;  %v8960_v0 = vld [vmem:[#allocation2 + $0xb10] sm:$0xff] }
0x1a77   : > { %5665 = vmatprep.subr.mxu0 %v8903_v50  ;;  %v8961_v50 = vld [vmem:[#allocation2 + $0xb08] sm:$0xff] }
0x1a78   : > { %5666 = vmatpush1.msra.mxu0 %v8904_v16  ;;  %v8962_v16 = vld [vmem:[#allocation2 + $0xb00] sm:$0xff] }
0x1a79   : > { %5667 = vmatprep.subr.mxu0 %v8905_v3 }
0x1a7a   : > { %5668 = vmatpush1.msra.mxu0 %v8906_v48 }
0x1a7b   : > { %5669 = vmatprep.subr.mxu0 %v8907_v5 }
0x1a7c   : > { %5670 = vmatpush1.msra.mxu0 %v8908_v49 }
0x1a7d   : > { %5671 = vmatprep.subr.mxu0 %v8909_v7 }
0x1a7e   : > { %5672 = vmatpush1.msra.mxu0 %v8910_v11 }
0x1a7f   : > { %5673 = vmatprep.subr.mxu0 %v8911_v12  ;;  %v7890_v12 = vld [vmem:[%s9965_s11 + $0x14] sm:$0xf] }
0x1a80   : > { %5674 = vmatpush1.msra.mxu0 %v8912_v13  ;;  %v8963_v13 = vld [vmem:[#allocation2 + $0xcf8] sm:$0xff] }
0x1a81   : > { %5675 = vmatprep.subr.mxu0 %v8913_v14  ;;  %v8964_v14 = vld [vmem:[#allocation2 + $0xcf0] sm:$0xff] }
0x1a82   : > { %5676 = vmatpush1.msra.mxu0 %v8914_v18  ;;  %v8966_v18 = vld [vmem:[#allocation2 + $0xce0] sm:$0xff] }
0x1a83   : > { %5677 = vmatprep.subr.mxu0 %v8915_v41  ;;  %v8968_v41 = vld [vmem:[#allocation2 + $0xcd0] sm:$0xff] }
0x1a84   : > { %5678 = vmatpush1.msra.mxu0 %v8916_v19  ;;  %v8969_v19 = vld [vmem:[#allocation2 + $0xcc8] sm:$0xff] }
0x1a85   : > { %5679 = vmatprep.subr.mxu0 %v8917_v62  ;;  %v8970_v62 = vld [vmem:[#allocation2 + $0xcc0] sm:$0xff] }
0x1a86   : > { %5680 = vmatpush1.msra.mxu0 %v8918_v22  ;;  %v8971_v22 = vld [vmem:[#allocation2 + $0xcb8] sm:$0xff] }
0x1a87   : > { %5681 = vmatprep.subr.mxu0 %v8919_v25  ;;  %v8972_v25 = vld [vmem:[#allocation2 + $0xcb0] sm:$0xff] }
0x1a88   : > { %5682 = vmatpush1.msra.mxu0 %v8920_v2  ;;  %v8973_v2 = vld [vmem:[#allocation2 + $0xca8] sm:$0xff] }
0x1a89   : > { %5683 = vmatprep.subr.mxu0 %v8921_v29  ;;  %v8974_v29 = vld [vmem:[#allocation2 + $0xca0] sm:$0xff] }
0x1a8a   : > { %5684 = vmatpush1.msra.mxu0 %v8922_v30  ;;  %v8975_v30 = vld [vmem:[#allocation2 + $0xc98] sm:$0xff] }
0x1a8b   : > { %5685 = vmatprep.subr.mxu0 %v8923_v51  ;;  %v8976_v51 = vld [vmem:[#allocation2 + $0xc90] sm:$0xff] }
0x1a8c   : > { %5686 = vmatpush1.msra.mxu0 %v8924_v47  ;;  %v8977_v47 = vld [vmem:[#allocation2 + $0xc88] sm:$0xff] }
0x1a8d   : > { %5687 = vmatprep.subr.mxu0 %v8925_v9  ;;  %v8978_v9 = vld [vmem:[#allocation2 + $0xc80] sm:$0xff] }
0x1a8e   : > { %5688 = vmatpush1.msra.mxu0 %v8926_v32  ;;  %v8979_v32 = vld [vmem:[#allocation2 + $0xc78] sm:$0xff] }
0x1a8f   : > { %5689 = vmatprep.subr.mxu0 %v8927_v10  ;;  %v8980_v10 = vld [vmem:[#allocation2 + $0xc70] sm:$0xff] }
0x1a90   : > { %5690 = vmatpush1.msra.mxu0 %v8928_v37  ;;  %v8981_v37 = vld [vmem:[#allocation2 + $0xc68] sm:$0xff] }
0x1a91   : > { %5691 = vmatprep.subr.mxu0 %v8929_v45  ;;  %v8982_v45 = vld [vmem:[#allocation2 + $0xc60] sm:$0xff] }
0x1a92   : > { %5692 = vmatpush1.msra.mxu0 %v8930_v38  ;;  %v8983_v38 = vld [vmem:[#allocation2 + $0xc58] sm:$0xff] }
0x1a93   : > { %5693 = vmatprep.subr.mxu0 %v8931_v40  ;;  %v8984_v40 = vld [vmem:[#allocation2 + $0xc50] sm:$0xff] }
0x1a94   : > { %5694 = vmatpush2.msra.mxu0 %v8932_v23  ;;  %v8985_v23 = vld [vmem:[#allocation2 + $0xc48] sm:$0xff] }
0x1a95   : > { %5695 = vmatprep.subr.mxu0 %v8933_v26  ;;  %v8986_v26 = vld [vmem:[#allocation2 + $0xc40] sm:$0xff] }
0x1a96   : > { %5696 = vmatpush2.msra.mxu0 %v8934_v60  ;;  %v8987_v60 = vld [vmem:[#allocation2 + $0xc38] sm:$0xff] }
0x1a97   : > { %5697 = vmatprep.subr.mxu0 %v8935_v20  ;;  %v8988_v20 = vld [vmem:[#allocation2 + $0xc30] sm:$0xff] }
0x1a98   : > { %5698 = vmatpush2.msra.mxu0 %v8936_v1  ;;  %v8989_v1 = vld [vmem:[#allocation2 + $0xc28] sm:$0xff] }
0x1a99   : > { %5699 = vmatprep.subr.mxu0 %v8937_v31  ;;  %v8990_v31 = vld [vmem:[#allocation2 + $0xc20] sm:$0xff] }
0x1a9a   : > { %5700 = vmatpush2.msra.mxu0 %v8938_v24  ;;  %v8991_v24 = vld [vmem:[#allocation2 + $0xc18] sm:$0xff] }
0x1a9b   : > { %5701 = vmatprep.subr.mxu0 %v8939_v27  ;;  %v8992_v27 = vld [vmem:[#allocation2 + $0xc10] sm:$0xff] }
0x1a9c   : > { %5702 = vmatpush2.msra.mxu0 %v8940_v42  ;;  %v8993_v42 = vld [vmem:[#allocation2 + $0xc08] sm:$0xff] }
0x1a9d   : > { %5703 = vmatprep.subr.mxu0 %v8941_v43  ;;  %v8994_v43 = vld [vmem:[#allocation2 + $0xc00] sm:$0xff] }
0x1a9e   : > { %5704 = vmatpush2.msra.mxu0 %v8942_v17  ;;  %v8995_v17 = vld [vmem:[#allocation2 + $0xdf8] sm:$0xff] }
0x1a9f   : > { %5705 = vmatprep.subr.mxu0 %v8943_v6  ;;  %v8996_v6 = vld [vmem:[#allocation2 + $0xdf0] sm:$0xff] }
0x1aa0   : > { %5706 = vmatpush2.msra.mxu0 %v8944_v52  ;;  %v8997_v52 = vld [vmem:[#allocation2 + $0xde8] sm:$0xff] }
0x1aa1   : > { %5707 = vmatprep.subr.mxu0 %v8945_v53  ;;  %v8998_v53 = vld [vmem:[#allocation2 + $0xde0] sm:$0xff] }
0x1aa2   : > { %5708 = vmatpush2.msra.mxu0 %v8946_v54  ;;  %v8999_v54 = vld [vmem:[#allocation2 + $0xdd8] sm:$0xff] }
0x1aa3   : > { %5709 = vmatprep.subr.mxu0 %v8947_v33  ;;  %v9000_v33 = vld [vmem:[#allocation2 + $0xdd0] sm:$0xff] }
0x1aa4   : > { %5710 = vmatpush2.msra.mxu0 %v8948_v46  ;;  %v9001_v46 = vld [vmem:[#allocation2 + $0xdc8] sm:$0xff] }
0x1aa5   : > { %5711 = vmatprep.subr.mxu0 %v8949_v8  ;;  %v9002_v8 = vld [vmem:[#allocation2 + $0xdc0] sm:$0xff] }
0x1aa6   : > { %5712 = vmatpush2.msra.mxu0 %v8950_v21  ;;  %v9003_v21 = vld [vmem:[#allocation2 + $0xdb8] sm:$0xff] }
0x1aa7   : > { %5713 = vmatprep.subr.mxu0 %v8951_v55  ;;  %v9004_v55 = vld [vmem:[#allocation2 + $0xdb0] sm:$0xff] }
0x1aa8   : > { %5714 = vmatpush2.msra.mxu0 %v8952_v34  ;;  %v9005_v34 = vld [vmem:[#allocation2 + $0xda8] sm:$0xff] }
0x1aa9   : > { %5715 = vmatprep.subr.mxu0 %v8953_v56  ;;  %v9006_v56 = vld [vmem:[#allocation2 + $0xda0] sm:$0xff] }
0x1aaa   : > { %5716 = vmatpush2.msra.mxu0 %v8954_v39  ;;  %v9007_v39 = vld [vmem:[#allocation2 + $0xd98] sm:$0xff] }
0x1aab   : > { %5717 = vmatprep.subr.mxu0 %v8955_v59  ;;  %v9008_v59 = vld [vmem:[#allocation2 + $0xd90] sm:$0xff] }
0x1aac   : > { %5718 = vmatpush2.msra.mxu0 %v8956_v61  ;;  %v9009_v61 = vld [vmem:[#allocation2 + $0xd88] sm:$0xff] }
0x1aad   : > { %5719 = vmatprep.subr.mxu0 %v8957_v63  ;;  %v9010_v63 = vld [vmem:[#allocation2 + $0xd80] sm:$0xff] }
0x1aae   : > { %5720 = vmatpush2.msra.mxu0 %v8958_v36  ;;  %v9011_v36 = vld [vmem:[#allocation2 + $0xd78] sm:$0xff] }
0x1aaf   : > { %5721 = vmatprep.subr.mxu0 %v8959_v44  ;;  %v9012_v44 = vld [vmem:[#allocation2 + $0xd70] sm:$0xff] }
0x1ab0   : > { %5722 = vmatpush2.msra.mxu0 %v8960_v0  ;;  %v9013_v0 = vld [vmem:[#allocation2 + $0xd68] sm:$0xff] }
0x1ab1   : > { %5723 = vmatprep.subr.mxu0 %v8961_v50  ;;  %v9014_v50 = vld [vmem:[#allocation2 + $0xd60] sm:$0xff] }
0x1ab2   : > { %5724 = vmatpush2.msra.mxu0 %v8962_v16  ;;  %v9015_v16 = vld [vmem:[#allocation2 + $0xd58] sm:$0xff] }
0x1ab3   : > { %5726 = vmatmul.mubr.f32.vlgmr.msra.gmra.mxu0 %v10290_v58 }
0x1ab4   : > { %5962 = vmatprep.mubr.f32.mxu0 %v9843_v4 }
0x1b33   : > { %v5654_v3 = vpop.f32.mrf.mxu0 }
0x1b34   : > { %v10357_v48 = vadd.f32 %v5654_v3, %v10344_v35  ;;  %v8965_v35 = vld [vmem:[#allocation2 + $0xce8] sm:$0xff]  ;;  %v9016_v3 = vld [vmem:[#allocation2 + $0xd50] sm:$0xff] }
0x1b35   : > { %v5656_v5 = vpop.f32.mrf.mxu0 }
0x1b36   : > { %v10360_v49 = vadd.f32 %v5656_v5, %v10347_v57  ;;  %v8967_v57 = vld [vmem:[#allocation2 + $0xcd8] sm:$0xff]  ;;  %v9017_v5 = vld [vmem:[#allocation2 + $0xd48] sm:$0xff] }
0x1b73   : > { %v5727_v7 = vpop.f32.mrf.mxu0 }
0x1b75   : > { %v5729_v11 = vpop.f32.mrf.mxu0 }
0x1b76   : > { %7891 = vmatprep.subr.msk.mxu1 %vm519_vm0, %v5729_v11  ;;  %v9019_v11 = vld [vmem:[#allocation2 + $0xd38] sm:$0xff] }
0x1b77   : > { %7892 = vmatpush1.msk.msra.mxu1 %vm519_vm0, %v5727_v7  ;;  %v9018_v7 = vld [vmem:[#allocation2 + $0xd40] sm:$0xff] }
0x1b78   : > { %7893 = vmatmul.mubr.msk.f32.vlgmr.msra.gmra.mxu1 %vm515_vm1, %v7890_v12  ;;  %5816 = vmatprep.subr.mxu1 %v8963_v13  ;;  %v9020_v12 = vld [vmem:[#allocation2 + $0xd30] sm:$0xff]  ;;  %v9021_v13 = vld [vmem:[#allocation2 + $0xd28] sm:$0xff] }
0x1b79   : > { %5817 = vmatpush1.msra.mxu1 %v8964_v14  ;;  %5880 = vmatprep.mubr.f32.mxu1 %v10288_v15  ;;  %v9022_v14 = vld [vmem:[#allocation2 + $0xd20] sm:$0xff] }
0x1b7a   : > { %5818 = vmatprep.subr.mxu1 %v8965_v35  ;;  %v9023_v35 = vld [vmem:[#allocation2 + $0xd18] sm:$0xff] }
0x1b7b   : > { %5819 = vmatpush1.msra.mxu1 %v8966_v18  ;;  %v9024_v18 = vld [vmem:[#allocation2 + $0xd10] sm:$0xff] }
0x1b7c   : > { %5820 = vmatprep.subr.mxu1 %v8967_v57  ;;  %v9025_v57 = vld [vmem:[#allocation2 + $0xd08] sm:$0xff] }
0x1b7d   : > { %5821 = vmatpush1.msra.mxu1 %v8968_v41  ;;  %v9026_v41 = vld [vmem:[#allocation2 + $0xd00] sm:$0xff] }
0x1b7e   : > { %5822 = vmatprep.subr.mxu1 %v8969_v19 }
0x1b7f   : > { %5823 = vmatpush1.msra.mxu1 %v8970_v62 }
0x1b80   : > { %5824 = vmatprep.subr.mxu1 %v8971_v22 }
0x1b81   : > { %5825 = vmatpush1.msra.mxu1 %v8972_v25 }
0x1b82   : > { %5826 = vmatprep.subr.mxu1 %v8973_v2 }
0x1b83   : > { %5827 = vmatpush1.msra.mxu1 %v8974_v29 }
0x1b84   : > { %5828 = vmatprep.subr.mxu1 %v8975_v30  ;;  %v7894_v30 = vld [vmem:[%s9965_s11 + $0x18] sm:$0xf] }
0x1b85   : > { %5829 = vmatpush1.msra.mxu1 %v8976_v51  ;;  %v9027_v51 = vld [vmem:[#allocation2 + $0xef8] sm:$0xff] }
0x1b86   : > { %5830 = vmatprep.subr.mxu1 %v8977_v47  ;;  %v9028_v47 = vld [vmem:[#allocation2 + $0xef0] sm:$0xff] }
0x1b87   : > { %5831 = vmatpush1.msra.mxu1 %v8978_v9  ;;  %v9030_v9 = vld [vmem:[#allocation2 + $0xee0] sm:$0xff] }
0x1b88   : > { %5832 = vmatprep.subr.mxu1 %v8979_v32  ;;  %v9032_v32 = vld [vmem:[#allocation2 + $0xed0] sm:$0xff] }
0x1b89   : > { %5833 = vmatpush1.msra.mxu1 %v8980_v10  ;;  %v9033_v10 = vld [vmem:[#allocation2 + $0xec8] sm:$0xff] }
0x1b8a   : > { %5834 = vmatprep.subr.mxu1 %v8981_v37  ;;  %v9034_v37 = vld [vmem:[#allocation2 + $0xec0] sm:$0xff] }
0x1b8b   : > { %5835 = vmatpush1.msra.mxu1 %v8982_v45  ;;  %v9035_v45 = vld [vmem:[#allocation2 + $0xeb8] sm:$0xff] }
0x1b8c   : > { %5836 = vmatprep.subr.mxu1 %v8983_v38  ;;  %v9036_v38 = vld [vmem:[#allocation2 + $0xeb0] sm:$0xff] }
0x1b8d   : > { %5837 = vmatpush1.msra.mxu1 %v8984_v40  ;;  %v9037_v40 = vld [vmem:[#allocation2 + $0xea8] sm:$0xff] }
0x1b8e   : > { %5838 = vmatprep.subr.mxu1 %v8985_v23  ;;  %v9038_v23 = vld [vmem:[#allocation2 + $0xea0] sm:$0xff] }
0x1b8f   : > { %5839 = vmatpush1.msra.mxu1 %v8986_v26  ;;  %v9039_v26 = vld [vmem:[#allocation2 + $0xe98] sm:$0xff] }
0x1b90   : > { %5840 = vmatprep.subr.mxu1 %v8987_v60  ;;  %v9040_v60 = vld [vmem:[#allocation2 + $0xe90] sm:$0xff] }
0x1b91   : > { %5841 = vmatpush1.msra.mxu1 %v8988_v20  ;;  %v9041_v20 = vld [vmem:[#allocation2 + $0xe88] sm:$0xff] }
0x1b92   : > { %5842 = vmatprep.subr.mxu1 %v8989_v1  ;;  %v9042_v1 = vld [vmem:[#allocation2 + $0xe80] sm:$0xff] }
0x1b93   : > { %5843 = vmatpush1.msra.mxu1 %v8990_v31  ;;  %v9043_v31 = vld [vmem:[#allocation2 + $0xe78] sm:$0xff] }
0x1b94   : > { %5844 = vmatprep.subr.mxu1 %v8991_v24  ;;  %v9044_v24 = vld [vmem:[#allocation2 + $0xe70] sm:$0xff] }
0x1b95   : > { %5845 = vmatpush1.msra.mxu1 %v8992_v27  ;;  %v9045_v27 = vld [vmem:[#allocation2 + $0xe68] sm:$0xff] }
0x1b96   : > { %5846 = vmatprep.subr.mxu1 %v8993_v42  ;;  %v9046_v42 = vld [vmem:[#allocation2 + $0xe60] sm:$0xff] }
0x1b97   : > { %5847 = vmatpush1.msra.mxu1 %v8994_v43  ;;  %v9047_v43 = vld [vmem:[#allocation2 + $0xe58] sm:$0xff] }
0x1b98   : > { %5848 = vmatprep.subr.mxu1 %v8995_v17  ;;  %v9048_v17 = vld [vmem:[#allocation2 + $0xe50] sm:$0xff] }
0x1b99   : > { %5849 = vmatpush2.msra.mxu1 %v8996_v6  ;;  %v9049_v6 = vld [vmem:[#allocation2 + $0xe48] sm:$0xff] }
0x1b9a   : > { %5850 = vmatprep.subr.mxu1 %v8997_v52  ;;  %v9050_v52 = vld [vmem:[#allocation2 + $0xe40] sm:$0xff] }
0x1b9b   : > { %5851 = vmatpush2.msra.mxu1 %v8998_v53  ;;  %v9051_v53 = vld [vmem:[#allocation2 + $0xe38] sm:$0xff] }
0x1b9c   : > { %5852 = vmatprep.subr.mxu1 %v8999_v54  ;;  %v9052_v54 = vld [vmem:[#allocation2 + $0xe30] sm:$0xff] }
0x1b9d   : > { %5853 = vmatpush2.msra.mxu1 %v9000_v33  ;;  %v9053_v33 = vld [vmem:[#allocation2 + $0xe28] sm:$0xff] }
0x1b9e   : > { %5854 = vmatprep.subr.mxu1 %v9001_v46  ;;  %v9054_v46 = vld [vmem:[#allocation2 + $0xe20] sm:$0xff] }
0x1b9f   : > { %5855 = vmatpush2.msra.mxu1 %v9002_v8  ;;  %v9055_v8 = vld [vmem:[#allocation2 + $0xe18] sm:$0xff] }
0x1ba0   : > { %5856 = vmatprep.subr.mxu1 %v9003_v21  ;;  %v9056_v21 = vld [vmem:[#allocation2 + $0xe10] sm:$0xff] }
0x1ba1   : > { %5857 = vmatpush2.msra.mxu1 %v9004_v55  ;;  %v9057_v55 = vld [vmem:[#allocation2 + $0xe08] sm:$0xff] }
0x1ba2   : > { %5858 = vmatprep.subr.mxu1 %v9005_v34  ;;  %v9058_v34 = vld [vmem:[#allocation2 + $0xe00] sm:$0xff] }
0x1ba3   : > { %5859 = vmatpush2.msra.mxu1 %v9006_v56  ;;  %v9059_v56 = vld [vmem:[#allocation2 + $0xff8] sm:$0xff] }
0x1ba4   : > { %5860 = vmatprep.subr.mxu1 %v9007_v39  ;;  %v9060_v39 = vld [vmem:[#allocation2 + $0xff0] sm:$0xff] }
0x1ba5   : > { %5861 = vmatpush2.msra.mxu1 %v9008_v59  ;;  %v9061_v59 = vld [vmem:[#allocation2 + $0xfe8] sm:$0xff] }
0x1ba6   : > { %5862 = vmatprep.subr.mxu1 %v9009_v61  ;;  %v9062_v61 = vld [vmem:[#allocation2 + $0xfe0] sm:$0xff] }
0x1ba7   : > { %5863 = vmatpush2.msra.mxu1 %v9010_v63  ;;  %v9063_v63 = vld [vmem:[#allocation2 + $0xfd8] sm:$0xff] }
0x1ba8   : > { %5864 = vmatprep.subr.mxu1 %v9011_v36  ;;  %v9064_v36 = vld [vmem:[#allocation2 + $0xfd0] sm:$0xff] }
0x1ba9   : > { %5865 = vmatpush2.msra.mxu1 %v9012_v44  ;;  %v9065_v44 = vld [vmem:[#allocation2 + $0xfc8] sm:$0xff] }
0x1baa   : > { %5866 = vmatprep.subr.mxu1 %v9013_v0  ;;  %v9066_v0 = vld [vmem:[#allocation2 + $0xfc0] sm:$0xff] }
0x1bab   : > { %5867 = vmatpush2.msra.mxu1 %v9014_v50  ;;  %v9067_v50 = vld [vmem:[#allocation2 + $0xfb8] sm:$0xff] }
0x1bac   : > { %5868 = vmatprep.subr.mxu1 %v9015_v16  ;;  %v9068_v16 = vld [vmem:[#allocation2 + $0xfb0] sm:$0xff] }
0x1bad   : > { %5869 = vmatpush2.msra.mxu1 %v9016_v3  ;;  %v9069_v3 = vld [vmem:[#allocation2 + $0xfa8] sm:$0xff] }
0x1bae   : > { %5870 = vmatprep.subr.mxu1 %v9017_v5  ;;  %v9070_v5 = vld [vmem:[#allocation2 + $0xfa0] sm:$0xff] }
0x1baf   : > { %5871 = vmatpush2.msra.mxu1 %v9018_v7  ;;  %v9071_v7 = vld [vmem:[#allocation2 + $0xf98] sm:$0xff] }
0x1bb0   : > { %5872 = vmatprep.subr.mxu1 %v9019_v11  ;;  %v9072_v11 = vld [vmem:[#allocation2 + $0xf90] sm:$0xff] }
0x1bb1   : > { %5873 = vmatpush2.msra.mxu1 %v9020_v12  ;;  %v9073_v12 = vld [vmem:[#allocation2 + $0xf88] sm:$0xff] }
0x1bb2   : > { %5874 = vmatprep.subr.mxu1 %v9021_v13  ;;  %v9074_v13 = vld [vmem:[#allocation2 + $0xf80] sm:$0xff] }
0x1bb3   : > { %5875 = vmatpush2.msra.mxu1 %v9022_v14  ;;  %v9075_v14 = vld [vmem:[#allocation2 + $0xf78] sm:$0xff] }
0x1bb4   : > { %5876 = vmatprep.subr.mxu1 %v9023_v35  ;;  %v9076_v35 = vld [vmem:[#allocation2 + $0xf70] sm:$0xff] }
0x1bb5   : > { %5877 = vmatpush2.msra.mxu1 %v9024_v18  ;;  %v9077_v18 = vld [vmem:[#allocation2 + $0xf68] sm:$0xff] }
0x1bb6   : > { %5878 = vmatprep.subr.mxu1 %v9025_v57  ;;  %v9078_v57 = vld [vmem:[#allocation2 + $0xf60] sm:$0xff] }
0x1bb7   : > { %5879 = vmatpush2.msra.mxu1 %v9026_v41  ;;  %v9079_v41 = vld [vmem:[#allocation2 + $0xf58] sm:$0xff] }
0x1bb8   : > { %5881 = vmatmul.mubr.f32.vlgmr.msra.gmra.mxu1 %v10290_v58 }
0x1bb9   : > { %6117 = vmatprep.mubr.f32.mxu1 %v9843_v4 }
0x1c38   : > { %v5809_v19 = vpop.f32.mrf.mxu1 }
0x1c39   : > { %v10370_v62 = vadd.f32 %v5809_v19, %v10357_v48  ;;  %v9029_v48 = vld [vmem:[#allocation2 + $0xee8] sm:$0xff]  ;;  %v9080_v19 = vld [vmem:[#allocation2 + $0xf50] sm:$0xff] }
0x1c3a   : > { %v5811_v22 = vpop.f32.mrf.mxu1 }
0x1c3b   : > { %v10373_v25 = vadd.f32 %v5811_v22, %v10360_v49  ;;  %v9031_v49 = vld [vmem:[#allocation2 + $0xed8] sm:$0xff]  ;;  %v9081_v22 = vld [vmem:[#allocation2 + $0xf48] sm:$0xff] }
0x1c78   : > { %v5882_v2 = vpop.f32.mrf.mxu1 }
0x1c7a   : > { %v5884_v29 = vpop.f32.mrf.mxu1 }
0x1c7b   : > { %7895 = vmatprep.subr.msk.mxu0 %vm519_vm0, %v5884_v29  ;;  %v9083_v29 = vld [vmem:[#allocation2 + $0xf38] sm:$0xff] }
0x1c7c   : > { %7896 = vmatpush1.msk.msra.mxu0 %vm519_vm0, %v5882_v2  ;;  %v9082_v2 = vld [vmem:[#allocation2 + $0xf40] sm:$0xff] }
0x1c7d   : > { %7897 = vmatmul.mubr.msk.f32.vlgmr.msra.gmra.mxu0 %vm515_vm1, %v7894_v30  ;;  %5971 = vmatprep.subr.mxu0 %v9027_v51  ;;  %v9084_v30 = vld [vmem:[#allocation2 + $0xf30] sm:$0xff]  ;;  %v9085_v51 = vld [vmem:[#allocation2 + $0xf28] sm:$0xff] }
0x1c7e   : > { %5972 = vmatpush1.msra.mxu0 %v9028_v47  ;;  %6035 = vmatprep.mubr.f32.mxu0 %v10288_v15  ;;  %v9086_v47 = vld [vmem:[#allocation2 + $0xf20] sm:$0xff] }
0x1c7f   : > { %5973 = vmatprep.subr.mxu0 %v9029_v48  ;;  %v9087_v48 = vld [vmem:[#allocation2 + $0xf18] sm:$0xff] }
0x1c80   : > { %5974 = vmatpush1.msra.mxu0 %v9030_v9  ;;  %v9088_v9 = vld [vmem:[#allocation2 + $0xf10] sm:$0xff] }
0x1c81   : > { %5975 = vmatprep.subr.mxu0 %v9031_v49  ;;  %v9089_v49 = vld [vmem:[#allocation2 + $0xf08] sm:$0xff] }
0x1c82   : > { %5976 = vmatpush1.msra.mxu0 %v9032_v32  ;;  %v9090_v32 = vld [vmem:[#allocation2 + $0xf00] sm:$0xff] }
0x1c83   : > { %5977 = vmatprep.subr.mxu0 %v9033_v10 }
0x1c84   : > { %5978 = vmatpush1.msra.mxu0 %v9034_v37 }
0x1c85   : > { %5979 = vmatprep.subr.mxu0 %v9035_v45 }
0x1c86   : > { %5980 = vmatpush1.msra.mxu0 %v9036_v38 }
0x1c87   : > { %5981 = vmatprep.subr.mxu0 %v9037_v40 }
0x1c88   : > { %5982 = vmatpush1.msra.mxu0 %v9038_v23 }
0x1c89   : > { %5983 = vmatprep.subr.mxu0 %v9039_v26  ;;  %v7898_v26 = vld [vmem:[%s9965_s11 + $0x1c] sm:$0xf] }
0x1c8a   : > { %5984 = vmatpush1.msra.mxu0 %v9040_v60  ;;  %v9091_v60 = vld [vmem:[#allocation2 + $0x10f8] sm:$0xff] }
0x1c8b   : > { %5985 = vmatprep.subr.mxu0 %v9041_v20  ;;  %v9092_v20 = vld [vmem:[#allocation2 + $0x10f0] sm:$0xff] }
0x1c8c   : > { %5986 = vmatpush1.msra.mxu0 %v9042_v1  ;;  %v9094_v1 = vld [vmem:[#allocation2 + $0x10e0] sm:$0xff] }
0x1c8d   : > { %5987 = vmatprep.subr.mxu0 %v9043_v31  ;;  %v9096_v31 = vld [vmem:[#allocation2 + $0x10d0] sm:$0xff] }
0x1c8e   : > { %5988 = vmatpush1.msra.mxu0 %v9044_v24  ;;  %v9097_v24 = vld [vmem:[#allocation2 + $0x10c8] sm:$0xff] }
0x1c8f   : > { %5989 = vmatprep.subr.mxu0 %v9045_v27  ;;  %v9098_v27 = vld [vmem:[#allocation2 + $0x10c0] sm:$0xff] }
0x1c90   : > { %5990 = vmatpush1.msra.mxu0 %v9046_v42  ;;  %v9099_v42 = vld [vmem:[#allocation2 + $0x10b8] sm:$0xff] }
0x1c91   : > { %5991 = vmatprep.subr.mxu0 %v9047_v43  ;;  %v9100_v43 = vld [vmem:[#allocation2 + $0x10b0] sm:$0xff] }
0x1c92   : > { %5992 = vmatpush1.msra.mxu0 %v9048_v17  ;;  %v9101_v17 = vld [vmem:[#allocation2 + $0x10a8] sm:$0xff] }
0x1c93   : > { %5993 = vmatprep.subr.mxu0 %v9049_v6  ;;  %v9102_v6 = vld [vmem:[#allocation2 + $0x10a0] sm:$0xff] }
0x1c94   : > { %5994 = vmatpush1.msra.mxu0 %v9050_v52  ;;  %v9103_v52 = vld [vmem:[#allocation2 + $0x1098] sm:$0xff] }
0x1c95   : > { %5995 = vmatprep.subr.mxu0 %v9051_v53  ;;  %v9104_v53 = vld [vmem:[#allocation2 + $0x1090] sm:$0xff] }
0x1c96   : > { %5996 = vmatpush1.msra.mxu0 %v9052_v54  ;;  %v9105_v54 = vld [vmem:[#allocation2 + $0x1088] sm:$0xff] }
0x1c97   : > { %5997 = vmatprep.subr.mxu0 %v9053_v33  ;;  %v9106_v33 = vld [vmem:[#allocation2 + $0x1080] sm:$0xff] }
0x1c98   : > { %5998 = vmatpush1.msra.mxu0 %v9054_v46  ;;  %v9107_v46 = vld [vmem:[#allocation2 + $0x1078] sm:$0xff] }
0x1c99   : > { %5999 = vmatprep.subr.mxu0 %v9055_v8  ;;  %v9108_v8 = vld [vmem:[#allocation2 + $0x1070] sm:$0xff] }
0x1c9a   : > { %6000 = vmatpush1.msra.mxu0 %v9056_v21  ;;  %v9109_v21 = vld [vmem:[#allocation2 + $0x1068] sm:$0xff] }
0x1c9b   : > { %6001 = vmatprep.subr.mxu0 %v9057_v55  ;;  %v9110_v55 = vld [vmem:[#allocation2 + $0x1060] sm:$0xff] }
0x1c9c   : > { %6002 = vmatpush1.msra.mxu0 %v9058_v34  ;;  %v9111_v34 = vld [vmem:[#allocation2 + $0x1058] sm:$0xff] }
0x1c9d   : > { %6003 = vmatprep.subr.mxu0 %v9059_v56  ;;  %v9112_v56 = vld [vmem:[#allocation2 + $0x1050] sm:$0xff] }
0x1c9e   : > { %6004 = vmatpush2.msra.mxu0 %v9060_v39  ;;  %v9113_v39 = vld [vmem:[#allocation2 + $0x1048] sm:$0xff] }
0x1c9f   : > { %6005 = vmatprep.subr.mxu0 %v9061_v59  ;;  %v9114_v59 = vld [vmem:[#allocation2 + $0x1040] sm:$0xff] }
0x1ca0   : > { %6006 = vmatpush2.msra.mxu0 %v9062_v61  ;;  %v9115_v61 = vld [vmem:[#allocation2 + $0x1038] sm:$0xff] }
0x1ca1   : > { %6007 = vmatprep.subr.mxu0 %v9063_v63  ;;  %v9116_v63 = vld [vmem:[#allocation2 + $0x1030] sm:$0xff] }
0x1ca2   : > { %6008 = vmatpush2.msra.mxu0 %v9064_v36  ;;  %v9117_v36 = vld [vmem:[#allocation2 + $0x1028] sm:$0xff] }
0x1ca3   : > { %6009 = vmatprep.subr.mxu0 %v9065_v44  ;;  %v9118_v44 = vld [vmem:[#allocation2 + $0x1020] sm:$0xff] }
0x1ca4   : > { %6010 = vmatpush2.msra.mxu0 %v9066_v0  ;;  %v9119_v0 = vld [vmem:[#allocation2 + $0x1018] sm:$0xff] }
0x1ca5   : > { %6011 = vmatprep.subr.mxu0 %v9067_v50  ;;  %v9120_v50 = vld [vmem:[#allocation2 + $0x1010] sm:$0xff] }
0x1ca6   : > { %6012 = vmatpush2.msra.mxu0 %v9068_v16  ;;  %v9121_v16 = vld [vmem:[#allocation2 + $0x1008] sm:$0xff] }
0x1ca7   : > { %6013 = vmatprep.subr.mxu0 %v9069_v3  ;;  %v9122_v3 = vld [vmem:[#allocation2 + $0x1000] sm:$0xff] }
0x1ca8   : > { %6014 = vmatpush2.msra.mxu0 %v9070_v5  ;;  %v9123_v5 = vld [vmem:[#allocation2 + $0x11f8] sm:$0xff] }
0x1ca9   : > { %6015 = vmatprep.subr.mxu0 %v9071_v7  ;;  %v9124_v7 = vld [vmem:[#allocation2 + $0x11f0] sm:$0xff] }
0x1caa   : > { %6016 = vmatpush2.msra.mxu0 %v9072_v11  ;;  %v9125_v11 = vld [vmem:[#allocation2 + $0x11e8] sm:$0xff] }
0x1cab   : > { %6017 = vmatprep.subr.mxu0 %v9073_v12  ;;  %v9126_v12 = vld [vmem:[#allocation2 + $0x11e0] sm:$0xff] }
0x1cac   : > { %6018 = vmatpush2.msra.mxu0 %v9074_v13  ;;  %v9127_v13 = vld [vmem:[#allocation2 + $0x11d8] sm:$0xff] }
0x1cad   : > { %6019 = vmatprep.subr.mxu0 %v9075_v14  ;;  %v9128_v14 = vld [vmem:[#allocation2 + $0x11d0] sm:$0xff] }
0x1cae   : > { %6020 = vmatpush2.msra.mxu0 %v9076_v35  ;;  %v9129_v35 = vld [vmem:[#allocation2 + $0x11c8] sm:$0xff] }
0x1caf   : > { %6021 = vmatprep.subr.mxu0 %v9077_v18  ;;  %v9130_v18 = vld [vmem:[#allocation2 + $0x11c0] sm:$0xff] }
0x1cb0   : > { %6022 = vmatpush2.msra.mxu0 %v9078_v57  ;;  %v9131_v57 = vld [vmem:[#allocation2 + $0x11b8] sm:$0xff] }
0x1cb1   : > { %6023 = vmatprep.subr.mxu0 %v9079_v41  ;;  %v9132_v41 = vld [vmem:[#allocation2 + $0x11b0] sm:$0xff] }
0x1cb2   : > { %6024 = vmatpush2.msra.mxu0 %v9080_v19  ;;  %v9133_v19 = vld [vmem:[#allocation2 + $0x11a8] sm:$0xff] }
0x1cb3   : > { %6025 = vmatprep.subr.mxu0 %v9081_v22  ;;  %v9134_v22 = vld [vmem:[#allocation2 + $0x11a0] sm:$0xff] }
0x1cb4   : > { %6026 = vmatpush2.msra.mxu0 %v9082_v2  ;;  %v9135_v2 = vld [vmem:[#allocation2 + $0x1198] sm:$0xff] }
0x1cb5   : > { %6027 = vmatprep.subr.mxu0 %v9083_v29  ;;  %v9136_v29 = vld [vmem:[#allocation2 + $0x1190] sm:$0xff] }
0x1cb6   : > { %6028 = vmatpush2.msra.mxu0 %v9084_v30  ;;  %v9137_v30 = vld [vmem:[#allocation2 + $0x1188] sm:$0xff] }
0x1cb7   : > { %6029 = vmatprep.subr.mxu0 %v9085_v51  ;;  %v9138_v51 = vld [vmem:[#allocation2 + $0x1180] sm:$0xff] }
0x1cb8   : > { %6030 = vmatpush2.msra.mxu0 %v9086_v47  ;;  %v9139_v47 = vld [vmem:[#allocation2 + $0x1178] sm:$0xff] }
0x1cb9   : > { %6031 = vmatprep.subr.mxu0 %v9087_v48  ;;  %v9140_v48 = vld [vmem:[#allocation2 + $0x1170] sm:$0xff] }
0x1cba   : > { %6032 = vmatpush2.msra.mxu0 %v9088_v9  ;;  %v9141_v9 = vld [vmem:[#allocation2 + $0x1168] sm:$0xff] }
0x1cbb   : > { %6033 = vmatprep.subr.mxu0 %v9089_v49  ;;  %v9142_v49 = vld [vmem:[#allocation2 + $0x1160] sm:$0xff] }
0x1cbc   : > { %6034 = vmatpush2.msra.mxu0 %v9090_v32  ;;  %v9143_v32 = vld [vmem:[#allocation2 + $0x1158] sm:$0xff] }
0x1cbd   : > { %6036 = vmatmul.mubr.f32.vlgmr.msra.gmra.mxu0 %v10290_v58 }
0x1cbe   : > { %6272 = vmatprep.mubr.f32.mxu0 %v9843_v4 }
0x1d3d   : > { %v5964_v10 = vpop.f32.mrf.mxu0 }
0x1d3e   : > { %v10383_v37 = vadd.f32 %v5964_v10, %v10370_v62  ;;  %v9093_v62 = vld [vmem:[#allocation2 + $0x10e8] sm:$0xff]  ;;  %v9144_v10 = vld [vmem:[#allocation2 + $0x1150] sm:$0xff] }
0x1d3f   : > { %v5966_v45 = vpop.f32.mrf.mxu0 }
0x1d40   : > { %v10386_v38 = vadd.f32 %v5966_v45, %v10373_v25  ;;  %v9095_v25 = vld [vmem:[#allocation2 + $0x10d8] sm:$0xff]  ;;  %v9145_v45 = vld [vmem:[#allocation2 + $0x1148] sm:$0xff] }
0x1d7d   : > { %v6037_v40 = vpop.f32.mrf.mxu0 }
0x1d7f   : > { %v6039_v23 = vpop.f32.mrf.mxu0 }
0x1d80   : > { %7899 = vmatprep.subr.msk.mxu1 %vm519_vm0, %v6039_v23  ;;  %v9147_v23 = vld [vmem:[#allocation2 + $0x1138] sm:$0xff] }
0x1d81   : > { %7900 = vmatpush1.msk.msra.mxu1 %vm519_vm0, %v6037_v40  ;;  %v9146_v40 = vld [vmem:[#allocation2 + $0x1140] sm:$0xff] }
0x1d82   : > { %7901 = vmatmul.mubr.msk.f32.vlgmr.msra.gmra.mxu1 %vm515_vm1, %v7898_v26  ;;  %6126 = vmatprep.subr.mxu1 %v9091_v60  ;;  %v9148_v26 = vld [vmem:[#allocation2 + $0x1130] sm:$0xff]  ;;  %v9149_v60 = vld [vmem:[#allocation2 + $0x1128] sm:$0xff] }
0x1d83   : > { %6127 = vmatpush1.msra.mxu1 %v9092_v20  ;;  %6190 = vmatprep.mubr.f32.mxu1 %v10288_v15  ;;  %v9150_v20 = vld [vmem:[#allocation2 + $0x1120] sm:$0xff] }
0x1d84   : > { %6128 = vmatprep.subr.mxu1 %v9093_v62  ;;  %v9151_v62 = vld [vmem:[#allocation2 + $0x1118] sm:$0xff] }
0x1d85   : > { %6129 = vmatpush1.msra.mxu1 %v9094_v1  ;;  %v9152_v1 = vld [vmem:[#allocation2 + $0x1110] sm:$0xff] }
0x1d86   : > { %6130 = vmatprep.subr.mxu1 %v9095_v25  ;;  %v9153_v25 = vld [vmem:[#allocation2 + $0x1108] sm:$0xff] }
0x1d87   : > { %6131 = vmatpush1.msra.mxu1 %v9096_v31  ;;  %v9154_v31 = vld [vmem:[#allocation2 + $0x1100] sm:$0xff] }
0x1d88   : > { %6132 = vmatprep.subr.mxu1 %v9097_v24 }
0x1d89   : > { %6133 = vmatpush1.msra.mxu1 %v9098_v27 }
0x1d8a   : > { %6134 = vmatprep.subr.mxu1 %v9099_v42 }
0x1d8b   : > { %6135 = vmatpush1.msra.mxu1 %v9100_v43 }
0x1d8c   : > { %6136 = vmatprep.subr.mxu1 %v9101_v17 }
0x1d8d   : > { %6137 = vmatpush1.msra.mxu1 %v9102_v6 }
0x1d8e   : > { %6138 = vmatprep.subr.mxu1 %v9103_v52  ;;  %v7902_v52 = vld [vmem:[%s9965_s11 + $0x20] sm:$0xf] }
0x1d8f   : > { %6139 = vmatpush1.msra.mxu1 %v9104_v53  ;;  %v10405_v53 = vrot.slane %v10288_v15, 4  ;;  %v9162_v15 = vld [vmem:[#allocation2 + $0xc0] sm:$0xff] }
0x1d90   : > { %6140 = vmatprep.subr.mxu1 %v9105_v54  ;;  %v9155_v54 = vld [vmem:[#allocation2 + $0xf8] sm:$0xff] }
0x1d91   : > { %6141 = vmatpush1.msra.mxu1 %v9106_v33  ;;  %v9158_v33 = vld [vmem:[#allocation2 + $0xe0] sm:$0xff] }
0x1d92   : > { %6142 = vmatprep.subr.mxu1 %v9107_v46  ;;  %v9159_v46 = vld [vmem:[#allocation2 + $0xd8] sm:$0xff] }
0x1d93   : > { %6143 = vmatpush1.msra.mxu1 %v9108_v8  ;;  %v9160_v8 = vld [vmem:[#allocation2 + $0xd0] sm:$0xff] }
0x1d94   : > { %6144 = vmatprep.subr.mxu1 %v9109_v21  ;;  %v9161_v21 = vld [vmem:[#allocation2 + $0xc8] sm:$0xff] }
0x1d95   : > { %6145 = vmatpush1.msra.mxu1 %v9110_v55  ;;  %v9163_v55 = vld [vmem:[#allocation2 + $0xb8] sm:$0xff] }
0x1d96   : > { %6146 = vmatprep.subr.mxu1 %v9111_v34  ;;  %v9164_v34 = vld [vmem:[#allocation2 + $0xb0] sm:$0xff] }
0x1d97   : > { %6147 = vmatpush1.msra.mxu1 %v9112_v56  ;;  %v9165_v56 = vld [vmem:[#allocation2 + $0xa8] sm:$0xff] }
0x1d98   : > { %6148 = vmatprep.subr.mxu1 %v9113_v39  ;;  %v9166_v39 = vld [vmem:[#allocation2 + $0xa0] sm:$0xff] }
0x1d99   : > { %6149 = vmatpush1.msra.mxu1 %v9114_v59  ;;  %v9167_v59 = vld [vmem:[#allocation2 + $0x98] sm:$0xff] }
0x1d9a   : > { %6150 = vmatprep.subr.mxu1 %v9115_v61  ;;  %v9168_v61 = vld [vmem:[#allocation2 + $0x90] sm:$0xff] }
0x1d9b   : > { %6151 = vmatpush1.msra.mxu1 %v9116_v63  ;;  %v9169_v63 = vld [vmem:[#allocation2 + $0x88] sm:$0xff] }
0x1d9c   : > { %6152 = vmatprep.subr.mxu1 %v9117_v36  ;;  %v9170_v36 = vld [vmem:[#allocation2 + $0x80] sm:$0xff] }
0x1d9d   : > { %6153 = vmatpush1.msra.mxu1 %v9118_v44  ;;  %v9171_v44 = vld [vmem:[#allocation2 + $0x78] sm:$0xff] }
0x1d9e   : > { %6154 = vmatprep.subr.mxu1 %v9119_v0  ;;  %v9172_v0 = vld [vmem:[#allocation2 + $0x70] sm:$0xff] }
0x1d9f   : > { %6155 = vmatpush1.msra.mxu1 %v9120_v50  ;;  %v9173_v50 = vld [vmem:[#allocation2 + $0x68] sm:$0xff] }
0x1da0   : > { %6156 = vmatprep.subr.mxu1 %v9121_v16  ;;  %v9174_v16 = vld [vmem:[#allocation2 + $0x60] sm:$0xff] }
0x1da1   : > { %6157 = vmatpush1.msra.mxu1 %v9122_v3  ;;  %v9175_v3 = vld [vmem:[#allocation2 + $0x58] sm:$0xff] }
0x1da2   : > { %6158 = vmatprep.subr.mxu1 %v9123_v5  ;;  %v9176_v5 = vld [vmem:[#allocation2 + $0x50] sm:$0xff] }
0x1da3   : > { %6159 = vmatpush2.msra.mxu1 %v9124_v7  ;;  %v9177_v7 = vld [vmem:[#allocation2 + $0x48] sm:$0xff] }
0x1da4   : > { %6160 = vmatprep.subr.mxu1 %v9125_v11  ;;  %v9178_v11 = vld [vmem:[#allocation2 + $0x40] sm:$0xff] }
0x1da5   : > { %6161 = vmatpush2.msra.mxu1 %v9126_v12  ;;  %v9179_v12 = vld [vmem:[#allocation2 + $0x38] sm:$0xff] }
0x1da6   : > { %6162 = vmatprep.subr.mxu1 %v9127_v13  ;;  %v9180_v13 = vld [vmem:[#allocation2 + $0x30] sm:$0xff] }
0x1da7   : > { %6163 = vmatpush2.msra.mxu1 %v9128_v14  ;;  %v9181_v14 = vld [vmem:[#allocation2 + $0x28] sm:$0xff] }
0x1da8   : > { %6164 = vmatprep.subr.mxu1 %v9129_v35  ;;  %v9182_v35 = vld [vmem:[#allocation2 + $0x20] sm:$0xff] }
0x1da9   : > { %6165 = vmatpush2.msra.mxu1 %v9130_v18  ;;  %v9183_v18 = vld [vmem:[#allocation2 + $0x18] sm:$0xff] }
0x1daa   : > { %6166 = vmatprep.subr.mxu1 %v9131_v57  ;;  %v9184_v57 = vld [vmem:[#allocation2 + $0x10] sm:$0xff] }
0x1dab   : > { %6167 = vmatpush2.msra.mxu1 %v9132_v41  ;;  %v9185_v41 = vld [vmem:[#allocation2 + $0x8] sm:$0xff] }
0x1dac   : > { %6168 = vmatprep.subr.mxu1 %v9133_v19  ;;  %v9186_v19 = vld [vmem:[#allocation2] sm:$0xff] }
0x1dad   : > { %6169 = vmatpush2.msra.mxu1 %v9134_v22  ;;  %v9187_v22 = vld [vmem:[#allocation2 + $0x1f8] sm:$0xff] }
0x1dae   : > { %6170 = vmatprep.subr.mxu1 %v9135_v2  ;;  %v9188_v2 = vld [vmem:[#allocation2 + $0x1f0] sm:$0xff] }
0x1daf   : > { %6171 = vmatpush2.msra.mxu1 %v9136_v29  ;;  %v9189_v29 = vld [vmem:[#allocation2 + $0x1e8] sm:$0xff] }
0x1db0   : > { %6172 = vmatprep.subr.mxu1 %v9137_v30  ;;  %v9190_v30 = vld [vmem:[#allocation2 + $0x1e0] sm:$0xff] }
0x1db1   : > { %6173 = vmatpush2.msra.mxu1 %v9138_v51  ;;  %v9191_v51 = vld [vmem:[#allocation2 + $0x1d8] sm:$0xff] }
0x1db2   : > { %6174 = vmatprep.subr.mxu1 %v9139_v47  ;;  %v9192_v47 = vld [vmem:[#allocation2 + $0x1d0] sm:$0xff] }
0x1db3   : > { %6175 = vmatpush2.msra.mxu1 %v9140_v48  ;;  %v9193_v48 = vld [vmem:[#allocation2 + $0x1c8] sm:$0xff] }
0x1db4   : > { %6176 = vmatprep.subr.mxu1 %v9141_v9  ;;  %v9194_v9 = vld [vmem:[#allocation2 + $0x1c0] sm:$0xff] }
0x1db5   : > { %6177 = vmatpush2.msra.mxu1 %v9142_v49  ;;  %v9195_v49 = vld [vmem:[#allocation2 + $0x1b8] sm:$0xff] }
0x1db6   : > { %6178 = vmatprep.subr.mxu1 %v9143_v32  ;;  %v9196_v32 = vld [vmem:[#allocation2 + $0x1b0] sm:$0xff] }
0x1db7   : > { %6179 = vmatpush2.msra.mxu1 %v9144_v10  ;;  %v9197_v10 = vld [vmem:[#allocation2 + $0x1a8] sm:$0xff] }
0x1db8   : > { %6180 = vmatprep.subr.mxu1 %v9145_v45  ;;  %v9198_v45 = vld [vmem:[#allocation2 + $0x1a0] sm:$0xff] }
0x1db9   : > { %6181 = vmatpush2.msra.mxu1 %v9146_v40  ;;  %v9199_v40 = vld [vmem:[#allocation2 + $0x198] sm:$0xff] }
0x1dba   : > { %6182 = vmatprep.subr.mxu1 %v9147_v23  ;;  %v9200_v23 = vld [vmem:[#allocation2 + $0x190] sm:$0xff] }
0x1dbb   : > { %6183 = vmatpush2.msra.mxu1 %v9148_v26  ;;  %v9201_v26 = vld [vmem:[#allocation2 + $0x188] sm:$0xff] }
0x1dbc   : > { %6184 = vmatprep.subr.mxu1 %v9149_v60  ;;  %v9202_v60 = vld [vmem:[#allocation2 + $0x180] sm:$0xff] }
0x1dbd   : > { %6185 = vmatpush2.msra.mxu1 %v9150_v20  ;;  %v9203_v20 = vld [vmem:[#allocation2 + $0x178] sm:$0xff] }
0x1dbe   : > { %6186 = vmatprep.subr.mxu1 %v9151_v62  ;;  %v9204_v62 = vld [vmem:[#allocation2 + $0x170] sm:$0xff] }
0x1dbf   : > { %6187 = vmatpush2.msra.mxu1 %v9152_v1  ;;  %v9205_v1 = vld [vmem:[#allocation2 + $0x168] sm:$0xff] }
0x1dc0   : > { %6188 = vmatprep.subr.mxu1 %v9153_v25  ;;  %v9206_v25 = vld [vmem:[#allocation2 + $0x160] sm:$0xff] }
0x1dc1   : > { %6189 = vmatpush2.msra.mxu1 %v9154_v31  ;;  %v9207_v31 = vld [vmem:[#allocation2 + $0x158] sm:$0xff] }
0x1dc2   : > { %6191 = vmatmul.mubr.f32.vlgmr.msra.gmra.mxu1 %v10290_v58 }
0x1dc3   : > { %6442 = vmatprep.mubr.f32.mxu1 %v9843_v4 }
0x1e42   : > { %v6119_v24 = vpop.f32.mrf.mxu1 }
0x1e43   : > { %v10396_v27 = vadd.f32 %v6119_v24, %v10383_v37  ;;  %v9156_v37 = vld [vmem:[#allocation2 + $0xf0] sm:$0xff] }
0x1e44   : > { %v6121_v42 = vpop.f32.mrf.mxu1  ;;  %v9208_v24 = vld [vmem:[#allocation2 + $0x150] sm:$0xff] }
0x1e45   : > { %v10399_v43 = vadd.f32 %v6121_v42, %v10386_v38  ;;  %v9157_v38 = vld [vmem:[#allocation2 + $0xe8] sm:$0xff] }
0x1e46   : > { %v9209_v42 = vld [vmem:[#allocation2 + $0x148] sm:$0xff] }
0x1e82   : > { %v6192_v17 = vpop.f32.mrf.mxu1 }
0x1e84   : > { %v6194_v6 = vpop.f32.mrf.mxu1 }
0x1e85   : > { %7903 = vmatprep.subr.msk.mxu0 %vm519_vm0, %v6194_v6  ;;  %v9211_v6 = vld [vmem:[#allocation2 + $0x138] sm:$0xff] }
0x1e86   : > { %7904 = vmatpush1.msk.msra.mxu0 %vm519_vm0, %v6192_v17  ;;  %v9210_v17 = vld [vmem:[#allocation2 + $0x140] sm:$0xff] }
0x1e87   : > { %7905 = vmatmul.mubr.msk.f32.vlgmr.msra.gmra.mxu0 %vm515_vm1, %v7902_v52  ;;  %6301 = vmatprep.subr.mxu0 %v9155_v54  ;;  %v9212_v52 = vld [vmem:[#allocation2 + $0x130] sm:$0xff]  ;;  %v9213_v54 = vld [vmem:[#allocation2 + $0x128] sm:$0xff] }
0x1e88   : > { %6302 = vmatpush1.msra.mxu0 %v9156_v37  ;;  %6365 = vmatprep.mubr.f32.mxu0 %v10405_v53  ;;  %v9214_v37 = vld [vmem:[#allocation2 + $0x120] sm:$0xff] }
0x1e89   : > { %6303 = vmatprep.subr.mxu0 %v9157_v38  ;;  %v9215_v38 = vld [vmem:[#allocation2 + $0x118] sm:$0xff] }
0x1e8a   : > { %6304 = vmatpush1.msra.mxu0 %v9158_v33  ;;  %v9216_v33 = vld [vmem:[#allocation2 + $0x110] sm:$0xff] }
0x1e8b   : > { %6305 = vmatprep.subr.mxu0 %v9159_v46  ;;  %v9217_v46 = vld [vmem:[#allocation2 + $0x108] sm:$0xff] }
0x1e8c   : > { %6306 = vmatpush1.msra.mxu0 %v9160_v8  ;;  %v10410_v8 = vrot.slane %v10290_v58, 4 }
0x1e8d   : > { %6307 = vmatprep.subr.mxu0 %v9161_v21  ;;  %v9218_v21 = vld [vmem:[#allocation2 + $0x100] sm:$0xff] }
0x1e8e   : > { %6308 = vmatpush1.msra.mxu0 %v9162_v15 }
0x1e8f   : > { %6309 = vmatprep.subr.mxu0 %v9163_v55 }
0x1e90   : > { %6310 = vmatpush1.msra.mxu0 %v9164_v34 }
0x1e91   : > { %6311 = vmatprep.subr.mxu0 %v9165_v56 }
0x1e92   : > { %6312 = vmatpush1.msra.mxu0 %v9166_v39 }
0x1e93   : > { %6313 = vmatprep.subr.mxu0 %v9167_v59 }
0x1e94   : > { %6314 = vmatpush1.msra.mxu0 %v9168_v61 }
0x1e95   : > { %6315 = vmatprep.subr.mxu0 %v9169_v63 }
0x1e96   : > { %6316 = vmatpush1.msra.mxu0 %v9170_v36 }
0x1e97   : > { %6317 = vmatprep.subr.mxu0 %v9171_v44 }
0x1e98   : > { %6318 = vmatpush1.msra.mxu0 %v9172_v0 }
0x1e99   : > { %6319 = vmatprep.subr.mxu0 %v9173_v50  ;;  %v9219_v50 = vld [vmem:[%s9965_s11] sm:$0xf] }
0x1e9a   : > { %6320 = vmatpush1.msra.mxu0 %v9174_v16  ;;  %v9220_v16 = vld [vmem:[#allocation2 + $0x2f8] sm:$0xff] }
0x1e9b   : > { %6321 = vmatprep.subr.mxu0 %v9175_v3  ;;  %v9221_v3 = vld [vmem:[#allocation2 + $0x2f0] sm:$0xff] }
0x1e9c   : > { %6322 = vmatpush1.msra.mxu0 %v9176_v5  ;;  %v9222_v5 = vld [vmem:[#allocation2 + $0x2e8] sm:$0xff] }
0x1e9d   : > { %6323 = vmatprep.subr.mxu0 %v9177_v7  ;;  %v9223_v7 = vld [vmem:[#allocation2 + $0x2e0] sm:$0xff] }
0x1e9e   : > { %6324 = vmatpush1.msra.mxu0 %v9178_v11  ;;  %v9224_v11 = vld [vmem:[#allocation2 + $0x2d8] sm:$0xff] }
0x1e9f   : > { %6325 = vmatprep.subr.mxu0 %v9179_v12  ;;  %v9225_v12 = vld [vmem:[#allocation2 + $0x2d0] sm:$0xff] }
0x1ea0   : > { %6326 = vmatpush1.msra.mxu0 %v9180_v13  ;;  %v9226_v13 = vld [vmem:[#allocation2 + $0x2c8] sm:$0xff] }
0x1ea1   : > { %6327 = vmatprep.subr.mxu0 %v9181_v14  ;;  %v9227_v14 = vld [vmem:[#allocation2 + $0x2c0] sm:$0xff] }
0x1ea2   : > { %6328 = vmatpush1.msra.mxu0 %v9182_v35  ;;  %v9228_v35 = vld [vmem:[#allocation2 + $0x2b8] sm:$0xff] }
0x1ea3   : > { %6329 = vmatprep.subr.mxu0 %v9183_v18  ;;  %v9229_v18 = vld [vmem:[#allocation2 + $0x2b0] sm:$0xff] }
0x1ea4   : > { %6330 = vmatpush1.msra.mxu0 %v9184_v57  ;;  %v9230_v57 = vld [vmem:[#allocation2 + $0x2a8] sm:$0xff] }
0x1ea5   : > { %6331 = vmatprep.subr.mxu0 %v9185_v41  ;;  %v9231_v41 = vld [vmem:[#allocation2 + $0x2a0] sm:$0xff] }
0x1ea6   : > { %6332 = vmatpush1.msra.mxu0 %v9186_v19  ;;  %v9232_v19 = vld [vmem:[#allocation2 + $0x298] sm:$0xff] }
0x1ea7   : > { %6333 = vmatprep.subr.mxu0 %v9187_v22  ;;  %v9233_v22 = vld [vmem:[#allocation2 + $0x290] sm:$0xff] }
0x1ea8   : > { %6334 = vmatpush2.msra.mxu0 %v9188_v2  ;;  %v9234_v2 = vld [vmem:[#allocation2 + $0x288] sm:$0xff] }
0x1ea9   : > { %6335 = vmatprep.subr.mxu0 %v9189_v29  ;;  %v9235_v29 = vld [vmem:[#allocation2 + $0x280] sm:$0xff] }
0x1eaa   : > { %6336 = vmatpush2.msra.mxu0 %v9190_v30  ;;  %v9236_v30 = vld [vmem:[#allocation2 + $0x278] sm:$0xff] }
0x1eab   : > { %6337 = vmatprep.subr.mxu0 %v9191_v51  ;;  %v9237_v51 = vld [vmem:[#allocation2 + $0x270] sm:$0xff] }
0x1eac   : > { %6338 = vmatpush2.msra.mxu0 %v9192_v47  ;;  %v9238_v47 = vld [vmem:[#allocation2 + $0x268] sm:$0xff] }
0x1ead   : > { %6339 = vmatprep.subr.mxu0 %v9193_v48  ;;  %v9239_v48 = vld [vmem:[#allocation2 + $0x260] sm:$0xff] }
0x1eae   : > { %6340 = vmatpush2.msra.mxu0 %v9194_v9  ;;  %v9240_v9 = vld [vmem:[#allocation2 + $0x258] sm:$0xff] }
0x1eaf   : > { %6341 = vmatprep.subr.mxu0 %v9195_v49  ;;  %v9241_v49 = vld [vmem:[#allocation2 + $0x250] sm:$0xff] }
0x1eb0   : > { %6342 = vmatpush2.msra.mxu0 %v9196_v32  ;;  %v9242_v32 = vld [vmem:[#allocation2 + $0x248] sm:$0xff] }
0x1eb1   : > { %6343 = vmatprep.subr.mxu0 %v9197_v10  ;;  %v9243_v10 = vld [vmem:[#allocation2 + $0x240] sm:$0xff] }
0x1eb2   : > { %6344 = vmatpush2.msra.mxu0 %v9198_v45  ;;  %v9244_v45 = vld [vmem:[#allocation2 + $0x238] sm:$0xff] }
0x1eb3   : > { %6345 = vmatprep.subr.mxu0 %v9199_v40  ;;  %v9245_v40 = vld [vmem:[#allocation2 + $0x230] sm:$0xff] }
0x1eb4   : > { %6346 = vmatpush2.msra.mxu0 %v9200_v23  ;;  %v9246_v23 = vld [vmem:[#allocation2 + $0x228] sm:$0xff] }
0x1eb5   : > { %6347 = vmatprep.subr.mxu0 %v9201_v26  ;;  %v9247_v26 = vld [vmem:[#allocation2 + $0x220] sm:$0xff] }
0x1eb6   : > { %6348 = vmatpush2.msra.mxu0 %v9202_v60  ;;  %v9248_v60 = vld [vmem:[#allocation2 + $0x218] sm:$0xff] }
0x1eb7   : > { %6349 = vmatprep.subr.mxu0 %v9203_v20  ;;  %v9249_v20 = vld [vmem:[#allocation2 + $0x210] sm:$0xff] }
0x1eb8   : > { %6350 = vmatpush2.msra.mxu0 %v9204_v62  ;;  %v9250_v62 = vld [vmem:[#allocation2 + $0x208] sm:$0xff] }
0x1eb9   : > { %6351 = vmatprep.subr.mxu0 %v9205_v1  ;;  %v9251_v1 = vld [vmem:[#allocation2 + $0x200] sm:$0xff] }
0x1eba   : > { %6352 = vmatpush2.msra.mxu0 %v9206_v25  ;;  %v9252_v25 = vld [vmem:[#allocation2 + $0x3f8] sm:$0xff] }
0x1ebb   : > { %6353 = vmatprep.subr.mxu0 %v9207_v31  ;;  %v9253_v31 = vld [vmem:[#allocation2 + $0x3f0] sm:$0xff] }
0x1ebc   : > { %6354 = vmatpush2.msra.mxu0 %v9208_v24  ;;  %v9254_v24 = vld [vmem:[#allocation2 + $0x3e8] sm:$0xff] }
0x1ebd   : > { %6355 = vmatprep.subr.mxu0 %v9209_v42  ;;  %v9255_v42 = vld [vmem:[#allocation2 + $0x3e0] sm:$0xff] }
0x1ebe   : > { %6356 = vmatpush2.msra.mxu0 %v9210_v17  ;;  %v9256_v17 = vld [vmem:[#allocation2 + $0x3d8] sm:$0xff] }
0x1ebf   : > { %6357 = vmatprep.subr.mxu0 %v9211_v6  ;;  %v9257_v6 = vld [vmem:[#allocation2 + $0x3d0] sm:$0xff] }
0x1ec0   : > { %6358 = vmatpush2.msra.mxu0 %v9212_v52  ;;  %v9258_v52 = vld [vmem:[#allocation2 + $0x3c8] sm:$0xff] }
0x1ec1   : > { %6359 = vmatprep.subr.mxu0 %v9213_v54  ;;  %v9259_v54 = vld [vmem:[#allocation2 + $0x3c0] sm:$0xff] }
0x1ec2   : > { %6360 = vmatpush2.msra.mxu0 %v9214_v37  ;;  %v9260_v37 = vld [vmem:[#allocation2 + $0x3b8] sm:$0xff] }
0x1ec3   : > { %6361 = vmatprep.subr.mxu0 %v9215_v38  ;;  %v9261_v38 = vld [vmem:[#allocation2 + $0x3b0] sm:$0xff] }
0x1ec4   : > { %6362 = vmatpush2.msra.mxu0 %v9216_v33  ;;  %v9262_v33 = vld [vmem:[#allocation2 + $0x3a8] sm:$0xff] }
0x1ec5   : > { %6363 = vmatprep.subr.mxu0 %v9217_v46  ;;  %v9263_v46 = vld [vmem:[#allocation2 + $0x3a0] sm:$0xff] }
0x1ec6   : > { %6364 = vmatpush2.msra.mxu0 %v9218_v21  ;;  %v9264_v21 = vld [vmem:[#allocation2 + $0x398] sm:$0xff] }
0x1ec7   : > { %6366 = vmatmul.mubr.f32.vlgmr.msra.gmra.mxu0 %v10410_v8 }
0x1ec8   : > { %6592 = vmatprep.mubr.f32.mxu0 %v9843_v4 }
0x1f47   : > { %v6274_v15 = vpop.f32.mrf.mxu0 }
0x1f48   : > { %v10415_v55 = vadd.f32 %v6274_v15, %v10396_v27  ;;  %v9265_v15 = vld [vmem:[#allocation2 + $0x390] sm:$0xff] }
0x1f49   : > { %v6276_v34 = vpop.f32.mrf.mxu0 }
0x1f4a   : > { %v10418_v56 = vadd.f32 %v6276_v34, %v10399_v43  ;;  %v6281_v39 = vsel %vm519_vm0, %v10415_v55, 0.0  ;;  %v6287_v59 = vmul.f32 %v10415_v55, %v10415_v55  ;;  %v9266_v34 = vld [vmem:[#allocation2 + $0x388] sm:$0xff] }
0x1f4c   : > { %v6282_v58 = vsel %vm519_vm0, %v10418_v56, 0.0  ;;  %v6288_v61 = vmul.f32 %v10418_v56, %v10418_v56  ;;  %v6289_v36 = vsel %vm519_vm0, %v6287_v59, 0.0  ;;  %v9269_v59 = vld [vmem:[#allocation2 + $0x370] sm:$0xff] }
0x1f4d   : > { %v6283_v63 = vadd.f32 %v6282_v58, %v6281_v39  ;;  %v9267_v39 = vld [vmem:[#allocation2 + $0x380] sm:$0xff]  ;;  %v9268_v58 = vld [vmem:[#allocation2 + $0x378] sm:$0xff] }
0x1f4e   : > { %v6290_v27 = vsel %vm519_vm0, %v6288_v61, 0.0  ;;  %v9270_v61 = vld [vmem:[#allocation2 + $0x368] sm:$0xff] }
0x1f4f   : > { %6284 = vadd.xlane.f32.xlu0 %v6283_v63  ;;  %v6291_v43 = vadd.f32 %v6290_v27, %v6289_v36  ;;  %v9271_v63 = vld [vmem:[#allocation2 + $0x360] sm:$0xff]  ;;  %v9272_v27 = vld [vmem:[#allocation2 + $0x358] sm:$0xff]  ;;  %v9273_v36 = vld [vmem:[#allocation2 + $0x350] sm:$0xff] }
0x1f53   : > { %6292 = vadd.xlane.f32.xlu0 %v6291_v43  ;;  %v9274_v43 = vld [vmem:[#allocation2 + $0x348] sm:$0xff] }
0x1f87   : > { %v6367_v44 = vpop.f32.mrf.mxu0 }
0x1f89   : > { %v6369_v0 = vpop.f32.mrf.mxu0 }
0x1f8a   : > { %7906 = vmatprep.subr.msk.mxu1 %vm519_vm0, %v6369_v0  ;;  %v9276_v0 = vld [vmem:[#allocation2 + $0x338] sm:$0xff] }
0x1f8b   : > { %7907 = vmatpush1.msk.msra.mxu1 %vm519_vm0, %v6367_v44  ;;  %v9275_v44 = vld [vmem:[#allocation2 + $0x340] sm:$0xff] }
0x1f8c   : > { %7908 = vmatmul.mubr.msk.f32.vlgmr.msra.gmra.mxu1 %vm515_vm1, %v9219_v50  ;;  %6451 = vmatprep.subr.mxu1 %v9220_v16  ;;  %v9277_v50 = vld [vmem:[#allocation2 + $0x330] sm:$0xff]  ;;  %v9278_v16 = vld [vmem:[#allocation2 + $0x328] sm:$0xff] }
0x1f8d   : > { %6452 = vmatpush1.msra.mxu1 %v9221_v3  ;;  %6515 = vmatprep.mubr.f32.mxu1 %v10405_v53  ;;  %v9279_v3 = vld [vmem:[#allocation2 + $0x320] sm:$0xff] }
0x1f8e   : > { %6453 = vmatprep.subr.mxu1 %v9222_v5  ;;  %v9280_v5 = vld [vmem:[#allocation2 + $0x318] sm:$0xff] }
0x1f8f   : > { %6454 = vmatpush1.msra.mxu1 %v9223_v7  ;;  %v9281_v7 = vld [vmem:[#allocation2 + $0x310] sm:$0xff] }
0x1f90   : > { %6455 = vmatprep.subr.mxu1 %v9224_v11  ;;  %v9282_v11 = vld [vmem:[#allocation2 + $0x308] sm:$0xff] }
0x1f91   : > { %6456 = vmatpush1.msra.mxu1 %v9225_v12  ;;  %v9283_v12 = vld [vmem:[#allocation2 + $0x300] sm:$0xff] }
0x1f92   : > { %6457 = vmatprep.subr.mxu1 %v9226_v13 }
0x1f93   : > { %6458 = vmatpush1.msra.mxu1 %v9227_v14 }
0x1f94   : > { %6459 = vmatprep.subr.mxu1 %v9228_v35 }
0x1f95   : > { %6460 = vmatpush1.msra.mxu1 %v9229_v18 }
0x1f96   : > { %6461 = vmatprep.subr.mxu1 %v9230_v57  ;;  %v9284_v57 = vld [vmem:[%s9965_s11 + $0x4] sm:$0xf] }
0x1f97   : > { %6462 = vmatpush1.msra.mxu1 %v9231_v41  ;;  %v9285_v41 = vld [vmem:[#allocation2 + $0x4f8] sm:$0xff] }
0x1f98   : > { %6463 = vmatprep.subr.mxu1 %v9232_v19  ;;  %v9286_v19 = vld [vmem:[#allocation2 + $0x4f0] sm:$0xff] }
0x1f99   : > { %6464 = vmatpush1.msra.mxu1 %v9233_v22  ;;  %v9287_v22 = vld [vmem:[#allocation2 + $0x4e8] sm:$0xff] }
0x1f9a   : > { %6465 = vmatprep.subr.mxu1 %v9234_v2  ;;  %v9288_v2 = vld [vmem:[#allocation2 + $0x4e0] sm:$0xff] }
0x1f9b   : > { %6466 = vmatpush1.msra.mxu1 %v9235_v29  ;;  %v9289_v29 = vld [vmem:[#allocation2 + $0x4d8] sm:$0xff] }
0x1f9c   : > { %6467 = vmatprep.subr.mxu1 %v9236_v30  ;;  %v9290_v30 = vld [vmem:[#allocation2 + $0x4d0] sm:$0xff] }
0x1f9d   : > { %6468 = vmatpush1.msra.mxu1 %v9237_v51  ;;  %v9291_v51 = vld [vmem:[#allocation2 + $0x4c8] sm:$0xff] }
0x1f9e   : > { %6469 = vmatprep.subr.mxu1 %v9238_v47  ;;  %v9292_v47 = vld [vmem:[#allocation2 + $0x4c0] sm:$0xff] }
0x1f9f   : > { %6470 = vmatpush1.msra.mxu1 %v9239_v48  ;;  %v9293_v48 = vld [vmem:[#allocation2 + $0x4b8] sm:$0xff] }
0x1fa0   : > { %6471 = vmatprep.subr.mxu1 %v9240_v9  ;;  %v9294_v9 = vld [vmem:[#allocation2 + $0x4b0] sm:$0xff] }
0x1fa1   : > { %6472 = vmatpush1.msra.mxu1 %v9241_v49  ;;  %v9295_v49 = vld [vmem:[#allocation2 + $0x4a8] sm:$0xff] }
0x1fa2   : > { %6473 = vmatprep.subr.mxu1 %v9242_v32  ;;  %v9296_v32 = vld [vmem:[#allocation2 + $0x4a0] sm:$0xff] }
0x1fa3   : > { %6474 = vmatpush1.msra.mxu1 %v9243_v10  ;;  %v9297_v10 = vld [vmem:[#allocation2 + $0x498] sm:$0xff] }
0x1fa4   : > { %6475 = vmatprep.subr.mxu1 %v9244_v45  ;;  %v9298_v45 = vld [vmem:[#allocation2 + $0x490] sm:$0xff] }
0x1fa5   : > { %6476 = vmatpush1.msra.mxu1 %v9245_v40  ;;  %v9299_v40 = vld [vmem:[#allocation2 + $0x488] sm:$0xff] }
0x1fa6   : > { %6477 = vmatprep.subr.mxu1 %v9246_v23  ;;  %v9300_v23 = vld [vmem:[#allocation2 + $0x480] sm:$0xff] }
0x1fa7   : > { %6478 = vmatpush1.msra.mxu1 %v9247_v26  ;;  %v9301_v26 = vld [vmem:[#allocation2 + $0x478] sm:$0xff] }
0x1fa8   : > { %6479 = vmatprep.subr.mxu1 %v9248_v60  ;;  %v9302_v60 = vld [vmem:[#allocation2 + $0x470] sm:$0xff] }
0x1fa9   : > { %6480 = vmatpush1.msra.mxu1 %v9249_v20  ;;  %v9303_v20 = vld [vmem:[#allocation2 + $0x468] sm:$0xff] }
0x1faa   : > { %6481 = vmatprep.subr.mxu1 %v9250_v62  ;;  %v9304_v62 = vld [vmem:[#allocation2 + $0x460] sm:$0xff] }
0x1fab   : > { %6482 = vmatpush1.msra.mxu1 %v9251_v1  ;;  %v9305_v1 = vld [vmem:[#allocation2 + $0x458] sm:$0xff] }
0x1fac   : > { %6483 = vmatprep.subr.mxu1 %v9252_v25  ;;  %v9306_v25 = vld [vmem:[#allocation2 + $0x450] sm:$0xff] }
0x1fad   : > { %6484 = vmatpush2.msra.mxu1 %v9253_v31  ;;  %v9307_v31 = vld [vmem:[#allocation2 + $0x448] sm:$0xff] }
0x1fae   : > { %6485 = vmatprep.subr.mxu1 %v9254_v24  ;;  %v9308_v24 = vld [vmem:[#allocation2 + $0x440] sm:$0xff] }
0x1faf   : > { %6486 = vmatpush2.msra.mxu1 %v9255_v42  ;;  %v9309_v42 = vld [vmem:[#allocation2 + $0x438] sm:$0xff] }
0x1fb0   : > { %6487 = vmatprep.subr.mxu1 %v9256_v17  ;;  %v9310_v17 = vld [vmem:[#allocation2 + $0x430] sm:$0xff] }
0x1fb1   : > { %6488 = vmatpush2.msra.mxu1 %v9257_v6  ;;  %v9311_v6 = vld [vmem:[#allocation2 + $0x428] sm:$0xff] }
0x1fb2   : > { %6489 = vmatprep.subr.mxu1 %v9258_v52  ;;  %v9312_v52 = vld [vmem:[#allocation2 + $0x420] sm:$0xff] }
0x1fb3   : > { %6490 = vmatpush2.msra.mxu1 %v9259_v54  ;;  %v9313_v54 = vld [vmem:[#allocation2 + $0x418] sm:$0xff] }
0x1fb4   : > { %6491 = vmatprep.subr.mxu1 %v9260_v37  ;;  %v9314_v37 = vld [vmem:[#allocation2 + $0x410] sm:$0xff] }
0x1fb5   : > { %6492 = vmatpush2.msra.mxu1 %v9261_v38  ;;  %v9315_v38 = vld [vmem:[#allocation2 + $0x408] sm:$0xff] }
0x1fb6   : > { %6493 = vmatprep.subr.mxu1 %v9262_v33  ;;  %v9316_v33 = vld [vmem:[#allocation2 + $0x400] sm:$0xff] }
0x1fb7   : > { %6494 = vmatpush2.msra.mxu1 %v9263_v46  ;;  %v9317_v46 = vld [vmem:[#allocation2 + $0x5f8] sm:$0xff] }
0x1fb8   : > { %6495 = vmatprep.subr.mxu1 %v9264_v21  ;;  %v9318_v21 = vld [vmem:[#allocation2 + $0x5f0] sm:$0xff] }
0x1fb9   : > { %6496 = vmatpush2.msra.mxu1 %v9265_v15  ;;  %v9319_v15 = vld [vmem:[#allocation2 + $0x5e8] sm:$0xff] }
0x1fba   : > { %6497 = vmatprep.subr.mxu1 %v9266_v34  ;;  %v9320_v34 = vld [vmem:[#allocation2 + $0x5e0] sm:$0xff] }
0x1fbb   : > { %6498 = vmatpush2.msra.mxu1 %v9267_v39  ;;  %v9321_v39 = vld [vmem:[#allocation2 + $0x5d8] sm:$0xff] }
0x1fbc   : > { %6499 = vmatprep.subr.mxu1 %v9268_v58  ;;  %v9322_v58 = vld [vmem:[#allocation2 + $0x5d0] sm:$0xff] }
0x1fbd   : > { %6500 = vmatpush2.msra.mxu1 %v9269_v59  ;;  %v9323_v59 = vld [vmem:[#allocation2 + $0x5c8] sm:$0xff] }
0x1fbe   : > { %6501 = vmatprep.subr.mxu1 %v9270_v61  ;;  %v9324_v61 = vld [vmem:[#allocation2 + $0x5c0] sm:$0xff] }
0x1fbf   : > { %6502 = vmatpush2.msra.mxu1 %v9271_v63  ;;  %v9325_v63 = vld [vmem:[#allocation2 + $0x5b8] sm:$0xff] }
0x1fc0   : > { %6503 = vmatprep.subr.mxu1 %v9272_v27  ;;  %v9326_v27 = vld [vmem:[#allocation2 + $0x5b0] sm:$0xff] }
0x1fc1   : > { %6504 = vmatpush2.msra.mxu1 %v9273_v36  ;;  %v9327_v36 = vld [vmem:[#allocation2 + $0x5a8] sm:$0xff] }
0x1fc2   : > { %6505 = vmatprep.subr.mxu1 %v9274_v43  ;;  %v9328_v43 = vld [vmem:[#allocation2 + $0x5a0] sm:$0xff] }
0x1fc3   : > { %6506 = vmatpush2.msra.mxu1 %v9275_v44  ;;  %v9329_v44 = vld [vmem:[#allocation2 + $0x598] sm:$0xff] }
0x1fc4   : > { %6507 = vmatprep.subr.mxu1 %v9276_v0  ;;  %v9330_v0 = vld [vmem:[#allocation2 + $0x590] sm:$0xff] }
0x1fc5   : > { %6508 = vmatpush2.msra.mxu1 %v9277_v50  ;;  %v9331_v50 = vld [vmem:[#allocation2 + $0x588] sm:$0xff] }
0x1fc6   : > { %6509 = vmatprep.subr.mxu1 %v9278_v16  ;;  %v9332_v16 = vld [vmem:[#allocation2 + $0x580] sm:$0xff] }
0x1fc7   : > { %6510 = vmatpush2.msra.mxu1 %v9279_v3  ;;  %v9333_v3 = vld [vmem:[#allocation2 + $0x578] sm:$0xff] }
0x1fc8   : > { %6511 = vmatprep.subr.mxu1 %v9280_v5  ;;  %v9334_v5 = vld [vmem:[#allocation2 + $0x570] sm:$0xff] }
0x1fc9   : > { %6512 = vmatpush2.msra.mxu1 %v9281_v7  ;;  %v9335_v7 = vld [vmem:[#allocation2 + $0x568] sm:$0xff] }
0x1fca   : > { %6513 = vmatprep.subr.mxu1 %v9282_v11  ;;  %v9336_v11 = vld [vmem:[#allocation2 + $0x560] sm:$0xff] }
0x1fcb   : > { %6514 = vmatpush2.msra.mxu1 %v9283_v12  ;;  %v9337_v12 = vld [vmem:[#allocation2 + $0x558] sm:$0xff] }
0x1fcc   : > { %6516 = vmatmul.mubr.f32.vlgmr.msra.gmra.mxu1 %v10410_v8 }
0x1fcd   : > { %6742 = vmatprep.mubr.f32.mxu1 %v9843_v4 }
0x204c   : > { %v10437_v13 = vpop.f32.mrf.mxu1 }
0x204e   : > { %v10439_v14 = vpop.f32.mrf.mxu1 }
0x208c   : > { %v6517_v35 = vpop.f32.mrf.mxu1 }
0x208e   : > { %v6519_v18 = vpop.f32.mrf.mxu1 }
0x208f   : > { %7909 = vmatprep.subr.msk.mxu0 %vm519_vm0, %v6519_v18  ;;  %v9339_v18 = vld [vmem:[#allocation2 + $0x548] sm:$0xff] }
0x2090   : > { %7910 = vmatpush1.msk.msra.mxu0 %vm519_vm0, %v6517_v35  ;;  %v9338_v35 = vld [vmem:[#allocation2 + $0x550] sm:$0xff] }
0x2091   : > { %7911 = vmatmul.mubr.msk.f32.vlgmr.msra.gmra.mxu0 %vm515_vm1, %v9284_v57  ;;  %6601 = vmatprep.subr.mxu0 %v9285_v41  ;;  %v9340_v57 = vld [vmem:[#allocation2 + $0x540] sm:$0xff]  ;;  %v9341_v41 = vld [vmem:[#allocation2 + $0x538] sm:$0xff] }
0x2092   : > { %6602 = vmatpush1.msra.mxu0 %v9286_v19  ;;  %6665 = vmatprep.mubr.f32.mxu0 %v10405_v53  ;;  %v9342_v19 = vld [vmem:[#allocation2 + $0x530] sm:$0xff] }
0x2093   : > { %6603 = vmatprep.subr.mxu0 %v9287_v22  ;;  %v9343_v22 = vld [vmem:[#allocation2 + $0x528] sm:$0xff] }
0x2094   : > { %6604 = vmatpush1.msra.mxu0 %v9288_v2  ;;  %v9344_v2 = vld [vmem:[#allocation2 + $0x520] sm:$0xff] }
0x2095   : > { %6605 = vmatprep.subr.mxu0 %v9289_v29  ;;  %v9345_v29 = vld [vmem:[#allocation2 + $0x518] sm:$0xff] }
0x2096   : > { %6606 = vmatpush1.msra.mxu0 %v9290_v30  ;;  %v9346_v30 = vld [vmem:[#allocation2 + $0x510] sm:$0xff] }
0x2097   : > { %6607 = vmatprep.subr.mxu0 %v9291_v51  ;;  %v9347_v51 = vld [vmem:[#allocation2 + $0x508] sm:$0xff] }
0x2098   : > { %6608 = vmatpush1.msra.mxu0 %v9292_v47  ;;  %v9348_v47 = vld [vmem:[#allocation2 + $0x500] sm:$0xff] }
0x2099   : > { %6609 = vmatprep.subr.mxu0 %v9293_v48  ;;  %v6449_v48 = vadd.f32 %v10437_v13, %v10313_v28  ;;  %v9351_v13 = vld [vmem:[#allocation2 + $0x6f0] sm:$0xff] }
0x209a   : > { %6610 = vmatpush1.msra.mxu0 %v9294_v9 }
0x209b   : > { %6611 = vmatprep.subr.mxu0 %v9295_v49  ;;  %v6450_v49 = vadd.f32 %v10439_v14, %v10313_v28  ;;  %v9352_v28 = vld [vmem:[#allocation2 + $0x6e8] sm:$0xff]  ;;  %v9353_v14 = vld [vmem:[#allocation2 + $0x6e0] sm:$0xff] }
0x209c   : > { %6612 = vmatpush1.msra.mxu0 %v9296_v32 }
0x209d   : > { %6613 = vmatprep.subr.mxu0 %v9297_v10 }
0x209e   : > { %6614 = vmatpush1.msra.mxu0 %v9298_v45 }
0x209f   : > { %6615 = vmatprep.subr.mxu0 %v9299_v40 }
0x20a0   : > { %6616 = vmatpush1.msra.mxu0 %v9300_v23 }
0x20a1   : > { %6617 = vmatprep.subr.mxu0 %v9301_v26  ;;  %v9349_v26 = vld [vmem:[%s9965_s11 + $0x8] sm:$0xf] }
0x20a2   : > { %6618 = vmatpush1.msra.mxu0 %v9302_v60  ;;  %v9350_v60 = vld [vmem:[#allocation2 + $0x6f8] sm:$0xff] }
0x20a3   : > { %6619 = vmatprep.subr.mxu0 %v9303_v20  ;;  %v9354_v20 = vld [vmem:[#allocation2 + $0x6d8] sm:$0xff] }
0x20a4   : > { %6620 = vmatpush1.msra.mxu0 %v9304_v62  ;;  %v9355_v62 = vld [vmem:[#allocation2 + $0x6d0] sm:$0xff] }
0x20a5   : > { %6621 = vmatprep.subr.mxu0 %v9305_v1  ;;  %v9356_v1 = vld [vmem:[#allocation2 + $0x6c8] sm:$0xff] }
0x20a6   : > { %6622 = vmatpush1.msra.mxu0 %v9306_v25  ;;  %v9357_v25 = vld [vmem:[#allocation2 + $0x6c0] sm:$0xff] }
0x20a7   : > { %6623 = vmatprep.subr.mxu0 %v9307_v31  ;;  %v9358_v31 = vld [vmem:[#allocation2 + $0x6b8] sm:$0xff] }
0x20a8   : > { %6624 = vmatpush1.msra.mxu0 %v9308_v24  ;;  %v9359_v24 = vld [vmem:[#allocation2 + $0x6b0] sm:$0xff] }
0x20a9   : > { %6625 = vmatprep.subr.mxu0 %v9309_v42  ;;  %v9360_v42 = vld [vmem:[#allocation2 + $0x6a8] sm:$0xff] }
0x20aa   : > { %6626 = vmatpush1.msra.mxu0 %v9310_v17  ;;  %v9361_v17 = vld [vmem:[#allocation2 + $0x6a0] sm:$0xff] }
0x20ab   : > { %6627 = vmatprep.subr.mxu0 %v9311_v6  ;;  %v9362_v6 = vld [vmem:[#allocation2 + $0x698] sm:$0xff] }
0x20ac   : > { %6628 = vmatpush1.msra.mxu0 %v9312_v52  ;;  %v9363_v52 = vld [vmem:[#allocation2 + $0x690] sm:$0xff] }
0x20ad   : > { %6629 = vmatprep.subr.mxu0 %v9313_v54  ;;  %v9364_v54 = vld [vmem:[#allocation2 + $0x688] sm:$0xff] }
0x20ae   : > { %6630 = vmatpush1.msra.mxu0 %v9314_v37  ;;  %v9365_v37 = vld [vmem:[#allocation2 + $0x680] sm:$0xff] }
0x20af   : > { %6631 = vmatprep.subr.mxu0 %v9315_v38  ;;  %v9366_v38 = vld [vmem:[#allocation2 + $0x678] sm:$0xff] }
0x20b0   : > { %6632 = vmatpush1.msra.mxu0 %v9316_v33  ;;  %v9367_v33 = vld [vmem:[#allocation2 + $0x670] sm:$0xff] }
0x20b1   : > { %6633 = vmatprep.subr.mxu0 %v9317_v46  ;;  %v9368_v46 = vld [vmem:[#allocation2 + $0x668] sm:$0xff] }
0x20b2   : > { %6634 = vmatpush2.msra.mxu0 %v9318_v21  ;;  %v9369_v21 = vld [vmem:[#allocation2 + $0x660] sm:$0xff] }
0x20b3   : > { %6635 = vmatprep.subr.mxu0 %v9319_v15  ;;  %v9370_v15 = vld [vmem:[#allocation2 + $0x658] sm:$0xff] }
0x20b4   : > { %6636 = vmatpush2.msra.mxu0 %v9320_v34  ;;  %v9371_v34 = vld [vmem:[#allocation2 + $0x650] sm:$0xff] }
0x20b5   : > { %6637 = vmatprep.subr.mxu0 %v9321_v39  ;;  %v9372_v39 = vld [vmem:[#allocation2 + $0x648] sm:$0xff] }
0x20b6   : > { %6638 = vmatpush2.msra.mxu0 %v9322_v58  ;;  %v9373_v58 = vld [vmem:[#allocation2 + $0x640] sm:$0xff] }
0x20b7   : > { %6639 = vmatprep.subr.mxu0 %v9323_v59  ;;  %v9374_v59 = vld [vmem:[#allocation2 + $0x638] sm:$0xff] }
0x20b8   : > { %6640 = vmatpush2.msra.mxu0 %v9324_v61  ;;  %v9375_v61 = vld [vmem:[#allocation2 + $0x630] sm:$0xff] }
0x20b9   : > { %6641 = vmatprep.subr.mxu0 %v9325_v63  ;;  %v9376_v63 = vld [vmem:[#allocation2 + $0x628] sm:$0xff] }
0x20ba   : > { %6642 = vmatpush2.msra.mxu0 %v9326_v27  ;;  %v9377_v27 = vld [vmem:[#allocation2 + $0x620] sm:$0xff] }
0x20bb   : > { %6643 = vmatprep.subr.mxu0 %v9327_v36  ;;  %v9378_v36 = vld [vmem:[#allocation2 + $0x618] sm:$0xff] }
0x20bc   : > { %6644 = vmatpush2.msra.mxu0 %v9328_v43  ;;  %v9379_v43 = vld [vmem:[#allocation2 + $0x610] sm:$0xff] }
0x20bd   : > { %6645 = vmatprep.subr.mxu0 %v9329_v44  ;;  %v9380_v44 = vld [vmem:[#allocation2 + $0x608] sm:$0xff] }
0x20be   : > { %6646 = vmatpush2.msra.mxu0 %v9330_v0  ;;  %v9381_v0 = vld [vmem:[#allocation2 + $0x600] sm:$0xff] }
0x20bf   : > { %6647 = vmatprep.subr.mxu0 %v9331_v50  ;;  %v9382_v50 = vld [vmem:[#allocation2 + $0x7f8] sm:$0xff] }
0x20c0   : > { %6648 = vmatpush2.msra.mxu0 %v9332_v16  ;;  %v9383_v16 = vld [vmem:[#allocation2 + $0x7f0] sm:$0xff] }
0x20c1   : > { %6649 = vmatprep.subr.mxu0 %v9333_v3  ;;  %v9384_v3 = vld [vmem:[#allocation2 + $0x7e8] sm:$0xff] }
0x20c2   : > { %6650 = vmatpush2.msra.mxu0 %v9334_v5  ;;  %v9385_v5 = vld [vmem:[#allocation2 + $0x7e0] sm:$0xff] }
0x20c3   : > { %6651 = vmatprep.subr.mxu0 %v9335_v7  ;;  %v9386_v7 = vld [vmem:[#allocation2 + $0x7d8] sm:$0xff] }
0x20c4   : > { %6652 = vmatpush2.msra.mxu0 %v9336_v11  ;;  %v9387_v11 = vld [vmem:[#allocation2 + $0x7d0] sm:$0xff] }
0x20c5   : > { %6653 = vmatprep.subr.mxu0 %v9337_v12  ;;  %v9388_v12 = vld [vmem:[#allocation2 + $0x7c8] sm:$0xff] }
0x20c6   : > { %6654 = vmatpush2.msra.mxu0 %v9338_v35  ;;  %v9389_v35 = vld [vmem:[#allocation2 + $0x7c0] sm:$0xff] }
0x20c7   : > { %6655 = vmatprep.subr.mxu0 %v9339_v18  ;;  %v9390_v18 = vld [vmem:[#allocation2 + $0x7b8] sm:$0xff] }
0x20c8   : > { %6656 = vmatpush2.msra.mxu0 %v9340_v57  ;;  %v9391_v57 = vld [vmem:[#allocation2 + $0x7b0] sm:$0xff] }
0x20c9   : > { %6657 = vmatprep.subr.mxu0 %v9341_v41  ;;  %v9392_v41 = vld [vmem:[#allocation2 + $0x7a8] sm:$0xff] }
0x20ca   : > { %6658 = vmatpush2.msra.mxu0 %v9342_v19  ;;  %v9393_v19 = vld [vmem:[#allocation2 + $0x7a0] sm:$0xff] }
0x20cb   : > { %6659 = vmatprep.subr.mxu0 %v9343_v22  ;;  %v9394_v22 = vld [vmem:[#allocation2 + $0x798] sm:$0xff] }
0x20cc   : > { %6660 = vmatpush2.msra.mxu0 %v9344_v2  ;;  %v9395_v2 = vld [vmem:[#allocation2 + $0x790] sm:$0xff] }
0x20cd   : > { %6661 = vmatprep.subr.mxu0 %v9345_v29  ;;  %v9396_v29 = vld [vmem:[#allocation2 + $0x788] sm:$0xff] }
0x20ce   : > { %6662 = vmatpush2.msra.mxu0 %v9346_v30  ;;  %v9397_v30 = vld [vmem:[#allocation2 + $0x780] sm:$0xff] }
0x20cf   : > { %6663 = vmatprep.subr.mxu0 %v9347_v51  ;;  %v9398_v51 = vld [vmem:[#allocation2 + $0x778] sm:$0xff] }
0x20d0   : > { %6664 = vmatpush2.msra.mxu0 %v9348_v47  ;;  %v9399_v47 = vld [vmem:[#allocation2 + $0x770] sm:$0xff] }
0x20d1   : > { %6666 = vmatmul.mubr.f32.vlgmr.msra.gmra.mxu0 %v10410_v8 }
0x20d2   : > { %6892 = vmatprep.mubr.f32.mxu0 %v9843_v4 }
0x2151   : > { %v6594_v9 = vpop.f32.mrf.mxu0 }
0x2152   : > { %v10452_v32 = vadd.f32 %v6594_v9, %v6449_v48  ;;  %v9400_v48 = vld [vmem:[#allocation2 + $0x768] sm:$0xff]  ;;  %v9401_v9 = vld [vmem:[#allocation2 + $0x760] sm:$0xff] }
0x2153   : > { %v6596_v10 = vpop.f32.mrf.mxu0 }
0x2154   : > { %v10454_v45 = vadd.f32 %v6596_v10, %v6450_v49  ;;  %v9402_v49 = vld [vmem:[#allocation2 + $0x758] sm:$0xff]  ;;  %v9403_v10 = vld [vmem:[#allocation2 + $0x750] sm:$0xff] }
0x2191   : > { %v6667_v40 = vpop.f32.mrf.mxu0 }
0x2193   : > { %v6669_v23 = vpop.f32.mrf.mxu0 }
0x2194   : > { %7912 = vmatprep.subr.msk.mxu1 %vm519_vm0, %v6669_v23  ;;  %v9405_v23 = vld [vmem:[#allocation2 + $0x740] sm:$0xff] }
0x2195   : > { %7913 = vmatpush1.msk.msra.mxu1 %vm519_vm0, %v6667_v40  ;;  %v9404_v40 = vld [vmem:[#allocation2 + $0x748] sm:$0xff] }
0x2196   : > { %7914 = vmatmul.mubr.msk.f32.vlgmr.msra.gmra.mxu1 %vm515_vm1, %v9349_v26  ;;  %6751 = vmatprep.subr.mxu1 %v9350_v60  ;;  %v9406_v26 = vld [vmem:[#allocation2 + $0x738] sm:$0xff]  ;;  %v9407_v60 = vld [vmem:[#allocation2 + $0x730] sm:$0xff] }
0x2197   : > { %6752 = vmatpush1.msra.mxu1 %v9351_v13  ;;  %6815 = vmatprep.mubr.f32.mxu1 %v10405_v53  ;;  %v9408_v13 = vld [vmem:[#allocation2 + $0x728] sm:$0xff] }
0x2198   : > { %6753 = vmatprep.subr.mxu1 %v9352_v28  ;;  %v9409_v28 = vld [vmem:[#allocation2 + $0x720] sm:$0xff] }
0x2199   : > { %6754 = vmatpush1.msra.mxu1 %v9353_v14  ;;  %v9410_v14 = vld [vmem:[#allocation2 + $0x718] sm:$0xff] }
0x219a   : > { %6755 = vmatprep.subr.mxu1 %v9354_v20  ;;  %v9411_v20 = vld [vmem:[#allocation2 + $0x710] sm:$0xff] }
0x219b   : > { %6756 = vmatpush1.msra.mxu1 %v9355_v62  ;;  %v9412_v62 = vld [vmem:[#allocation2 + $0x708] sm:$0xff] }
0x219c   : > { %6757 = vmatprep.subr.mxu1 %v9356_v1  ;;  %v9413_v1 = vld [vmem:[#allocation2 + $0x700] sm:$0xff] }
0x219d   : > { %6758 = vmatpush1.msra.mxu1 %v9357_v25 }
0x219e   : > { %6759 = vmatprep.subr.mxu1 %v9358_v31 }
0x219f   : > { %6760 = vmatpush1.msra.mxu1 %v9359_v24 }
0x21a0   : > { %6761 = vmatprep.subr.mxu1 %v9360_v42 }
0x21a1   : > { %6762 = vmatpush1.msra.mxu1 %v9361_v17 }
0x21a2   : > { %6763 = vmatprep.subr.mxu1 %v9362_v6 }
0x21a3   : > { %6764 = vmatpush1.msra.mxu1 %v9363_v52  ;;  %v9414_v52 = vld [vmem:[%s9965_s11 + $0xc] sm:$0xf] }
0x21a4   : > { %6765 = vmatprep.subr.mxu1 %v9364_v54  ;;  %v9415_v54 = vld [vmem:[#allocation2 + $0x8f8] sm:$0xff] }
0x21a5   : > { %6766 = vmatpush1.msra.mxu1 %v9365_v37  ;;  %v9416_v37 = vld [vmem:[#allocation2 + $0x8f0] sm:$0xff] }
0x21a6   : > { %6767 = vmatprep.subr.mxu1 %v9366_v38  ;;  %v9418_v38 = vld [vmem:[#allocation2 + $0x8e0] sm:$0xff] }
0x21a7   : > { %6768 = vmatpush1.msra.mxu1 %v9367_v33  ;;  %v9420_v33 = vld [vmem:[#allocation2 + $0x8d0] sm:$0xff] }
0x21a8   : > { %6769 = vmatprep.subr.mxu1 %v9368_v46  ;;  %v9421_v46 = vld [vmem:[#allocation2 + $0x8c8] sm:$0xff] }
0x21a9   : > { %6770 = vmatpush1.msra.mxu1 %v9369_v21  ;;  %v9422_v21 = vld [vmem:[#allocation2 + $0x8c0] sm:$0xff] }
0x21aa   : > { %6771 = vmatprep.subr.mxu1 %v9370_v15  ;;  %v9423_v15 = vld [vmem:[#allocation2 + $0x8b8] sm:$0xff] }
0x21ab   : > { %6772 = vmatpush1.msra.mxu1 %v9371_v34  ;;  %v9424_v34 = vld [vmem:[#allocation2 + $0x8b0] sm:$0xff] }
0x21ac   : > { %6773 = vmatprep.subr.mxu1 %v9372_v39  ;;  %v9425_v39 = vld [vmem:[#allocation2 + $0x8a8] sm:$0xff] }
0x21ad   : > { %6774 = vmatpush1.msra.mxu1 %v9373_v58  ;;  %v9426_v58 = vld [vmem:[#allocation2 + $0x8a0] sm:$0xff] }
0x21ae   : > { %6775 = vmatprep.subr.mxu1 %v9374_v59  ;;  %v9427_v59 = vld [vmem:[#allocation2 + $0x898] sm:$0xff] }
0x21af   : > { %6776 = vmatpush1.msra.mxu1 %v9375_v61  ;;  %v9428_v61 = vld [vmem:[#allocation2 + $0x890] sm:$0xff] }
0x21b0   : > { %6777 = vmatprep.subr.mxu1 %v9376_v63  ;;  %v9429_v63 = vld [vmem:[#allocation2 + $0x888] sm:$0xff] }
0x21b1   : > { %6778 = vmatpush1.msra.mxu1 %v9377_v27  ;;  %v9430_v27 = vld [vmem:[#allocation2 + $0x880] sm:$0xff] }
0x21b2   : > { %6779 = vmatprep.subr.mxu1 %v9378_v36  ;;  %v9431_v36 = vld [vmem:[#allocation2 + $0x878] sm:$0xff] }
0x21b3   : > { %6780 = vmatpush1.msra.mxu1 %v9379_v43  ;;  %v9432_v43 = vld [vmem:[#allocation2 + $0x870] sm:$0xff] }
0x21b4   : > { %6781 = vmatprep.subr.mxu1 %v9380_v44  ;;  %v9433_v44 = vld [vmem:[#allocation2 + $0x868] sm:$0xff] }
0x21b5   : > { %6782 = vmatpush1.msra.mxu1 %v9381_v0  ;;  %v9434_v0 = vld [vmem:[#allocation2 + $0x860] sm:$0xff] }
0x21b6   : > { %6783 = vmatprep.subr.mxu1 %v9382_v50  ;;  %v9435_v50 = vld [vmem:[#allocation2 + $0x858] sm:$0xff] }
0x21b7   : > { %6784 = vmatpush2.msra.mxu1 %v9383_v16  ;;  %v9436_v16 = vld [vmem:[#allocation2 + $0x850] sm:$0xff] }
0x21b8   : > { %6785 = vmatprep.subr.mxu1 %v9384_v3  ;;  %v9437_v3 = vld [vmem:[#allocation2 + $0x848] sm:$0xff] }
0x21b9   : > { %6786 = vmatpush2.msra.mxu1 %v9385_v5  ;;  %v9438_v5 = vld [vmem:[#allocation2 + $0x840] sm:$0xff] }
0x21ba   : > { %6787 = vmatprep.subr.mxu1 %v9386_v7  ;;  %v9439_v7 = vld [vmem:[#allocation2 + $0x838] sm:$0xff] }
0x21bb   : > { %6788 = vmatpush2.msra.mxu1 %v9387_v11  ;;  %v9440_v11 = vld [vmem:[#allocation2 + $0x830] sm:$0xff] }
0x21bc   : > { %6789 = vmatprep.subr.mxu1 %v9388_v12  ;;  %v9441_v12 = vld [vmem:[#allocation2 + $0x828] sm:$0xff] }
0x21bd   : > { %6790 = vmatpush2.msra.mxu1 %v9389_v35  ;;  %v9442_v35 = vld [vmem:[#allocation2 + $0x820] sm:$0xff] }
0x21be   : > { %6791 = vmatprep.subr.mxu1 %v9390_v18  ;;  %v9443_v18 = vld [vmem:[#allocation2 + $0x818] sm:$0xff] }
0x21bf   : > { %6792 = vmatpush2.msra.mxu1 %v9391_v57  ;;  %v9444_v57 = vld [vmem:[#allocation2 + $0x810] sm:$0xff] }
0x21c0   : > { %6793 = vmatprep.subr.mxu1 %v9392_v41  ;;  %v9445_v41 = vld [vmem:[#allocation2 + $0x808] sm:$0xff] }
0x21c1   : > { %6794 = vmatpush2.msra.mxu1 %v9393_v19  ;;  %v9446_v19 = vld [vmem:[#allocation2 + $0x800] sm:$0xff] }
0x21c2   : > { %6795 = vmatprep.subr.mxu1 %v9394_v22  ;;  %v9447_v22 = vld [vmem:[#allocation2 + $0x9f8] sm:$0xff] }
0x21c3   : > { %6796 = vmatpush2.msra.mxu1 %v9395_v2  ;;  %v9448_v2 = vld [vmem:[#allocation2 + $0x9f0] sm:$0xff] }
0x21c4   : > { %6797 = vmatprep.subr.mxu1 %v9396_v29  ;;  %v9449_v29 = vld [vmem:[#allocation2 + $0x9e8] sm:$0xff] }
0x21c5   : > { %6798 = vmatpush2.msra.mxu1 %v9397_v30  ;;  %v9450_v30 = vld [vmem:[#allocation2 + $0x9e0] sm:$0xff] }
0x21c6   : > { %6799 = vmatprep.subr.mxu1 %v9398_v51  ;;  %v9451_v51 = vld [vmem:[#allocation2 + $0x9d8] sm:$0xff] }
0x21c7   : > { %6800 = vmatpush2.msra.mxu1 %v9399_v47  ;;  %v9452_v47 = vld [vmem:[#allocation2 + $0x9d0] sm:$0xff] }
0x21c8   : > { %6801 = vmatprep.subr.mxu1 %v9400_v48  ;;  %v9453_v48 = vld [vmem:[#allocation2 + $0x9c8] sm:$0xff] }
0x21c9   : > { %6802 = vmatpush2.msra.mxu1 %v9401_v9  ;;  %v9454_v9 = vld [vmem:[#allocation2 + $0x9c0] sm:$0xff] }
0x21ca   : > { %6803 = vmatprep.subr.mxu1 %v9402_v49  ;;  %v9455_v49 = vld [vmem:[#allocation2 + $0x9b8] sm:$0xff] }
0x21cb   : > { %6804 = vmatpush2.msra.mxu1 %v9403_v10  ;;  %v9456_v10 = vld [vmem:[#allocation2 + $0x9b0] sm:$0xff] }
0x21cc   : > { %6805 = vmatprep.subr.mxu1 %v9404_v40  ;;  %v9457_v40 = vld [vmem:[#allocation2 + $0x9a8] sm:$0xff] }
0x21cd   : > { %6806 = vmatpush2.msra.mxu1 %v9405_v23  ;;  %v9458_v23 = vld [vmem:[#allocation2 + $0x9a0] sm:$0xff] }
0x21ce   : > { %6807 = vmatprep.subr.mxu1 %v9406_v26  ;;  %v9459_v26 = vld [vmem:[#allocation2 + $0x998] sm:$0xff] }
0x21cf   : > { %6808 = vmatpush2.msra.mxu1 %v9407_v60  ;;  %v9460_v60 = vld [vmem:[#allocation2 + $0x990] sm:$0xff] }
0x21d0   : > { %6809 = vmatprep.subr.mxu1 %v9408_v13  ;;  %v9461_v13 = vld [vmem:[#allocation2 + $0x988] sm:$0xff] }
0x21d1   : > { %6810 = vmatpush2.msra.mxu1 %v9409_v28  ;;  %v9462_v28 = vld [vmem:[#allocation2 + $0x980] sm:$0xff] }
0x21d2   : > { %6811 = vmatprep.subr.mxu1 %v9410_v14  ;;  %v9463_v14 = vld [vmem:[#allocation2 + $0x978] sm:$0xff] }
0x21d3   : > { %6812 = vmatpush2.msra.mxu1 %v9411_v20  ;;  %v9464_v20 = vld [vmem:[#allocation2 + $0x970] sm:$0xff] }
0x21d4   : > { %6813 = vmatprep.subr.mxu1 %v9412_v62  ;;  %v9465_v62 = vld [vmem:[#allocation2 + $0x968] sm:$0xff] }
0x21d5   : > { %6814 = vmatpush2.msra.mxu1 %v9413_v1  ;;  %v9466_v1 = vld [vmem:[#allocation2 + $0x960] sm:$0xff] }
0x21d6   : > { %6816 = vmatmul.mubr.f32.vlgmr.msra.gmra.mxu1 %v10410_v8 }
0x21d7   : > { %7042 = vmatprep.mubr.f32.mxu1 %v9843_v4 }
0x2256   : > { %v6744_v25 = vpop.f32.mrf.mxu1 }
0x2257   : > { %v10464_v31 = vadd.f32 %v6744_v25, %v10452_v32  ;;  %v9417_v32 = vld [vmem:[#allocation2 + $0x8e8] sm:$0xff]  ;;  %v9467_v25 = vld [vmem:[#allocation2 + $0x958] sm:$0xff] }
0x2258   : > { %v6746_v24 = vpop.f32.mrf.mxu1 }
0x2259   : > { %v10467_v42 = vadd.f32 %v6746_v24, %v10454_v45  ;;  %v9419_v45 = vld [vmem:[#allocation2 + $0x8d8] sm:$0xff]  ;;  %v9468_v24 = vld [vmem:[#allocation2 + $0x950] sm:$0xff] }
0x2296   : > { %v6817_v17 = vpop.f32.mrf.mxu1 }
0x2298   : > { %v6819_v6 = vpop.f32.mrf.mxu1 }
0x2299   : > { %7915 = vmatprep.subr.msk.mxu0 %vm519_vm0, %v6819_v6  ;;  %v9470_v6 = vld [vmem:[#allocation2 + $0x940] sm:$0xff] }
0x229a   : > { %7916 = vmatpush1.msk.msra.mxu0 %vm519_vm0, %v6817_v17  ;;  %v9469_v17 = vld [vmem:[#allocation2 + $0x948] sm:$0xff] }
0x229b   : > { %7917 = vmatmul.mubr.msk.f32.vlgmr.msra.gmra.mxu0 %vm515_vm1, %v9414_v52  ;;  %6901 = vmatprep.subr.mxu0 %v9415_v54  ;;  %v9471_v52 = vld [vmem:[#allocation2 + $0x938] sm:$0xff]  ;;  %v9472_v54 = vld [vmem:[#allocation2 + $0x930] sm:$0xff] }
0x229c   : > { %6902 = vmatpush1.msra.mxu0 %v9416_v37  ;;  %6965 = vmatprep.mubr.f32.mxu0 %v10405_v53  ;;  %v9473_v37 = vld [vmem:[#allocation2 + $0x928] sm:$0xff] }
0x229d   : > { %6903 = vmatprep.subr.mxu0 %v9417_v32  ;;  %v9474_v32 = vld [vmem:[#allocation2 + $0x920] sm:$0xff] }
0x229e   : > { %6904 = vmatpush1.msra.mxu0 %v9418_v38  ;;  %v9475_v38 = vld [vmem:[#allocation2 + $0x918] sm:$0xff] }
0x229f   : > { %6905 = vmatprep.subr.mxu0 %v9419_v45  ;;  %v9476_v45 = vld [vmem:[#allocation2 + $0x910] sm:$0xff] }
0x22a0   : > { %6906 = vmatpush1.msra.mxu0 %v9420_v33  ;;  %v9477_v33 = vld [vmem:[#allocation2 + $0x908] sm:$0xff] }
0x22a1   : > { %6907 = vmatprep.subr.mxu0 %v9421_v46  ;;  %v9478_v46 = vld [vmem:[#allocation2 + $0x900] sm:$0xff] }
0x22a2   : > { %6908 = vmatpush1.msra.mxu0 %v9422_v21 }
0x22a3   : > { %6909 = vmatprep.subr.mxu0 %v9423_v15 }
0x22a4   : > { %6910 = vmatpush1.msra.mxu0 %v9424_v34 }
0x22a5   : > { %6911 = vmatprep.subr.mxu0 %v9425_v39 }
0x22a6   : > { %6912 = vmatpush1.msra.mxu0 %v9426_v58 }
0x22a7   : > { %6913 = vmatprep.subr.mxu0 %v9427_v59 }
0x22a8   : > { %6914 = vmatpush1.msra.mxu0 %v9428_v61  ;;  %v9479_v61 = vld [vmem:[%s9965_s11 + $0x10] sm:$0xf] }
0x22a9   : > { %6915 = vmatprep.subr.mxu0 %v9429_v63  ;;  %v9480_v63 = vld [vmem:[#allocation2 + $0xaf8] sm:$0xff] }
0x22aa   : > { %6916 = vmatpush1.msra.mxu0 %v9430_v27  ;;  %v9481_v27 = vld [vmem:[#allocation2 + $0xaf0] sm:$0xff] }
0x22ab   : > { %6917 = vmatprep.subr.mxu0 %v9431_v36  ;;  %v9483_v36 = vld [vmem:[#allocation2 + $0xae0] sm:$0xff] }
0x22ac   : > { %6918 = vmatpush1.msra.mxu0 %v9432_v43  ;;  %v9485_v43 = vld [vmem:[#allocation2 + $0xad0] sm:$0xff] }
0x22ad   : > { %6919 = vmatprep.subr.mxu0 %v9433_v44  ;;  %v9486_v44 = vld [vmem:[#allocation2 + $0xac8] sm:$0xff] }
0x22ae   : > { %6920 = vmatpush1.msra.mxu0 %v9434_v0  ;;  %v9487_v0 = vld [vmem:[#allocation2 + $0xac0] sm:$0xff] }
0x22af   : > { %6921 = vmatprep.subr.mxu0 %v9435_v50  ;;  %v9488_v50 = vld [vmem:[#allocation2 + $0xab8] sm:$0xff] }
0x22b0   : > { %6922 = vmatpush1.msra.mxu0 %v9436_v16  ;;  %v9489_v16 = vld [vmem:[#allocation2 + $0xab0] sm:$0xff] }
0x22b1   : > { %6923 = vmatprep.subr.mxu0 %v9437_v3  ;;  %v9490_v3 = vld [vmem:[#allocation2 + $0xaa8] sm:$0xff] }
0x22b2   : > { %6924 = vmatpush1.msra.mxu0 %v9438_v5  ;;  %v9491_v5 = vld [vmem:[#allocation2 + $0xaa0] sm:$0xff] }
0x22b3   : > { %6925 = vmatprep.subr.mxu0 %v9439_v7  ;;  %v9492_v7 = vld [vmem:[#allocation2 + $0xa98] sm:$0xff] }
0x22b4   : > { %6926 = vmatpush1.msra.mxu0 %v9440_v11  ;;  %v9493_v11 = vld [vmem:[#allocation2 + $0xa90] sm:$0xff] }
0x22b5   : > { %6927 = vmatprep.subr.mxu0 %v9441_v12  ;;  %v9494_v12 = vld [vmem:[#allocation2 + $0xa88] sm:$0xff] }
0x22b6   : > { %6928 = vmatpush1.msra.mxu0 %v9442_v35  ;;  %v9495_v35 = vld [vmem:[#allocation2 + $0xa80] sm:$0xff] }
0x22b7   : > { %6929 = vmatprep.subr.mxu0 %v9443_v18  ;;  %v9496_v18 = vld [vmem:[#allocation2 + $0xa78] sm:$0xff] }
0x22b8   : > { %6930 = vmatpush1.msra.mxu0 %v9444_v57  ;;  %v9497_v57 = vld [vmem:[#allocation2 + $0xa70] sm:$0xff] }
0x22b9   : > { %6931 = vmatprep.subr.mxu0 %v9445_v41  ;;  %v9498_v41 = vld [vmem:[#allocation2 + $0xa68] sm:$0xff] }
0x22ba   : > { %6932 = vmatpush1.msra.mxu0 %v9446_v19  ;;  %v9499_v19 = vld [vmem:[#allocation2 + $0xa60] sm:$0xff] }
0x22bb   : > { %6933 = vmatprep.subr.mxu0 %v9447_v22  ;;  %v9500_v22 = vld [vmem:[#allocation2 + $0xa58] sm:$0xff] }
0x22bc   : > { %6934 = vmatpush2.msra.mxu0 %v9448_v2  ;;  %v9501_v2 = vld [vmem:[#allocation2 + $0xa50] sm:$0xff] }
0x22bd   : > { %6935 = vmatprep.subr.mxu0 %v9449_v29  ;;  %v9502_v29 = vld [vmem:[#allocation2 + $0xa48] sm:$0xff] }
0x22be   : > { %6936 = vmatpush2.msra.mxu0 %v9450_v30  ;;  %v9503_v30 = vld [vmem:[#allocation2 + $0xa40] sm:$0xff] }
0x22bf   : > { %6937 = vmatprep.subr.mxu0 %v9451_v51  ;;  %v9504_v51 = vld [vmem:[#allocation2 + $0xa38] sm:$0xff] }
0x22c0   : > { %6938 = vmatpush2.msra.mxu0 %v9452_v47  ;;  %v9505_v47 = vld [vmem:[#allocation2 + $0xa30] sm:$0xff] }
0x22c1   : > { %6939 = vmatprep.subr.mxu0 %v9453_v48  ;;  %v9506_v48 = vld [vmem:[#allocation2 + $0xa28] sm:$0xff] }
0x22c2   : > { %6940 = vmatpush2.msra.mxu0 %v9454_v9  ;;  %v9507_v9 = vld [vmem:[#allocation2 + $0xa20] sm:$0xff] }
0x22c3   : > { %6941 = vmatprep.subr.mxu0 %v9455_v49  ;;  %v9508_v49 = vld [vmem:[#allocation2 + $0xa18] sm:$0xff] }
0x22c4   : > { %6942 = vmatpush2.msra.mxu0 %v9456_v10  ;;  %v9509_v10 = vld [vmem:[#allocation2 + $0xa10] sm:$0xff] }
0x22c5   : > { %6943 = vmatprep.subr.mxu0 %v9457_v40  ;;  %v9510_v40 = vld [vmem:[#allocation2 + $0xa08] sm:$0xff] }
0x22c6   : > { %6944 = vmatpush2.msra.mxu0 %v9458_v23  ;;  %v9511_v23 = vld [vmem:[#allocation2 + $0xa00] sm:$0xff] }
0x22c7   : > { %6945 = vmatprep.subr.mxu0 %v9459_v26  ;;  %v9512_v26 = vld [vmem:[#allocation2 + $0xbf8] sm:$0xff] }
0x22c8   : > { %6946 = vmatpush2.msra.mxu0 %v9460_v60  ;;  %v9513_v60 = vld [vmem:[#allocation2 + $0xbf0] sm:$0xff] }
0x22c9   : > { %6947 = vmatprep.subr.mxu0 %v9461_v13  ;;  %v9514_v13 = vld [vmem:[#allocation2 + $0xbe8] sm:$0xff] }
0x22ca   : > { %6948 = vmatpush2.msra.mxu0 %v9462_v28  ;;  %v9515_v28 = vld [vmem:[#allocation2 + $0xbe0] sm:$0xff] }
0x22cb   : > { %6949 = vmatprep.subr.mxu0 %v9463_v14  ;;  %v9516_v14 = vld [vmem:[#allocation2 + $0xbd8] sm:$0xff] }
0x22cc   : > { %6950 = vmatpush2.msra.mxu0 %v9464_v20  ;;  %v9517_v20 = vld [vmem:[#allocation2 + $0xbd0] sm:$0xff] }
0x22cd   : > { %6951 = vmatprep.subr.mxu0 %v9465_v62  ;;  %v9518_v62 = vld [vmem:[#allocation2 + $0xbc8] sm:$0xff] }
0x22ce   : > { %6952 = vmatpush2.msra.mxu0 %v9466_v1  ;;  %v9519_v1 = vld [vmem:[#allocation2 + $0xbc0] sm:$0xff] }
0x22cf   : > { %6953 = vmatprep.subr.mxu0 %v9467_v25  ;;  %v9520_v25 = vld [vmem:[#allocation2 + $0xbb8] sm:$0xff] }
0x22d0   : > { %6954 = vmatpush2.msra.mxu0 %v9468_v24  ;;  %v9521_v24 = vld [vmem:[#allocation2 + $0xbb0] sm:$0xff] }
0x22d1   : > { %6955 = vmatprep.subr.mxu0 %v9469_v17  ;;  %v9522_v17 = vld [vmem:[#allocation2 + $0xba8] sm:$0xff] }
0x22d2   : > { %6956 = vmatpush2.msra.mxu0 %v9470_v6  ;;  %v9523_v6 = vld [vmem:[#allocation2 + $0xba0] sm:$0xff] }
0x22d3   : > { %6957 = vmatprep.subr.mxu0 %v9471_v52  ;;  %v9524_v52 = vld [vmem:[#allocation2 + $0xb98] sm:$0xff] }
0x22d4   : > { %6958 = vmatpush2.msra.mxu0 %v9472_v54  ;;  %v9525_v54 = vld [vmem:[#allocation2 + $0xb90] sm:$0xff] }
0x22d5   : > { %6959 = vmatprep.subr.mxu0 %v9473_v37  ;;  %v9526_v37 = vld [vmem:[#allocation2 + $0xb88] sm:$0xff] }
0x22d6   : > { %6960 = vmatpush2.msra.mxu0 %v9474_v32  ;;  %v9527_v32 = vld [vmem:[#allocation2 + $0xb80] sm:$0xff] }
0x22d7   : > { %6961 = vmatprep.subr.mxu0 %v9475_v38  ;;  %v9528_v38 = vld [vmem:[#allocation2 + $0xb78] sm:$0xff] }
0x22d8   : > { %6962 = vmatpush2.msra.mxu0 %v9476_v45  ;;  %v9529_v45 = vld [vmem:[#allocation2 + $0xb70] sm:$0xff] }
0x22d9   : > { %6963 = vmatprep.subr.mxu0 %v9477_v33  ;;  %v9530_v33 = vld [vmem:[#allocation2 + $0xb68] sm:$0xff] }
0x22da   : > { %6964 = vmatpush2.msra.mxu0 %v9478_v46  ;;  %v9531_v46 = vld [vmem:[#allocation2 + $0xb60] sm:$0xff] }
0x22db   : > { %6966 = vmatmul.mubr.f32.vlgmr.msra.gmra.mxu0 %v10410_v8 }
0x22dc   : > { %7192 = vmatprep.mubr.f32.mxu0 %v9843_v4 }
0x235b   : > { %v6894_v21 = vpop.f32.mrf.mxu0 }
0x235c   : > { %v10477_v15 = vadd.f32 %v6894_v21, %v10464_v31  ;;  %v9482_v31 = vld [vmem:[#allocation2 + $0xae8] sm:$0xff]  ;;  %v9532_v21 = vld [vmem:[#allocation2 + $0xb58] sm:$0xff] }
0x235d   : > { %v6896_v34 = vpop.f32.mrf.mxu0 }
0x235e   : > { %v10480_v39 = vadd.f32 %v6896_v34, %v10467_v42  ;;  %v9484_v42 = vld [vmem:[#allocation2 + $0xad8] sm:$0xff]  ;;  %v9533_v34 = vld [vmem:[#allocation2 + $0xb50] sm:$0xff] }
0x239b   : > { %v6967_v58 = vpop.f32.mrf.mxu0 }
0x239d   : > { %v6969_v59 = vpop.f32.mrf.mxu0 }
0x239e   : > { %7918 = vmatprep.subr.msk.mxu1 %vm519_vm0, %v6969_v59  ;;  %v9535_v59 = vld [vmem:[#allocation2 + $0xb40] sm:$0xff] }
0x239f   : > { %7919 = vmatpush1.msk.msra.mxu1 %vm519_vm0, %v6967_v58  ;;  %v9534_v58 = vld [vmem:[#allocation2 + $0xb48] sm:$0xff] }
0x23a0   : > { %7920 = vmatmul.mubr.msk.f32.vlgmr.msra.gmra.mxu1 %vm515_vm1, %v9479_v61  ;;  %7051 = vmatprep.subr.mxu1 %v9480_v63  ;;  %v9536_v61 = vld [vmem:[#allocation2 + $0xb38] sm:$0xff]  ;;  %v9537_v63 = vld [vmem:[#allocation2 + $0xb30] sm:$0xff] }
0x23a1   : > { %7052 = vmatpush1.msra.mxu1 %v9481_v27  ;;  %7115 = vmatprep.mubr.f32.mxu1 %v10405_v53  ;;  %v9538_v27 = vld [vmem:[#allocation2 + $0xb28] sm:$0xff] }
0x23a2   : > { %7053 = vmatprep.subr.mxu1 %v9482_v31  ;;  %v9539_v31 = vld [vmem:[#allocation2 + $0xb20] sm:$0xff] }
0x23a3   : > { %7054 = vmatpush1.msra.mxu1 %v9483_v36  ;;  %v9540_v36 = vld [vmem:[#allocation2 + $0xb18] sm:$0xff] }
0x23a4   : > { %7055 = vmatprep.subr.mxu1 %v9484_v42  ;;  %v9541_v42 = vld [vmem:[#allocation2 + $0xb10] sm:$0xff] }
0x23a5   : > { %7056 = vmatpush1.msra.mxu1 %v9485_v43  ;;  %v9542_v43 = vld [vmem:[#allocation2 + $0xb08] sm:$0xff] }
0x23a6   : > { %7057 = vmatprep.subr.mxu1 %v9486_v44  ;;  %v9543_v44 = vld [vmem:[#allocation2 + $0xb00] sm:$0xff] }
0x23a7   : > { %7058 = vmatpush1.msra.mxu1 %v9487_v0 }
0x23a8   : > { %7059 = vmatprep.subr.mxu1 %v9488_v50 }
0x23a9   : > { %7060 = vmatpush1.msra.mxu1 %v9489_v16 }
0x23aa   : > { %7061 = vmatprep.subr.mxu1 %v9490_v3 }
0x23ab   : > { %7062 = vmatpush1.msra.mxu1 %v9491_v5 }
0x23ac   : > { %7063 = vmatprep.subr.mxu1 %v9492_v7 }
0x23ad   : > { %7064 = vmatpush1.msra.mxu1 %v9493_v11  ;;  %v9544_v11 = vld [vmem:[%s9965_s11 + $0x14] sm:$0xf] }
0x23ae   : > { %7065 = vmatprep.subr.mxu1 %v9494_v12  ;;  %v9545_v12 = vld [vmem:[#allocation2 + $0xcf8] sm:$0xff] }
0x23af   : > { %7066 = vmatpush1.msra.mxu1 %v9495_v35  ;;  %v9546_v35 = vld [vmem:[#allocation2 + $0xcf0] sm:$0xff] }
0x23b0   : > { %7067 = vmatprep.subr.mxu1 %v9496_v18  ;;  %v9548_v18 = vld [vmem:[#allocation2 + $0xce0] sm:$0xff] }
0x23b1   : > { %7068 = vmatpush1.msra.mxu1 %v9497_v57  ;;  %v9550_v57 = vld [vmem:[#allocation2 + $0xcd0] sm:$0xff] }
0x23b2   : > { %7069 = vmatprep.subr.mxu1 %v9498_v41  ;;  %v9551_v41 = vld [vmem:[#allocation2 + $0xcc8] sm:$0xff] }
0x23b3   : > { %7070 = vmatpush1.msra.mxu1 %v9499_v19  ;;  %v9552_v19 = vld [vmem:[#allocation2 + $0xcc0] sm:$0xff] }
0x23b4   : > { %7071 = vmatprep.subr.mxu1 %v9500_v22  ;;  %v9553_v22 = vld [vmem:[#allocation2 + $0xcb8] sm:$0xff] }
0x23b5   : > { %7072 = vmatpush1.msra.mxu1 %v9501_v2  ;;  %v9554_v2 = vld [vmem:[#allocation2 + $0xcb0] sm:$0xff] }
0x23b6   : > { %7073 = vmatprep.subr.mxu1 %v9502_v29  ;;  %v9555_v29 = vld [vmem:[#allocation2 + $0xca8] sm:$0xff] }
0x23b7   : > { %7074 = vmatpush1.msra.mxu1 %v9503_v30  ;;  %v9556_v30 = vld [vmem:[#allocation2 + $0xca0] sm:$0xff] }
0x23b8   : > { %7075 = vmatprep.subr.mxu1 %v9504_v51  ;;  %v9557_v51 = vld [vmem:[#allocation2 + $0xc98] sm:$0xff] }
0x23b9   : > { %7076 = vmatpush1.msra.mxu1 %v9505_v47  ;;  %v9558_v47 = vld [vmem:[#allocation2 + $0xc90] sm:$0xff] }
0x23ba   : > { %7077 = vmatprep.subr.mxu1 %v9506_v48  ;;  %v9559_v48 = vld [vmem:[#allocation2 + $0xc88] sm:$0xff] }
0x23bb   : > { %7078 = vmatpush1.msra.mxu1 %v9507_v9  ;;  %v9560_v9 = vld [vmem:[#allocation2 + $0xc80] sm:$0xff] }
0x23bc   : > { %7079 = vmatprep.subr.mxu1 %v9508_v49  ;;  %v9561_v49 = vld [vmem:[#allocation2 + $0xc78] sm:$0xff] }
0x23bd   : > { %7080 = vmatpush1.msra.mxu1 %v9509_v10  ;;  %v9562_v10 = vld [vmem:[#allocation2 + $0xc70] sm:$0xff] }
0x23be   : > { %7081 = vmatprep.subr.mxu1 %v9510_v40  ;;  %v9563_v40 = vld [vmem:[#allocation2 + $0xc68] sm:$0xff] }
0x23bf   : > { %7082 = vmatpush1.msra.mxu1 %v9511_v23  ;;  %v9564_v23 = vld [vmem:[#allocation2 + $0xc60] sm:$0xff] }
0x23c0   : > { %7083 = vmatprep.subr.mxu1 %v9512_v26  ;;  %v9565_v26 = vld [vmem:[#allocation2 + $0xc58] sm:$0xff] }
0x23c1   : > { %7084 = vmatpush2.msra.mxu1 %v9513_v60  ;;  %v9566_v60 = vld [vmem:[#allocation2 + $0xc50] sm:$0xff] }
0x23c2   : > { %7085 = vmatprep.subr.mxu1 %v9514_v13  ;;  %v9567_v13 = vld [vmem:[#allocation2 + $0xc48] sm:$0xff] }
0x23c3   : > { %7086 = vmatpush2.msra.mxu1 %v9515_v28  ;;  %v9568_v28 = vld [vmem:[#allocation2 + $0xc40] sm:$0xff] }
0x23c4   : > { %7087 = vmatprep.subr.mxu1 %v9516_v14  ;;  %v9569_v14 = vld [vmem:[#allocation2 + $0xc38] sm:$0xff] }
0x23c5   : > { %7088 = vmatpush2.msra.mxu1 %v9517_v20  ;;  %v9570_v20 = vld [vmem:[#allocation2 + $0xc30] sm:$0xff] }
0x23c6   : > { %7089 = vmatprep.subr.mxu1 %v9518_v62  ;;  %v9571_v62 = vld [vmem:[#allocation2 + $0xc28] sm:$0xff] }
0x23c7   : > { %7090 = vmatpush2.msra.mxu1 %v9519_v1  ;;  %v9572_v1 = vld [vmem:[#allocation2 + $0xc20] sm:$0xff] }
0x23c8   : > { %7091 = vmatprep.subr.mxu1 %v9520_v25  ;;  %v9573_v25 = vld [vmem:[#allocation2 + $0xc18] sm:$0xff] }
0x23c9   : > { %7092 = vmatpush2.msra.mxu1 %v9521_v24  ;;  %v9574_v24 = vld [vmem:[#allocation2 + $0xc10] sm:$0xff] }
0x23ca   : > { %7093 = vmatprep.subr.mxu1 %v9522_v17  ;;  %v9575_v17 = vld [vmem:[#allocation2 + $0xc08] sm:$0xff] }
0x23cb   : > { %7094 = vmatpush2.msra.mxu1 %v9523_v6  ;;  %v9576_v6 = vld [vmem:[#allocation2 + $0xc00] sm:$0xff] }
0x23cc   : > { %7095 = vmatprep.subr.mxu1 %v9524_v52  ;;  %v9577_v52 = vld [vmem:[#allocation2 + $0xdf8] sm:$0xff] }
0x23cd   : > { %7096 = vmatpush2.msra.mxu1 %v9525_v54  ;;  %v9578_v54 = vld [vmem:[#allocation2 + $0xdf0] sm:$0xff] }
0x23ce   : > { %7097 = vmatprep.subr.mxu1 %v9526_v37  ;;  %v9579_v37 = vld [vmem:[#allocation2 + $0xde8] sm:$0xff] }
0x23cf   : > { %7098 = vmatpush2.msra.mxu1 %v9527_v32  ;;  %v9580_v32 = vld [vmem:[#allocation2 + $0xde0] sm:$0xff] }
0x23d0   : > { %7099 = vmatprep.subr.mxu1 %v9528_v38  ;;  %v9581_v38 = vld [vmem:[#allocation2 + $0xdd8] sm:$0xff] }
0x23d1   : > { %7100 = vmatpush2.msra.mxu1 %v9529_v45  ;;  %v9582_v45 = vld [vmem:[#allocation2 + $0xdd0] sm:$0xff] }
0x23d2   : > { %7101 = vmatprep.subr.mxu1 %v9530_v33  ;;  %v9583_v33 = vld [vmem:[#allocation2 + $0xdc8] sm:$0xff] }
0x23d3   : > { %7102 = vmatpush2.msra.mxu1 %v9531_v46  ;;  %v9584_v46 = vld [vmem:[#allocation2 + $0xdc0] sm:$0xff] }
0x23d4   : > { %7103 = vmatprep.subr.mxu1 %v9532_v21  ;;  %v9585_v21 = vld [vmem:[#allocation2 + $0xdb8] sm:$0xff] }
0x23d5   : > { %7104 = vmatpush2.msra.mxu1 %v9533_v34  ;;  %v9586_v34 = vld [vmem:[#allocation2 + $0xdb0] sm:$0xff] }
0x23d6   : > { %7105 = vmatprep.subr.mxu1 %v9534_v58  ;;  %v9587_v58 = vld [vmem:[#allocation2 + $0xda8] sm:$0xff] }
0x23d7   : > { %7106 = vmatpush2.msra.mxu1 %v9535_v59  ;;  %v9588_v59 = vld [vmem:[#allocation2 + $0xda0] sm:$0xff] }
0x23d8   : > { %7107 = vmatprep.subr.mxu1 %v9536_v61  ;;  %v9589_v61 = vld [vmem:[#allocation2 + $0xd98] sm:$0xff] }
0x23d9   : > { %7108 = vmatpush2.msra.mxu1 %v9537_v63  ;;  %v9590_v63 = vld [vmem:[#allocation2 + $0xd90] sm:$0xff] }
0x23da   : > { %7109 = vmatprep.subr.mxu1 %v9538_v27  ;;  %v9591_v27 = vld [vmem:[#allocation2 + $0xd88] sm:$0xff] }
0x23db   : > { %7110 = vmatpush2.msra.mxu1 %v9539_v31  ;;  %v9592_v31 = vld [vmem:[#allocation2 + $0xd80] sm:$0xff] }
0x23dc   : > { %7111 = vmatprep.subr.mxu1 %v9540_v36  ;;  %v9593_v36 = vld [vmem:[#allocation2 + $0xd78] sm:$0xff] }
0x23dd   : > { %7112 = vmatpush2.msra.mxu1 %v9541_v42  ;;  %v9594_v42 = vld [vmem:[#allocation2 + $0xd70] sm:$0xff] }
0x23de   : > { %7113 = vmatprep.subr.mxu1 %v9542_v43  ;;  %v9595_v43 = vld [vmem:[#allocation2 + $0xd68] sm:$0xff] }
0x23df   : > { %7114 = vmatpush2.msra.mxu1 %v9543_v44  ;;  %v9596_v44 = vld [vmem:[#allocation2 + $0xd60] sm:$0xff] }
0x23e0   : > { %7116 = vmatmul.mubr.f32.vlgmr.msra.gmra.mxu1 %v10410_v8 }
0x23e1   : > { %7342 = vmatprep.mubr.f32.mxu1 %v9843_v4 }
0x2460   : > { %v7044_v0 = vpop.f32.mrf.mxu1 }
0x2461   : > { %v10490_v50 = vadd.f32 %v7044_v0, %v10477_v15  ;;  %v9547_v15 = vld [vmem:[#allocation2 + $0xce8] sm:$0xff]  ;;  %v9597_v0 = vld [vmem:[#allocation2 + $0xd58] sm:$0xff] }
0x2462   : > { %v7046_v16 = vpop.f32.mrf.mxu1 }
0x2463   : > { %v10493_v3 = vadd.f32 %v7046_v16, %v10480_v39  ;;  %v9549_v39 = vld [vmem:[#allocation2 + $0xcd8] sm:$0xff]  ;;  %v9598_v16 = vld [vmem:[#allocation2 + $0xd50] sm:$0xff] }
0x24a0   : > { %v7117_v5 = vpop.f32.mrf.mxu1 }
0x24a2   : > { %v7119_v7 = vpop.f32.mrf.mxu1 }
0x24a3   : > { %7921 = vmatprep.subr.msk.mxu0 %vm519_vm0, %v7119_v7  ;;  %v9600_v7 = vld [vmem:[#allocation2 + $0xd40] sm:$0xff] }
0x24a4   : > { %7922 = vmatpush1.msk.msra.mxu0 %vm519_vm0, %v7117_v5  ;;  %v9599_v5 = vld [vmem:[#allocation2 + $0xd48] sm:$0xff] }
0x24a5   : > { %7923 = vmatmul.mubr.msk.f32.vlgmr.msra.gmra.mxu0 %vm515_vm1, %v9544_v11  ;;  %7201 = vmatprep.subr.mxu0 %v9545_v12  ;;  %v9601_v11 = vld [vmem:[#allocation2 + $0xd38] sm:$0xff]  ;;  %v9602_v12 = vld [vmem:[#allocation2 + $0xd30] sm:$0xff] }
0x24a6   : > { %7202 = vmatpush1.msra.mxu0 %v9546_v35  ;;  %7265 = vmatprep.mubr.f32.mxu0 %v10405_v53  ;;  %v9603_v35 = vld [vmem:[#allocation2 + $0xd28] sm:$0xff] }
0x24a7   : > { %7203 = vmatprep.subr.mxu0 %v9547_v15  ;;  %v9604_v15 = vld [vmem:[#allocation2 + $0xd20] sm:$0xff] }
0x24a8   : > { %7204 = vmatpush1.msra.mxu0 %v9548_v18  ;;  %v9605_v18 = vld [vmem:[#allocation2 + $0xd18] sm:$0xff] }
0x24a9   : > { %7205 = vmatprep.subr.mxu0 %v9549_v39  ;;  %v9606_v39 = vld [vmem:[#allocation2 + $0xd10] sm:$0xff] }
0x24aa   : > { %7206 = vmatpush1.msra.mxu0 %v9550_v57  ;;  %v9607_v57 = vld [vmem:[#allocation2 + $0xd08] sm:$0xff] }
0x24ab   : > { %7207 = vmatprep.subr.mxu0 %v9551_v41  ;;  %v9608_v41 = vld [vmem:[#allocation2 + $0xd00] sm:$0xff] }
0x24ac   : > { %7208 = vmatpush1.msra.mxu0 %v9552_v19 }
0x24ad   : > { %7209 = vmatprep.subr.mxu0 %v9553_v22 }
0x24ae   : > { %7210 = vmatpush1.msra.mxu0 %v9554_v2 }
0x24af   : > { %7211 = vmatprep.subr.mxu0 %v9555_v29 }
0x24b0   : > { %7212 = vmatpush1.msra.mxu0 %v9556_v30 }
0x24b1   : > { %7213 = vmatprep.subr.mxu0 %v9557_v51 }
0x24b2   : > { %7214 = vmatpush1.msra.mxu0 %v9558_v47  ;;  %v9609_v47 = vld [vmem:[%s9965_s11 + $0x18] sm:$0xf] }
0x24b3   : > { %7215 = vmatprep.subr.mxu0 %v9559_v48  ;;  %v9610_v48 = vld [vmem:[#allocation2 + $0xef8] sm:$0xff] }
0x24b4   : > { %7216 = vmatpush1.msra.mxu0 %v9560_v9  ;;  %v9611_v9 = vld [vmem:[#allocation2 + $0xef0] sm:$0xff] }
0x24b5   : > { %7217 = vmatprep.subr.mxu0 %v9561_v49  ;;  %v9613_v49 = vld [vmem:[#allocation2 + $0xee0] sm:$0xff] }
0x24b6   : > { %7218 = vmatpush1.msra.mxu0 %v9562_v10  ;;  %v9615_v10 = vld [vmem:[#allocation2 + $0xed0] sm:$0xff] }
0x24b7   : > { %7219 = vmatprep.subr.mxu0 %v9563_v40  ;;  %v9616_v40 = vld [vmem:[#allocation2 + $0xec8] sm:$0xff] }
0x24b8   : > { %7220 = vmatpush1.msra.mxu0 %v9564_v23  ;;  %v9617_v23 = vld [vmem:[#allocation2 + $0xec0] sm:$0xff] }
0x24b9   : > { %7221 = vmatprep.subr.mxu0 %v9565_v26  ;;  %v9618_v26 = vld [vmem:[#allocation2 + $0xeb8] sm:$0xff] }
0x24ba   : > { %7222 = vmatpush1.msra.mxu0 %v9566_v60  ;;  %v9619_v60 = vld [vmem:[#allocation2 + $0xeb0] sm:$0xff] }
0x24bb   : > { %7223 = vmatprep.subr.mxu0 %v9567_v13  ;;  %v9620_v13 = vld [vmem:[#allocation2 + $0xea8] sm:$0xff] }
0x24bc   : > { %7224 = vmatpush1.msra.mxu0 %v9568_v28  ;;  %v9621_v28 = vld [vmem:[#allocation2 + $0xea0] sm:$0xff] }
0x24bd   : > { %7225 = vmatprep.subr.mxu0 %v9569_v14  ;;  %v9622_v14 = vld [vmem:[#allocation2 + $0xe98] sm:$0xff] }
0x24be   : > { %7226 = vmatpush1.msra.mxu0 %v9570_v20  ;;  %v9623_v20 = vld [vmem:[#allocation2 + $0xe90] sm:$0xff] }
0x24bf   : > { %7227 = vmatprep.subr.mxu0 %v9571_v62  ;;  %v9624_v62 = vld [vmem:[#allocation2 + $0xe88] sm:$0xff] }
0x24c0   : > { %7228 = vmatpush1.msra.mxu0 %v9572_v1  ;;  %v9625_v1 = vld [vmem:[#allocation2 + $0xe80] sm:$0xff] }
0x24c1   : > { %7229 = vmatprep.subr.mxu0 %v9573_v25  ;;  %v9626_v25 = vld [vmem:[#allocation2 + $0xe78] sm:$0xff] }
0x24c2   : > { %7230 = vmatpush1.msra.mxu0 %v9574_v24  ;;  %v9627_v24 = vld [vmem:[#allocation2 + $0xe70] sm:$0xff] }
0x24c3   : > { %7231 = vmatprep.subr.mxu0 %v9575_v17  ;;  %v9628_v17 = vld [vmem:[#allocation2 + $0xe68] sm:$0xff] }
0x24c4   : > { %7232 = vmatpush1.msra.mxu0 %v9576_v6  ;;  %v9629_v6 = vld [vmem:[#allocation2 + $0xe60] sm:$0xff] }
0x24c5   : > { %7233 = vmatprep.subr.mxu0 %v9577_v52  ;;  %v9630_v52 = vld [vmem:[#allocation2 + $0xe58] sm:$0xff] }
0x24c6   : > { %7234 = vmatpush2.msra.mxu0 %v9578_v54  ;;  %v9631_v54 = vld [vmem:[#allocation2 + $0xe50] sm:$0xff] }
0x24c7   : > { %7235 = vmatprep.subr.mxu0 %v9579_v37  ;;  %v9632_v37 = vld [vmem:[#allocation2 + $0xe48] sm:$0xff] }
0x24c8   : > { %7236 = vmatpush2.msra.mxu0 %v9580_v32  ;;  %v9633_v32 = vld [vmem:[#allocation2 + $0xe40] sm:$0xff] }
0x24c9   : > { %7237 = vmatprep.subr.mxu0 %v9581_v38  ;;  %v9634_v38 = vld [vmem:[#allocation2 + $0xe38] sm:$0xff] }
0x24ca   : > { %7238 = vmatpush2.msra.mxu0 %v9582_v45  ;;  %v9635_v45 = vld [vmem:[#allocation2 + $0xe30] sm:$0xff] }
0x24cb   : > { %7239 = vmatprep.subr.mxu0 %v9583_v33  ;;  %v9636_v33 = vld [vmem:[#allocation2 + $0xe28] sm:$0xff] }
0x24cc   : > { %7240 = vmatpush2.msra.mxu0 %v9584_v46  ;;  %v9637_v46 = vld [vmem:[#allocation2 + $0xe20] sm:$0xff] }
0x24cd   : > { %7241 = vmatprep.subr.mxu0 %v9585_v21  ;;  %v9638_v21 = vld [vmem:[#allocation2 + $0xe18] sm:$0xff] }
0x24ce   : > { %7242 = vmatpush2.msra.mxu0 %v9586_v34  ;;  %v9639_v34 = vld [vmem:[#allocation2 + $0xe10] sm:$0xff] }
0x24cf   : > { %7243 = vmatprep.subr.mxu0 %v9587_v58  ;;  %v9640_v58 = vld [vmem:[#allocation2 + $0xe08] sm:$0xff] }
0x24d0   : > { %7244 = vmatpush2.msra.mxu0 %v9588_v59  ;;  %v9641_v59 = vld [vmem:[#allocation2 + $0xe00] sm:$0xff] }
0x24d1   : > { %7245 = vmatprep.subr.mxu0 %v9589_v61  ;;  %v9642_v61 = vld [vmem:[#allocation2 + $0xff8] sm:$0xff] }
0x24d2   : > { %7246 = vmatpush2.msra.mxu0 %v9590_v63  ;;  %v9643_v63 = vld [vmem:[#allocation2 + $0xff0] sm:$0xff] }
0x24d3   : > { %7247 = vmatprep.subr.mxu0 %v9591_v27  ;;  %v9644_v27 = vld [vmem:[#allocation2 + $0xfe8] sm:$0xff] }
0x24d4   : > { %7248 = vmatpush2.msra.mxu0 %v9592_v31  ;;  %v9645_v31 = vld [vmem:[#allocation2 + $0xfe0] sm:$0xff] }
0x24d5   : > { %7249 = vmatprep.subr.mxu0 %v9593_v36  ;;  %v9646_v36 = vld [vmem:[#allocation2 + $0xfd8] sm:$0xff] }
0x24d6   : > { %7250 = vmatpush2.msra.mxu0 %v9594_v42  ;;  %v9647_v42 = vld [vmem:[#allocation2 + $0xfd0] sm:$0xff] }
0x24d7   : > { %7251 = vmatprep.subr.mxu0 %v9595_v43  ;;  %v9648_v43 = vld [vmem:[#allocation2 + $0xfc8] sm:$0xff] }
0x24d8   : > { %7252 = vmatpush2.msra.mxu0 %v9596_v44  ;;  %v9649_v44 = vld [vmem:[#allocation2 + $0xfc0] sm:$0xff] }
0x24d9   : > { %7253 = vmatprep.subr.mxu0 %v9597_v0  ;;  %v9650_v0 = vld [vmem:[#allocation2 + $0xfb8] sm:$0xff] }
0x24da   : > { %7254 = vmatpush2.msra.mxu0 %v9598_v16  ;;  %v9651_v16 = vld [vmem:[#allocation2 + $0xfb0] sm:$0xff] }
0x24db   : > { %7255 = vmatprep.subr.mxu0 %v9599_v5  ;;  %v9652_v5 = vld [vmem:[#allocation2 + $0xfa8] sm:$0xff] }
0x24dc   : > { %7256 = vmatpush2.msra.mxu0 %v9600_v7  ;;  %v9653_v7 = vld [vmem:[#allocation2 + $0xfa0] sm:$0xff] }
0x24dd   : > { %7257 = vmatprep.subr.mxu0 %v9601_v11  ;;  %v9654_v11 = vld [vmem:[#allocation2 + $0xf98] sm:$0xff] }
0x24de   : > { %7258 = vmatpush2.msra.mxu0 %v9602_v12  ;;  %v9655_v12 = vld [vmem:[#allocation2 + $0xf90] sm:$0xff] }
0x24df   : > { %7259 = vmatprep.subr.mxu0 %v9603_v35  ;;  %v9656_v35 = vld [vmem:[#allocation2 + $0xf88] sm:$0xff] }
0x24e0   : > { %7260 = vmatpush2.msra.mxu0 %v9604_v15  ;;  %v9657_v15 = vld [vmem:[#allocation2 + $0xf80] sm:$0xff] }
0x24e1   : > { %7261 = vmatprep.subr.mxu0 %v9605_v18  ;;  %v9658_v18 = vld [vmem:[#allocation2 + $0xf78] sm:$0xff] }
0x24e2   : > { %7262 = vmatpush2.msra.mxu0 %v9606_v39  ;;  %v9659_v39 = vld [vmem:[#allocation2 + $0xf70] sm:$0xff] }
0x24e3   : > { %7263 = vmatprep.subr.mxu0 %v9607_v57  ;;  %v9660_v57 = vld [vmem:[#allocation2 + $0xf68] sm:$0xff] }
0x24e4   : > { %7264 = vmatpush2.msra.mxu0 %v9608_v41  ;;  %v9661_v41 = vld [vmem:[#allocation2 + $0xf60] sm:$0xff] }
0x24e5   : > { %7266 = vmatmul.mubr.f32.vlgmr.msra.gmra.mxu0 %v10410_v8 }
0x24e6   : > { %7492 = vmatprep.mubr.f32.mxu0 %v9843_v4 }
0x2565   : > { %v7194_v19 = vpop.f32.mrf.mxu0 }
0x2566   : > { %v10503_v22 = vadd.f32 %v7194_v19, %v10490_v50  ;;  %v9612_v50 = vld [vmem:[#allocation2 + $0xee8] sm:$0xff]  ;;  %v9662_v19 = vld [vmem:[#allocation2 + $0xf58] sm:$0xff] }
0x2567   : > { %v7196_v2 = vpop.f32.mrf.mxu0 }
0x2568   : > { %v10506_v29 = vadd.f32 %v7196_v2, %v10493_v3  ;;  %v9614_v3 = vld [vmem:[#allocation2 + $0xed8] sm:$0xff]  ;;  %v9663_v2 = vld [vmem:[#allocation2 + $0xf50] sm:$0xff] }
0x25a5   : > { %v7267_v30 = vpop.f32.mrf.mxu0 }
0x25a7   : > { %v7269_v51 = vpop.f32.mrf.mxu0 }
0x25a8   : > { %7924 = vmatprep.subr.msk.mxu1 %vm519_vm0, %v7269_v51  ;;  %v9665_v51 = vld [vmem:[#allocation2 + $0xf40] sm:$0xff] }
0x25a9   : > { %7925 = vmatpush1.msk.msra.mxu1 %vm519_vm0, %v7267_v30  ;;  %v9664_v30 = vld [vmem:[#allocation2 + $0xf48] sm:$0xff] }
0x25aa   : > { %7926 = vmatmul.mubr.msk.f32.vlgmr.msra.gmra.mxu1 %vm515_vm1, %v9609_v47  ;;  %7351 = vmatprep.subr.mxu1 %v9610_v48  ;;  %v9666_v47 = vld [vmem:[#allocation2 + $0xf38] sm:$0xff]  ;;  %v9667_v48 = vld [vmem:[#allocation2 + $0xf30] sm:$0xff] }
0x25ab   : > { %7352 = vmatpush1.msra.mxu1 %v9611_v9  ;;  %7415 = vmatprep.mubr.f32.mxu1 %v10405_v53  ;;  %v9668_v9 = vld [vmem:[#allocation2 + $0xf28] sm:$0xff] }
0x25ac   : > { %7353 = vmatprep.subr.mxu1 %v9612_v50  ;;  %v9669_v50 = vld [vmem:[#allocation2 + $0xf20] sm:$0xff] }
0x25ad   : > { %7354 = vmatpush1.msra.mxu1 %v9613_v49  ;;  %v9670_v49 = vld [vmem:[#allocation2 + $0xf18] sm:$0xff] }
0x25ae   : > { %7355 = vmatprep.subr.mxu1 %v9614_v3  ;;  %v9671_v3 = vld [vmem:[#allocation2 + $0xf10] sm:$0xff] }
0x25af   : > { %7356 = vmatpush1.msra.mxu1 %v9615_v10  ;;  %v9672_v10 = vld [vmem:[#allocation2 + $0xf08] sm:$0xff] }
0x25b0   : > { %7357 = vmatprep.subr.mxu1 %v9616_v40  ;;  %v9673_v40 = vld [vmem:[#allocation2 + $0xf00] sm:$0xff] }
0x25b1   : > { %7358 = vmatpush1.msra.mxu1 %v9617_v23 }
0x25b2   : > { %7359 = vmatprep.subr.mxu1 %v9618_v26 }
0x25b3   : > { %7360 = vmatpush1.msra.mxu1 %v9619_v60 }
0x25b4   : > { %7361 = vmatprep.subr.mxu1 %v9620_v13 }
0x25b5   : > { %7362 = vmatpush1.msra.mxu1 %v9621_v28 }
0x25b6   : > { %7363 = vmatprep.subr.mxu1 %v9622_v14 }
0x25b7   : > { %7364 = vmatpush1.msra.mxu1 %v9623_v20  ;;  %v9674_v20 = vld [vmem:[%s9965_s11 + $0x1c] sm:$0xf] }
0x25b8   : > { %7365 = vmatprep.subr.mxu1 %v9624_v62  ;;  %v9675_v62 = vld [vmem:[#allocation2 + $0x10f8] sm:$0xff] }
0x25b9   : > { %7366 = vmatpush1.msra.mxu1 %v9625_v1  ;;  %v9678_v1 = vld [vmem:[#allocation2 + $0x10e0] sm:$0xff] }
0x25ba   : > { %7367 = vmatprep.subr.mxu1 %v9626_v25  ;;  %v9680_v25 = vld [vmem:[#allocation2 + $0x10d0] sm:$0xff] }
0x25bb   : > { %7368 = vmatpush1.msra.mxu1 %v9627_v24  ;;  %v9681_v24 = vld [vmem:[#allocation2 + $0x10c8] sm:$0xff] }
0x25bc   : > { %7369 = vmatprep.subr.mxu1 %v9628_v17  ;;  %v9682_v17 = vld [vmem:[#allocation2 + $0x10c0] sm:$0xff] }
0x25bd   : > { %7370 = vmatpush1.msra.mxu1 %v9629_v6  ;;  %v9683_v6 = vld [vmem:[#allocation2 + $0x10b8] sm:$0xff] }
0x25be   : > { %7371 = vmatprep.subr.mxu1 %v9630_v52  ;;  %v9684_v52 = vld [vmem:[#allocation2 + $0x10b0] sm:$0xff] }
0x25bf   : > { %7372 = vmatpush1.msra.mxu1 %v9631_v54  ;;  %v9685_v54 = vld [vmem:[#allocation2 + $0x10a8] sm:$0xff] }
0x25c0   : > { %7373 = vmatprep.subr.mxu1 %v9632_v37  ;;  %v9686_v37 = vld [vmem:[#allocation2 + $0x10a0] sm:$0xff] }
0x25c1   : > { %7374 = vmatpush1.msra.mxu1 %v9633_v32  ;;  %v9688_v32 = vld [vmem:[#allocation2 + $0x1090] sm:$0xff] }
0x25c2   : > { %7375 = vmatprep.subr.mxu1 %v9634_v38  ;;  %v9689_v38 = vld [vmem:[#allocation2 + $0x1088] sm:$0xff] }
0x25c3   : > { %7376 = vmatpush1.msra.mxu1 %v9635_v45  ;;  %v9690_v45 = vld [vmem:[#allocation2 + $0x1080] sm:$0xff] }
0x25c4   : > { %7377 = vmatprep.subr.mxu1 %v9636_v33  ;;  %v9691_v33 = vld [vmem:[#allocation2 + $0x1078] sm:$0xff] }
0x25c5   : > { %7378 = vmatpush1.msra.mxu1 %v9637_v46  ;;  %v9692_v46 = vld [vmem:[#allocation2 + $0x1070] sm:$0xff] }
0x25c6   : > { %7379 = vmatprep.subr.mxu1 %v9638_v21  ;;  %v9693_v21 = vld [vmem:[#allocation2 + $0x1068] sm:$0xff] }
0x25c7   : > { %7380 = vmatpush1.msra.mxu1 %v9639_v34  ;;  %v9694_v34 = vld [vmem:[#allocation2 + $0x1060] sm:$0xff] }
0x25c8   : > { %7381 = vmatprep.subr.mxu1 %v9640_v58  ;;  %v9695_v58 = vld [vmem:[#allocation2 + $0x1058] sm:$0xff] }
0x25c9   : > { %7382 = vmatpush1.msra.mxu1 %v9641_v59  ;;  %v9696_v59 = vld [vmem:[#allocation2 + $0x1050] sm:$0xff] }
0x25ca   : > { %7383 = vmatprep.subr.mxu1 %v9642_v61  ;;  %v9697_v61 = vld [vmem:[#allocation2 + $0x1048] sm:$0xff] }
0x25cb   : > { %7384 = vmatpush2.msra.mxu1 %v9643_v63  ;;  %v9698_v63 = vld [vmem:[#allocation2 + $0x1040] sm:$0xff] }
0x25cc   : > { %7385 = vmatprep.subr.mxu1 %v9644_v27  ;;  %v9699_v27 = vld [vmem:[#allocation2 + $0x1038] sm:$0xff] }
0x25cd   : > { %7386 = vmatpush2.msra.mxu1 %v9645_v31  ;;  %v9700_v31 = vld [vmem:[#allocation2 + $0x1030] sm:$0xff] }
0x25ce   : > { %7387 = vmatprep.subr.mxu1 %v9646_v36  ;;  %v9701_v36 = vld [vmem:[#allocation2 + $0x1028] sm:$0xff] }
0x25cf   : > { %7388 = vmatpush2.msra.mxu1 %v9647_v42  ;;  %v9702_v42 = vld [vmem:[#allocation2 + $0x1020] sm:$0xff] }
0x25d0   : > { %7389 = vmatprep.subr.mxu1 %v9648_v43  ;;  %v9703_v43 = vld [vmem:[#allocation2 + $0x1018] sm:$0xff] }
0x25d1   : > { %7390 = vmatpush2.msra.mxu1 %v9649_v44  ;;  %v9704_v44 = vld [vmem:[#allocation2 + $0x1010] sm:$0xff] }
0x25d2   : > { %7391 = vmatprep.subr.mxu1 %v9650_v0  ;;  %v9705_v0 = vld [vmem:[#allocation2 + $0x1008] sm:$0xff] }
0x25d3   : > { %7392 = vmatpush2.msra.mxu1 %v9651_v16  ;;  %v9706_v16 = vld [vmem:[#allocation2 + $0x1000] sm:$0xff] }
0x25d4   : > { %7393 = vmatprep.subr.mxu1 %v9652_v5  ;;  %v9707_v5 = vld [vmem:[#allocation2 + $0x11f8] sm:$0xff] }
0x25d5   : > { %7394 = vmatpush2.msra.mxu1 %v9653_v7  ;;  %v9708_v7 = vld [vmem:[#allocation2 + $0x11f0] sm:$0xff] }
0x25d6   : > { %7395 = vmatprep.subr.mxu1 %v9654_v11  ;;  %v9709_v11 = vld [vmem:[#allocation2 + $0x11e8] sm:$0xff] }
0x25d7   : > { %7396 = vmatpush2.msra.mxu1 %v9655_v12  ;;  %v9710_v12 = vld [vmem:[#allocation2 + $0x11e0] sm:$0xff] }
0x25d8   : > { %7397 = vmatprep.subr.mxu1 %v9656_v35  ;;  %v9711_v35 = vld [vmem:[#allocation2 + $0x11d8] sm:$0xff] }
0x25d9   : > { %7398 = vmatpush2.msra.mxu1 %v9657_v15  ;;  %v9712_v15 = vld [vmem:[#allocation2 + $0x11d0] sm:$0xff] }
0x25da   : > { %7399 = vmatprep.subr.mxu1 %v9658_v18  ;;  %v9713_v18 = vld [vmem:[#allocation2 + $0x11c8] sm:$0xff] }
0x25db   : > { %7400 = vmatpush2.msra.mxu1 %v9659_v39  ;;  %v9714_v39 = vld [vmem:[#allocation2 + $0x11c0] sm:$0xff] }
0x25dc   : > { %7401 = vmatprep.subr.mxu1 %v9660_v57  ;;  %v9715_v57 = vld [vmem:[#allocation2 + $0x11b8] sm:$0xff] }
0x25dd   : > { %7402 = vmatpush2.msra.mxu1 %v9661_v41  ;;  %v9716_v41 = vld [vmem:[#allocation2 + $0x11b0] sm:$0xff] }
0x25de   : > { %7403 = vmatprep.subr.mxu1 %v9662_v19  ;;  %v9717_v19 = vld [vmem:[#allocation2 + $0x11a8] sm:$0xff] }
0x25df   : > { %7404 = vmatpush2.msra.mxu1 %v9663_v2  ;;  %v9718_v2 = vld [vmem:[#allocation2 + $0x11a0] sm:$0xff] }
0x25e0   : > { %7405 = vmatprep.subr.mxu1 %v9664_v30  ;;  %v9719_v30 = vld [vmem:[#allocation2 + $0x1198] sm:$0xff] }
0x25e1   : > { %7406 = vmatpush2.msra.mxu1 %v9665_v51  ;;  %v9720_v51 = vld [vmem:[#allocation2 + $0x1190] sm:$0xff] }
0x25e2   : > { %7407 = vmatprep.subr.mxu1 %v9666_v47  ;;  %v9721_v47 = vld [vmem:[#allocation2 + $0x1188] sm:$0xff] }
0x25e3   : > { %7408 = vmatpush2.msra.mxu1 %v9667_v48  ;;  %v9722_v48 = vld [vmem:[#allocation2 + $0x1180] sm:$0xff] }
0x25e4   : > { %7409 = vmatprep.subr.mxu1 %v9668_v9  ;;  %v9723_v9 = vld [vmem:[#allocation2 + $0x1178] sm:$0xff] }
0x25e5   : > { %7410 = vmatpush2.msra.mxu1 %v9669_v50  ;;  %v9724_v50 = vld [vmem:[#allocation2 + $0x1170] sm:$0xff] }
0x25e6   : > { %7411 = vmatprep.subr.mxu1 %v9670_v49  ;;  %v9725_v49 = vld [vmem:[#allocation2 + $0x1168] sm:$0xff] }
0x25e7   : > { %7412 = vmatpush2.msra.mxu1 %v9671_v3  ;;  %v9726_v3 = vld [vmem:[#allocation2 + $0x1160] sm:$0xff] }
0x25e8   : > { %7413 = vmatprep.subr.mxu1 %v9672_v10  ;;  %v9727_v10 = vld [vmem:[#allocation2 + $0x1158] sm:$0xff] }
0x25e9   : > { %7414 = vmatpush2.msra.mxu1 %v9673_v40  ;;  %v9728_v40 = vld [vmem:[#allocation2 + $0x1150] sm:$0xff] }
0x25ea   : > { %7416 = vmatmul.mubr.f32.vlgmr.msra.gmra.mxu1 %v10410_v8 }
0x25eb   : > { %7642 = vmatprep.mubr.f32.mxu1 %v9843_v4  ;;  %v9676_v4 = vld [vmem:[#allocation2 + $0x10f0] sm:$0xff] }
0x266a   : > { %v7344_v23 = vpop.f32.mrf.mxu1 }
0x266b   : > { %v10516_v26 = vadd.f32 %v7344_v23, %v10503_v22  ;;  %v9677_v22 = vld [vmem:[#allocation2 + $0x10e8] sm:$0xff] }
0x266c   : > { %v7346_v60 = vpop.f32.mrf.mxu1  ;;  %v9729_v23 = vld [vmem:[#allocation2 + $0x1148] sm:$0xff] }
0x266d   : > { %v10519_v13 = vadd.f32 %v7346_v60, %v10506_v29  ;;  %v9679_v29 = vld [vmem:[#allocation2 + $0x10d8] sm:$0xff]  ;;  %v9730_v60 = vld [vmem:[#allocation2 + $0x1140] sm:$0xff] }
0x26aa   : > { %v7417_v28 = vpop.f32.mrf.mxu1 }
0x26ac   : > { %v7419_v14 = vpop.f32.mrf.mxu1 }
0x26ad   : > { %7927 = vmatprep.subr.msk.mxu0 %vm519_vm0, %v7419_v14  ;;  %v9732_v14 = vld [vmem:[#allocation2 + $0x1130] sm:$0xff] }
0x26ae   : > { %7928 = vmatpush1.msk.msra.mxu0 %vm519_vm0, %v7417_v28  ;;  %v9731_v28 = vld [vmem:[#allocation2 + $0x1138] sm:$0xff] }
0x26af   : > { %7929 = vmatmul.mubr.msk.f32.vlgmr.msra.gmra.mxu0 %vm515_vm1, %v9674_v20  ;;  %7501 = vmatprep.subr.mxu0 %v9675_v62  ;;  %v9733_v20 = vld [vmem:[#allocation2 + $0x1128] sm:$0xff]  ;;  %v9734_v62 = vld [vmem:[#allocation2 + $0x1120] sm:$0xff] }
0x26b0   : > { %7502 = vmatpush1.msra.mxu0 %v9676_v4  ;;  %7565 = vmatprep.mubr.f32.mxu0 %v10405_v53  ;;  %v9687_v53 = vld [vmem:[#allocation2 + $0x1098] sm:$0xff] }
0x26b1   : > { %7503 = vmatprep.subr.mxu0 %v9677_v22  ;;  %v9735_v4 = vld [vmem:[#allocation2 + $0x1118] sm:$0xff]  ;;  %v9736_v22 = vld [vmem:[#allocation2 + $0x1110] sm:$0xff] }
0x26b2   : > { %7504 = vmatpush1.msra.mxu0 %v9678_v1  ;;  %v9737_v1 = vld [vmem:[#allocation2 + $0x1108] sm:$0xff] }
0x26b3   : > { %7505 = vmatprep.subr.mxu0 %v9679_v29  ;;  %v9738_v29 = vld [vmem:[#allocation2 + $0x1100] sm:$0xff] }
0x26b4   : > { %7506 = vmatpush1.msra.mxu0 %v9680_v25 }
0x26b5   : > { %7507 = vmatprep.subr.mxu0 %v9681_v24 }
0x26b6   : > { %7508 = vmatpush1.msra.mxu0 %v9682_v17 }
0x26b7   : > { %7509 = vmatprep.subr.mxu0 %v9683_v6 }
0x26b8   : > { %7510 = vmatpush1.msra.mxu0 %v9684_v52 }
0x26b9   : > { %7511 = vmatprep.subr.mxu0 %v9685_v54 }
0x26ba   : > { %7512 = vmatpush1.msra.mxu0 %v9686_v37  ;;  %v9739_v37 = vld [vmem:[%s9965_s11 + $0x20] sm:$0xf] }
0x26bb   : > { %7513 = vmatprep.subr.mxu0 %v9687_v53 }
0x26bc   : > { %7514 = vmatpush1.msra.mxu0 %v9688_v32 }
0x26bd   : > { %7515 = vmatprep.subr.mxu0 %v9689_v38 }
0x26be   : > { %7516 = vmatpush1.msra.mxu0 %v9690_v45 }
0x26bf   : > { %7517 = vmatprep.subr.mxu0 %v9691_v33 }
0x26c0   : > { %7518 = vmatpush1.msra.mxu0 %v9692_v46 }
0x26c1   : > { %7519 = vmatprep.subr.mxu0 %v9693_v21 }
0x26c2   : > { %7520 = vmatpush1.msra.mxu0 %v9694_v34 }
0x26c3   : > { %7521 = vmatprep.subr.mxu0 %v9695_v58 }
0x26c4   : > { %7522 = vmatpush1.msra.mxu0 %v9696_v59  ;;  %v6285_v59 = vpop.xlane.xlu0 %6284 }
0x26c5   : > { %7523 = vmatprep.subr.mxu0 %v9697_v61 }
0x26c6   : > { %7524 = vmatpush1.msra.mxu0 %v9698_v63 }
0x26c7   : > { %7525 = vmatprep.subr.mxu0 %v9699_v27 }
0x26c8   : > { %7526 = vmatpush1.msra.mxu0 %v9700_v31  ;;  %v6293_v61 = vpop.xlane.xlu0 %6292 }
0x26c9   : > { %7527 = vmatprep.subr.mxu0 %v9701_v36 }
0x26ca   : > { %7528 = vmatpush1.msra.mxu0 %v9702_v42 }
0x26cb   : > { %7529 = vmatprep.subr.mxu0 %v9703_v43 }
0x26cc   : > { %7530 = vmatpush1.msra.mxu0 %v9704_v44 }
0x26cd   : > { %7531 = vmatprep.subr.mxu0 %v9705_v0 }
0x26ce   : > { %7532 = vmatpush1.msra.mxu0 %v9706_v16 }
0x26cf   : > { %7533 = vmatprep.subr.mxu0 %v9707_v5  ;;  %v7806_v5 = vld [vmem:[%s9970_s14 + $0x10] sm:$0xf] }
0x26d0   : > { %7534 = vmatpush2.msra.mxu0 %v9708_v7 }
0x26d1   : > { %7535 = vmatprep.subr.mxu0 %v9709_v11 }
0x26d2   : > { %7536 = vmatpush2.msra.mxu0 %v9710_v12  ;;  %v7807_v12 = vld [vmem:[%s9970_s14 + $0x14] sm:$0xf] }
0x26d3   : > { %7537 = vmatprep.subr.mxu0 %v9711_v35 }
0x26d4   : > { %7538 = vmatpush2.msra.mxu0 %v9712_v15 }
0x26d5   : > { %7539 = vmatprep.subr.mxu0 %v9713_v18 }
0x26d6   : > { %7540 = vmatpush2.msra.mxu0 %v9714_v39 }
0x26d7   : > { %7541 = vmatprep.subr.mxu0 %v9715_v57 }
0x26d8   : > { %7542 = vmatpush2.msra.mxu0 %v9716_v41 }
0x26d9   : > { %7543 = vmatprep.subr.mxu0 %v9717_v19 }
0x26da   : > { %7544 = vmatpush2.msra.mxu0 %v9718_v2 }
0x26db   : > { %7545 = vmatprep.subr.mxu0 %v9719_v30 }
0x26dc   : > { %7546 = vmatpush2.msra.mxu0 %v9720_v51 }
0x26dd   : > { %7547 = vmatprep.subr.mxu0 %v9721_v47 }
0x26de   : > { %7548 = vmatpush2.msra.mxu0 %v9722_v48 }
0x26df   : > { %7549 = vmatprep.subr.mxu0 %v9723_v9 }
0x26e0   : > { %7550 = vmatpush2.msra.mxu0 %v9724_v50 }
0x26e1   : > { %7551 = vmatprep.subr.mxu0 %v9725_v49 }
0x26e2   : > { %7552 = vmatpush2.msra.mxu0 %v9726_v3 }
0x26e3   : > { %7553 = vmatprep.subr.mxu0 %v9727_v10  ;;  %v9740_v10 = vld [vmem:[%s10563_s7] sm:$0xff] }
0x26e4   : > { %7554 = vmatpush2.msra.mxu0 %v9728_v40 }
0x26e5   : > { %7555 = vmatprep.subr.mxu0 %v9729_v23 }
0x26e6   : > { %7556 = vmatpush2.msra.mxu0 %v9730_v60 }
0x26e7   : > { %7557 = vmatprep.subr.mxu0 %v9731_v28 }
0x26e8   : > { %7558 = vmatpush2.msra.mxu0 %v9732_v14 }
0x26e9   : > { %7559 = vmatprep.subr.mxu0 %v9733_v20 }
0x26ea   : > { %7560 = vmatpush2.msra.mxu0 %v9734_v62 }
0x26eb   : > { %7561 = vmatprep.subr.mxu0 %v9735_v4 }
0x26ec   : > { %7562 = vmatpush2.msra.mxu0 %v9736_v22 }
0x26ed   : > { %7563 = vmatprep.subr.mxu0 %v9737_v1 }
0x26ee   : > { %7564 = vmatpush2.msra.mxu0 %v9738_v29 }
0x26ef   : > { %7566 = vmatmul.mubr.f32.vlgmr.msra.gmra.mxu0 %v10410_v8 }
0x276f   : > { %v7494_v25 = vpop.f32.mrf.mxu0 }
0x2770   : > { %v7499_v24 = vadd.f32 %v7494_v25, %v10516_v26 }
0x2771   : > { %v7496_v17 = vpop.f32.mrf.mxu0 }
0x2772   : > { %v7500_v6 = vadd.f32 %v7496_v17, %v10519_v13 }
0x27af   : > { %v7567_v52 = vpop.f32.mrf.mxu0 }
0x27b1   : > { %v7569_v54 = vpop.f32.mrf.mxu0 }
0x27b2   : > { %7930 = vmatprep.subr.msk.mxu1 %vm519_vm0, %v7569_v54 }
0x27b3   : > { %7931 = vmatpush1.msk.msra.mxu1 %vm519_vm0, %v7567_v52 }
0x27b4   : > { %7932 = vmatmul.mubr.msk.f32.vlgmr.msra.gmra.mxu1 %vm515_vm1, %v9739_v37 }
0x2874   : > { %v7644_v53 = vpop.f32.mrf.mxu1 }
0x2875   : > { %v7649_v32 = vadd.f32 %v7644_v53, %v7499_v24 }
0x2876   : > { %v7646_v38 = vpop.f32.mrf.mxu1 }
0x2877   : > { %v7650_v45 = vadd.f32 %v7646_v38, %v7500_v6  ;;  %v7657_v8 = vmul.f32 %v7649_v32, %v7649_v32  ;;  %v7651_v33 = vsel %vm519_vm0, %v7649_v32, 0.0 }
0x2879   : > { %v7652_v26 = vsel %vm519_vm0, %v7650_v45, 0.0  ;;  %v7658_v46 = vmul.f32 %v7650_v45, %v7650_v45  ;;  %v7659_v21 = vsel %vm519_vm0, %v7657_v8, 0.0 }
0x287a   : > { %v7653_v13 = vadd.f32 %v7652_v26, %v7651_v33 }
0x287b   : > { %v7660_v34 = vsel %vm519_vm0, %v7658_v46, 0.0 }
0x287c   : > { %7654 = vadd.xlane.f32.xlu1 %v7653_v13  ;;  %v7661_v58 = vadd.f32 %v7660_v34, %v7659_v21 }
0x287e   : > { %7662 = vadd.xlane.f32.xlu0 %v7661_v58 }
0x2905   : > { %v7655_v63 = vpop.xlane.xlu1 %7654 }
0x2906   : > { %v7656_v27 = vadd.f32 %v7655_v63, %v6285_v59 }
0x2907   : > { %v7663_v31 = vpop.xlane.xlu0 %7662 }
0x2908   : > { %v7665_v36 = vmul.f32 0.001953125, %v7656_v27  ;;  %v7664_v42 = vadd.f32 %v7663_v31, %v6293_v61 }
0x290a   : > { %v7667_v43 = vmul.f32 %v7665_v36, %v7665_v36  ;;  %v7666_v44 = vmul.f32 0.001953125, %v7664_v42  ;;  %v7672_v15 = vsub.f32 %v10415_v55, %v7665_v36  ;;  %v7673_v18 = vsub.f32 %v10418_v56, %v7665_v36  ;;  %v9741_v56 = vld [vmem:[%s10563_s7 + $0x8] sm:$0xff] }
0x290b   : > { %v7688_v39 = vsub.f32 %v7649_v32, %v7665_v36  ;;  %v7689_v57 = vsub.f32 %v7650_v45, %v7665_v36 }
0x290c   : > { %v7668_v0 = vsub.f32 %v7666_v44, %v7667_v43 }
0x290e   : > { %v7669_v16 = vadd.f32 1e-05, %v7668_v0 }
0x2910   : > { %7989 = vrsqrt.f32 %v7669_v16 }
0x291d   : > { %v7990_v7 = vpop.eup %7989 }
0x291e   : > { %v7671_v11 = vmul.f32 %v7990_v7, %v7806_v5 }
0x2920   : > { %7676 = vperm.xlu0 %7983, %v7671_v11  }
0x2924   : > { %7683 = vperm.xlu0 %7983, %v7807_v12  }
0x299b   : > { %v7677_v35 = vpop.permute.xlu0 %7676 }
0x299c   : > { %v7679_v41 = vmul.f32 %v7677_v35, %v7672_v15  ;;  %v7680_v19 = vmul.f32 %v7677_v35, %v7673_v18  ;;  %v7690_v2 = vmul.f32 %v7688_v39, %v7677_v35  ;;  %v7691_v30 = vmul.f32 %v7689_v57, %v7677_v35 }
0x299f   : > { %v7684_v51 = vpop.permute.xlu0 %7683 }
0x29a0   : > { %v7686_v47 = vadd.f32 %v7684_v51, %v7679_v41  ;;  %v7687_v48 = vadd.f32 %v7684_v51, %v7680_v19  ;;  %v7692_v9 = vadd.f32 %v7690_v2, %v7684_v51  ;;  %v7693_v50 = vadd.f32 %v7691_v30, %v7684_v51 }
0x29a2   : > { %v7696_v49 = vcombine.low %v7686_v47, %v7687_v48  ;;  %v7702_v3 = vcombine.low %v7692_v9, %v7693_v50 }
0x29a4   : > { %v7698_v55 = vadd.f32 %v9740_v10, %v7696_v49  ;;  %v7704_v40 = vadd.f32 %v9741_v56, %v7702_v3 }
0x29a6   : > { %7699 = vst [vmem:[%s10563_s7] sm:$0xff] %v7698_v55  ;;  %7933 = vst [vmem:[%s10563_s7 + $0x8] sm:$0xff] %v7704_v40 }
0x29a7 PF: > { %s19_s24 = sadd.s32 1, %s9834_s24  }
0x29a8   : > { %p16_p2 = scmp.ge.s32.totalorder %s19_s24, 4  }
0x29aa   :  { %18 = sbr.rel (!%p16_p2) target bundleno = 2 (0x2), region = 127 }
0x29af   :  { %7717 = vsyncpa [#allocation3], 1 }
0x29b0   :  { %7719 = vsyncpa [#allocation3 + $0x1], 1 }
0x29b1   :  { %7720 = vsyncpa [#allocation5], 1 }

</bundles_post_ra>
